<compile_context>
chip_gen: v5e
topology: v5e:2x2
jax: 0.10.0
libtpu: 0.0.40
codegen_flags: <defaults>
</compile_context>

<pallas_src>
import functools

import jax
import jax.numpy as jnp
from jax import lax
from jax.experimental import pallas as pl
from jax.experimental.pallas import tpu as pltpu

EPS = 1e-5


def fused_kernel(x191_ref, w1s_ref, gamma_ref, beta_ref, x185_hbm, w2_hbm,
                 out_ref, x185_buf, w2_buf, sems, *, inv_m):
    # Kick off DMAs for the residual and the second conv weight immediately;
    # they hide entirely under conv1 + the BN statistics below.
    x185_cp = pltpu.make_async_copy(x185_hbm, x185_buf, sems.at[0])
    w2_cp = pltpu.make_async_copy(w2_hbm, w2_buf, sems.at[1])
    x185_cp.start()
    w2_cp.start()

    # 1x1 conv #1 with the x196 scale pre-folded into the weight:
    #   x198[o, m] = sum_c (w1[o, c] * scale[c]) * x191[c, m]
    # x191 arrives already in bf16; MXU with f32 accumulation.
    x198 = jnp.dot(w1s_ref[...], x191_ref[...],
                   preferred_element_type=jnp.float32)

    # Training-mode BatchNorm statistics over the N*H*W (lane) axis, one pass:
    # mean = E[x], var = E[x^2] - mean^2 (biased, matches PyTorch training BN).
    s1 = jnp.sum(x198, axis=1, keepdims=True)
    s2 = jnp.sum(x198 * x198, axis=1, keepdims=True)
    mean = s1 * inv_m
    var = jnp.maximum(s2 * inv_m - mean * mean, 0.0)

    # Per-channel affine form of BN:  x199 = a * x198 + b.
    a = gamma_ref[...] * lax.rsqrt(var + EPS)
    b = beta_ref[...] - mean * a

    # Residual add + ReLU (f32) — wait for x185 only now.
    x185_cp.wait()
    x201 = jnp.maximum(x185_buf[...] + x198 * a + b, 0.0)

    # 1x1 conv #2 (bf16 MXU operands, f32 accumulation), bf16 writeback.
    w2_cp.wait()
    out_ref[...] = jnp.dot(
        w2_buf[...], x201.astype(jnp.bfloat16),
        preferred_element_type=jnp.float32,
    ).astype(out_ref.dtype)


def module_forward(x196, x191, x185, w1, gamma, beta, w2):
    """x196: (1,C,1,1), x191/x185: (1,C,H,W), w1/w2: (C,C,1,1), gamma/beta: (C,).

    Returns x202 in bf16 (accuracy is already bounded by the bf16 MXU
    operands; halves the HBM writeback of this bandwidth-bound kernel).
    """
    N, C, H, W = x191.shape
    assert N == 1, "module is defined for batch size 1"
    M = N * H * W

    # Pure reshapes (no data movement): contiguous NCHW with N==1 -> (C, M).
    # x191 is cast to bf16 in the wrapper (fuses with the upstream producer);
    # it is only ever a bf16 MXU operand inside the kernel.
    x191_cm = x191.reshape(C, M).astype(jnp.bfloat16)
    x185_cm = x185.reshape(C, M).astype(jnp.float32)

    # Fold x196 into W1 (diag(scale) applied on the input-channel axis).
    scale = x196.reshape(1, C).astype(jnp.float32)
    w1s = (w1.reshape(C, C).astype(jnp.float32) * scale).astype(jnp.bfloat16)
    w2m = w2.reshape(C, C).astype(jnp.bfloat16)

    gamma2 = gamma.reshape(C, 1).astype(jnp.float32)
    beta2 = beta.reshape(C, 1).astype(jnp.float32)

    vmem = pl.BlockSpec(memory_space=pltpu.MemorySpace.VMEM)
    anymem = pl.BlockSpec(memory_space=pl.ANY)
    kernel = functools.partial(fused_kernel, inv_m=1.0 / float(M))
    out_cm = pl.pallas_call(
        kernel,
        out_shape=jax.ShapeDtypeStruct((C, M), jnp.bfloat16),
        in_specs=[vmem, vmem, vmem, vmem, anymem, anymem],
        out_specs=vmem,
        scratch_shapes=[
            pltpu.VMEM((C, M), jnp.float32),     # x185 landing buffer
            pltpu.VMEM((C, C), jnp.bfloat16),    # w2 landing buffer
            pltpu.SemaphoreType.DMA((2,)),
        ],
    )(x191_cm, w1s, gamma2, beta2, x185_cm, w2m)

    return out_cm.reshape(N, C, H, W)


def reference_forward(x196, x191, x185, w1, gamma, beta, w2):
    """Pure-JAX f32 reference with the module's NCHW semantics."""
    C = x191.shape[1]
    x197 = x196 * x191
    x198 = jnp.einsum("nchw,oc->nohw", x197, w1.reshape(C, C))
    mean = jnp.mean(x198, axis=(0, 2, 3), keepdims=True)
    var = jnp.mean((x198 - mean) ** 2, axis=(0, 2, 3), keepdims=True)
    x199 = (x198 - mean) / jnp.sqrt(var + EPS)
    x199 = x199 * gamma.reshape(1, C, 1, 1) + beta.reshape(1, C, 1, 1)
    x201 = jnp.maximum(x185 + x199, 0.0)
    return jnp.einsum("nchw,oc->nohw", x201, w2.reshape(C, C))


if __name__ == "__main__":
    # Actual module shapes (already small): C=336, H=W=14, N=1.
    N, C, H, W = 1, 336, 14, 14

    key = jax.random.PRNGKey(0)
    k1, k2, k3, k4, k5, k6, k7 = jax.random.split(key, 7)

    x196 = jax.random.normal(k1, (N, C, 1, 1), dtype=jnp.float32)
    x191 = jax.random.normal(k2, (N, C, H, W), dtype=jnp.float32)
    x185 = jax.random.normal(k3, (N, C, H, W), dtype=jnp.float32)

    # Deterministic synthetic parameters (Conv2d 1x1 weights, BN affine params).
    w1 = jax.random.normal(k4, (C, C, 1, 1), dtype=jnp.float32) * 0.05
    w2 = jax.random.normal(k5, (C, C, 1, 1), dtype=jnp.float32) * 0.05
    gamma = 1.0 + 0.1 * jax.random.normal(k6, (C,), dtype=jnp.float32)
    beta = 0.1 * jax.random.normal(k7, (C,), dtype=jnp.float32)

    out = module_forward(x196, x191, x185, w1, gamma, beta, w2)
    out = jax.block_until_ready(out)

    ref = reference_forward(x196, x191, x185, w1, gamma, beta, w2)
    assert out.shape == (N, C, H, W)
    # Tolerance reflects intentional bf16 matmul operands + bf16 output
    # (f32 accumulation); structural bugs would produce O(1) errors.
    assert jnp.allclose(out.astype(jnp.float32), ref, atol=5e-2, rtol=5e-2)

    print("KERNEL_OK")
</pallas_src>

<mosaic_0001>
module attributes {stable_mosaic.version = 11 : i64} {
  func.func @fused_kernel(%arg0: memref<336x196xbf16, #tpu.memory_space<vmem>>, %arg1: memref<336x336xbf16, #tpu.memory_space<vmem>>, %arg2: memref<336x1xf32, #tpu.memory_space<vmem>>, %arg3: memref<336x1xf32, #tpu.memory_space<vmem>>, %arg4: memref<336x196xf32, #tpu.memory_space<any>>, %arg5: memref<336x336xbf16, #tpu.memory_space<any>>, %arg6: memref<336x196xbf16, #tpu.memory_space<vmem>>, %arg7: memref<336x196xf32, #tpu.memory_space<vmem>>, %arg8: memref<336x336xbf16, #tpu.memory_space<vmem>>, %arg9: memref<2x!tpu.dma_semaphore, #tpu.memory_space<semaphore_mem>>) attributes {dimension_semantics = [], scalar_prefetch = 0 : i64, scratch_operands = 3 : i64, tpu.core_type = #tpu.core_type<tc>} {
    %c0_i32 = arith.constant 0 : i32
    %0 = tpu.memref_slice %arg9[%c0_i32] : memref<2x!tpu.dma_semaphore, #tpu.memory_space<semaphore_mem>> -> memref<1x!tpu.dma_semaphore, #tpu.memory_space<semaphore_mem>>
    %1 = tpu.memref_squeeze %0 : memref<1x!tpu.dma_semaphore, #tpu.memory_space<semaphore_mem>> -> memref<!tpu.dma_semaphore, #tpu.memory_space<semaphore_mem>>
    tpu.enqueue_dma source(%arg4 : memref<336x196xf32, #tpu.memory_space<any>>) target(%arg7 : memref<336x196xf32, #tpu.memory_space<vmem>>) target_semaphore(%1 : memref<!tpu.dma_semaphore, #tpu.memory_space<semaphore_mem>>)
    %c1_i32 = arith.constant 1 : i32
    %2 = tpu.memref_slice %arg9[%c1_i32] : memref<2x!tpu.dma_semaphore, #tpu.memory_space<semaphore_mem>> -> memref<1x!tpu.dma_semaphore, #tpu.memory_space<semaphore_mem>>
    %3 = tpu.memref_squeeze %2 : memref<1x!tpu.dma_semaphore, #tpu.memory_space<semaphore_mem>> -> memref<!tpu.dma_semaphore, #tpu.memory_space<semaphore_mem>>
    tpu.enqueue_dma source(%arg5 : memref<336x336xbf16, #tpu.memory_space<any>>) target(%arg8 : memref<336x336xbf16, #tpu.memory_space<vmem>>) target_semaphore(%3 : memref<!tpu.dma_semaphore, #tpu.memory_space<semaphore_mem>>)
    %c0 = arith.constant 0 : index
    %c0_0 = arith.constant 0 : index
    %4 = vector.load %arg1[%c0, %c0_0] : memref<336x336xbf16, #tpu.memory_space<vmem>>, vector<336x336xbf16>
    %c0_1 = arith.constant 0 : index
    %c0_2 = arith.constant 0 : index
    %5 = vector.load %arg0[%c0_1, %c0_2] : memref<336x196xbf16, #tpu.memory_space<vmem>>, vector<336x196xbf16>
    %cst = arith.constant dense<0.000000e+00> : vector<336x196xf32>
    %6 = tpu.matmul %4, %5, %cst {dimension_numbers = #tpu.dot_dimension_numbers<[1], [0], [0], [1], [0, 0, 1, 1], [], []>} : vector<336x336xbf16>, vector<336x196xbf16>, vector<336x196xf32> -> vector<336x196xf32>
    %cst_3 = arith.constant dense<0.000000e+00> : vector<336xf32>
    %7 = vector.multi_reduction <add>, %6, %cst_3 [1] : vector<336x196xf32> to vector<336xf32>
    %8 = vector.shape_cast %7 : vector<336xf32> to vector<336x1xf32>
    %9 = arith.mulf %6, %6 : vector<336x196xf32>
    %cst_4 = arith.constant dense<0.000000e+00> : vector<336xf32>
    %10 = vector.multi_reduction <add>, %9, %cst_4 [1] : vector<336x196xf32> to vector<336xf32>
    %11 = vector.shape_cast %10 : vector<336xf32> to vector<336x1xf32>
    %cst_5 = arith.constant 0.00510204071 : f32
    %12 = vector.broadcast %cst_5 : f32 to vector<336x1xf32>
    %13 = arith.mulf %8, %12 : vector<336x1xf32>
    %cst_6 = arith.constant 0.00510204071 : f32
    %14 = vector.broadcast %cst_6 : f32 to vector<336x1xf32>
    %15 = arith.mulf %11, %14 : vector<336x1xf32>
    %16 = arith.mulf %13, %13 : vector<336x1xf32>
    %17 = arith.subf %15, %16 : vector<336x1xf32>
    %cst_7 = arith.constant 0.000000e+00 : f32
    %18 = vector.broadcast %cst_7 : f32 to vector<336x1xf32>
    %19 = arith.maximumf %17, %18 : vector<336x1xf32>
    %c0_8 = arith.constant 0 : index
    %c0_9 = arith.constant 0 : index
    %20 = vector.load %arg2[%c0_8, %c0_9] : memref<336x1xf32, #tpu.memory_space<vmem>>, vector<336x1xf32>
    %cst_10 = arith.constant 9.99999974E-6 : f32
    %21 = vector.broadcast %cst_10 : f32 to vector<336x1xf32>
    %22 = arith.addf %19, %21 : vector<336x1xf32>
    %23 = math.rsqrt %22 : vector<336x1xf32>
    %24 = arith.mulf %20, %23 : vector<336x1xf32>
    %c0_11 = arith.constant 0 : index
    %c0_12 = arith.constant 0 : index
    %25 = vector.load %arg3[%c0_11, %c0_12] : memref<336x1xf32, #tpu.memory_space<vmem>>, vector<336x1xf32>
    %26 = arith.mulf %13, %24 : vector<336x1xf32>
    %27 = arith.subf %25, %26 : vector<336x1xf32>
    %c0_i32_13 = arith.constant 0 : i32
    %28 = tpu.memref_slice %arg9[%c0_i32_13] : memref<2x!tpu.dma_semaphore, #tpu.memory_space<semaphore_mem>> -> memref<1x!tpu.dma_semaphore, #tpu.memory_space<semaphore_mem>>
    %29 = tpu.memref_squeeze %28 : memref<1x!tpu.dma_semaphore, #tpu.memory_space<semaphore_mem>> -> memref<!tpu.dma_semaphore, #tpu.memory_space<semaphore_mem>>
    tpu.wait_dma2 semaphore(%29 : memref<!tpu.dma_semaphore, #tpu.memory_space<semaphore_mem>>) src(%arg4 : memref<336x196xf32, #tpu.memory_space<any>>) dst(%arg7 : memref<336x196xf32, #tpu.memory_space<vmem>>)
    %c0_14 = arith.constant 0 : index
    %c0_15 = arith.constant 0 : index
    %30 = vector.load %arg7[%c0_14, %c0_15] : memref<336x196xf32, #tpu.memory_space<vmem>>, vector<336x196xf32>
    %31 = vector.broadcast %24 : vector<336x1xf32> to vector<336x196xf32>
    %32 = arith.mulf %6, %31 : vector<336x196xf32>
    %33 = arith.addf %30, %32 : vector<336x196xf32>
    %34 = vector.broadcast %27 : vector<336x1xf32> to vector<336x196xf32>
    %35 = arith.addf %33, %34 : vector<336x196xf32>
    %cst_16 = arith.constant 0.000000e+00 : f32
    %36 = vector.broadcast %cst_16 : f32 to vector<336x196xf32>
    %37 = arith.maximumf %35, %36 : vector<336x196xf32>
    %c1_i32_17 = arith.constant 1 : i32
    %38 = tpu.memref_slice %arg9[%c1_i32_17] : memref<2x!tpu.dma_semaphore, #tpu.memory_space<semaphore_mem>> -> memref<1x!tpu.dma_semaphore, #tpu.memory_space<semaphore_mem>>
    %39 = tpu.memref_squeeze %38 : memref<1x!tpu.dma_semaphore, #tpu.memory_space<semaphore_mem>> -> memref<!tpu.dma_semaphore, #tpu.memory_space<semaphore_mem>>
    tpu.wait_dma2 semaphore(%39 : memref<!tpu.dma_semaphore, #tpu.memory_space<semaphore_mem>>) src(%arg5 : memref<336x336xbf16, #tpu.memory_space<any>>) dst(%arg8 : memref<336x336xbf16, #tpu.memory_space<vmem>>)
    %c0_18 = arith.constant 0 : index
    %c0_19 = arith.constant 0 : index
    %40 = vector.load %arg8[%c0_18, %c0_19] : memref<336x336xbf16, #tpu.memory_space<vmem>>, vector<336x336xbf16>
    %41 = arith.truncf %37 : vector<336x196xf32> to vector<336x196xbf16>
    %cst_20 = arith.constant dense<0.000000e+00> : vector<336x196xf32>
    %42 = tpu.matmul %40, %41, %cst_20 {dimension_numbers = #tpu.dot_dimension_numbers<[1], [0], [0], [1], [0, 0, 1, 1], [], []>} : vector<336x336xbf16>, vector<336x196xbf16>, vector<336x196xf32> -> vector<336x196xf32>
    %43 = arith.truncf %42 : vector<336x196xf32> to vector<336x196xbf16>
    %c0_21 = arith.constant 0 : index
    %c0_22 = arith.constant 0 : index
    %44 = vector.load %arg6[%c0_21, %c0_22] : memref<336x196xbf16, #tpu.memory_space<vmem>>, vector<336x196xbf16>
    tpu.vector_store %arg6[%c0_21, %c0_22], %43 {strides = array<i32>} : memref<336x196xbf16, #tpu.memory_space<vmem>>, vector<336x196xbf16>,
    return
  }
}

</mosaic_0001>

<bundles_post_ra>
// kernel: tpu_custom_call.1
= control target key start
LH: loop header
LB: loop body
LE: loop exit
PB: predicated region body
PF: predicated region fallthrough
CT: control target
= control target key end

     0   :  { %s10872_s0 = inlined_call_operand.vmem [shape: bf16[336,196], index: 0, kind: input, shape index: {}]   ;;  %s10873_s1 = inlined_call_operand.vmem [shape: bf16[336,336], index: 1, kind: input, shape index: {}]   ;;  %s10874_s2 = inlined_call_operand.vmem [shape: f32[336,1], index: 2, kind: input, shape index: {}]   ;;  %s10875_s3 = inlined_call_operand.vmem [shape: f32[336,1], index: 3, kind: input, shape index: {}]   ;;  %s10876_s4 = inlined_call_operand.vmem [shape: f32[336,196], index: 4, kind: input, shape index: {}]   ;;  %s10877_s5 = inlined_call_operand.vmem [shape: bf16[336,336], index: 5, kind: input, shape index: {}]   ;;  %s10878_s6 = inlined_call_operand.vmem [shape: bf16[336,196], index: 6, kind: output, shape index: {}]  }
   0x1   :  { %v6254_v0 = vld [vmem:[%s10876_s4] sm:$0xff]  ;;  %v6259_v1 = vld [vmem:[%s10876_s4 + $0x8] sm:$0xff]  ;;  %v6264_v2 = vld [vmem:[%s10876_s4 + $0x10] sm:$0xff] }
   0x2   :  { %11130 = vst [vmem:[#allocation9_spill] sm:$0xff] %v6254_v0  ;;  %v6269_v3 = vld [vmem:[%s10876_s4 + $0x18] sm:$0xff]  ;;  %v6274_v4 = vld [vmem:[%s10876_s4 + $0x20] sm:$0xff]  ;;  %v6279_v5 = vld [vmem:[%s10876_s4 + $0x28] sm:$0xff] }
   0x3   :  { %11131 = vst [vmem:[#allocation10_spill] sm:$0xff] %v6259_v1  ;;  %v6284_v6 = vld [vmem:[%s10876_s4 + $0x30] sm:$0xff]  ;;  %v6289_v7 = vld [vmem:[%s10876_s4 + $0x38] sm:$0xff]  ;;  %v6294_v8 = vld [vmem:[%s10876_s4 + $0x40] sm:$0xff] }
   0x4   :  { %11132 = vst [vmem:[#allocation11_spill] sm:$0xff] %v6264_v2  ;;  %v6299_v9 = vld [vmem:[%s10876_s4 + $0x48] sm:$0xff]  ;;  %v6304_v10 = vld [vmem:[%s10876_s4 + $0x50] sm:$0xff]  ;;  %v6309_v11 = vld [vmem:[%s10876_s4 + $0x58] sm:$0xff] }
   0x5   :  { %11133 = vst [vmem:[#allocation12_spill] sm:$0xff] %v6269_v3  ;;  %v6314_v12 = vld [vmem:[%s10876_s4 + $0x60] sm:$0xff]  ;;  %v6319_v13 = vld [vmem:[%s10876_s4 + $0x68] sm:$0xff]  ;;  %v6324_v14 = vld [vmem:[%s10876_s4 + $0x70] sm:$0xff] }
   0x6   :  { %11134 = vst [vmem:[#allocation13_spill] sm:$0xff] %v6274_v4  ;;  %v6329_v15 = vld [vmem:[%s10876_s4 + $0x78] sm:$0xff]  ;;  %v6334_v16 = vld [vmem:[%s10876_s4 + $0x80] sm:$0xff]  ;;  %v6339_v17 = vld [vmem:[%s10876_s4 + $0x88] sm:$0xff] }
   0x7   :  { %11135 = vst [vmem:[#allocation14_spill] sm:$0xff] %v6279_v5  ;;  %v6344_v18 = vld [vmem:[%s10876_s4 + $0x90] sm:$0xff]  ;;  %v6349_v19 = vld [vmem:[%s10876_s4 + $0x98] sm:$0xff]  ;;  %v6354_v20 = vld [vmem:[%s10876_s4 + $0xa0] sm:$0xff] }
   0x8   :  { %11136 = vst [vmem:[#allocation15_spill] sm:$0xff] %v6284_v6  ;;  %v6359_v21 = vld [vmem:[%s10876_s4 + $0xa8] sm:$0xff]  ;;  %v6364_v22 = vld [vmem:[%s10876_s4 + $0xb0] sm:$0xff]  ;;  %v6369_v23 = vld [vmem:[%s10876_s4 + $0xb8] sm:$0xff] }
   0x9   :  { %11137 = vst [vmem:[#allocation16_spill] sm:$0xff] %v6289_v7  ;;  %v6374_v24 = vld [vmem:[%s10876_s4 + $0xc0] sm:$0xff]  ;;  %v6379_v25 = vld [vmem:[%s10876_s4 + $0xc8] sm:$0xff]  ;;  %v6384_v26 = vld [vmem:[%s10876_s4 + $0xd0] sm:$0xff] }
   0xa   :  { %11138 = vst [vmem:[#allocation17_spill] sm:$0xff] %v6294_v8  ;;  %v6389_v27 = vld [vmem:[%s10876_s4 + $0xd8] sm:$0xff]  ;;  %v6394_v28 = vld [vmem:[%s10876_s4 + $0xe0] sm:$0xff]  ;;  %v6399_v29 = vld [vmem:[%s10876_s4 + $0xe8] sm:$0xff] }
   0xb   :  { %11139 = vst [vmem:[#allocation18_spill] sm:$0xff] %v6299_v9  ;;  %v6404_v30 = vld [vmem:[%s10876_s4 + $0xf0] sm:$0xff]  ;;  %v6409_v31 = vld [vmem:[%s10876_s4 + $0xf8] sm:$0xff]  ;;  %v6414_v32 = vld [vmem:[%s10876_s4 + $0x100] sm:$0xff] }
   0xc   :  { %11140 = vst [vmem:[#allocation19_spill] sm:$0xff] %v6304_v10  ;;  %v6419_v33 = vld [vmem:[%s10876_s4 + $0x108] sm:$0xff]  ;;  %v6424_v34 = vld [vmem:[%s10876_s4 + $0x110] sm:$0xff]  ;;  %v6429_v35 = vld [vmem:[%s10876_s4 + $0x118] sm:$0xff] }
   0xd   :  { %11141 = vst [vmem:[#allocation20_spill] sm:$0xff] %v6309_v11  ;;  %v6434_v36 = vld [vmem:[%s10876_s4 + $0x120] sm:$0xff]  ;;  %v6439_v37 = vld [vmem:[%s10876_s4 + $0x128] sm:$0xff]  ;;  %v6444_v38 = vld [vmem:[%s10876_s4 + $0x130] sm:$0xff] }
   0xe   :  { %11142 = vst [vmem:[#allocation21_spill] sm:$0xff] %v6314_v12  ;;  %v6449_v39 = vld [vmem:[%s10876_s4 + $0x138] sm:$0xff]  ;;  %v6454_v40 = vld [vmem:[%s10876_s4 + $0x140] sm:$0xff]  ;;  %v6459_v41 = vld [vmem:[%s10876_s4 + $0x148] sm:$0xff] }
   0xf   :  { %11143 = vst [vmem:[#allocation22_spill] sm:$0xff] %v6319_v13  ;;  %v6464_v42 = vld [vmem:[%s10876_s4 + $0x150] sm:$0xff]  ;;  %v6469_v43 = vld [vmem:[%s10876_s4 + $0x158] sm:$0xff]  ;;  %v6474_v44 = vld [vmem:[%s10876_s4 + $0x160] sm:$0xff] }
  0x10   :  { %11144 = vst [vmem:[#allocation23_spill] sm:$0xff] %v6324_v14  ;;  %v6479_v45 = vld [vmem:[%s10876_s4 + $0x168] sm:$0xff]  ;;  %v6484_v46 = vld [vmem:[%s10876_s4 + $0x170] sm:$0xff]  ;;  %v6489_v47 = vld [vmem:[%s10876_s4 + $0x178] sm:$0xff] }
  0x11   :  { %11145 = vst [vmem:[#allocation24_spill] sm:$0xff] %v6329_v15  ;;  %v6494_v48 = vld [vmem:[%s10876_s4 + $0x180] sm:$0xff]  ;;  %v6499_v49 = vld [vmem:[%s10876_s4 + $0x188] sm:$0xff]  ;;  %v6504_v50 = vld [vmem:[%s10876_s4 + $0x190] sm:$0xff] }
  0x12   :  { %11146 = vst [vmem:[#allocation25_spill] sm:$0xff] %v6334_v16  ;;  %v6509_v51 = vld [vmem:[%s10876_s4 + $0x198] sm:$0xff]  ;;  %v6514_v52 = vld [vmem:[%s10876_s4 + $0x1a0] sm:$0xff]  ;;  %v6519_v53 = vld [vmem:[%s10876_s4 + $0x1a8] sm:$0xff] }
  0x13   :  { %11147 = vst [vmem:[#allocation26_spill] sm:$0xff] %v6339_v17  ;;  %v6524_v54 = vld [vmem:[%s10876_s4 + $0x1b0] sm:$0xff]  ;;  %v6529_v55 = vld [vmem:[%s10876_s4 + $0x1b8] sm:$0xff]  ;;  %v6534_v56 = vld [vmem:[%s10876_s4 + $0x1c0] sm:$0xff] }
  0x14   :  { %11148 = vst [vmem:[#allocation27_spill] sm:$0xff] %v6344_v18  ;;  %v6539_v57 = vld [vmem:[%s10876_s4 + $0x1c8] sm:$0xff]  ;;  %v6544_v58 = vld [vmem:[%s10876_s4 + $0x1d0] sm:$0xff]  ;;  %v6549_v59 = vld [vmem:[%s10876_s4 + $0x1d8] sm:$0xff] }
  0x15   :  { %11149 = vst [vmem:[#allocation28_spill] sm:$0xff] %v6349_v19  ;;  %v6554_v60 = vld [vmem:[%s10876_s4 + $0x1e0] sm:$0xff]  ;;  %v6559_v61 = vld [vmem:[%s10876_s4 + $0x1e8] sm:$0xff]  ;;  %v6564_v62 = vld [vmem:[%s10876_s4 + $0x1f0] sm:$0xff] }
  0x16   :  { %11150 = vst [vmem:[#allocation29_spill] sm:$0xff] %v6354_v20  ;;  %v6569_v63 = vld [vmem:[%s10876_s4 + $0x1f8] sm:$0xff] }
  0x17   :  { %11151 = vst [vmem:[#allocation30_spill] sm:$0xff] %v6359_v21 }
  0x18   :  { %11152 = vst [vmem:[#allocation31_spill] sm:$0xff] %v6364_v22 }
  0x19   :  { %11153 = vst [vmem:[#allocation32_spill] sm:$0xff] %v6369_v23 }
  0x1a   :  { %11154 = vst [vmem:[#allocation33_spill] sm:$0xff] %v6374_v24 }
  0x1b   :  { %11155 = vst [vmem:[#allocation34_spill] sm:$0xff] %v6379_v25 }
  0x1c   :  { %11156 = vst [vmem:[#allocation35_spill] sm:$0xff] %v6384_v26 }
  0x1d   :  { %11157 = vst [vmem:[#allocation36_spill] sm:$0xff] %v6389_v27 }
  0x1e   :  { %11158 = vst [vmem:[#allocation37_spill] sm:$0xff] %v6394_v28 }
  0x1f   :  { %11159 = vst [vmem:[#allocation38_spill] sm:$0xff] %v6399_v29 }
  0x20   :  { %11160 = vst [vmem:[#allocation39_spill] sm:$0xff] %v6404_v30 }
  0x21   :  { %11161 = vst [vmem:[#allocation40_spill] sm:$0xff] %v6409_v31 }
  0x22   :  { %11162 = vst [vmem:[#allocation41_spill] sm:$0xff] %v6414_v32 }
  0x23   :  { %11163 = vst [vmem:[#allocation42_spill] sm:$0xff] %v6419_v33 }
  0x24   :  { %11164 = vst [vmem:[#allocation43_spill] sm:$0xff] %v6424_v34 }
  0x25   :  { %11165 = vst [vmem:[#allocation44_spill] sm:$0xff] %v6429_v35 }
  0x26   :  { %11166 = vst [vmem:[#allocation45_spill] sm:$0xff] %v6434_v36 }
  0x27   :  { %11167 = vst [vmem:[#allocation46_spill] sm:$0xff] %v6439_v37 }
  0x28   :  { %11168 = vst [vmem:[#allocation47_spill] sm:$0xff] %v6444_v38 }
  0x29   :  { %11169 = vst [vmem:[#allocation48_spill] sm:$0xff] %v6449_v39 }
  0x2a   :  { %11170 = vst [vmem:[#allocation49_spill] sm:$0xff] %v6454_v40 }
  0x2b   :  { %11171 = vst [vmem:[#allocation50_spill] sm:$0xff] %v6459_v41 }
  0x2c   :  { %11172 = vst [vmem:[#allocation51_spill] sm:$0xff] %v6464_v42 }
  0x2d   :  { %11173 = vst [vmem:[#allocation52_spill] sm:$0xff] %v6469_v43 }
  0x2e   :  { %11174 = vst [vmem:[#allocation53_spill] sm:$0xff] %v6474_v44 }
  0x2f   :  { %11175 = vst [vmem:[#allocation54_spill] sm:$0xff] %v6479_v45 }
  0x30   :  { %11176 = vst [vmem:[#allocation55_spill] sm:$0xff] %v6484_v46 }
  0x31   :  { %11177 = vst [vmem:[#allocation56_spill] sm:$0xff] %v6489_v47 }
  0x32   :  { %11178 = vst [vmem:[#allocation57_spill] sm:$0xff] %v6494_v48 }
  0x33   :  { %11179 = vst [vmem:[#allocation58_spill] sm:$0xff] %v6499_v49  ;;  %v6634_v49 = vld [vmem:[%s10876_s4 + $0x260] sm:$0xff] }
  0x34   :  { %11180 = vst [vmem:[#allocation59_spill] sm:$0xff] %v6504_v50 }
  0x35   :  { %11181 = vst [vmem:[#allocation60_spill] sm:$0xff] %v6509_v51 }
  0x36   :  { %11182 = vst [vmem:[#allocation61_spill] sm:$0xff] %v6514_v52 }
  0x37   :  { %11183 = vst [vmem:[#allocation62_spill] sm:$0xff] %v6519_v53 }
  0x38   :  { %11184 = vst [vmem:[#allocation63_spill] sm:$0xff] %v6524_v54  ;;  %v6599_v54 = vld [vmem:[%s10876_s4 + $0x228] sm:$0xff] }
  0x39   :  { %11185 = vst [vmem:[#allocation64_spill] sm:$0xff] %v6529_v55  ;;  %v6574_v55 = vld [vmem:[%s10876_s4 + $0x200] sm:$0xff] }
  0x3a   :  { %11186 = vst [vmem:[#allocation65_spill] sm:$0xff] %v6534_v56  ;;  %v6629_v56 = vld [vmem:[%s10876_s4 + $0x258] sm:$0xff] }
  0x3b   :  { %11187 = vst [vmem:[#allocation66_spill] sm:$0xff] %v6539_v57  ;;  %v6604_v57 = vld [vmem:[%s10876_s4 + $0x230] sm:$0xff] }
  0x3c   :  { %11188 = vst [vmem:[#allocation67_spill] sm:$0xff] %v6544_v58 }
  0x3d   :  { %11189 = vst [vmem:[#allocation68_spill] sm:$0xff] %v6549_v59 }
  0x3e   :  { %11190 = vst [vmem:[#allocation69_spill] sm:$0xff] %v6554_v60  ;;  %v6579_v60 = vld [vmem:[%s10876_s4 + $0x208] sm:$0xff] }
  0x3f   :  { %11191 = vst [vmem:[#allocation70_spill] sm:$0xff] %v6559_v61  ;;  %v6584_v61 = vld [vmem:[%s10876_s4 + $0x210] sm:$0xff] }
  0x40   :  { %11192 = vst [vmem:[#allocation71_spill] sm:$0xff] %v6564_v62  ;;  %v6589_v62 = vld [vmem:[%s10876_s4 + $0x218] sm:$0xff] }
  0x41   :  { %11193 = vst [vmem:[#allocation72_spill] sm:$0xff] %v6569_v63  ;;  %v6594_v63 = vld [vmem:[%s10876_s4 + $0x220] sm:$0xff] }
  0x42   :  { %11194 = vst [vmem:[#allocation73_spill] sm:$0xff] %v6574_v55 }
  0x43   :  { %11195 = vst [vmem:[#allocation74_spill] sm:$0xff] %v6579_v60 }
  0x44   :  { %11196 = vst [vmem:[#allocation75_spill] sm:$0xff] %v6584_v61  ;;  %v6609_v61 = vld [vmem:[%s10876_s4 + $0x238] sm:$0xff] }
  0x45   :  { %11197 = vst [vmem:[#allocation76_spill] sm:$0xff] %v6589_v62  ;;  %v6614_v62 = vld [vmem:[%s10876_s4 + $0x240] sm:$0xff] }
  0x46   :  { %11198 = vst [vmem:[#allocation77_spill] sm:$0xff] %v6594_v63  ;;  %v6619_v63 = vld [vmem:[%s10876_s4 + $0x248] sm:$0xff] }
  0x47   :  { %11199 = vst [vmem:[#allocation78_spill] sm:$0xff] %v6599_v54  ;;  %v6624_v54 = vld [vmem:[%s10876_s4 + $0x250] sm:$0xff] }
  0x48   :  { %11200 = vst [vmem:[#allocation79_spill] sm:$0xff] %v6604_v57 }
  0x49   :  { %11201 = vst [vmem:[#allocation80_spill] sm:$0xff] %v6609_v61 }
  0x4a   :  { %11202 = vst [vmem:[#allocation81_spill] sm:$0xff] %v6614_v62  ;;  %v6639_v62 = vld [vmem:[%s10876_s4 + $0x268] sm:$0xff] }
  0x4b   :  { %11203 = vst [vmem:[#allocation82_spill] sm:$0xff] %v6619_v63  ;;  %v6644_v63 = vld [vmem:[%s10876_s4 + $0x270] sm:$0xff] }
  0x4c   :  { %11204 = vst [vmem:[#allocation83_spill] sm:$0xff] %v6624_v54  ;;  %v6649_v54 = vld [vmem:[%s10876_s4 + $0x278] sm:$0xff] }
  0x4d   :  { %11205 = vst [vmem:[#allocation84_spill] sm:$0xff] %v6629_v56  ;;  %v6654_v56 = vld [vmem:[%s10876_s4 + $0x280] sm:$0xff] }
  0x4e   :  { %11206 = vst [vmem:[#allocation85_spill] sm:$0xff] %v6634_v49  ;;  %v6659_v49 = vld [vmem:[%s10876_s4 + $0x288] sm:$0xff] }
  0x4f   :  { %11207 = vst [vmem:[#allocation86_spill] sm:$0xff] %v6639_v62  ;;  %v6664_v62 = vld [vmem:[%s10876_s4 + $0x290] sm:$0xff] }
  0x50   :  { %11208 = vst [vmem:[#allocation87_spill] sm:$0xff] %v6644_v63  ;;  %v6669_v63 = vld [vmem:[%s10876_s4 + $0x298] sm:$0xff] }
  0x51   :  { %11209 = vst [vmem:[#allocation88_spill] sm:$0xff] %v6649_v54 }
  0x52   :  { %11210 = vst [vmem:[#allocation89_spill] sm:$0xff] %v6654_v56 }
  0x53   :  { %11211 = vst [vmem:[#allocation90_spill] sm:$0xff] %v6659_v49 }
  0x54   :  { %11212 = vst [vmem:[#allocation91_spill] sm:$0xff] %v6664_v62 }
  0x55   :  { %11213 = vst [vmem:[#allocation92_spill] sm:$0xff] %v6669_v63 }
  0x56   :  { %203 = vsyncadd [#allocation4], 10752  ;;  %v215_v54 = vld [vmem:[%s10877_s5] sm:$0xff]  ;;  %v217_v56 = vld [vmem:[%s10877_s5 + $0x8] sm:$0xff] }
  0x57   :  { %216 = vst [vmem:[#allocation3] sm:$0xff] %v215_v54  ;;  %v219_v49 = vld [vmem:[%s10877_s5 + $0x10] sm:$0xff]  ;;  %v221_v62 = vld [vmem:[%s10877_s5 + $0x18] sm:$0xff]  ;;  %v223_v63 = vld [vmem:[%s10877_s5 + $0x20] sm:$0xff] }
  0x58   :  { %218 = vst [vmem:[#allocation3 + $0x8] sm:$0xff] %v217_v56  ;;  %v225_v48 = vld [vmem:[%s10877_s5 + $0x28] sm:$0xff]  ;;  %v227_v54 = vld [vmem:[%s10877_s5 + $0x30] sm:$0xff]  ;;  %v229_v51 = vld [vmem:[%s10877_s5 + $0x38] sm:$0xff] }
  0x59   :  { %220 = vst [vmem:[#allocation3 + $0x10] sm:$0xff] %v219_v49  ;;  %v231_v56 = vld [vmem:[%s10877_s5 + $0x40] sm:$0xff]  ;;  %v233_v49 = vld [vmem:[%s10877_s5 + $0x48] sm:$0xff] }
  0x5a   :  { %222 = vst [vmem:[#allocation3 + $0x18] sm:$0xff] %v221_v62  ;;  %v235_v62 = vld [vmem:[%s10877_s5 + $0x50] sm:$0xff] }
  0x5b   :  { %224 = vst [vmem:[#allocation3 + $0x20] sm:$0xff] %v223_v63  ;;  %v237_v63 = vld [vmem:[%s10877_s5 + $0x58] sm:$0xff] }
  0x5c   :  { %226 = vst [vmem:[#allocation3 + $0x28] sm:$0xff] %v225_v48  ;;  %v239_v48 = vld [vmem:[%s10877_s5 + $0x60] sm:$0xff] }
  0x5d   :  { %228 = vst [vmem:[#allocation3 + $0x30] sm:$0xff] %v227_v54  ;;  %v241_v54 = vld [vmem:[%s10877_s5 + $0x68] sm:$0xff] }
  0x5e   :  { %230 = vst [vmem:[#allocation3 + $0x38] sm:$0xff] %v229_v51  ;;  %v243_v51 = vld [vmem:[%s10877_s5 + $0x70] sm:$0xff] }
  0x5f   :  { %232 = vst [vmem:[#allocation3 + $0x40] sm:$0xff] %v231_v56  ;;  %v245_v56 = vld [vmem:[%s10877_s5 + $0x78] sm:$0xff] }
  0x60   :  { %234 = vst [vmem:[#allocation3 + $0x48] sm:$0xff] %v233_v49  ;;  %v247_v49 = vld [vmem:[%s10877_s5 + $0x80] sm:$0xff] }
  0x61   :  { %236 = vst [vmem:[#allocation3 + $0x50] sm:$0xff] %v235_v62  ;;  %v249_v62 = vld [vmem:[%s10877_s5 + $0x88] sm:$0xff] }
  0x62   :  { %238 = vst [vmem:[#allocation3 + $0x58] sm:$0xff] %v237_v63  ;;  %v251_v63 = vld [vmem:[%s10877_s5 + $0x90] sm:$0xff] }
  0x63   :  { %240 = vst [vmem:[#allocation3 + $0x60] sm:$0xff] %v239_v48  ;;  %v253_v48 = vld [vmem:[%s10877_s5 + $0x98] sm:$0xff] }
  0x64   :  { %242 = vst [vmem:[#allocation3 + $0x68] sm:$0xff] %v241_v54  ;;  %v255_v54 = vld [vmem:[%s10877_s5 + $0xa0] sm:$0xff] }
  0x65   :  { %244 = vst [vmem:[#allocation3 + $0x70] sm:$0xff] %v243_v51  ;;  %v257_v51 = vld [vmem:[%s10877_s5 + $0xa8] sm:$0xff] }
  0x66   :  { %246 = vst [vmem:[#allocation3 + $0x78] sm:$0xff] %v245_v56  ;;  %v259_v56 = vld [vmem:[%s10877_s5 + $0xb0] sm:$0xff] }
  0x67   :  { %248 = vst [vmem:[#allocation3 + $0x80] sm:$0xff] %v247_v49  ;;  %v261_v49 = vld [vmem:[%s10877_s5 + $0xb8] sm:$0xff] }
  0x68   :  { %250 = vst [vmem:[#allocation3 + $0x88] sm:$0xff] %v249_v62  ;;  %v263_v62 = vld [vmem:[%s10877_s5 + $0xc0] sm:$0xff] }
  0x69   :  { %252 = vst [vmem:[#allocation3 + $0x90] sm:$0xff] %v251_v63  ;;  %v265_v63 = vld [vmem:[%s10877_s5 + $0xc8] sm:$0xff] }
  0x6a   :  { %254 = vst [vmem:[#allocation3 + $0x98] sm:$0xff] %v253_v48  ;;  %v267_v48 = vld [vmem:[%s10877_s5 + $0xd0] sm:$0xff] }
  0x6b   :  { %256 = vst [vmem:[#allocation3 + $0xa0] sm:$0xff] %v255_v54  ;;  %v269_v54 = vld [vmem:[%s10877_s5 + $0xd8] sm:$0xff] }
  0x6c   :  { %258 = vst [vmem:[#allocation3 + $0xa8] sm:$0xff] %v257_v51  ;;  %v271_v51 = vld [vmem:[%s10877_s5 + $0xe0] sm:$0xff] }
  0x6d   :  { %260 = vst [vmem:[#allocation3 + $0xb0] sm:$0xff] %v259_v56  ;;  %v273_v56 = vld [vmem:[%s10877_s5 + $0xe8] sm:$0xff] }
  0x6e   :  { %262 = vst [vmem:[#allocation3 + $0xb8] sm:$0xff] %v261_v49  ;;  %v275_v49 = vld [vmem:[%s10877_s5 + $0xf0] sm:$0xff] }
  0x6f   :  { %264 = vst [vmem:[#allocation3 + $0xc0] sm:$0xff] %v263_v62  ;;  %v277_v62 = vld [vmem:[%s10877_s5 + $0xf8] sm:$0xff] }
  0x70   :  { %266 = vst [vmem:[#allocation3 + $0xc8] sm:$0xff] %v265_v63  ;;  %v279_v63 = vld [vmem:[%s10877_s5 + $0x100] sm:$0xff] }
  0x71   :  { %268 = vst [vmem:[#allocation3 + $0xd0] sm:$0xff] %v267_v48  ;;  %v281_v48 = vld [vmem:[%s10877_s5 + $0x108] sm:$0xff] }
  0x72   :  { %270 = vst [vmem:[#allocation3 + $0xd8] sm:$0xff] %v269_v54  ;;  %v283_v54 = vld [vmem:[%s10877_s5 + $0x110] sm:$0xff] }
  0x73   :  { %272 = vst [vmem:[#allocation3 + $0xe0] sm:$0xff] %v271_v51  ;;  %v285_v51 = vld [vmem:[%s10877_s5 + $0x118] sm:$0xff] }
  0x74   :  { %274 = vst [vmem:[#allocation3 + $0xe8] sm:$0xff] %v273_v56  ;;  %v287_v56 = vld [vmem:[%s10877_s5 + $0x120] sm:$0xff] }
  0x75   :  { %276 = vst [vmem:[#allocation3 + $0xf0] sm:$0xff] %v275_v49  ;;  %v289_v49 = vld [vmem:[%s10877_s5 + $0x128] sm:$0xff] }
  0x76   :  { %278 = vst [vmem:[#allocation3 + $0xf8] sm:$0xff] %v277_v62  ;;  %v291_v62 = vld [vmem:[%s10877_s5 + $0x130] sm:$0xff] }
  0x77   :  { %280 = vst [vmem:[#allocation3 + $0x100] sm:$0xff] %v279_v63  ;;  %v293_v63 = vld [vmem:[%s10877_s5 + $0x138] sm:$0xff] }
  0x78   :  { %282 = vst [vmem:[#allocation3 + $0x108] sm:$0xff] %v281_v48  ;;  %v295_v48 = vld [vmem:[%s10877_s5 + $0x140] sm:$0xff] }
  0x79   :  { %284 = vst [vmem:[#allocation3 + $0x110] sm:$0xff] %v283_v54  ;;  %v297_v54 = vld [vmem:[%s10877_s5 + $0x148] sm:$0xff] }
  0x7a   :  { %286 = vst [vmem:[#allocation3 + $0x118] sm:$0xff] %v285_v51  ;;  %v299_v51 = vld [vmem:[%s10877_s5 + $0x150] sm:$0xff] }
  0x7b   :  { %288 = vst [vmem:[#allocation3 + $0x120] sm:$0xff] %v287_v56  ;;  %v301_v56 = vld [vmem:[%s10877_s5 + $0x158] sm:$0xff] }
  0x7c   :  { %290 = vst [vmem:[#allocation3 + $0x128] sm:$0xff] %v289_v49  ;;  %v303_v49 = vld [vmem:[%s10877_s5 + $0x160] sm:$0xff] }
  0x7d   :  { %292 = vst [vmem:[#allocation3 + $0x130] sm:$0xff] %v291_v62  ;;  %v305_v62 = vld [vmem:[%s10877_s5 + $0x168] sm:$0xff] }
  0x7e   :  { %294 = vst [vmem:[#allocation3 + $0x138] sm:$0xff] %v293_v63  ;;  %v307_v63 = vld [vmem:[%s10877_s5 + $0x170] sm:$0xff] }
  0x7f   :  { %296 = vst [vmem:[#allocation3 + $0x140] sm:$0xff] %v295_v48  ;;  %v309_v48 = vld [vmem:[%s10877_s5 + $0x178] sm:$0xff] }
  0x80   :  { %298 = vst [vmem:[#allocation3 + $0x148] sm:$0xff] %v297_v54  ;;  %v311_v54 = vld [vmem:[%s10877_s5 + $0x180] sm:$0xff] }
  0x81   :  { %300 = vst [vmem:[#allocation3 + $0x150] sm:$0xff] %v299_v51  ;;  %v313_v51 = vld [vmem:[%s10877_s5 + $0x188] sm:$0xff] }
  0x82   :  { %302 = vst [vmem:[#allocation3 + $0x158] sm:$0xff] %v301_v56  ;;  %v315_v56 = vld [vmem:[%s10877_s5 + $0x190] sm:$0xff] }
  0x83   :  { %304 = vst [vmem:[#allocation3 + $0x160] sm:$0xff] %v303_v49  ;;  %v317_v49 = vld [vmem:[%s10877_s5 + $0x198] sm:$0xff] }
  0x84   :  { %306 = vst [vmem:[#allocation3 + $0x168] sm:$0xff] %v305_v62  ;;  %v319_v62 = vld [vmem:[%s10877_s5 + $0x1a0] sm:$0xff] }
  0x85   :  { %308 = vst [vmem:[#allocation3 + $0x170] sm:$0xff] %v307_v63  ;;  %v321_v63 = vld [vmem:[%s10877_s5 + $0x1a8] sm:$0xff] }
  0x86   :  { %310 = vst [vmem:[#allocation3 + $0x178] sm:$0xff] %v309_v48  ;;  %v323_v48 = vld [vmem:[%s10877_s5 + $0x1b0] sm:$0xff] }
  0x87   :  { %312 = vst [vmem:[#allocation3 + $0x180] sm:$0xff] %v311_v54  ;;  %v325_v54 = vld [vmem:[%s10877_s5 + $0x1b8] sm:$0xff] }
  0x88   :  { %314 = vst [vmem:[#allocation3 + $0x188] sm:$0xff] %v313_v51  ;;  %v327_v51 = vld [vmem:[%s10877_s5 + $0x1c0] sm:$0xff] }
  0x89   :  { %316 = vst [vmem:[#allocation3 + $0x190] sm:$0xff] %v315_v56  ;;  %v329_v56 = vld [vmem:[%s10877_s5 + $0x1c8] sm:$0xff] }
  0x8a   :  { %318 = vst [vmem:[#allocation3 + $0x198] sm:$0xff] %v317_v49  ;;  %v331_v49 = vld [vmem:[%s10877_s5 + $0x1d0] sm:$0xff] }
  0x8b   :  { %320 = vst [vmem:[#allocation3 + $0x1a0] sm:$0xff] %v319_v62  ;;  %v333_v62 = vld [vmem:[%s10877_s5 + $0x1d8] sm:$0xff] }
  0x8c   :  { %322 = vst [vmem:[#allocation3 + $0x1a8] sm:$0xff] %v321_v63  ;;  %v335_v63 = vld [vmem:[%s10877_s5 + $0x1e0] sm:$0xff] }
  0x8d   :  { %324 = vst [vmem:[#allocation3 + $0x1b0] sm:$0xff] %v323_v48  ;;  %v337_v48 = vld [vmem:[%s10877_s5 + $0x1e8] sm:$0xff] }
  0x8e   :  { %326 = vst [vmem:[#allocation3 + $0x1b8] sm:$0xff] %v325_v54  ;;  %v339_v54 = vld [vmem:[%s10877_s5 + $0x1f0] sm:$0xff] }
  0x8f   :  { %328 = vst [vmem:[#allocation3 + $0x1c0] sm:$0xff] %v327_v51 }
  0x90   :  { %330 = vst [vmem:[#allocation3 + $0x1c8] sm:$0xff] %v329_v56 }
  0x91   :  { %332 = vst [vmem:[#allocation3 + $0x1d0] sm:$0xff] %v331_v49 }
  0x92   :  { %334 = vst [vmem:[#allocation3 + $0x1d8] sm:$0xff] %v333_v62 }
  0x93   :  { %336 = vst [vmem:[#allocation3 + $0x1e0] sm:$0xff] %v335_v63 }
  0x94   :  { %338 = vst [vmem:[#allocation3 + $0x1e8] sm:$0xff] %v337_v48 }
  0x95   :  { %340 = vst [vmem:[#allocation3 + $0x1f0] sm:$0xff] %v339_v54 }
  0x96   :  { %346 = vsyncadd [#allocation4 + $0x1], 8064  ;;  %v5507_v51 = vld [vmem:[%s10872_s0 + $0x70] sm:$0xf]  ;;  %v6033_v56 = vld [vmem:[%s10872_s0 + $0x74] sm:$0xf0] }
  0x97   :  { %v5508_v49 = vor.u32 %v6033_v56, %v5507_v51  ;;  %v5571_v62 = vld [vmem:[%s10872_s0 + $0xf0] sm:$0xf]  ;;  %v6049_v63 = vld [vmem:[%s10872_s0 + $0xf4] sm:$0xf0]  ;;  %v5611_v48 = vld [vmem:[%s10872_s0 + $0x140] sm:$0xf] }
  0x98   :  { %v5572_v54 = vor.u32 %v6049_v63, %v5571_v62  ;;  %v6059_v50 = vld [vmem:[%s10872_s0 + $0x144] sm:$0xf0]  ;;  %v5499_v51 = vld [vmem:[%s10872_s0 + $0x60] sm:$0xf]  ;;  %v5603_v63 = vld [vmem:[%s10872_s0 + $0x130] sm:$0xf] }
  0x99   :  { %v6031_v56 = vld [vmem:[%s10872_s0 + $0x64] sm:$0xf0]  ;;  %1062 = vmatpush.bf16.msra.mxu0 %v5508_v49  ;;  %v5612_v61 = vor.u32 %v6059_v50, %v5611_v48  ;;  %v5563_v43 = vld [vmem:[%s10872_s0 + $0xe0] sm:$0xf]  ;;  %v6057_v49 = vld [vmem:[%s10872_s0 + $0x134] sm:$0xf0] }
  0x9a   :  { %v5500_v57 = vor.u32 %v6031_v56, %v5499_v51  ;;  %v6047_v62 = vld [vmem:[%s10872_s0 + $0xe4] sm:$0xf0]  ;;  %1176 = vmatpush.bf16.msra.mxu1 %v5572_v54  ;;  %v5491_v50 = vld [vmem:[%s10872_s0 + $0x50] sm:$0xf]  ;;  %v6029_v48 = vld [vmem:[%s10872_s0 + $0x54] sm:$0xf0]  ;;  %v5604_v51 = vor.u32 %v6057_v49, %v5603_v63 }
  0x9b   :  { %v5564_v42 = vor.u32 %v6047_v62, %v5563_v43  ;;  %1293 = vmatpush.bf16.msra.mxu2 %v5612_v61  ;;  %v5555_v56 = vld [vmem:[%s10872_s0 + $0xd0] sm:$0xf]  ;;  %v6045_v43 = vld [vmem:[%s10872_s0 + $0xd4] sm:$0xf0]  ;;  %v5595_v54 = vld [vmem:[%s10872_s0 + $0x120] sm:$0xf]  ;;  %v5492_v45 = vor.u32 %v6029_v48, %v5491_v50 }
  0x9c   :  { %v6055_v62 = vld [vmem:[%s10872_s0 + $0x124] sm:$0xf0]  ;;  %v5556_v61 = vor.u32 %v6045_v43, %v5555_v56  ;;  %v5483_v63 = vld [vmem:[%s10872_s0 + $0x40] sm:$0xf]  ;;  %v6053_v50 = vld [vmem:[%s10872_s0 + $0x114] sm:$0xf0] }
  0x9d   :  { %1063 = vmatpush.bf16.msra.mxu0 %v5500_v57  ;;  %v6027_v49 = vld [vmem:[%s10872_s0 + $0x44] sm:$0xf0]  ;;  %v5596_v44 = vor.u32 %v6055_v62, %v5595_v54  ;;  %v5547_v60 = vld [vmem:[%s10872_s0 + $0xc0] sm:$0xf]  ;;  %v5475_v56 = vld [vmem:[%s10872_s0 + $0x30] sm:$0xf] }
  0x9e   :  { %1177 = vmatpush.bf16.msra.mxu1 %v5564_v42  ;;  %v6043_v57 = vld [vmem:[%s10872_s0 + $0xc4] sm:$0xf0]  ;;  %v5587_v42 = vld [vmem:[%s10872_s0 + $0x110] sm:$0xf]  ;;  %v5484_v48 = vor.u32 %v6027_v49, %v5483_v63  ;;  %v6025_v43 = vld [vmem:[%s10872_s0 + $0x34] sm:$0xf0] }
  0x9f   :  { %1294 = vmatpush.bf16.msra.mxu2 %v5604_v51  ;;  %v5548_v51 = vor.u32 %v6043_v57, %v5547_v60  ;;  %v5588_v54 = vor.u32 %v6053_v50, %v5587_v42  ;;  %v5539_v62 = vld [vmem:[%s10872_s0 + $0xb0] sm:$0xf]  ;;  %v5579_v60 = vld [vmem:[%s10872_s0 + $0x100] sm:$0xf]  ;;  %v5476_v63 = vor.u32 %v6025_v43, %v5475_v56  ;;  %v5573_v49 = vld [vmem:[%s10872_s0 + $0xf8] sm:$0xf0] }
  0xa0   :  { %v5207_v42 = vld [vmem:[%s10873_s1 + $0x8] sm:$0xf]  ;;  %v5467_v50 = vld [vmem:[%s10872_s0 + $0x20] sm:$0xf]  ;;  %v5957_v43 = vld [vmem:[%s10873_s1 + $0x10] sm:$0xf0] }
  0xa1   :  { %1064 = vmatpush.bf16.msra.mxu0 %v5492_v45  ;;  %v6041_v45 = vld [vmem:[%s10872_s0 + $0xb4] sm:$0xf0]  ;;  %v6974_v37 = vor.u32 %v5957_v43, %v5207_v42  ;;  %vm998_vm0 = vcmask 654336   ;;  %v5451_v42 = vld [vmem:[%s10872_s0] sm:$0xf]  ;;  %vm1746_vm1 = vcmask 556032  }
  0xa2   :  { %1178 = vmatpush.bf16.msra.mxu1 %v5556_v61  ;;  %v6051_v61 = vld [vmem:[%s10872_s0 + $0x104] sm:$0xf0]  ;;  %v5540_v57 = vor.u32 %v6041_v45, %v5539_v62  ;;  %v5613_v43 = vld [vmem:[%s10872_s0 + $0x148] sm:$0xf0]  ;;  %v5965_v36 = vld [vmem:[%s10873_s1 + $0x50] sm:$0xf0] }
  0xa3   :  { %1295 = vmatpush.bf16.msra.mxu2 %v5596_v44  ;;  %v6048_v44 = vld [vmem:[%s10872_s0 + $0xf4] sm:$0xf]  ;;  %v5580_v56 = vor.u32 %v6051_v61, %v5579_v60  ;;  %v6039_v62 = vld [vmem:[%s10872_s0 + $0xa4] sm:$0xf0]  ;;  %v5459_v60 = vld [vmem:[%s10872_s0 + $0x10] sm:$0xf] }
  0xa4   :  { %v5576_v45 = vor.u32 %v6048_v44, %v5573_v49  ;;  %v6021_v61 = vld [vmem:[%s10872_s0 + $0x14] sm:$0xf0]  ;;  %v5523_v44 = vld [vmem:[%s10872_s0 + $0x90] sm:$0xf]  ;;  %v5964_v39 = vld [vmem:[%s10873_s1 + $0x4c] sm:$0xf] }
  0xa5   :  { %1065 = vmatpush.bf16.msra.mxu0 %v5484_v48  ;;  %v6023_v48 = vld [vmem:[%s10872_s0 + $0x24] sm:$0xf0]  ;;  %v5460_v49 = vor.u32 %v6021_v61, %v5459_v60  ;;  %v5955_v60 = vld [vmem:[%s10873_s1 + $0x4] sm:$0xf]  ;;  %v5201_v61 = vld [vmem:[%s10873_s1 + $0xc] sm:$0xf0] }
  0xa6   :  { %1179 = vmatpush.bf16.msra.mxu1 %v5548_v51  ;;  %v5531_v51 = vld [vmem:[%s10872_s0 + $0xa0] sm:$0xf]  ;;  %v5468_v55 = vor.u32 %v6023_v48, %v5467_v50  ;;  %v6019_v50 = vld [vmem:[%s10872_s0 + $0x4] sm:$0xf0]  ;;  %v5972_v59 = vld [vmem:[%s10873_s1 + $0x88] sm:$0xf0] }
  0xa7   :  { %1296 = vmatpush.bf16.msra.mxu2 %v5588_v54  ;;  %v5532_v54 = vor.u32 %v6039_v62, %v5531_v51  ;;  %v5515_v48 = vld [vmem:[%s10872_s0 + $0x80] sm:$0xf]  ;;  %v5452_v51 = vor.u32 %v6019_v50, %v5451_v42  ;;  %v5960_v42 = vld [vmem:[%s10873_s1 + $0x28] sm:$0xf0]  ;;  %v6046_v50 = vld [vmem:[%s10872_s0 + $0xe4] sm:$0xf] }
  0xa8   :  { %v5199_v62 = vld [vmem:[%s10873_s1] sm:$0xf]  ;;  %v5279_v31 = vld [vmem:[%s10873_s1 + $0x98] sm:$0xf]  ;;  %v5975_v30 = vld [vmem:[%s10873_s1 + $0xa0] sm:$0xf0] }
  0xa9   :  { %1066 = vmatpush.bf16.msra.mxu0 %v5476_v63  ;;  %v6037_v63 = vld [vmem:[%s10872_s0 + $0x94] sm:$0xf0]  ;;  %v7190_v33 = vor.u32 %v5975_v30, %v5279_v31  ;;  %v5974_v30 = vld [vmem:[%s10873_s1 + $0x98] sm:$0xf0]  ;;  %v5973_v31 = vld [vmem:[%s10873_s1 + $0x94] sm:$0xf] }
  0xaa   :  { %1180 = vmatpush.bf16.msra.mxu1 %v5540_v57  ;;  %v5524_v57 = vor.u32 %v6037_v63, %v5523_v44  ;;  %v5273_v32 = vld [vmem:[%s10873_s1 + $0x9c] sm:$0xf0]  ;;  %v5303_v26 = vld [vmem:[%s10873_s1 + $0xc8] sm:$0xf]  ;;  %v5981_v47 = vld [vmem:[%s10873_s1 + $0xd0] sm:$0xf0] }
  0xab   :  { %1297 = vmatpush.bf16.msra.mxu2 %v5580_v56  ;;  %v6058_v56 = vld [vmem:[%s10872_s0 + $0x144] sm:$0xf]  ;;  %v7258_v46 = vor.u32 %v5981_v47, %v5303_v26  ;;  %v5297_v26 = vld [vmem:[%s10873_s1 + $0xcc] sm:$0xf0]  ;;  %v5315_v18 = vld [vmem:[%s10873_s1 + $0xe0] sm:$0xf] }
  0xac   :  { %v5616_v44 = vor.u32 %v6058_v56, %v5613_v43  ;;  %v5211_v43 = vld [vmem:[%s10873_s1 + $0x18] sm:$0xf]  ;;  %v5984_v21 = vld [vmem:[%s10873_s1 + $0xe8] sm:$0xf0]  ;;  %v5589_v8 = vld [vmem:[%s10872_s0 + $0x118] sm:$0xf0] }
  0xad   :  { %1067 = vmatpush.bf16.msra.mxu0 %v5468_v55  ;;  %v6035_v55 = vld [vmem:[%s10872_s0 + $0x84] sm:$0xf0]  ;;  %v5307_v15 = vld [vmem:[%s10873_s1 + $0xd8] sm:$0xf] }
  0xae   :  { %5617 = vmatmul.msk.bf16.vlgmr.msra.gmra.mxu2 %vm998_vm0, %v6974_v37  ;;  %1181 = vmatpush.bf16.msra.mxu1 %v5532_v54  ;;  %v5516_v54 = vor.u32 %v6035_v55, %v5515_v48  ;;  %v5565_v48 = vld [vmem:[%s10872_s0 + $0xe8] sm:$0xf0]  ;;  %v5333_v28 = vld [vmem:[%s10873_s1 + $0x114] sm:$0xf0]  ;;  %v5351_v23 = vld [vmem:[%s10873_s1 + $0x128] sm:$0xf] }
  0xaf   :  { %1518 = vmatpush.bf16.msrb.mxu2 %v5576_v45  ;;  %v5956_v45 = vld [vmem:[%s10873_s1 + $0x8] sm:$0xf0]  ;;  %v5568_v56 = vor.u32 %v6046_v50, %v5565_v48  ;;  %v5962_v50 = vld [vmem:[%s10873_s1 + $0x38] sm:$0xf0]  ;;  %v5961_v48 = vld [vmem:[%s10873_s1 + $0x34] sm:$0xf] }
  0xb0   :  { %v7020_v63 = vor.u32 %v5956_v45, %v5199_v62  ;;  %v5958_v62 = vld [vmem:[%s10873_s1 + $0x1c] sm:$0xf]  ;;  %v5213_v45 = vld [vmem:[%s10873_s1 + $0x24] sm:$0xf0] }
  0xb1   :  { %1068 = vmatpush.bf16.msra.mxu0 %v5460_v49  ;;  %v7022_v49 = vor.u32 %v5955_v60, %v5201_v61  ;;  %v7056_v60 = vor.u32 %v5958_v62, %v5213_v45  ;;  %v5231_v61 = vld [vmem:[%s10873_s1 + $0x38] sm:$0xf]  ;;  %v5243_v62 = vld [vmem:[%s10873_s1 + $0x50] sm:$0xf]  ;;  %v5966_v45 = vld [vmem:[%s10873_s1 + $0x58] sm:$0xf0] }
  0xb2   :  { %1182 = vmatpush.bf16.msra.mxu1 %v5524_v57  ;;  %v5219_v57 = vld [vmem:[%s10873_s1 + $0x20] sm:$0xf] }
  0xb3   :  { %v7038_v55 = vor.u32 %v5960_v42, %v5219_v57  ;;  %1519 = vmatpush.bf16.msrb.mxu2 %v5568_v56  ;;  %v5223_v42 = vld [vmem:[%s10873_s1 + $0x30] sm:$0xf]  ;;  %v5225_v56 = vld [vmem:[%s10873_s1 + $0x3c] sm:$0xf0] }
  0xb5   :  { %1069 = vmatpush.bf16.msra.mxu0 %v5452_v51  ;;  %v5959_v51 = vld [vmem:[%s10873_s1 + $0x20] sm:$0xf0] }
  0xb6   :  { %1183 = vmatpush.bf16.msra.mxu1 %v5516_v54  ;;  %v7054_v54 = vor.u32 %v5959_v51, %v5211_v43  ;;  %v7082_v43 = vor.u32 %v5962_v50, %v5223_v42  ;;  %v7084_v51 = vor.u32 %v5961_v48, %v5225_v56  ;;  %v5605_v42 = vld [vmem:[%s10872_s0 + $0x138] sm:$0xf0]  ;;  %v6044_v50 = vld [vmem:[%s10872_s0 + $0xd4] sm:$0xf] }
  0xb7   :  { %v5557_v56 = vld [vmem:[%s10872_s0 + $0xd8] sm:$0xf0] }
  0xb8   :  { %1070 = vmatmul.bf16.vlgmr.msra.gmra.mxu0 %v7020_v63 }
  0xb9   :  { %1635 = vmatpush.bf16.msrb.mxu0 %v5616_v44  ;;  %1184 = vmatmul.bf16.vlgmr.msra.gmra.mxu1 %v7022_v49  ;;  %v5963_v44 = vld [vmem:[%s10873_s1 + $0x40] sm:$0xf0] }
  0xba   :  { %v7066_v57 = vor.u32 %v5963_v44, %v5231_v61  ;;  %v7094_v61 = vor.u32 %v5966_v45, %v5243_v62  ;;  %v6056_v44 = vld [vmem:[%s10872_s0 + $0x134] sm:$0xf]  ;;  %v5560_v62 = vor.u32 %v6044_v50, %v5557_v56  ;;  %v5235_v45 = vld [vmem:[%s10873_s1 + $0x48] sm:$0xf] }
  0xbb   :  { %v5608_v48 = vor.u32 %v6056_v44, %v5605_v42  ;;  %v5237_v44 = vld [vmem:[%s10873_s1 + $0x54] sm:$0xf0]  ;;  %v7122_v42 = vor.u32 %v5965_v36, %v5235_v45  ;;  %v5255_v56 = vld [vmem:[%s10873_s1 + $0x68] sm:$0xf]  ;;  %v5247_v36 = vld [vmem:[%s10873_s1 + $0x60] sm:$0xf] }
  0xbc   :  { %1520 = vmatpush.bf16.msrb.mxu2 %v5560_v62  ;;  %v7124_v50 = vor.u32 %v5964_v39, %v5237_v44  ;;  %v5968_v39 = vld [vmem:[%s10873_s1 + $0x68] sm:$0xf0]  ;;  %v5967_v62 = vld [vmem:[%s10873_s1 + $0x64] sm:$0xf]  ;;  %v5249_v45 = vld [vmem:[%s10873_s1 + $0x6c] sm:$0xf0] }
  0xbd   :  { %1636 = vmatpush.bf16.msrb.mxu0 %v5608_v48  ;;  %v5969_v48 = vld [vmem:[%s10873_s1 + $0x70] sm:$0xf0]  ;;  %v7150_v44 = vor.u32 %v5968_v39, %v5247_v36  ;;  %v5259_v36 = vld [vmem:[%s10873_s1 + $0x78] sm:$0xf]  ;;  %v5971_v39 = vld [vmem:[%s10873_s1 + $0x80] sm:$0xf0] }
  0xbe   :  { %5618 = vmatmul.msk.bf16.gmra.mxu2 %vm998_vm0, %v7038_v55  ;;  %v7134_v38 = vor.u32 %v5969_v48, %v5255_v56  ;;  %v7152_v56 = vor.u32 %v5967_v62, %v5249_v45  ;;  %v5267_v48 = vld [vmem:[%s10873_s1 + $0x80] sm:$0xf]  ;;  %v5970_v62 = vld [vmem:[%s10873_s1 + $0x7c] sm:$0xf]  ;;  %v7178_v45 = vor.u32 %v5971_v39, %v5259_v36  ;;  %v6042_v36 = vld [vmem:[%s10872_s0 + $0xc4] sm:$0xf] }
  0xbf   :  { %v7162_v58 = vor.u32 %v5972_v59, %v5267_v48  ;;  %v5261_v59 = vld [vmem:[%s10873_s1 + $0x84] sm:$0xf0]  ;;  %v5549_v39 = vld [vmem:[%s10872_s0 + $0xc8] sm:$0xf0] }
  0xc0   :  { %v7180_v48 = vor.u32 %v5970_v62, %v5261_v59  ;;  %v5552_v62 = vor.u32 %v6042_v36, %v5549_v39  ;;  %v5271_v59 = vld [vmem:[%s10873_s1 + $0x90] sm:$0xf]  ;;  %v7214_v36 = vor.u32 %v5973_v31, %v5273_v32  ;;  %v5283_v32 = vld [vmem:[%s10873_s1 + $0xa8] sm:$0xf]  ;;  %v5597_v31 = vld [vmem:[%s10872_s0 + $0x128] sm:$0xf0] }
  0xc1   :  { %v7212_v53 = vor.u32 %v5974_v30, %v5271_v59  ;;  %v5291_v39 = vld [vmem:[%s10873_s1 + $0xb0] sm:$0xf]  ;;  %v5977_v59 = vld [vmem:[%s10873_s1 + $0xb0] sm:$0xf0]  ;;  %v6054_v30 = vld [vmem:[%s10872_s0 + $0x124] sm:$0xf] }
  0xc2   :  { %1521 = vmatpush.bf16.msrb.mxu2 %v5552_v62  ;;  %v5978_v62 = vld [vmem:[%s10873_s1 + $0xb8] sm:$0xf0]  ;;  %v5600_v25 = vor.u32 %v6054_v30, %v5597_v31  ;;  %v7246_v24 = vor.u32 %v5977_v59, %v5283_v32  ;;  %v5295_v32 = vld [vmem:[%s10873_s1 + $0xc0] sm:$0xf]  ;;  %v5980_v59 = vld [vmem:[%s10873_s1 + $0xc8] sm:$0xf0] }
  0xc3   :  { %v7224_v52 = vor.u32 %v5978_v62, %v5291_v39  ;;  %v5976_v39 = vld [vmem:[%s10873_s1 + $0xac] sm:$0xf]  ;;  %v5285_v62 = vld [vmem:[%s10873_s1 + $0xb4] sm:$0xf0]  ;;  %v5979_v30 = vld [vmem:[%s10873_s1 + $0xc4] sm:$0xf]  ;;  %v7274_v47 = vor.u32 %v5980_v59, %v5295_v32 }
  0xc4   :  { %1637 = vmatpush.bf16.msrb.mxu0 %v5600_v25  ;;  %v7248_v27 = vor.u32 %v5976_v39, %v5285_v62  ;;  %v7276_v39 = vor.u32 %v5979_v30, %v5297_v26  ;;  %v6040_v32 = vld [vmem:[%s10872_s0 + $0xb4] sm:$0xf]  ;;  %v5541_v59 = vld [vmem:[%s10872_s0 + $0xb8] sm:$0xf0]  ;;  %v7294_v26 = vor.u32 %v5984_v21, %v5315_v18  ;;  %v5983_v18 = vld [vmem:[%s10873_s1 + $0xe0] sm:$0xf0] }
  0xc5   :  { %v5309_v21 = vld [vmem:[%s10873_s1 + $0xe4] sm:$0xf0] }
  0xc8   :  { %1075 = vmatmul.bf16.gmra.mxu0 %v7054_v54 }
  0xc9   :  { %1189 = vmatmul.bf16.gmra.mxu1 %v7056_v60 }
  0xce   :  { %5619 = vmatmul.msk.bf16.gmra.mxu2 %vm998_vm0, %v7066_v57 }
  0xd8   :  { %1080 = vmatmul.bf16.gmra.mxu0 %v7082_v43 }
  0xd9   :  { %1194 = vmatmul.bf16.gmra.mxu1 %v7084_v51 }
  0xde   :  { %5620 = vmatmul.msk.bf16.gmra.mxu2 %vm998_vm0, %v7094_v61 }
  0xe8   :  { %1085 = vmatmul.bf16.gmra.mxu0 %v7122_v42 }
  0xe9   :  { %1199 = vmatmul.bf16.gmra.mxu1 %v7124_v50 }
  0xee   :  { %5621 = vmatmul.msk.bf16.gmra.mxu2 %vm998_vm0, %v7134_v38 }
  0xf8   :  { %1090 = vmatmul.bf16.gmra.mxu0 %v7150_v44 }
  0xf9   :  { %1204 = vmatmul.bf16.gmra.mxu1 %v7152_v56 }
  0xfe   :  { %5622 = vmatmul.msk.bf16.gmra.mxu2 %vm998_vm0, %v7162_v58 }
 0x108   :  { %1095 = vmatmul.bf16.gmra.mxu0 %v7178_v45 }
 0x109   :  { %1209 = vmatmul.bf16.gmra.mxu1 %v7180_v48 }
 0x10e   :  { %5623 = vmatmul.msk.bf16.gmra.mxu2 %vm998_vm0, %v7190_v33 }
 0x118   :  { %1100 = vmatmul.bf16.gmra.mxu0 %v7212_v53 }
 0x119   :  { %1214 = vmatmul.bf16.gmra.mxu1 %v7214_v36 }
 0x11e   :  { %5624 = vmatmul.msk.bf16.gmra.mxu2 %vm998_vm0, %v7224_v52 }
 0x128   :  { %1105 = vmatmul.bf16.gmra.mxu0 %v7246_v24 }
 0x129   :  { %1219 = vmatmul.bf16.gmra.mxu1 %v7248_v27 }
 0x12e   :  { %5625 = vmatmul.msk.bf16.gmra.mxu2 %vm998_vm0, %v7258_v46 }
 0x131   :  { %v1299_v25 = vpop.f32.mrf.mxu2 }
 0x135   :  { %v1071_v31 = vpop.f32.mrf.mxu0 }
 0x136   :  { %v1185_v62 = vpop.f32.mrf.mxu1 }
 0x137   :  { %v1186_v19 = vadd.f32 %v1185_v62, %v1071_v31  ;;  %v5544_v31 = vor.u32 %v6040_v32, %v5541_v59  ;;  %v5327_v59 = vld [vmem:[%s10873_s1 + $0xf8] sm:$0xf] }
 0x138   :  { %1110 = vmatmul.bf16.gmra.mxu0 %v7274_v47 }
 0x139   :  { %v1301_v20 = vpop.f32.mrf.mxu2  ;;  %1224 = vmatmul.bf16.gmra.mxu1 %v7276_v39  ;;  %v7292_v30 = vadd.f32 %v1299_v25, %v1186_v19  ;;  %1522 = vmatpush.bf16.msrb.mxu2 %v5544_v31  ;;  %v5982_v19 = vld [vmem:[%s10873_s1 + $0xdc] sm:$0xf]  ;;  %v5987_v31 = vld [vmem:[%s10873_s1 + $0x100] sm:$0xf0] }
 0x13b   :  { %11214 = vst [vmem:[#allocation93_spill] sm:$0xff] %v7292_v30 }
 0x13d   :  { %v1073_v62 = vpop.f32.mrf.mxu0 }
 0x13e   :  { %5626 = vmatmul.msk.bf16.gmra.mxu2 %vm998_vm0, %v7294_v26  ;;  %v1187_v41 = vpop.f32.mrf.mxu1 }
 0x13f   :  { %v1188_v40 = vadd.f32 %v1187_v41, %v1073_v62  ;;  %v7312_v41 = vor.u32 %v5983_v18, %v5307_v15  ;;  %v7326_v15 = vor.u32 %v5987_v31, %v5327_v59  ;;  %v5985_v59 = vld [vmem:[%s10873_s1 + $0xf4] sm:$0xf]  ;;  %v5321_v31 = vld [vmem:[%s10873_s1 + $0xfc] sm:$0xf0] }
 0x140   :  { %v7346_v35 = vor.u32 %v5985_v59, %v5321_v31  ;;  %v5331_v31 = vld [vmem:[%s10873_s1 + $0x108] sm:$0xf] }
 0x141   :  { %v7298_v13 = vadd.f32 %v1301_v20, %v1188_v40  ;;  %v1304_v12 = vpop.f32.mrf.mxu2  ;;  %v7314_v40 = vor.u32 %v5982_v19, %v5309_v21 }
 0x143   :  { %11215 = vst [vmem:[#allocation94_spill] sm:$0xff] %v7298_v13 }
 0x145   :  { %v1076_v20 = vpop.f32.mrf.mxu0 }
 0x146   :  { %v1190_v25 = vpop.f32.mrf.mxu1 }
 0x147   :  { %v1191_v32 = vadd.f32 %v1190_v25, %v1076_v20  ;;  %v5319_v25 = vld [vmem:[%s10873_s1 + $0xf0] sm:$0xf] }
 0x148   :  { %1115 = vmatmul.bf16.gmra.mxu0 %v7312_v41 }
 0x149   :  { %v7323_v62 = vadd.f32 %v1304_v12, %v1191_v32  ;;  %v1306_v14 = vpop.f32.mrf.mxu2  ;;  %1229 = vmatmul.bf16.gmra.mxu1 %v7314_v40  ;;  %v5986_v12 = vld [vmem:[%s10873_s1 + $0xf8] sm:$0xf0] }
 0x14b   :  { %11216 = vst [vmem:[#allocation95_spill] sm:$0xff] %v7323_v62 }
 0x14d   :  { %v1078_v18 = vpop.f32.mrf.mxu0 }
 0x14e   :  { %5627 = vmatmul.msk.bf16.gmra.mxu2 %vm998_vm0, %v7326_v15  ;;  %v1192_v19 = vpop.f32.mrf.mxu1 }
 0x14f   :  { %v1193_v21 = vadd.f32 %v1192_v19, %v1078_v18  ;;  %v7344_v18 = vor.u32 %v5986_v12, %v5319_v25 }
 0x151   :  { %v1309_v20 = vpop.f32.mrf.mxu2  ;;  %v7336_v32 = vadd.f32 %v1306_v14, %v1193_v21  ;;  %v5339_v14 = vld [vmem:[%s10873_s1 + $0x110] sm:$0xf]  ;;  %v5990_v21 = vld [vmem:[%s10873_s1 + $0x118] sm:$0xf0] }
 0x152   :  { %v7358_v25 = vor.u32 %v5990_v21, %v5339_v14  ;;  %v5533_v14 = vld [vmem:[%s10872_s0 + $0xa8] sm:$0xf0]  ;;  %v6052_v21 = vld [vmem:[%s10872_s0 + $0x114] sm:$0xf] }
 0x153   :  { %11217 = vst [vmem:[#allocation96_spill] sm:$0xff] %v7336_v32  ;;  %v5592_v3 = vor.u32 %v6052_v21, %v5589_v8  ;;  %v5345_v21 = vld [vmem:[%s10873_s1 + $0x12c] sm:$0xf0] }
 0x155   :  { %v1081_v19 = vpop.f32.mrf.mxu0  ;;  %1638 = vmatpush.bf16.msrb.mxu0 %v5592_v3 }
 0x156   :  { %v1195_v34 = vpop.f32.mrf.mxu1 }
 0x157   :  { %v1196_v7 = vadd.f32 %v1195_v34, %v1081_v19  ;;  %v6038_v19 = vld [vmem:[%s10872_s0 + $0xa4] sm:$0xf] }
 0x158   :  { %1120 = vmatmul.bf16.gmra.mxu0 %v7344_v18  ;;  %v5536_v9 = vor.u32 %v6038_v19, %v5533_v14  ;;  %v5993_v19 = vld [vmem:[%s10873_s1 + $0x130] sm:$0xf0]  ;;  %v5343_v14 = vld [vmem:[%s10873_s1 + $0x120] sm:$0xf] }
 0x159   :  { %v7355_v6 = vadd.f32 %v1309_v20, %v1196_v7  ;;  %v1311_v29 = vpop.f32.mrf.mxu2  ;;  %1234 = vmatmul.bf16.gmra.mxu1 %v7346_v35  ;;  %v5989_v7 = vld [vmem:[%s10873_s1 + $0x110] sm:$0xf0] }
 0x15a   :  { %v7388_v2 = vor.u32 %v5989_v7, %v5331_v31  ;;  %1523 = vmatpush.bf16.msrb.mxu2 %v5536_v9  ;;  %v7402_v9 = vor.u32 %v5993_v19, %v5351_v23  ;;  %v5991_v23 = vld [vmem:[%s10873_s1 + $0x124] sm:$0xf] }
 0x15b   :  { %11218 = vst [vmem:[#allocation97_spill] sm:$0xff] %v7355_v6  ;;  %v7422_v19 = vor.u32 %v5991_v23, %v5345_v21 }
 0x15d   :  { %v1083_v12 = vpop.f32.mrf.mxu0 }
 0x15e   :  { %5628 = vmatmul.msk.bf16.gmra.mxu2 %vm998_vm0, %v7358_v25  ;;  %v1197_v34 = vpop.f32.mrf.mxu1 }
 0x15f   :  { %v1198_v59 = vadd.f32 %v1197_v34, %v1083_v12  ;;  %v5988_v34 = vld [vmem:[%s10873_s1 + $0x10c] sm:$0xf] }
 0x161   :  { %v1314_v20 = vpop.f32.mrf.mxu2  ;;  %v7377_v12 = vadd.f32 %v1311_v29, %v1198_v59  ;;  %v7390_v29 = vor.u32 %v5988_v34, %v5333_v28 }
 0x163   :  { %11219 = vst [vmem:[#allocation98_spill] sm:$0xff] %v7377_v12 }
 0x165   :  { %v1086_v1 = vpop.f32.mrf.mxu0 }
 0x166   :  { %v1200_v59 = vpop.f32.mrf.mxu1 }
 0x167   :  { %v1201_v0 = vadd.f32 %v1200_v59, %v1086_v1 }
 0x168   :  { %1125 = vmatmul.bf16.gmra.mxu0 %v7388_v2 }
 0x169   :  { %v7399_v8 = vadd.f32 %v1314_v20, %v1201_v0  ;;  %v1316_v31 = vpop.f32.mrf.mxu2  ;;  %1239 = vmatmul.bf16.gmra.mxu1 %v7390_v29  ;;  %v5992_v0 = vld [vmem:[%s10873_s1 + $0x128] sm:$0xf0] }
 0x16a   :  { %v7420_v34 = vor.u32 %v5992_v0, %v5343_v14 }
 0x16b   :  { %11220 = vst [vmem:[#allocation99_spill] sm:$0xff] %v7399_v8 }
 0x16d   :  { %v1088_v3 = vpop.f32.mrf.mxu0 }
 0x16e   :  { %5629 = vmatmul.msk.bf16.gmra.mxu2 %vm998_vm0, %v7402_v9  ;;  %v1202_v1 = vpop.f32.mrf.mxu1 }
 0x16f   :  { %v1203_v28 = vadd.f32 %v1202_v1, %v1088_v3 }
 0x171   :  { %v1319_v7 = vpop.f32.mrf.mxu2  ;;  %v7412_v20 = vadd.f32 %v1316_v31, %v1203_v28  ;;  %v5363_v31 = vld [vmem:[%s10873_s1 + $0x140] sm:$0xf]  ;;  %v5996_v28 = vld [vmem:[%s10873_s1 + $0x148] sm:$0xf0] }
 0x172   :  { %v7434_v14 = vor.u32 %v5996_v28, %v5363_v31  ;;  %v5994_v31 = vld [vmem:[%s10873_s1 + $0x13c] sm:$0xf]  ;;  %v5357_v28 = vld [vmem:[%s10873_s1 + $0x144] sm:$0xf0] }
 0x173   :  { %11221 = vst [vmem:[#allocation100_spill] sm:$0xff] %v7412_v20  ;;  %v7454_v16 = vor.u32 %v5994_v31, %v5357_v28  ;;  %v6036_v31 = vld [vmem:[%s10872_s0 + $0x94] sm:$0xf]  ;;  %v5525_v28 = vld [vmem:[%s10872_s0 + $0x98] sm:$0xf0] }
 0x174   :  { %11223 = vst [vmem:[#allocation102_spill] sm:$0xff] %v7434_v14 }
 0x175   :  { %v1091_v59 = vpop.f32.mrf.mxu0  ;;  %11225 = vst [vmem:[#allocation104_spill] sm:$0xff] %v7454_v16 }
 0x176   :  { %v1205_v3 = vpop.f32.mrf.mxu1 }
 0x177   :  { %v1206_v1 = vadd.f32 %v1205_v3, %v1091_v59  ;;  %v5355_v3 = vld [vmem:[%s10873_s1 + $0x138] sm:$0xf] }
 0x178   :  { %1130 = vmatmul.bf16.gmra.mxu0 %v7420_v34 }
 0x179   :  { %v7431_v22 = vadd.f32 %v1319_v7, %v1206_v1  ;;  %v1321_v17 = vpop.f32.mrf.mxu2  ;;  %1244 = vmatmul.bf16.gmra.mxu1 %v7422_v19  ;;  %v5995_v7 = vld [vmem:[%s10873_s1 + $0x140] sm:$0xf0] }
 0x17b   :  { %11222 = vst [vmem:[#allocation101_spill] sm:$0xff] %v7431_v22 }
 0x17d   :  { %v1093_v0 = vpop.f32.mrf.mxu0 }
 0x17e   :  { %5630 = vmatmul.msk.bf16.gmra.mxu2 %vm998_vm0, %v7434_v14  ;;  %v1207_v23 = vpop.f32.mrf.mxu1 }
 0x17f   :  { %v1208_v21 = vadd.f32 %v1207_v23, %v1093_v0  ;;  %v7452_v0 = vor.u32 %v5995_v7, %v5355_v3 }
 0x181   :  { %v1324_v59 = vpop.f32.mrf.mxu2  ;;  %v7444_v1 = vadd.f32 %v1321_v17, %v1208_v21  ;;  %v5375_v17 = vld [vmem:[%s10873_s1 + $0x158] sm:$0xf]  ;;  %v5999_v21 = vld [vmem:[%s10873_s1 + $0x160] sm:$0xf0] }
 0x182   :  { %v7466_v3 = vor.u32 %v5999_v21, %v5375_v17  ;;  %v5367_v17 = vld [vmem:[%s10873_s1 + $0x150] sm:$0xf]  ;;  %v5998_v21 = vld [vmem:[%s10873_s1 + $0x158] sm:$0xf0] }
 0x183   :  { %11224 = vst [vmem:[#allocation103_spill] sm:$0xff] %v7444_v1 }
 0x184   :  { %11227 = vst [vmem:[#allocation106_spill] sm:$0xff] %v7466_v3 }
 0x185   :  { %v1096_v23 = vpop.f32.mrf.mxu0 }
 0x186   :  { %v1210_v11 = vpop.f32.mrf.mxu1 }
 0x187   :  { %v1211_v10 = vadd.f32 %v1210_v11, %v1096_v23 }
 0x188   :  { %1135 = vmatmul.bf16.gmra.mxu0 %v7452_v0 }
 0x189   :  { %v7463_v5 = vadd.f32 %v1324_v59, %v1211_v10  ;;  %v1326_v4 = vpop.f32.mrf.mxu2  ;;  %1249 = vmatmul.bf16.gmra.mxu1 %v7454_v16  ;;  %v5528_v59 = vor.u32 %v6036_v31, %v5525_v28 }
 0x18b   :  { %11226 = vst [vmem:[#allocation105_spill] sm:$0xff] %v7463_v5  ;;  %1524 = vmatpush.bf16.msrb.mxu2 %v5528_v59  ;;  %v5997_v5 = vld [vmem:[%s10873_s1 + $0x154] sm:$0xf] }
 0x18d   :  { %v1098_v7 = vpop.f32.mrf.mxu0 }
 0x18e   :  { %5631 = vmatmul.msk.bf16.gmra.mxu2 %vm998_vm0, %v7466_v3  ;;  %v1212_v11 = vpop.f32.mrf.mxu1 }
 0x18f   :  { %v1213_v10 = vadd.f32 %v1212_v11, %v1098_v7  ;;  %v5369_v7 = vld [vmem:[%s10873_s1 + $0x15c] sm:$0xf0]  ;;  %v7490_v11 = vor.u32 %v5998_v21, %v5367_v17 }
 0x190   :  { %v7492_v28 = vor.u32 %v5997_v5, %v5369_v7 }
 0x191   :  { %v1329_v23 = vpop.f32.mrf.mxu2  ;;  %v7482_v3 = vadd.f32 %v1326_v4, %v1213_v10  ;;  %v5387_v4 = vld [vmem:[%s10873_s1 + $0x170] sm:$0xf]  ;;  %v6002_v10 = vld [vmem:[%s10873_s1 + $0x178] sm:$0xf0] }
 0x192   :  { %11229 = vst [vmem:[#allocation108_spill] sm:$0xff] %v7492_v28  ;;  %v7504_v17 = vor.u32 %v6002_v10, %v5387_v4  ;;  %v6000_v4 = vld [vmem:[%s10873_s1 + $0x16c] sm:$0xf]  ;;  %v5381_v10 = vld [vmem:[%s10873_s1 + $0x174] sm:$0xf0] }
 0x193   :  { %11228 = vst [vmem:[#allocation107_spill] sm:$0xff] %v7482_v3 }
 0x194   :  { %11231 = vst [vmem:[#allocation110_spill] sm:$0xff] %v7504_v17 }
 0x195   :  { %v1101_v31 = vpop.f32.mrf.mxu0 }
 0x196   :  { %v1215_v14 = vpop.f32.mrf.mxu1 }
 0x197   :  { %v1216_v1 = vadd.f32 %v1215_v14, %v1101_v31  ;;  %v5379_v31 = vld [vmem:[%s10873_s1 + $0x168] sm:$0xf] }
 0x198   :  { %1140 = vmatmul.bf16.gmra.mxu0 %v7490_v11 }
 0x199   :  { %v7501_v59 = vadd.f32 %v1329_v23, %v1216_v1  ;;  %v1331_v3 = vpop.f32.mrf.mxu2  ;;  %1254 = vmatmul.bf16.gmra.mxu1 %v7492_v28  ;;  %v6001_v1 = vld [vmem:[%s10873_s1 + $0x170] sm:$0xf0] }
 0x19b   :  { %11230 = vst [vmem:[#allocation109_spill] sm:$0xff] %v7501_v59 }
 0x19d   :  { %v1103_v5 = vpop.f32.mrf.mxu0 }
 0x19e   :  { %5632 = vmatmul.msk.bf16.gmra.mxu2 %vm998_vm0, %v7504_v17  ;;  %v1217_v14 = vpop.f32.mrf.mxu1  ;;  %v7524_v17 = vor.u32 %v6000_v4, %v5381_v10 }
 0x19f   :  { %v1218_v21 = vadd.f32 %v1217_v14, %v1103_v5  ;;  %v7522_v5 = vor.u32 %v6001_v1, %v5379_v31  ;;  %v6050_v31 = vld [vmem:[%s10872_s0 + $0x104] sm:$0xf] }
 0x1a0   :  { %11234 = vst [vmem:[#allocation113_spill] sm:$0xff] %v7524_v17 }
 0x1a1   :  { %v1334_v7 = vpop.f32.mrf.mxu2  ;;  %v7514_v23 = vadd.f32 %v1331_v3, %v1218_v21  ;;  %11233 = vst [vmem:[#allocation112_spill] sm:$0xff] %v7522_v5  ;;  %v5399_v3 = vld [vmem:[%s10873_s1 + $0x188] sm:$0xf]  ;;  %v6005_v21 = vld [vmem:[%s10873_s1 + $0x190] sm:$0xf0] }
 0x1a2   :  { %v7542_v1 = vor.u32 %v6005_v21, %v5399_v3  ;;  %v6003_v3 = vld [vmem:[%s10873_s1 + $0x184] sm:$0xf]  ;;  %v5393_v21 = vld [vmem:[%s10873_s1 + $0x18c] sm:$0xf0] }
 0x1a3   :  { %11232 = vst [vmem:[#allocation111_spill] sm:$0xff] %v7514_v23 }
 0x1a4   :  { %11236 = vst [vmem:[#allocation115_spill] sm:$0xff] %v7542_v1 }
 0x1a5   :  { %v1106_v14 = vpop.f32.mrf.mxu0 }
 0x1a6   :  { %v1220_v59 = vpop.f32.mrf.mxu1 }
 0x1a7   :  { %v1221_v28 = vadd.f32 %v1220_v59, %v1106_v14  ;;  %v5581_v59 = vld [vmem:[%s10872_s0 + $0x108] sm:$0xf0] }
 0x1a8   :  { %1145 = vmatmul.bf16.gmra.mxu0 %v7522_v5  ;;  %v5584_v4 = vor.u32 %v6050_v31, %v5581_v59 }
 0x1a9   :  { %v7533_v23 = vadd.f32 %v1334_v7, %v1221_v28  ;;  %v1336_v16 = vpop.f32.mrf.mxu2  ;;  %1259 = vmatmul.bf16.gmra.mxu1 %v7524_v17  ;;  %v6004_v17 = vld [vmem:[%s10873_s1 + $0x188] sm:$0xf0] }
 0x1aa   :  { %1639 = vmatpush.bf16.msrb.mxu0 %v5584_v4  ;;  %v7562_v4 = vor.u32 %v6003_v3, %v5393_v21 }
 0x1ab   :  { %11235 = vst [vmem:[#allocation114_spill] sm:$0xff] %v7533_v23  ;;  %v5391_v23 = vld [vmem:[%s10873_s1 + $0x180] sm:$0xf] }
 0x1ac   :  { %v7560_v31 = vor.u32 %v6004_v17, %v5391_v23  ;;  %11239 = vst [vmem:[#allocation118_spill] sm:$0xff] %v7562_v4  ;;  %v6032_v17 = vld [vmem:[%s10872_s0 + $0x74] sm:$0xf]  ;;  %v5509_v23 = vld [vmem:[%s10872_s0 + $0x78] sm:$0xf0] }
 0x1ad   :  { %v1108_v10 = vpop.f32.mrf.mxu0 }
 0x1ae   :  { %5633 = vmatmul.msk.bf16.gmra.mxu2 %vm998_vm0, %v7542_v1  ;;  %v1222_v28 = vpop.f32.mrf.mxu1  ;;  %11238 = vst [vmem:[#allocation117_spill] sm:$0xff] %v7560_v31  ;;  %v5512_v1 = vor.u32 %v6032_v17, %v5509_v23  ;;  %v6007_v23 = vld [vmem:[%s10873_s1 + $0x1a0] sm:$0xf0] }
 0x1af   :  { %v1223_v7 = vadd.f32 %v1222_v28, %v1108_v10 }
 0x1b0   :  { %1404 = vmatpush.bf16.msra.mxu3 %v5512_v1  ;;  %v6028_v1 = vld [vmem:[%s10872_s0 + $0x54] sm:$0xf] }
 0x1b1   :  { %v1339_v14 = vpop.f32.mrf.mxu2  ;;  %v7552_v5 = vadd.f32 %v1336_v16, %v1223_v7  ;;  %v5411_v16 = vld [vmem:[%s10873_s1 + $0x1a0] sm:$0xf]  ;;  %v6008_v7 = vld [vmem:[%s10873_s1 + $0x1a8] sm:$0xf0] }
 0x1b3   :  { %11237 = vst [vmem:[#allocation116_spill] sm:$0xff] %v7552_v5  ;;  %v7586_v5 = vor.u32 %v6008_v7, %v5411_v16  ;;  %v5403_v7 = vld [vmem:[%s10873_s1 + $0x198] sm:$0xf] }
 0x1b5   :  { %v1111_v59 = vpop.f32.mrf.mxu0  ;;  %11241 = vst [vmem:[#allocation120_spill] sm:$0xff] %v7586_v5 }
 0x1b6   :  { %v1225_v10 = vpop.f32.mrf.mxu1 }
 0x1b7   :  { %v1226_v28 = vadd.f32 %v1225_v10, %v1111_v59  ;;  %v6034_v59 = vld [vmem:[%s10872_s0 + $0x84] sm:$0xf]  ;;  %v5517_v10 = vld [vmem:[%s10872_s0 + $0x88] sm:$0xf0] }
 0x1b8   :  { %1150 = vmatmul.bf16.gmra.mxu0 %v7560_v31  ;;  %v5520_v31 = vor.u32 %v6034_v59, %v5517_v10  ;;  %v7616_v10 = vor.u32 %v6007_v23, %v5403_v7  ;;  %v6011_v7 = vld [vmem:[%s10873_s1 + $0x1c0] sm:$0xf0]  ;;  %v6024_v23 = vld [vmem:[%s10872_s0 + $0x34] sm:$0xf] }
 0x1b9   :  { %v7577_v3 = vadd.f32 %v1339_v14, %v1226_v28  ;;  %v1341_v21 = vpop.f32.mrf.mxu2  ;;  %1264 = vmatmul.bf16.gmra.mxu1 %v7562_v4  ;;  %v6030_v14 = vld [vmem:[%s10872_s0 + $0x64] sm:$0xf]  ;;  %v5501_v28 = vld [vmem:[%s10872_s0 + $0x68] sm:$0xf0] }
 0x1ba   :  { %1525 = vmatpush.bf16.msrb.mxu2 %v5520_v31  ;;  %v5504_v4 = vor.u32 %v6030_v14, %v5501_v28  ;;  %v5493_v31 = vld [vmem:[%s10872_s0 + $0x58] sm:$0xf0]  ;;  %11243 = vst [vmem:[#allocation122_spill] sm:$0xff] %v7616_v10  ;;  %v6026_v14 = vld [vmem:[%s10872_s0 + $0x44] sm:$0xf] }
 0x1bb   :  { %11240 = vst [vmem:[#allocation119_spill] sm:$0xff] %v7577_v3  ;;  %v5496_v59 = vor.u32 %v6028_v1, %v5493_v31 }
 0x1bc   :  { %1405 = vmatpush.bf16.msra.mxu3 %v5504_v4  ;;  %v6006_v4 = vld [vmem:[%s10873_s1 + $0x19c] sm:$0xf] }
 0x1bd   :  { %v1113_v3 = vpop.f32.mrf.mxu0 }
 0x1be   :  { %5634 = vmatmul.msk.bf16.gmra.mxu2 %vm998_vm0, %v7586_v5  ;;  %v1227_v22 = vpop.f32.mrf.mxu1 }
 0x1bf   :  { %v1228_v17 = vadd.f32 %v1227_v22, %v1113_v3  ;;  %v5405_v3 = vld [vmem:[%s10873_s1 + $0x1a4] sm:$0xf0] }
 0x1c0   :  { %1406 = vmatpush.bf16.msra.mxu3 %v5496_v59  ;;  %v5423_v59 = vld [vmem:[%s10873_s1 + $0x1b8] sm:$0xf] }
 0x1c1   :  { %v1344_v16 = vpop.f32.mrf.mxu2  ;;  %v7608_v22 = vadd.f32 %v1341_v21, %v1228_v17  ;;  %v5485_v21 = vld [vmem:[%s10872_s0 + $0x48] sm:$0xf0]  ;;  %v7624_v17 = vor.u32 %v6006_v4, %v5405_v3  ;;  %v5477_v4 = vld [vmem:[%s10872_s0 + $0x38] sm:$0xf0] }
 0x1c2   :  { %v5488_v1 = vor.u32 %v6026_v14, %v5485_v21  ;;  %v5480_v21 = vor.u32 %v6024_v23, %v5477_v4 }
 0x1c3   :  { %11242 = vst [vmem:[#allocation121_spill] sm:$0xff] %v7608_v22 }
 0x1c4   :  { %11244 = vst [vmem:[#allocation123_spill] sm:$0xff] %v7624_v17  ;;  %1407 = vmatpush.bf16.msra.mxu3 %v5488_v1  ;;  %v6022_v1 = vld [vmem:[%s10872_s0 + $0x24] sm:$0xf] }
 0x1c5   :  { %v1116_v28 = vpop.f32.mrf.mxu0 }
 0x1c6   :  { %v1230_v31 = vpop.f32.mrf.mxu1 }
 0x1c7   :  { %v1231_v5 = vadd.f32 %v1230_v31, %v1116_v28  ;;  %v7642_v28 = vor.u32 %v6011_v7, %v5423_v59  ;;  %v5469_v31 = vld [vmem:[%s10872_s0 + $0x28] sm:$0xf0]  ;;  %v6020_v59 = vld [vmem:[%s10872_s0 + $0x14] sm:$0xf]  ;;  %v5461_v7 = vld [vmem:[%s10872_s0 + $0x18] sm:$0xf0] }
 0x1c8   :  { %1155 = vmatmul.bf16.gmra.mxu0 %v7616_v10  ;;  %1408 = vmatpush.bf16.msra.mxu3 %v5480_v21  ;;  %v5472_v10 = vor.u32 %v6022_v1, %v5469_v31  ;;  %v5415_v21 = vld [vmem:[%s10873_s1 + $0x1b0] sm:$0xf]  ;;  %v6009_v1 = vld [vmem:[%s10873_s1 + $0x1b4] sm:$0xf]  ;;  %v5417_v31 = vld [vmem:[%s10873_s1 + $0x1bc] sm:$0xf0] }
 0x1c9   :  { %v7639_v3 = vadd.f32 %v1344_v16, %v1231_v5  ;;  %v1346_v14 = vpop.f32.mrf.mxu2  ;;  %1269 = vmatmul.bf16.gmra.mxu1 %v7624_v17  ;;  %11246 = vst [vmem:[#allocation125_spill] sm:$0xff] %v7642_v28 }
 0x1cb   :  { %11245 = vst [vmem:[#allocation124_spill] sm:$0xff] %v7639_v3 }
 0x1cc   :  { %1409 = vmatpush.bf16.msra.mxu3 %v5472_v10  ;;  %v5464_v10 = vor.u32 %v6020_v59, %v5461_v7  ;;  %v7680_v7 = vor.u32 %v6009_v1, %v5417_v31 }
 0x1cd   :  { %v1118_v22 = vpop.f32.mrf.mxu0 }
 0x1ce   :  { %5635 = vmatmul.msk.bf16.gmra.mxu2 %vm998_vm0, %v7642_v28  ;;  %v1232_v5 = vpop.f32.mrf.mxu1  ;;  %11248 = vst [vmem:[#allocation127_spill] sm:$0xff] %v7680_v7 }
 0x1cf   :  { %v1233_v16 = vadd.f32 %v1232_v5, %v1118_v22  ;;  %v6010_v22 = vld [vmem:[%s10873_s1 + $0x1b8] sm:$0xf0]  ;;  %v6018_v5 = vld [vmem:[%s10872_s0 + $0x4] sm:$0xf] }
 0x1d0   :  { %1410 = vmatpush.bf16.msra.mxu3 %v5464_v10  ;;  %v5435_v10 = vld [vmem:[%s10873_s1 + $0x1d0] sm:$0xf] }
 0x1d1   :  { %v7658_v23 = vadd.f32 %v1346_v14, %v1233_v16  ;;  %v1349_v4 = vpop.f32.mrf.mxu2  ;;  %v7672_v14 = vor.u32 %v6010_v22, %v5415_v21  ;;  %v5453_v16 = vld [vmem:[%s10872_s0 + $0x8] sm:$0xf0]  ;;  %v6014_v21 = vld [vmem:[%s10873_s1 + $0x1d8] sm:$0xf0] }
 0x1d2   :  { %v5456_v28 = vor.u32 %v6018_v5, %v5453_v16  ;;  %v7692_v1 = vor.u32 %v6014_v21, %v5435_v10 }
 0x1d3   :  { %11247 = vst [vmem:[#allocation126_spill] sm:$0xff] %v7658_v23 }
 0x1d4   :  { %1411 = vmatpush.bf16.msra.mxu3 %v5456_v28  ;;  %11250 = vst [vmem:[#allocation129_spill] sm:$0xff] %v7692_v1 }
 0x1d5   :  { %v1121_v59 = vpop.f32.mrf.mxu0 }
 0x1d6   :  { %v1235_v23 = vpop.f32.mrf.mxu1 }
 0x1d7   :  { %v1236_v3 = vadd.f32 %v1235_v23, %v1121_v59  ;;  %1412 = vmatmul.bf16.vlgmr.msra.gmra.mxu3 %v7020_v63  ;;  %v6012_v63 = vld [vmem:[%s10873_s1 + $0x1cc] sm:$0xf]  ;;  %v5429_v59 = vld [vmem:[%s10873_s1 + $0x1d4] sm:$0xf0] }
 0x1d8   :  { %1160 = vmatmul.bf16.gmra.mxu0 %v7672_v14  ;;  %v7713_v21 = vor.u32 %v6012_v63, %v5429_v59 }
 0x1d9   :  { %v7689_v22 = vadd.f32 %v1349_v4, %v1236_v3  ;;  %v1351_v17 = vpop.f32.mrf.mxu2  ;;  %1274 = vmatmul.bf16.gmra.mxu1 %v7680_v7  ;;  %v5427_v3 = vld [vmem:[%s10873_s1 + $0x1c8] sm:$0xf]  ;;  %v6013_v4 = vld [vmem:[%s10873_s1 + $0x1d0] sm:$0xf0] }
 0x1da   :  { %v7711_v10 = vor.u32 %v6013_v4, %v5427_v3  ;;  %11252 = vst [vmem:[#allocation131_spill] sm:$0xff] %v7713_v21 }
 0x1db   :  { %11249 = vst [vmem:[#allocation128_spill] sm:$0xff] %v7689_v22 }
 0x1dd   :  { %v1123_v23 = vpop.f32.mrf.mxu0 }
 0x1de   :  { %5636 = vmatmul.msk.bf16.gmra.mxu2 %vm998_vm0, %v7692_v1  ;;  %v1237_v31 = vpop.f32.mrf.mxu1  ;;  %v6017_v1 = vld [vmem:[%s10873_s1 + $0x1f0] sm:$0xf0] }
 0x1df   :  { %v1238_v5 = vadd.f32 %v1237_v31, %v1123_v23 }
 0x1e1   :  { %v7697_v16 = vadd.f32 %v1351_v17, %v1238_v5  ;;  %v1354_v28 = vpop.f32.mrf.mxu2  ;;  %v5447_v5 = vld [vmem:[%s10873_s1 + $0x1e8] sm:$0xf] }
 0x1e2   :  { %v7725_v3 = vor.u32 %v6017_v1, %v5447_v5  ;;  %v6016_v1 = vld [vmem:[%s10873_s1 + $0x1e8] sm:$0xf0] }
 0x1e3   :  { %11251 = vst [vmem:[#allocation130_spill] sm:$0xff] %v7697_v16 }
 0x1e4   :  { %11254 = vst [vmem:[#allocation133_spill] sm:$0xff] %v7725_v3 }
 0x1e5   :  { %v1126_v17 = vpop.f32.mrf.mxu0 }
 0x1e6   :  { %v1240_v23 = vpop.f32.mrf.mxu1 }
 0x1e7   :  { %v1241_v31 = vadd.f32 %v1240_v23, %v1126_v17  ;;  %1417 = vmatmul.bf16.gmra.mxu3 %v7054_v54  ;;  %v6015_v54 = vld [vmem:[%s10873_s1 + $0x1e4] sm:$0xf] }
 0x1e8   :  { %1165 = vmatmul.bf16.gmra.mxu0 %v7711_v10 }
 0x1e9   :  { %v7722_v16 = vadd.f32 %v1354_v28, %v1241_v31  ;;  %v1356_v22 = vpop.f32.mrf.mxu2  ;;  %1279 = vmatmul.bf16.gmra.mxu1 %v7713_v21  ;;  %v5439_v28 = vld [vmem:[%s10873_s1 + $0x1e0] sm:$0xf]  ;;  %v5441_v31 = vld [vmem:[%s10873_s1 + $0x1ec] sm:$0xf0] }
 0x1ea   :  { %v7744_v5 = vor.u32 %v6016_v1, %v5439_v28 }
 0x1eb   :  { %11253 = vst [vmem:[#allocation132_spill] sm:$0xff] %v7722_v16 }
 0x1ed   :  { %v1128_v4 = vpop.f32.mrf.mxu0 }
 0x1ee   :  { %5637 = vmatmul.msk.bf16.gmra.mxu2 %vm998_vm0, %v7725_v3  ;;  %v1242_v63 = vpop.f32.mrf.mxu1 }
 0x1ef   :  { %v1243_v59 = vadd.f32 %v1242_v63, %v1128_v4  ;;  %v7746_v4 = vor.u32 %v6015_v54, %v5441_v31 }
 0x1f1   :  { %v7730_v17 = vadd.f32 %v1356_v22, %v1243_v59  ;;  %v1359_v23 = vpop.f32.mrf.mxu2 }
 0x1f3   :  { %11255 = vst [vmem:[#allocation134_spill] sm:$0xff] %v7730_v17 }
 0x1f5   :  { %v1131_v22 = vpop.f32.mrf.mxu0 }
 0x1f6   :  { %v1245_v63 = vpop.f32.mrf.mxu1 }
 0x1f7   :  { %v1246_v59 = vadd.f32 %v1245_v63, %v1131_v22  ;;  %1422 = vmatmul.bf16.gmra.mxu3 %v7082_v43 }
 0x1f8   :  { %1170 = vmatmul.bf16.gmra.mxu0 %v7744_v5 }
 0x1f9   :  { %v7749_v3 = vadd.f32 %v1359_v23, %v1246_v59  ;;  %v1361_v17 = vpop.f32.mrf.mxu2  ;;  %1284 = vmatmul.bf16.gmra.mxu1 %v7746_v4 }
 0x1fb   :  { %11256 = vst [vmem:[#allocation135_spill] sm:$0xff] %v7749_v3 }
 0x1fd   :  { %v1133_v16 = vpop.f32.mrf.mxu0 }
 0x1fe   :  { %1526 = vmatmul.bf16.vlgmr.msrb.gmra.mxu2 %v7022_v49  ;;  %v1247_v21 = vpop.f32.mrf.mxu1 }
 0x1ff   :  { %v1248_v28 = vadd.f32 %v1247_v21, %v1133_v16 }
 0x201   :  { %v7754_v1 = vadd.f32 %v1361_v17, %v1248_v28  ;;  %v1364_v54 = vpop.f32.mrf.mxu2 }
 0x203   :  { %11257 = vst [vmem:[#allocation136_spill] sm:$0xff] %v7754_v1 }
 0x205   :  { %v1136_v31 = vpop.f32.mrf.mxu0 }
 0x206   :  { %v1250_v7 = vpop.f32.mrf.mxu1 }
 0x207   :  { %v1251_v22 = vadd.f32 %v1250_v7, %v1136_v31  ;;  %1427 = vmatmul.bf16.gmra.mxu3 %v7122_v42 }
 0x208   :  { %5638 = vmatmul.msk.bf16.vlgmr.msrb.gmra.mxu0 %vm998_vm0, %v6974_v37 }
 0x209   :  { %v7758_v23 = vadd.f32 %v1364_v54, %v1251_v22  ;;  %v1366_v63 = vpop.f32.mrf.mxu2 }
 0x20b   :  { %11258 = vst [vmem:[#allocation137_spill] sm:$0xff] %v7758_v23 }
 0x20d   :  { %v1138_v43 = vpop.f32.mrf.mxu0 }
 0x20e   :  { %1531 = vmatmul.bf16.gmra.mxu2 %v7056_v60  ;;  %v1252_v49 = vpop.f32.mrf.mxu1 }
 0x20f   :  { %v1253_v59 = vadd.f32 %v1252_v49, %v1138_v43 }
 0x211   :  { %v7762_v16 = vadd.f32 %v1366_v63, %v1253_v59  ;;  %v1369_v21 = vpop.f32.mrf.mxu2 }
 0x213   :  { %11259 = vst [vmem:[#allocation138_spill] sm:$0xff] %v7762_v16 }
 0x215   :  { %v1141_v17 = vpop.f32.mrf.mxu0 }
 0x216   :  { %v1255_v28 = vpop.f32.mrf.mxu1 }
 0x217   :  { %v1256_v1 = vadd.f32 %v1255_v28, %v1141_v17  ;;  %1432 = vmatmul.bf16.gmra.mxu3 %v7150_v44 }
 0x218   :  { %5639 = vmatmul.msk.bf16.gmra.mxu0 %vm998_vm0, %v7038_v55 }
 0x219   :  { %v7766_v37 = vadd.f32 %v1369_v21, %v1256_v1  ;;  %v1371_v7 = vpop.f32.mrf.mxu2 }
 0x21b   :  { %11260 = vst [vmem:[#allocation139_spill] sm:$0xff] %v7766_v37 }
 0x21d   :  { %v1143_v42 = vpop.f32.mrf.mxu0 }
 0x21e   :  { %1536 = vmatmul.bf16.gmra.mxu2 %v7084_v51  ;;  %v1257_v60 = vpop.f32.mrf.mxu1 }
 0x21f   :  { %v1258_v54 = vadd.f32 %v1257_v60, %v1143_v42 }
 0x221   :  { %v7770_v31 = vadd.f32 %v1371_v7, %v1258_v54  ;;  %v1374_v22 = vpop.f32.mrf.mxu2 }
 0x223   :  { %11261 = vst [vmem:[#allocation140_spill] sm:$0xff] %v7770_v31 }
 0x225   :  { %v1146_v63 = vpop.f32.mrf.mxu0 }
 0x226   :  { %v1260_v43 = vpop.f32.mrf.mxu1 }
 0x227   :  { %v1261_v49 = vadd.f32 %v1260_v43, %v1146_v63  ;;  %1437 = vmatmul.bf16.gmra.mxu3 %v7178_v45 }
 0x228   :  { %5640 = vmatmul.msk.bf16.gmra.mxu0 %vm998_vm0, %v7066_v57 }
 0x229   :  { %v7774_v55 = vadd.f32 %v1374_v22, %v1261_v49  ;;  %v1376_v1 = vpop.f32.mrf.mxu2 }
 0x22b   :  { %11262 = vst [vmem:[#allocation141_spill] sm:$0xff] %v7774_v55 }
 0x22d   :  { %v1148_v44 = vpop.f32.mrf.mxu0 }
 0x22e   :  { %1541 = vmatmul.bf16.gmra.mxu2 %v7124_v50  ;;  %v1262_v51 = vpop.f32.mrf.mxu1 }
 0x22f   :  { %v1263_v59 = vadd.f32 %v1262_v51, %v1148_v44 }
 0x231   :  { %v7778_v21 = vadd.f32 %v1376_v1, %v1263_v59  ;;  %v1379_v17 = vpop.f32.mrf.mxu2 }
 0x233   :  { %11263 = vst [vmem:[#allocation142_spill] sm:$0xff] %v7778_v21 }
 0x235   :  { %v1151_v28 = vpop.f32.mrf.mxu0 }
 0x236   :  { %v1265_v7 = vpop.f32.mrf.mxu1 }
 0x237   :  { %v1266_v42 = vadd.f32 %v1265_v7, %v1151_v28  ;;  %1442 = vmatmul.bf16.gmra.mxu3 %v7212_v53 }
 0x238   :  { %5641 = vmatmul.msk.bf16.gmra.mxu0 %vm998_vm0, %v7094_v61 }
 0x239   :  { %v7782_v57 = vadd.f32 %v1379_v17, %v1266_v42  ;;  %v1381_v60 = vpop.f32.mrf.mxu2 }
 0x23b   :  { %11264 = vst [vmem:[#allocation143_spill] sm:$0xff] %v7782_v57 }
 0x23d   :  { %v1153_v45 = vpop.f32.mrf.mxu0 }
 0x23e   :  { %1546 = vmatmul.bf16.gmra.mxu2 %v7152_v56  ;;  %v1267_v50 = vpop.f32.mrf.mxu1 }
 0x23f   :  { %v1268_v54 = vadd.f32 %v1267_v50, %v1153_v45 }
 0x241   :  { %v7786_v22 = vadd.f32 %v1381_v60, %v1268_v54  ;;  %v1384_v63 = vpop.f32.mrf.mxu2 }
 0x243   :  { %11265 = vst [vmem:[#allocation144_spill] sm:$0xff] %v7786_v22 }
 0x245   :  { %v1156_v43 = vpop.f32.mrf.mxu0 }
 0x246   :  { %v1270_v49 = vpop.f32.mrf.mxu1 }
 0x247   :  { %v1271_v1 = vadd.f32 %v1270_v49, %v1156_v43  ;;  %1447 = vmatmul.bf16.gmra.mxu3 %v7246_v24 }
 0x248   :  { %5642 = vmatmul.msk.bf16.gmra.mxu0 %vm998_vm0, %v7134_v38 }
 0x249   :  { %v7790_v61 = vadd.f32 %v1384_v63, %v1271_v1  ;;  %v1386_v44 = vpop.f32.mrf.mxu2 }
 0x24b   :  { %11266 = vst [vmem:[#allocation145_spill] sm:$0xff] %v7790_v61 }
 0x24d   :  { %v1158_v53 = vpop.f32.mrf.mxu0 }
 0x24e   :  { %1551 = vmatmul.bf16.gmra.mxu2 %v7180_v48  ;;  %v1272_v56 = vpop.f32.mrf.mxu1 }
 0x24f   :  { %v1273_v51 = vadd.f32 %v1272_v56, %v1158_v53 }
 0x251   :  { %v7794_v59 = vadd.f32 %v1386_v44, %v1273_v51  ;;  %v1389_v17 = vpop.f32.mrf.mxu2 }
 0x253   :  { %11267 = vst [vmem:[#allocation146_spill] sm:$0xff] %v7794_v59 }
 0x255   :  { %v1161_v28 = vpop.f32.mrf.mxu0 }
 0x256   :  { %v1275_v7 = vpop.f32.mrf.mxu1 }
 0x257   :  { %v1276_v42 = vadd.f32 %v1275_v7, %v1161_v28  ;;  %1452 = vmatmul.bf16.gmra.mxu3 %v7274_v47 }
 0x258   :  { %5643 = vmatmul.msk.bf16.gmra.mxu0 %vm998_vm0, %v7162_v58 }
 0x259   :  { %v7798_v38 = vadd.f32 %v1389_v17, %v1276_v42  ;;  %v1391_v60 = vpop.f32.mrf.mxu2 }
 0x25a   :  { %v1413_v45 = vpop.f32.mrf.mxu3 }
 0x25b   :  { %11268 = vst [vmem:[#allocation147_spill] sm:$0xff] %v7798_v38 }
 0x25d   :  { %v1163_v24 = vpop.f32.mrf.mxu0 }
 0x25e   :  { %1556 = vmatmul.bf16.gmra.mxu2 %v7214_v36  ;;  %v1277_v48 = vpop.f32.mrf.mxu1 }
 0x25f   :  { %v1278_v50 = vadd.f32 %v1277_v48, %v1163_v24 }
 0x261   :  { %v7802_v54 = vadd.f32 %v1391_v60, %v1278_v50  ;;  %v1394_v63 = vpop.f32.mrf.mxu2 }
 0x262   :  { %v1415_v49 = vpop.f32.mrf.mxu3 }
 0x263   :  { %11269 = vst [vmem:[#allocation148_spill] sm:$0xff] %v7802_v54 }
 0x265   :  { %v1166_v43 = vpop.f32.mrf.mxu0 }
 0x266   :  { %v1280_v1 = vpop.f32.mrf.mxu1 }
 0x267   :  { %v1281_v44 = vadd.f32 %v1280_v1, %v1166_v43  ;;  %1457 = vmatmul.bf16.gmra.mxu3 %v7312_v41 }
 0x268   :  { %5644 = vmatmul.msk.bf16.gmra.mxu0 %vm998_vm0, %v7190_v33 }
 0x269   :  { %v7806_v58 = vadd.f32 %v1394_v63, %v1281_v44  ;;  %v1396_v53 = vpop.f32.mrf.mxu2 }
 0x26a   :  { %v1418_v56 = vpop.f32.mrf.mxu3 }
 0x26b   :  { %11270 = vst [vmem:[#allocation149_spill] sm:$0xff] %v7806_v58 }
 0x26d   :  { %v1168_v47 = vpop.f32.mrf.mxu0 }
 0x26e   :  { %1561 = vmatmul.bf16.gmra.mxu2 %v7248_v27  ;;  %v1282_v36 = vpop.f32.mrf.mxu1 }
 0x26f   :  { %v1283_v51 = vadd.f32 %v1282_v36, %v1168_v47 }
 0x271   :  { %v7810_v17 = vadd.f32 %v1396_v53, %v1283_v51  ;;  %v1399_v28 = vpop.f32.mrf.mxu2 }
 0x272   :  { %v1420_v42 = vpop.f32.mrf.mxu3 }
 0x273   :  { %11271 = vst [vmem:[#allocation150_spill] sm:$0xff] %v7810_v17 }
 0x275   :  { %v1171_v7 = vpop.f32.mrf.mxu0 }
 0x276   :  { %v1285_v60 = vpop.f32.mrf.mxu1 }
 0x277   :  { %v1286_v24 = vadd.f32 %v1285_v60, %v1171_v7  ;;  %1462 = vmatmul.bf16.gmra.mxu3 %v7344_v18 }
 0x278   :  { %5645 = vmatmul.msk.bf16.gmra.mxu0 %vm998_vm0, %v7224_v52 }
 0x279   :  { %v7814_v33 = vadd.f32 %v1399_v28, %v1286_v24  ;;  %v1401_v48 = vpop.f32.mrf.mxu2  ;;  %v1915_v24 = vmul.f32 %v7292_v30, %v7292_v30 }
 0x27a   :  { %v1423_v50 = vpop.f32.mrf.mxu3 }
 0x27b   :  { %11272 = vst [vmem:[#allocation151_spill] sm:$0xff] %v7814_v33 }
 0x27d   :  { %v1173_v41 = vpop.f32.mrf.mxu0 }
 0x27e   :  { %1566 = vmatmul.bf16.gmra.mxu2 %v7276_v39  ;;  %v1287_v27 = vpop.f32.mrf.mxu1 }
 0x27f   :  { %v1288_v63 = vadd.f32 %v1287_v27, %v1173_v41 }
 0x281   :  { %v7818_v43 = vadd.f32 %v1401_v48, %v1288_v63  ;;  %v1527_v1 = vpop.f32.mrf.mxu2 }
 0x282   :  { %v1528_v44 = vadd.f32 %v1527_v1, %v1413_v45  ;;  %v7820_v47 = vpop.f32.mrf.mxu3 }
 0x283   :  { %11273 = vst [vmem:[#allocation152_spill] sm:$0xff] %v7818_v43 }
 0x285   :  { %v1641_v53 = vpop.f32.mrf.mxu0 }
 0x286   :  { %v7822_v52 = vadd.f32 %v1641_v53, %v1528_v44 }
 0x287   :  { %1467 = vmatmul.bf16.gmra.mxu3 %v7388_v2  ;;  %v1917_v2 = vmul.f32 %v7298_v13, %v7298_v13 }
 0x288   :  { %11274 = vst [vmem:[#allocation153_spill] sm:$0xff] %v7822_v52  ;;  %5646 = vmatmul.msk.bf16.gmra.mxu0 %vm998_vm0, %v7258_v46  ;;  %v1747_v18 = vsel %vm1746_vm1, %v7822_v52, 0.0  ;;  %v1916_v51 = vmul.f32 %v7822_v52, %v7822_v52  ;;  %v11326_v52 = vld [vmem:[#allocation131_spill] sm:$0xff] }
 0x289   :  { %v1529_v36 = vpop.f32.mrf.mxu2  ;;  %v1748_v39 = vadd.f32 %v1747_v18, %v7292_v30 }
 0x28a   :  { %v1530_v45 = vadd.f32 %v1529_v36, %v1415_v49  ;;  %v7832_v7 = vpop.f32.mrf.mxu3  ;;  %v1999_v46 = vsel %vm1746_vm1, %v1916_v51, 0.0 }
 0x28b   :  { %1749 = vadd.xlane.f32.xlu0 %v1748_v39  ;;  %v2000_v27 = vadd.f32 %v1999_v46, %v1915_v24 }
 0x28d   :  { %v1643_v28 = vpop.f32.mrf.mxu0 }
 0x28e   :  { %1571 = vmatmul.bf16.gmra.mxu2 %v7314_v40  ;;  %v7835_v60 = vadd.f32 %v1643_v28, %v1530_v45  ;;  %v1919_v45 = vmul.f32 %v7323_v62, %v7323_v62 }
 0x290   :  { %11275 = vst [vmem:[#allocation154_spill] sm:$0xff] %v7835_v60  ;;  %v1918_v48 = vmul.f32 %v7835_v60, %v7835_v60  ;;  %v1751_v18 = vsel %vm1746_vm1, %v7835_v60, 0.0 }
 0x291   :  { %v1532_v41 = vpop.f32.mrf.mxu2  ;;  %v1752_v51 = vadd.f32 %v1751_v18, %v7298_v13 }
 0x292   :  { %v1533_v49 = vadd.f32 %v1532_v41, %v1418_v56  ;;  %v2003_v63 = vsel %vm1746_vm1, %v1918_v48, 0.0  ;;  %v7845_v44 = vpop.f32.mrf.mxu3 }
 0x293   :  { %2001 = vadd.xlane.f32.xlu0 %v2000_v27  ;;  %v2004_v40 = vadd.f32 %v2003_v63, %v1917_v2  ;;  %v1921_v63 = vmul.f32 %v7336_v32, %v7336_v32 }
 0x295   :  { %v1646_v1 = vpop.f32.mrf.mxu0  ;;  %2005 = vadd.xlane.f32.xlu1 %v2004_v40 }
 0x296   :  { %v7847_v53 = vadd.f32 %v1646_v1, %v1533_v49 }
 0x297   :  { %1472 = vmatmul.bf16.gmra.mxu3 %v7420_v34 }
 0x298   :  { %11276 = vst [vmem:[#allocation155_spill] sm:$0xff] %v7847_v53  ;;  %v1920_v36 = vmul.f32 %v7847_v53, %v7847_v53  ;;  %5647 = vmatmul.msk.bf16.gmra.mxu0 %vm998_vm0, %v7294_v26  ;;  %v1755_v56 = vsel %vm1746_vm1, %v7847_v53, 0.0 }
 0x299   :  { %v1534_v39 = vpop.f32.mrf.mxu2  ;;  %v1756_v24 = vadd.f32 %v1755_v56, %v7323_v62 }
 0x29a   :  { %v2007_v28 = vsel %vm1746_vm1, %v1920_v36, 0.0  ;;  %v1535_v48 = vadd.f32 %v1534_v39, %v1420_v42  ;;  %v7863_v26 = vpop.f32.mrf.mxu3 }
 0x29b   :  { %1753 = vadd.xlane.f32.xlu0 %v1752_v51  ;;  %v2008_v46 = vadd.f32 %v2007_v28, %v1919_v45  ;;  %v1923_v28 = vmul.f32 %v7355_v6, %v7355_v6 }
 0x29d   :  { %v1648_v41 = vpop.f32.mrf.mxu0  ;;  %2009 = vadd.xlane.f32.xlu2 %v2008_v46  ;;  %1757 = vadd.xlane.f32.xlu1 %v1756_v24 }
 0x29e   :  { %1576 = vmatmul.bf16.gmra.mxu2 %v7346_v35  ;;  %v7866_v27 = vadd.f32 %v1648_v41, %v1535_v48 }
 0x2a0   :  { %11277 = vst [vmem:[#allocation156_spill] sm:$0xff] %v7866_v27  ;;  %v1922_v2 = vmul.f32 %v7866_v27, %v7866_v27  ;;  %v1759_v34 = vsel %vm1746_vm1, %v7866_v27, 0.0 }
 0x2a1   :  { %v1537_v49 = vpop.f32.mrf.mxu2  ;;  %v1760_v1 = vadd.f32 %v1759_v34, %v7336_v32 }
 0x2a2   :  { %v1538_v42 = vadd.f32 %v1537_v49, %v1423_v50  ;;  %v2011_v40 = vsel %vm1746_vm1, %v1922_v2, 0.0  ;;  %v7876_v35 = vpop.f32.mrf.mxu3 }
 0x2a3   :  { %v2012_v18 = vadd.f32 %v2011_v40, %v1921_v63 }
 0x2a5   :  { %v1651_v36 = vpop.f32.mrf.mxu0  ;;  %1761 = vadd.xlane.f32.xlu1 %v1760_v1  ;;  %2013 = vadd.xlane.f32.xlu0 %v2012_v18  ;;  %v1925_v18 = vmul.f32 %v7377_v12, %v7377_v12 }
 0x2a6   :  { %v7878_v56 = vadd.f32 %v1651_v36, %v1538_v42 }
 0x2a7   :  { %1477 = vmatmul.bf16.gmra.mxu3 %v7452_v0 }
 0x2a8   :  { %11278 = vst [vmem:[#allocation157_spill] sm:$0xff] %v7878_v56  ;;  %v1924_v39 = vmul.f32 %v7878_v56, %v7878_v56  ;;  %5648 = vmatmul.msk.bf16.gmra.mxu0 %vm998_vm0, %v7326_v15  ;;  %v1763_v50 = vsel %vm1746_vm1, %v7878_v56, 0.0 }
 0x2a9   :  { %v1539_v51 = vpop.f32.mrf.mxu2  ;;  %v1764_v45 = vadd.f32 %v1763_v50, %v7355_v6 }
 0x2aa   :  { %v2015_v46 = vsel %vm1746_vm1, %v1924_v39, 0.0  ;;  %v1540_v48 = vadd.f32 %v1539_v51, %v7820_v47  ;;  %v7892_v15 = vpop.f32.mrf.mxu3 }
 0x2ab   :  { %1765 = vadd.xlane.f32.xlu2 %v1764_v45  ;;  %v2016_v24 = vadd.f32 %v2015_v46, %v1923_v28 }
 0x2ad   :  { %v1653_v41 = vpop.f32.mrf.mxu0  ;;  %2017 = vadd.xlane.f32.xlu1 %v2016_v24 }
 0x2ae   :  { %1581 = vmatmul.bf16.gmra.mxu2 %v7390_v29  ;;  %v7895_v2 = vadd.f32 %v1653_v41, %v1540_v48  ;;  %v1927_v48 = vmul.f32 %v7399_v8, %v7399_v8 }
 0x2b0   :  { %11279 = vst [vmem:[#allocation158_spill] sm:$0xff] %v7895_v2  ;;  %v1767_v34 = vsel %vm1746_vm1, %v7895_v2, 0.0  ;;  %v1926_v0 = vmul.f32 %v7895_v2, %v7895_v2 }
 0x2b1   :  { %v1542_v49 = vpop.f32.mrf.mxu2  ;;  %v1768_v63 = vadd.f32 %v1767_v34, %v7377_v12 }
 0x2b2   :  { %v1543_v42 = vadd.f32 %v1542_v49, %v7832_v7  ;;  %v7903_v40 = vpop.f32.mrf.mxu3  ;;  %v2019_v29 = vsel %vm1746_vm1, %v1926_v0, 0.0 }
 0x2b3   :  { %1769 = vadd.xlane.f32.xlu2 %v1768_v63  ;;  %v2020_v50 = vadd.f32 %v2019_v29, %v1925_v18  ;;  %v1929_v29 = vmul.f32 %v7412_v20, %v7412_v20 }
 0x2b5   :  { %v1656_v47 = vpop.f32.mrf.mxu0 }
 0x2b6   :  { %v7905_v1 = vadd.f32 %v1656_v47, %v1543_v42 }
 0x2b7   :  { %1482 = vmatmul.bf16.gmra.mxu3 %v7490_v11 }
 0x2b8   :  { %11280 = vst [vmem:[#allocation159_spill] sm:$0xff] %v7905_v1  ;;  %5649 = vmatmul.msk.bf16.gmra.mxu0 %vm998_vm0, %v7358_v25  ;;  %v1771_v36 = vsel %vm1746_vm1, %v7905_v1, 0.0  ;;  %v1928_v51 = vmul.f32 %v7905_v1, %v7905_v1 }
 0x2b9   :  { %v1544_v39 = vpop.f32.mrf.mxu2  ;;  %v1772_v7 = vadd.f32 %v1771_v36, %v7399_v8  ;;  %v11311_v8 = vld [vmem:[#allocation123_spill] sm:$0xff] }
 0x2ba   :  { %v1545_v45 = vadd.f32 %v1544_v39, %v7845_v44  ;;  %v7919_v46 = vpop.f32.mrf.mxu3  ;;  %v2023_v24 = vsel %vm1746_vm1, %v1928_v51, 0.0  ;;  %v11284_v51 = vld [vmem:[#allocation112_spill] sm:$0xff] }
 0x2bb   :  { %2021 = vadd.xlane.f32.xlu2 %v2020_v50  ;;  %1773 = vadd.xlane.f32.xlu0 %v1772_v7  ;;  %v2024_v49 = vadd.f32 %v2023_v24, %v1927_v48 }
 0x2bd   :  { %v1658_v28 = vpop.f32.mrf.mxu0 }
 0x2be   :  { %1586 = vmatmul.bf16.gmra.mxu2 %v7422_v19  ;;  %v7922_v25 = vadd.f32 %v1658_v28, %v1545_v45 }
 0x2c0   :  { %11281 = vst [vmem:[#allocation160_spill] sm:$0xff] %v7922_v25  ;;  %v1775_v41 = vsel %vm1746_vm1, %v7922_v25, 0.0  ;;  %v1930_v44 = vmul.f32 %v7922_v25, %v7922_v25 }
 0x2c1   :  { %v1547_v11 = vpop.f32.mrf.mxu2  ;;  %v1776_v34 = vadd.f32 %v1775_v41, %v7412_v20 }
 0x2c2   :  { %v1548_v63 = vadd.f32 %v1547_v11, %v7863_v26  ;;  %v7933_v0 = vpop.f32.mrf.mxu3  ;;  %v2027_v47 = vsel %vm1746_vm1, %v1930_v44, 0.0  ;;  %v11283_v26 = vld [vmem:[#allocation101_spill] sm:$0xff] }
 0x2c3   :  { %1777 = vadd.xlane.f32.xlu1 %v1776_v34  ;;  %2025 = vadd.xlane.f32.xlu0 %v2024_v49  ;;  %v2028_v50 = vadd.f32 %v2027_v47, %v1929_v29  ;;  %v1931_v11 = vmul.f32 %v11283_v26, %v11283_v26 }
 0x2c5   :  { %v1661_v19 = vpop.f32.mrf.mxu0 }
 0x2c6   :  { %v7935_v42 = vadd.f32 %v1661_v19, %v1548_v63  ;;  %v11287_v63 = vld [vmem:[#allocation103_spill] sm:$0xff] }
 0x2c7   :  { %1487 = vmatmul.bf16.gmra.mxu3 %v11284_v51 }
 0x2c8   :  { %11282 = vst [vmem:[#allocation161_spill] sm:$0xff] %v7935_v42  ;;  %5650 = vmatmul.msk.bf16.gmra.mxu0 %vm998_vm0, %v7402_v9  ;;  %v1779_v18 = vsel %vm1746_vm1, %v7935_v42, 0.0  ;;  %v1932_v7 = vmul.f32 %v7935_v42, %v7935_v42  ;;  %v11285_v9 = vld [vmem:[#allocation104_spill] sm:$0xff] }
 0x2c9   :  { %v1549_v36 = vpop.f32.mrf.mxu2  ;;  %v1780_v39 = vadd.f32 %v1779_v18, %v11283_v26 }
 0x2ca   :  { %v1550_v45 = vadd.f32 %v1549_v36, %v7876_v35  ;;  %v7949_v24 = vpop.f32.mrf.mxu3  ;;  %v2031_v41 = vsel %vm1746_vm1, %v1932_v7, 0.0  ;;  %v11289_v7 = vld [vmem:[#allocation102_spill] sm:$0xff] }
 0x2cb   :  { %1781 = vadd.xlane.f32.xlu2 %v1780_v39  ;;  %2029 = vadd.xlane.f32.xlu1 %v2028_v50  ;;  %v2032_v44 = vadd.f32 %v2031_v41, %v1931_v11  ;;  %v1933_v50 = vmul.f32 %v11287_v63, %v11287_v63  ;;  %v11291_v11 = vld [vmem:[#allocation117_spill] sm:$0xff] }
 0x2cd   :  { %v1663_v28 = vpop.f32.mrf.mxu0 }
 0x2ce   :  { %1591 = vmatmul.bf16.gmra.mxu2 %v11285_v9  ;;  %v7952_v48 = vadd.f32 %v1663_v28, %v1550_v45 }
 0x2d0   :  { %11286 = vst [vmem:[#allocation112_spill] sm:$0xff] %v7952_v48  ;;  %v1783_v34 = vsel %vm1746_vm1, %v7952_v48, 0.0  ;;  %v1934_v35 = vmul.f32 %v7952_v48, %v7952_v48 }
 0x2d1   :  { %v1552_v49 = vpop.f32.mrf.mxu2  ;;  %v1784_v19 = vadd.f32 %v1783_v34, %v11287_v63  ;;  %v11303_v63 = vld [vmem:[#allocation110_spill] sm:$0xff] }
 0x2d2   :  { %v1553_v47 = vadd.f32 %v1552_v49, %v7892_v15  ;;  %v7963_v18 = vpop.f32.mrf.mxu3  ;;  %v2035_v39 = vsel %vm1746_vm1, %v1934_v35, 0.0  ;;  %v11290_v15 = vld [vmem:[#allocation105_spill] sm:$0xff] }
 0x2d3   :  { %2033 = vadd.xlane.f32.xlu2 %v2032_v44  ;;  %1785 = vadd.xlane.f32.xlu0 %v1784_v19  ;;  %v2036_v9 = vadd.f32 %v2035_v39, %v1933_v50  ;;  %v11292_v19 = vld [vmem:[#allocation108_spill] sm:$0xff] }
 0x2d5   :  { %v1666_v29 = vpop.f32.mrf.mxu0 }
 0x2d6   :  { %v7965_v36 = vadd.f32 %v1666_v29, %v1553_v47  ;;  %v1935_v29 = vmul.f32 %v11290_v15, %v11290_v15 }
 0x2d7   :  { %1492 = vmatmul.bf16.gmra.mxu3 %v11291_v11 }
 0x2d8   :  { %11288 = vst [vmem:[#allocation104_spill] sm:$0xff] %v7965_v36  ;;  %5651 = vmatmul.msk.bf16.gmra.mxu0 %vm998_vm0, %v11289_v7  ;;  %v1787_v51 = vsel %vm1746_vm1, %v7965_v36, 0.0  ;;  %v1936_v41 = vmul.f32 %v7965_v36, %v7965_v36  ;;  %v11294_v7 = vld [vmem:[#allocation107_spill] sm:$0xff] }
 0x2d9   :  { %v1554_v45 = vpop.f32.mrf.mxu2  ;;  %v1788_v28 = vadd.f32 %v1787_v51, %v11290_v15 }
 0x2da   :  { %v1555_v34 = vadd.f32 %v1554_v45, %v7903_v40  ;;  %v7979_v44 = vpop.f32.mrf.mxu3  ;;  %v2039_v47 = vsel %vm1746_vm1, %v1936_v41, 0.0 }
 0x2db   :  { %1789 = vadd.xlane.f32.xlu1 %v1788_v28  ;;  %2037 = vadd.xlane.f32.xlu0 %v2036_v9  ;;  %v2040_v28 = vadd.f32 %v2039_v47, %v1935_v29 }
 0x2dd   :  { %v1668_v49 = vpop.f32.mrf.mxu0 }
 0x2de   :  { %1596 = vmatmul.bf16.gmra.mxu2 %v11292_v19  ;;  %v7982_v35 = vadd.f32 %v1668_v49, %v1555_v34  ;;  %v1937_v49 = vmul.f32 %v11294_v7, %v11294_v7  ;;  %v11296_v19 = vld [vmem:[#allocation106_spill] sm:$0xff] }
 0x2e0   :  { %11293 = vst [vmem:[#allocation102_spill] sm:$0xff] %v7982_v35  ;;  %v1791_v39 = vsel %vm1746_vm1, %v7982_v35, 0.0  ;;  %v1938_v40 = vmul.f32 %v7982_v35, %v7982_v35 }
 0x2e1   :  { %v1557_v50 = vpop.f32.mrf.mxu2  ;;  %v1792_v51 = vadd.f32 %v1791_v39, %v11294_v7  ;;  %v11297_v39 = vld [vmem:[#allocation109_spill] sm:$0xff] }
 0x2e2   :  { %v1558_v45 = vadd.f32 %v1557_v50, %v7919_v46  ;;  %v7993_v11 = vpop.f32.mrf.mxu3  ;;  %v2043_v34 = vsel %vm1746_vm1, %v1938_v40, 0.0 }
 0x2e3   :  { %1793 = vadd.xlane.f32.xlu2 %v1792_v51  ;;  %2041 = vadd.xlane.f32.xlu1 %v2040_v28  ;;  %v2044_v46 = vadd.f32 %v2043_v34, %v1937_v49  ;;  %v11298_v28 = vld [vmem:[#allocation122_spill] sm:$0xff]  ;;  %v1939_v49 = vmul.f32 %v11297_v39, %v11297_v39 }
 0x2e5   :  { %v1671_v9 = vpop.f32.mrf.mxu0 }
 0x2e6   :  { %v7995_v41 = vadd.f32 %v1671_v9, %v1558_v45 }
 0x2e7   :  { %1497 = vmatmul.bf16.gmra.mxu3 %v11298_v28 }
 0x2e8   :  { %11295 = vst [vmem:[#allocation117_spill] sm:$0xff] %v7995_v41  ;;  %5652 = vmatmul.msk.bf16.gmra.mxu0 %vm998_vm0, %v11296_v19  ;;  %v1795_v47 = vsel %vm1746_vm1, %v7995_v41, 0.0  ;;  %v1940_v51 = vmul.f32 %v7995_v41, %v7995_v41  ;;  %v11299_v19 = vld [vmem:[#allocation113_spill] sm:$0xff] }
 0x2e9   :  { %v1559_v29 = vpop.f32.mrf.mxu2  ;;  %v1796_v50 = vadd.f32 %v1795_v47, %v11297_v39 }
 0x2ea   :  { %v1560_v40 = vadd.f32 %v1559_v29, %v7933_v0  ;;  %v8009_v9 = vpop.f32.mrf.mxu3  ;;  %v2047_v34 = vsel %vm1746_vm1, %v1940_v51, 0.0 }
 0x2eb   :  { %2045 = vadd.xlane.f32.xlu2 %v2044_v46  ;;  %1797 = vadd.xlane.f32.xlu0 %v1796_v50  ;;  %v11301_v46 = vld [vmem:[#allocation111_spill] sm:$0xff]  ;;  %v2048_v41 = vadd.f32 %v2047_v34, %v1939_v49 }
 0x2ec   :  { %v1941_v39 = vmul.f32 %v11301_v46, %v11301_v46 }
 0x2ed   :  { %v1673_v45 = vpop.f32.mrf.mxu0 }
 0x2ee   :  { %1601 = vmatmul.bf16.gmra.mxu2 %v11299_v19  ;;  %v8012_v48 = vadd.f32 %v1673_v45, %v1560_v40 }
 0x2f0   :  { %11300 = vst [vmem:[#allocation108_spill] sm:$0xff] %v8012_v48  ;;  %v1799_v47 = vsel %vm1746_vm1, %v8012_v48, 0.0  ;;  %v1942_v0 = vmul.f32 %v8012_v48, %v8012_v48 }
 0x2f1   :  { %v1562_v28 = vpop.f32.mrf.mxu2  ;;  %v1800_v50 = vadd.f32 %v1799_v47, %v11301_v46 }
 0x2f2   :  { %v1563_v29 = vadd.f32 %v1562_v28, %v7949_v24  ;;  %v8023_v45 = vpop.f32.mrf.mxu3  ;;  %v2051_v19 = vsel %vm1746_vm1, %v1942_v0, 0.0  ;;  %v11304_v24 = vld [vmem:[#allocation114_spill] sm:$0xff] }
 0x2f3   :  { %1801 = vadd.xlane.f32.xlu1 %v1800_v50  ;;  %2049 = vadd.xlane.f32.xlu0 %v2048_v41  ;;  %v2052_v41 = vadd.f32 %v2051_v19, %v1941_v39  ;;  %v1943_v39 = vmul.f32 %v11304_v24, %v11304_v24 }
 0x2f5   :  { %v1676_v40 = vpop.f32.mrf.mxu0 }
 0x2f6   :  { %v8025_v51 = vadd.f32 %v1676_v40, %v1563_v29 }
 0x2f7   :  { %1502 = vmatmul.bf16.gmra.mxu3 %v7672_v14 }
 0x2f8   :  { %11302 = vst [vmem:[#allocation106_spill] sm:$0xff] %v8025_v51  ;;  %5653 = vmatmul.msk.bf16.gmra.mxu0 %vm998_vm0, %v11303_v63  ;;  %v1803_v34 = vsel %vm1746_vm1, %v8025_v51, 0.0  ;;  %v1944_v28 = vmul.f32 %v8025_v51, %v8025_v51  ;;  %v11305_v63 = vld [vmem:[#allocation118_spill] sm:$0xff] }
 0x2f9   :  { %v1564_v49 = vpop.f32.mrf.mxu2  ;;  %v1804_v47 = vadd.f32 %v1803_v34, %v11304_v24 }
 0x2fa   :  { %v1565_v50 = vadd.f32 %v1564_v49, %v7963_v18  ;;  %v8039_v29 = vpop.f32.mrf.mxu3  ;;  %v2055_v34 = vsel %vm1746_vm1, %v1944_v28, 0.0 }
 0x2fb   :  { %1805 = vadd.xlane.f32.xlu2 %v1804_v47  ;;  %2053 = vadd.xlane.f32.xlu1 %v2052_v41  ;;  %v2056_v47 = vadd.f32 %v2055_v34, %v1943_v39  ;;  %v11307_v41 = vld [vmem:[#allocation116_spill] sm:$0xff] }
 0x2fd   :  { %v1678_v0 = vpop.f32.mrf.mxu0 }
 0x2fe   :  { %1606 = vmatmul.bf16.gmra.mxu2 %v11305_v63  ;;  %v8042_v40 = vadd.f32 %v1678_v0, %v1565_v50  ;;  %v1750_v48 = vpop.xlane.xlu0 %1749 }
 0x2ff   :  { %v8053_v50 = vmul.f32 0.0051020407, %v1750_v48 }
 0x300   :  { %11306 = vst [vmem:[#allocation122_spill] sm:$0xff] %v8042_v40  ;;  %v1807_v14 = vsel %vm1746_vm1, %v8042_v40, 0.0  ;;  %v1946_v49 = vmul.f32 %v8042_v40, %v8042_v40 }
 0x301   :  { %v1567_v19 = vpop.f32.mrf.mxu2  ;;  %v1808_v18 = vadd.f32 %v1807_v14, %v11307_v41  ;;  %v2251_v34 = vmul.f32 %v8053_v50, %v8053_v50  ;;  %v1945_v14 = vmul.f32 %v11307_v41, %v11307_v41 }
 0x302   :  { %v1568_v63 = vadd.f32 %v1567_v19, %v7979_v44  ;;  %v8055_v0 = vpop.f32.mrf.mxu3  ;;  %v2059_v15 = vsel %vm1746_vm1, %v1946_v49, 0.0  ;;  %v11309_v44 = vld [vmem:[#allocation115_spill] sm:$0xff] }
 0x303   :  { %2057 = vadd.xlane.f32.xlu2 %v2056_v47  ;;  %1809 = vadd.xlane.f32.xlu0 %v1808_v18  ;;  %v2060_v40 = vadd.f32 %v2059_v15, %v1945_v14 }
 0x305   :  { %v1681_v28 = vpop.f32.mrf.mxu0 }
 0x306   :  { %v8057_v46 = vadd.f32 %v1681_v28, %v1568_v63  ;;  %v2002_v36 = vpop.xlane.xlu0 %2001  ;;  %v11310_v63 = vld [vmem:[#allocation119_spill] sm:$0xff] }
 0x307   :  { %v2209_v39 = vmul.f32 0.0051020407, %v2002_v36  ;;  %1507 = vmatmul.bf16.gmra.mxu3 %v7711_v10  ;;  %v1947_v10 = vmul.f32 %v11310_v63, %v11310_v63 }
 0x308   :  { %11308 = vst [vmem:[#allocation113_spill] sm:$0xff] %v8057_v46  ;;  %5654 = vmatmul.msk.bf16.gmra.mxu0 %vm998_vm0, %v11309_v44  ;;  %v2006_v48 = vpop.xlane.xlu1 %2005  ;;  %v1811_v19 = vsel %vm1746_vm1, %v8057_v46, 0.0  ;;  %v1948_v49 = vmul.f32 %v8057_v46, %v8057_v46 }
 0x309   :  { %v2293_v47 = vsub.f32 %v2209_v39, %v2251_v34  ;;  %v1569_v18 = vpop.f32.mrf.mxu2  ;;  %v1812_v28 = vadd.f32 %v1811_v19, %v11310_v63 }
 0x30a   :  { %v1570_v41 = vadd.f32 %v1569_v18, %v7993_v11  ;;  %v2063_v15 = vsel %vm1746_vm1, %v1948_v49, 0.0  ;;  %v2210_v11 = vmul.f32 0.0051020407, %v2006_v48 }
 0x30b   :  { %v2335_v36 = vmax.f32 %v2293_v47, 0.0  ;;  %1813 = vadd.xlane.f32.xlu1 %v1812_v28  ;;  %2061 = vadd.xlane.f32.xlu0 %v2060_v40  ;;  %v8084_v40 = vpop.f32.mrf.mxu3  ;;  %v11313_v28 = vld [vmem:[#allocation121_spill] sm:$0xff] }
 0x30d   :  { %v8073_v44 = vadd.f32 1e-05, %v2335_v36  ;;  %v1683_v1 = vpop.f32.mrf.mxu0  ;;  %v2064_v36 = vadd.f32 %v2063_v15, %v1947_v10 }
 0x30e   :  { %1611 = vmatmul.bf16.gmra.mxu2 %v11311_v8  ;;  %v8076_v34 = vadd.f32 %v1683_v1, %v1570_v41  ;;  %v1754_v39 = vpop.xlane.xlu0 %1753 }
 0x30f   :  { %6124 = vrsqrt.f32 %v8073_v44  ;;  %v8080_v14 = vmul.f32 0.0051020407, %v1754_v39  ;;  %vm2467_vm3 = vweird.f32 %v8073_v44 }
 0x310   :  { %11312 = vst [vmem:[#allocation110_spill] sm:$0xff] %v8076_v34  ;;  %v2010_v19 = vpop.xlane.xlu2 %2009  ;;  %v1758_v47 = vpop.xlane.xlu1 %1757  ;;  %v1815_v8 = vsel %vm1746_vm1, %v8076_v34, 0.0  ;;  %v1950_v39 = vmul.f32 %v8076_v34, %v8076_v34 }
 0x311   :  { %v2252_v1 = vmul.f32 %v8080_v14, %v8080_v14  ;;  %v1572_v41 = vpop.f32.mrf.mxu2  ;;  %v8090_v18 = vmul.f32 0.0051020407, %v1758_v47  ;;  %v1816_v49 = vadd.f32 %v1815_v8, %v11313_v28  ;;  %v2211_v63 = vmul.f32 0.0051020407, %v2010_v19 }
 0x312   :  { %v1573_v46 = vadd.f32 %v1572_v41, %v8009_v9  ;;  %v2067_v15 = vsel %vm1746_vm1, %v1950_v39, 0.0  ;;  %v11315_v41 = vld [vmem:[#allocation120_spill] sm:$0xff] }
 0x313   :  { %v2294_v48 = vsub.f32 %v2210_v11, %v2252_v1  ;;  %v2253_v25 = vmul.f32 %v8090_v18, %v8090_v18  ;;  %1817 = vadd.xlane.f32.xlu2 %v1816_v49  ;;  %2065 = vadd.xlane.f32.xlu1 %v2064_v36  ;;  %v1949_v11 = vmul.f32 %v11313_v28, %v11313_v28  ;;  %v8106_v19 = vpop.f32.mrf.mxu3 }
 0x315   :  { %v6125_v20 = vpop.eup %6124  ;;  %v2336_v27 = vmax.f32 %v2294_v48, 0.0  ;;  %v2295_v32 = vsub.f32 %v2211_v63, %v2253_v25  ;;  %v1686_v47 = vpop.f32.mrf.mxu0  ;;  %v2068_v36 = vadd.f32 %v2067_v15, %v1949_v11  ;;  %v11316_v48 = vld [vmem:[#allocation124_spill] sm:$0xff]  ;;  %v2377_v11 = vld [vmem:[%s10874_s2] sm:$0xff] }
 0x316   :  { %v2462_v51 = vmul.f32 %v6125_v20, %v8073_v44  ;;  %v8099_v8 = vadd.f32 %v1686_v47, %v1573_v46  ;;  %vm2468_vm2 = vweird.f32 %v6125_v20  ;;  %v1951_v44 = vmul.f32 %v11316_v48, %v11316_v48 }
 0x317   :  { %v8102_v10 = vadd.f32 1e-05, %v2336_v27  ;;  %v2337_v9 = vmax.f32 %v2295_v32, 0.0  ;;  %1512 = vmatmul.bf16.gmra.mxu3 %v7744_v5  ;;  %vm2469_vm4 = vmor %vm2467_vm3, %vm2468_vm2 }
 0x318   :  { %11314 = vst [vmem:[#allocation118_spill] sm:$0xff] %v8099_v8  ;;  %v2463_v1 = vmul.f32 %v6125_v20, %v2462_v51  ;;  %5655 = vmatmul.msk.bf16.gmra.mxu0 %vm998_vm0, %v11315_v41  ;;  %v1762_v25 = vpop.xlane.xlu1 %1761  ;;  %v2014_v63 = vpop.xlane.xlu0 %2013  ;;  %v1819_v46 = vsel %vm1746_vm1, %v8099_v8, 0.0  ;;  %v1952_v51 = vmul.f32 %v8099_v8, %v8099_v8 }
 0x319   :  { %6126 = vrsqrt.f32 %v8102_v10  ;;  %v8113_v49 = vadd.f32 1e-05, %v2337_v9  ;;  %v1574_v27 = vpop.f32.mrf.mxu2  ;;  %v8115_v32 = vmul.f32 0.0051020407, %v1762_v25  ;;  %v1820_v47 = vadd.f32 %v1819_v46, %v11316_v48  ;;  %v11317_v46 = vld [vmem:[#allocation127_spill] sm:$0xff] }
 0x31a   :  { %v2464_v39 = vmul.f32 0.5, %v2463_v1  ;;  %v2212_v34 = vmul.f32 0.0051020407, %v2014_v63  ;;  %v1575_v1 = vadd.f32 %v1574_v27, %v8023_v45  ;;  %vm2477_vm6 = vweird.f32 %v8102_v10 }
 0x31b   :  { %6128 = vrsqrt.f32 %v8113_v49  ;;  %v2254_v41 = vmul.f32 %v8115_v32, %v8115_v32  ;;  %2069 = vadd.xlane.f32.xlu2 %v2068_v36  ;;  %1821 = vadd.xlane.f32.xlu0 %v1820_v47  ;;  %vm2487_vm9 = vweird.f32 %v8113_v49 }
 0x31c   :  { %v2465_v9 = vsub.f32 1.5, %v2464_v39 }
 0x31d   :  { %v2296_v25 = vsub.f32 %v2212_v34, %v2254_v41  ;;  %v1688_v15 = vpop.f32.mrf.mxu0  ;;  %v2071_v34 = vsel %vm1746_vm1, %v1952_v51, 0.0  ;;  %v8144_v51 = vpop.f32.mrf.mxu3 }
 0x31e   :  { %v2466_v5 = vmul.f32 %v6125_v20, %v2465_v9  ;;  %1616 = vmatmul.bf16.gmra.mxu2 %v11317_v46  ;;  %v1766_v8 = vpop.xlane.xlu2 %1765  ;;  %v8134_v41 = vadd.f32 %v1688_v15, %v1575_v1  ;;  %v2072_v1 = vadd.f32 %v2071_v34, %v1951_v44  ;;  %v11321_v44 = vld [vmem:[#allocation126_spill] sm:$0xff] }
 0x31f   :  { %v6127_v28 = vpop.eup %6126  ;;  %v2338_v63 = vmax.f32 %v2296_v25, 0.0  ;;  %v8130_v36 = vmul.f32 0.0051020407, %v1766_v8 }
 0x320   :  { %v2470_v39 = vsel %vm2469_vm4, %v6125_v20, %v2466_v5  ;;  %v2472_v47 = vmul.f32 %v6127_v28, %v8102_v10  ;;  %11318 = vst [vmem:[#allocation115_spill] sm:$0xff] %v8134_v41  ;;  %v2018_v9 = vpop.xlane.xlu1 %2017  ;;  %v8149_v20 = vld [vmem:[%s10875_s3] sm:$0xff]  ;;  %v1823_v56 = vsel %vm1746_vm1, %v8134_v41, 0.0  ;;  %vm2478_vm5 = vweird.f32 %v6127_v28 }
 0x321   :  { %v6129_v45 = vpop.eup %6128  ;;  %v8138_v27 = vmul.f32 %v2470_v39, %v2377_v11  ;;  %v8140_v46 = vadd.f32 1e-05, %v2338_v63  ;;  %v2255_v8 = vmul.f32 %v8130_v36, %v8130_v36  ;;  %v1577_v25 = vpop.f32.mrf.mxu2  ;;  %v2213_v24 = vmul.f32 0.0051020407, %v2018_v9  ;;  %11319 = vst [vmem:[#allocation123_spill] sm:$0xff] %v8149_v20  ;;  %vm2479_vm8 = vmor %vm2477_vm6, %vm2478_vm5 }
 0x322   :  { %v2473_v15 = vmul.f32 %v6127_v28, %v2472_v47  ;;  %v2482_v5 = vmul.f32 %v6129_v45, %v8113_v49  ;;  %v1578_v11 = vadd.f32 %v1577_v25, %v8039_v29  ;;  %v1954_v29 = vmul.f32 %v8134_v41, %v8134_v41 }
 0x323   :  { %v8155_v63 = vmul.f32 %v8138_v27, %v8053_v50  ;;  %6130 = vrsqrt.f32 %v8140_v46  ;;  %v2297_v39 = vsub.f32 %v2213_v24, %v2255_v8  ;;  %2073 = vadd.xlane.f32.xlu0 %v2072_v1  ;;  %v1824_v25 = vadd.f32 %v1823_v56, %v11321_v44  ;;  %v11323_v56 = vld [vmem:[#allocation125_spill] sm:$0xff] }
 0x324   :  { %v2474_v9 = vmul.f32 0.5, %v2473_v15  ;;  %v2483_v48 = vmul.f32 %v6129_v45, %v2482_v5  ;;  %v2378_v5 = vld [vmem:[%s10874_s2 + $0x8] sm:$0xff]  ;;  %vm2488_vm7 = vweird.f32 %v6129_v45  ;;  %vm2497_vm11 = vweird.f32 %v8140_v46 }
 0x325   :  { %11320 = vst [vmem:[#allocation120_spill] sm:$0xff] %v8155_v63  ;;  %v2339_v34 = vmax.f32 %v2297_v39, 0.0  ;;  %v1691_v50 = vpop.f32.mrf.mxu0  ;;  %1825 = vadd.xlane.f32.xlu1 %v1824_v25  ;;  %v2379_v25 = vld [vmem:[%s10874_s2 + $0x10] sm:$0xff]  ;;  %vm2489_vm10 = vmor %vm2487_vm9, %vm2488_vm7 }
 0x326   :  { %v2475_v6 = vsub.f32 1.5, %v2474_v9  ;;  %v2484_v60 = vmul.f32 0.5, %v2483_v48  ;;  %v8165_v24 = vadd.f32 %v1691_v50, %v1578_v11  ;;  %v1770_v8 = vpop.xlane.xlu2 %1769  ;;  %v11324_v9 = vld [vmem:[#allocation128_spill] sm:$0xff] }
 0x327   :  { %v8168_v15 = vadd.f32 1e-05, %v2339_v34  ;;  %v8193_v41 = vmul.f32 0.0051020407, %v1770_v8 }
 0x328   :  { %11322 = vst [vmem:[#allocation127_spill] sm:$0xff] %v8165_v24  ;;  %v2476_v1 = vmul.f32 %v6127_v28, %v2475_v6  ;;  %v2485_v39 = vsub.f32 1.5, %v2484_v60  ;;  %5656 = vmatmul.msk.bf16.gmra.mxu0 %vm998_vm0, %v11323_v56  ;;  %v1827_v48 = vsel %vm1746_vm1, %v8165_v24, 0.0  ;;  %v2075_v6 = vsel %vm1746_vm1, %v1954_v29, 0.0  ;;  %v8197_v29 = vpop.f32.mrf.mxu3 }
 0x329   :  { %v8177_v11 = vpop.eup %6130  ;;  %6132 = vrsqrt.f32 %v8168_v15  ;;  %v1579_v10 = vpop.f32.mrf.mxu2  ;;  %v1828_v34 = vadd.f32 %v1827_v48, %v11324_v9  ;;  %v1956_v47 = vmul.f32 %v8165_v24, %v8165_v24  ;;  %v8215_v24 = vld [vmem:[%s10875_s3 + $0x10] sm:$0xff]  ;;  %vm2507_vm15 = vweird.f32 %v8168_v15 }
 0x32a   :  { %v2480_v60 = vsel %vm2479_vm8, %v6127_v28, %v2476_v1  ;;  %v2486_v50 = vmul.f32 %v6129_v45, %v2485_v39  ;;  %v2492_v56 = vmul.f32 %v8177_v11, %v8140_v46  ;;  %v1953_v28 = vmul.f32 %v11321_v44, %v11321_v44  ;;  %v8202_v1 = vld [vmem:[%s10875_s3 + $0x8] sm:$0xff] }
 0x32b   :  { %v8190_v49 = vmul.f32 %v2480_v60, %v2378_v5  ;;  %1829 = vadd.xlane.f32.xlu2 %v1828_v34  ;;  %v1580_v5 = vadd.f32 %v1579_v10, %v8055_v0  ;;  %v2079_v10 = vsel %vm1746_vm1, %v1956_v47, 0.0  ;;  %vm2498_vm12 = vweird.f32 %v8177_v11 }
 0x32c   :  { %v2490_v39 = vsel %vm2489_vm10, %v6129_v45, %v2486_v50  ;;  %v2493_v48 = vmul.f32 %v8177_v11, %v2492_v56  ;;  %v2076_v60 = vadd.f32 %v2075_v6, %v1953_v28  ;;  %vm2499_vm13 = vmor %vm2497_vm11, %vm2498_vm12 }
 0x32d   :  { %v8208_v8 = vmul.f32 %v8190_v49, %v8080_v14  ;;  %v8210_v34 = vmul.f32 %v2490_v39, %v2379_v25  ;;  %v1693_v44 = vpop.f32.mrf.mxu0  ;;  %v1955_v14 = vmul.f32 %v11324_v9, %v11324_v9  ;;  %v11328_v9 = vld [vmem:[#allocation130_spill] sm:$0xff] }
 0x32e   :  { %v2494_v13 = vmul.f32 0.5, %v2493_v48  ;;  %1621 = vmatmul.bf16.gmra.mxu2 %v11326_v52  ;;  %v8218_v45 = vadd.f32 %v1693_v44, %v1580_v5  ;;  %v2022_v50 = vpop.xlane.xlu2 %2021  ;;  %v1774_v0 = vpop.xlane.xlu0 %1773  ;;  %v2256_v52 = vmul.f32 %v8193_v41, %v8193_v41  ;;  %2077 = vadd.xlane.f32.xlu1 %v2076_v60  ;;  %v2380_v60 = vld [vmem:[%s10874_s2 + $0x18] sm:$0xff] }
 0x32f   :  { %11325 = vst [vmem:[#allocation125_spill] sm:$0xff] %v8208_v8  ;;  %v6133_v25 = vpop.eup %6132  ;;  %v8227_v56 = vmul.f32 %v8210_v34, %v8090_v18  ;;  %v2214_v44 = vmul.f32 0.0051020407, %v2022_v50  ;;  %v2080_v6 = vadd.f32 %v2079_v10, %v1955_v14  ;;  %v8247_v39 = vmul.f32 0.0051020407, %v1774_v0 }
 0x330   :  { %11327 = vst [vmem:[#allocation131_spill] sm:$0xff] %v8218_v45  ;;  %v2495_v28 = vsub.f32 1.5, %v2494_v13  ;;  %v2502_v47 = vmul.f32 %v6133_v25, %v8168_v15  ;;  %v1831_v18 = vsel %vm1746_vm1, %v8218_v45, 0.0  ;;  %vm2508_vm14 = vweird.f32 %v6133_v25  ;;  %v8293_v15 = vld [vmem:[%s10875_s3 + $0x20] sm:$0xff] }
 0x331   :  { %v2298_v48 = vsub.f32 %v2214_v44, %v2256_v52  ;;  %v1582_v5 = vpop.f32.mrf.mxu2  ;;  %v1832_v30 = vadd.f32 %v1831_v18, %v11328_v9  ;;  %v1958_v52 = vmul.f32 %v8218_v45, %v8218_v45  ;;  %vm2509_vm2 = vmor %vm2507_vm15, %vm2508_vm14 }
 0x332   :  { %v2496_v13 = vmul.f32 %v8177_v11, %v2495_v28  ;;  %v2503_v46 = vmul.f32 %v6133_v25, %v2502_v47  ;;  %v1583_v50 = vadd.f32 %v1582_v5, %v8084_v40  ;;  %v8253_v40 = vpop.f32.mrf.mxu3  ;;  %v8258_v5 = vld [vmem:[%s10875_s3 + $0x18] sm:$0xff] }
 0x333   :  { %v2340_v44 = vmax.f32 %v2298_v48, 0.0  ;;  %2081 = vadd.xlane.f32.xlu2 %v2080_v6  ;;  %1833 = vadd.xlane.f32.xlu0 %v1832_v30  ;;  %11329 = vst [vmem:[#allocation162_spill] sm:$0xff] %v8258_v5  ;;  %v1957_v30 = vmul.f32 %v11328_v9, %v11328_v9 }
 0x334   :  { %v2500_v14 = vsel %vm2499_vm13, %v8177_v11, %v2496_v13  ;;  %v2504_v10 = vmul.f32 0.5, %v2503_v46  ;;  %v2381_v13 = vld [vmem:[%s10874_s2 + $0x20] sm:$0xff] }
 0x335   :  { %v8249_v35 = vmul.f32 %v2500_v14, %v2380_v60  ;;  %v8251_v28 = vadd.f32 1e-05, %v2340_v44  ;;  %v1696_v47 = vpop.f32.mrf.mxu0  ;;  %v2083_v60 = vsel %vm1746_vm1, %v1958_v52, 0.0  ;;  %v11332_v14 = vld [vmem:[#allocation129_spill] sm:$0xff] }
 0x336   :  { %v2505_v48 = vsub.f32 1.5, %v2504_v10  ;;  %v8260_v6 = vadd.f32 %v1696_v47, %v1583_v50  ;;  %v1778_v11 = vpop.xlane.xlu1 %1777  ;;  %v2026_v0 = vpop.xlane.xlu0 %2025  ;;  %v2257_v50 = vmul.f32 %v8247_v39, %v8247_v39  ;;  %v11333_v10 = vld [vmem:[#allocation132_spill] sm:$0xff]  ;;  %11334 = vst [vmem:[#allocation129_spill] sm:$0xff] %v8293_v15 }
 0x337   :  { %v8266_v18 = vmul.f32 %v8249_v35, %v8115_v32  ;;  %6134 = vrsqrt.f32 %v8251_v28  ;;  %v2215_v44 = vmul.f32 0.0051020407, %v2026_v0  ;;  %v2084_v0 = vadd.f32 %v2083_v60, %v1957_v30 }
 0x338   :  { %11330 = vst [vmem:[#allocation163_spill] sm:$0xff] %v8260_v6  ;;  %v2506_v46 = vmul.f32 %v6133_v25, %v2505_v48  ;;  %5657 = vmatmul.msk.bf16.gmra.mxu0 %vm998_vm0, %v11332_v14  ;;  %v1835_v32 = vsel %vm1746_vm1, %v8260_v6, 0.0  ;;  %v1960_v48 = vmul.f32 %v8260_v6, %v8260_v6  ;;  %v8288_v14 = vmul.f32 0.0051020407, %v1778_v11 }
 0x339   :  { %11331 = vst [vmem:[#allocation164_spill] sm:$0xff] %v8266_v18  ;;  %v1584_v52 = vpop.f32.mrf.mxu2  ;;  %v1836_v47 = vadd.f32 %v1835_v32, %v11333_v10  ;;  %v2299_v9 = vsub.f32 %v2215_v44, %v2257_v50  ;;  %v1959_v32 = vmul.f32 %v11333_v10, %v11333_v10  ;;  %vm2517_vm4 = vweird.f32 %v8251_v28  ;;  %v11343_v18 = vld [vmem:[#allocation136_spill] sm:$0xff] }
 0x33a   :  { %v2510_v45 = vsel %vm2509_vm2, %v6133_v25, %v2506_v46  ;;  %v1585_v26 = vadd.f32 %v1584_v52, %v8106_v19  ;;  %v11337_v19 = vld [vmem:[#allocation134_spill] sm:$0xff] }
 0x33b   :  { %v8286_v7 = vmul.f32 %v2510_v45, %v2381_v13  ;;  %1837 = vadd.xlane.f32.xlu1 %v1836_v47  ;;  %v2341_v42 = vmax.f32 %v2299_v9, 0.0  ;;  %2085 = vadd.xlane.f32.xlu0 %v2084_v0  ;;  %v2087_v9 = vsel %vm1746_vm1, %v1960_v48, 0.0 }
 0x33c   :  { %v2088_v48 = vadd.f32 %v2087_v9, %v1959_v32 }
 0x33d   :  { %v6135_v25 = vpop.eup %6134  ;;  %v8298_v46 = vmul.f32 %v8286_v7, %v8130_v36  ;;  %v1698_v30 = vpop.f32.mrf.mxu0  ;;  %v8301_v11 = vadd.f32 1e-05, %v2341_v42  ;;  %v2258_v36 = vmul.f32 %v8288_v14, %v8288_v14 }
 0x33e   :  { %v2512_v45 = vmul.f32 %v6135_v25, %v8251_v28  ;;  %1626 = vmatmul.bf16.gmra.mxu2 %v7746_v4  ;;  %v8304_v60 = vadd.f32 %v1698_v30, %v1585_v26  ;;  %v1782_v13 = vpop.xlane.xlu2 %1781  ;;  %v2030_v50 = vpop.xlane.xlu1 %2029  ;;  %vm2518_vm3 = vweird.f32 %v6135_v25 }
 0x33f   :  { %11335 = vst [vmem:[#allocation165_spill] sm:$0xff] %v8298_v46  ;;  %v2216_v44 = vmul.f32 0.0051020407, %v2030_v50  ;;  %v8313_v42 = vpop.f32.mrf.mxu3  ;;  %6136 = vrsqrt.f32 %v8301_v11  ;;  %vm2519_vm5 = vmor %vm2517_vm4, %vm2518_vm3  ;;  %vm2527_vm7 = vweird.f32 %v8301_v11 }
 0x340   :  { %11336 = vst [vmem:[#allocation166_spill] sm:$0xff] %v8304_v60  ;;  %v2513_v52 = vmul.f32 %v6135_v25, %v2512_v45  ;;  %v1839_v47 = vsel %vm1746_vm1, %v8304_v60, 0.0  ;;  %v1962_v50 = vmul.f32 %v8304_v60, %v8304_v60  ;;  %v8322_v45 = vmul.f32 0.0051020407, %v1782_v13 }
 0x341   :  { %v2300_v4 = vsub.f32 %v2216_v44, %v2258_v36  ;;  %v1587_v26 = vpop.f32.mrf.mxu2  ;;  %v1840_v6 = vadd.f32 %v1839_v47, %v11337_v19 }
 0x342   :  { %v2514_v0 = vmul.f32 0.5, %v2513_v52  ;;  %v1588_v30 = vadd.f32 %v1587_v26, %v8144_v51  ;;  %v2382_v51 = vld [vmem:[%s10874_s2 + $0x28] sm:$0xff]  ;;  %v2259_v26 = vmul.f32 %v8322_v45, %v8322_v45 }
 0x343   :  { %v2342_v10 = vmax.f32 %v2300_v4, 0.0  ;;  %2089 = vadd.xlane.f32.xlu1 %v2088_v48  ;;  %1841 = vadd.xlane.f32.xlu2 %v1840_v6  ;;  %v2091_v6 = vsel %vm1746_vm1, %v1962_v50, 0.0  ;;  %v11339_v48 = vld [vmem:[#allocation133_spill] sm:$0xff] }
 0x344   :  { %v2515_v2 = vsub.f32 1.5, %v2514_v0 }
 0x345   :  { %v8324_v36 = vadd.f32 1e-05, %v2342_v10  ;;  %v1701_v44 = vpop.f32.mrf.mxu0  ;;  %v6137_v12 = vpop.eup %6136 }
 0x346   :  { %v2516_v9 = vmul.f32 %v6135_v25, %v2515_v2  ;;  %v8330_v32 = vadd.f32 %v1701_v44, %v1588_v30  ;;  %v2034_v52 = vpop.xlane.xlu2 %2033  ;;  %v1786_v4 = vpop.xlane.xlu0 %1785  ;;  %v2522_v13 = vmul.f32 %v6137_v12, %v8301_v11  ;;  %v1961_v2 = vmul.f32 %v11337_v19, %v11337_v19 }
 0x347   :  { %6138 = vrsqrt.f32 %v8324_v36  ;;  %v2217_v47 = vmul.f32 0.0051020407, %v2034_v52  ;;  %v8345_v60 = vpop.f32.mrf.mxu3  ;;  %vm2528_vm6 = vweird.f32 %v6137_v12  ;;  %vm2537_vm10 = vweird.f32 %v8324_v36 }
 0x348   :  { %11338 = vst [vmem:[#allocation167_spill] sm:$0xff] %v8330_v32  ;;  %v2520_v10 = vsel %vm2519_vm5, %v6135_v25, %v2516_v9  ;;  %5658 = vmatmul.msk.bf16.gmra.mxu0 %vm998_vm0, %v11339_v48  ;;  %v2523_v0 = vmul.f32 %v6137_v12, %v2522_v13  ;;  %v1843_v44 = vsel %vm1746_vm1, %v8330_v32, 0.0  ;;  %v8350_v25 = vld [vmem:[%s10875_s3 + $0x28] sm:$0xff]  ;;  %v1964_v50 = vmul.f32 %v8330_v32, %v8330_v32  ;;  %vm2529_vm8 = vmor %vm2527_vm7, %vm2528_vm6 }
 0x349   :  { %v8341_v28 = vmul.f32 %v2520_v10, %v2382_v51  ;;  %v1589_v30 = vpop.f32.mrf.mxu2  ;;  %11340 = vst [vmem:[#allocation133_spill] sm:$0xff] %v8350_v25  ;;  %v2301_v9 = vsub.f32 %v2217_v47, %v2259_v26  ;;  %v2092_v52 = vadd.f32 %v2091_v6, %v1961_v2  ;;  %v1844_v51 = vadd.f32 %v1843_v44, %v7749_v3  ;;  %v2383_v44 = vld [vmem:[%s10874_s2 + $0x30] sm:$0xff] }
 0x34a   :  { %v2524_v10 = vmul.f32 0.5, %v2523_v0  ;;  %v8359_v48 = vmul.f32 0.0051020407, %v1786_v4  ;;  %v1590_v53 = vadd.f32 %v1589_v30, %v8197_v29  ;;  %v1963_v47 = vmul.f32 %v7749_v3, %v7749_v3 }
 0x34b   :  { %v8357_v13 = vmul.f32 %v8341_v28, %v8193_v41  ;;  %v2343_v19 = vmax.f32 %v2301_v9, 0.0  ;;  %2093 = vadd.xlane.f32.xlu2 %v2092_v52  ;;  %1845 = vadd.xlane.f32.xlu0 %v1844_v51  ;;  %v2095_v30 = vsel %vm1746_vm1, %v1964_v50, 0.0 }
 0x34c   :  { %v2525_v26 = vsub.f32 1.5, %v2524_v10  ;;  %v2260_v52 = vmul.f32 %v8359_v48, %v8359_v48  ;;  %v2096_v32 = vadd.f32 %v2095_v30, %v1963_v47 }
 0x34d   :  { %11341 = vst [vmem:[#allocation168_spill] sm:$0xff] %v8357_v13  ;;  %v6139_v62 = vpop.eup %6138  ;;  %v1703_v6 = vpop.f32.mrf.mxu0  ;;  %v8367_v2 = vadd.f32 1e-05, %v2343_v19 }
 0x34e   :  { %v2532_v41 = vmul.f32 %v6139_v62, %v8324_v36  ;;  %v8369_v4 = vadd.f32 %v1703_v6, %v1590_v53  ;;  %v1790_v0 = vpop.xlane.xlu1 %1789  ;;  %v2038_v29 = vpop.xlane.xlu0 %2037  ;;  %v2526_v9 = vmul.f32 %v6137_v12, %v2525_v26  ;;  %vm2538_vm9 = vweird.f32 %v6139_v62 }
 0x34f   :  { %v2218_v51 = vmul.f32 0.0051020407, %v2038_v29  ;;  %6140 = vrsqrt.f32 %v8367_v2  ;;  %vm2539_vm11 = vmor %vm2537_vm10, %vm2538_vm9  ;;  %vm2547_vm13 = vweird.f32 %v8367_v2 }
 0x350   :  { %11342 = vst [vmem:[#allocation169_spill] sm:$0xff] %v8369_v4  ;;  %v2533_v19 = vmul.f32 %v6139_v62, %v2532_v41  ;;  %v2530_v53 = vsel %vm2529_vm8, %v6137_v12, %v2526_v9  ;;  %v1847_v50 = vsel %vm1746_vm1, %v8369_v4, 0.0  ;;  %v8388_v41 = vld [vmem:[%s10875_s3 + $0x30] sm:$0xff]  ;;  %v1966_v12 = vmul.f32 %v8369_v4, %v8369_v4  ;;  %v8392_v9 = vpop.f32.mrf.mxu3  ;;  %v8424_v4 = vld [vmem:[%s10875_s3 + $0x38] sm:$0xff] }
 0x351   :  { %v2302_v10 = vsub.f32 %v2218_v51, %v2260_v52  ;;  %v1592_v6 = vpop.f32.mrf.mxu2  ;;  %v8381_v3 = vmul.f32 %v2530_v53, %v2383_v44  ;;  %v1848_v5 = vadd.f32 %v1847_v50, %v11343_v18  ;;  %11344 = vst [vmem:[#allocation170_spill] sm:$0xff] %v8388_v41  ;;  %v2384_v53 = vld [vmem:[%s10874_s2 + $0x38] sm:$0xff] }
 0x352   :  { %v2534_v26 = vmul.f32 0.5, %v2533_v19  ;;  %v1593_v11 = vadd.f32 %v1592_v6, %v8253_v40  ;;  %v8398_v40 = vmul.f32 0.0051020407, %v1790_v0  ;;  %11347 = vst [vmem:[#allocation173_spill] sm:$0xff] %v8424_v4 }
 0x353   :  { %v2344_v29 = vmax.f32 %v2302_v10, 0.0  ;;  %v8396_v47 = vmul.f32 %v8381_v3, %v8247_v39  ;;  %1849 = vadd.xlane.f32.xlu1 %v1848_v5  ;;  %2097 = vadd.xlane.f32.xlu0 %v2096_v32  ;;  %v2099_v32 = vsel %vm1746_vm1, %v1966_v12, 0.0 }
 0x354   :  { %v2535_v30 = vsub.f32 1.5, %v2534_v26  ;;  %v2261_v26 = vmul.f32 %v8398_v40, %v8398_v40 }
 0x355   :  { %11345 = vst [vmem:[#allocation171_spill] sm:$0xff] %v8396_v47  ;;  %v8400_v44 = vadd.f32 1e-05, %v2344_v29  ;;  %v1706_v52 = vpop.f32.mrf.mxu0  ;;  %v6141_v51 = vpop.eup %6140 }
 0x356   :  { %v2536_v10 = vmul.f32 %v6139_v62, %v2535_v30  ;;  %v8408_v39 = vadd.f32 %v1706_v52, %v1593_v11  ;;  %v1794_v0 = vpop.xlane.xlu2 %1793  ;;  %v2042_v6 = vpop.xlane.xlu1 %2041  ;;  %v2542_v5 = vmul.f32 %v6141_v51, %v8367_v2  ;;  %v1965_v30 = vmul.f32 %v11343_v18, %v11343_v18 }
 0x357   :  { %6142 = vrsqrt.f32 %v8400_v44  ;;  %v2219_v29 = vmul.f32 0.0051020407, %v2042_v6  ;;  %vm2548_vm12 = vweird.f32 %v6141_v51  ;;  %vm2557_vm2 = vweird.f32 %v8400_v44 }
 0x358   :  { %11346 = vst [vmem:[#allocation172_spill] sm:$0xff] %v8408_v39  ;;  %v2540_v50 = vsel %vm2539_vm11, %v6139_v62, %v2536_v10  ;;  %v2543_v11 = vmul.f32 %v6141_v51, %v2542_v5  ;;  %v1851_v19 = vsel %vm1746_vm1, %v8408_v39, 0.0  ;;  %v1968_v62 = vmul.f32 %v8408_v39, %v8408_v39  ;;  %vm2549_vm14 = vmor %vm2547_vm13, %vm2548_vm12 }
 0x359   :  { %v8417_v36 = vmul.f32 %v2540_v50, %v2384_v53  ;;  %v1594_v52 = vpop.f32.mrf.mxu2  ;;  %v2303_v12 = vsub.f32 %v2219_v29, %v2261_v26  ;;  %v1852_v10 = vadd.f32 %v1851_v19, %v7758_v23  ;;  %v2100_v6 = vadd.f32 %v2099_v32, %v1965_v30 }
 0x35a   :  { %v2544_v5 = vmul.f32 0.5, %v2543_v11  ;;  %v8433_v50 = vmul.f32 0.0051020407, %v1794_v0  ;;  %v1595_v47 = vadd.f32 %v1594_v52, %v8313_v42  ;;  %v1967_v32 = vmul.f32 %v7758_v23, %v7758_v23 }
 0x35b   :  { %v8431_v53 = vmul.f32 %v8417_v36, %v8288_v14  ;;  %v2345_v18 = vmax.f32 %v2303_v12, 0.0  ;;  %1853 = vadd.xlane.f32.xlu2 %v1852_v10  ;;  %2101 = vadd.xlane.f32.xlu1 %v2100_v6  ;;  %v8440_v14 = vpop.f32.mrf.mxu3  ;;  %v2103_v52 = vsel %vm1746_vm1, %v1968_v62, 0.0  ;;  %v2385_v12 = vld [vmem:[%s10874_s2 + $0x40] sm:$0xff] }
 0x35c   :  { %v2545_v26 = vsub.f32 1.5, %v2544_v5  ;;  %v2262_v6 = vmul.f32 %v8433_v50, %v8433_v50  ;;  %v2104_v62 = vadd.f32 %v2103_v52, %v1967_v32 }
 0x35d   :  { %11348 = vst [vmem:[#allocation174_spill] sm:$0xff] %v8431_v53  ;;  %v6143_v41 = vpop.eup %6142  ;;  %v1708_v19 = vpop.f32.mrf.mxu0  ;;  %v8443_v29 = vadd.f32 1e-05, %v2345_v18 }
 0x35e   :  { %v2552_v0 = vmul.f32 %v6143_v41, %v8400_v44  ;;  %v8445_v30 = vadd.f32 %v1708_v19, %v1595_v47  ;;  %v2046_v42 = vpop.xlane.xlu2 %2045  ;;  %v1798_v11 = vpop.xlane.xlu0 %1797  ;;  %v2546_v10 = vmul.f32 %v6141_v51, %v2545_v26  ;;  %vm2558_vm15 = vweird.f32 %v6143_v41 }
 0x35f   :  { %v2220_v5 = vmul.f32 0.0051020407, %v2046_v42  ;;  %6144 = vrsqrt.f32 %v8443_v29  ;;  %vm2559_vm3 = vmor %vm2557_vm2, %vm2558_vm15  ;;  %v1969_v44 = vmul.f32 %v7762_v16, %v7762_v16  ;;  %vm2567_vm5 = vweird.f32 %v8443_v29 }
 0x360   :  { %11349 = vst [vmem:[#allocation175_spill] sm:$0xff] %v8445_v30  ;;  %v2553_v18 = vmul.f32 %v6143_v41, %v2552_v0  ;;  %v2550_v47 = vsel %vm2549_vm14, %v6141_v51, %v2546_v10  ;;  %v1855_v23 = vsel %vm1746_vm1, %v8445_v30, 0.0  ;;  %v8465_v0 = vld [vmem:[%s10875_s3 + $0x40] sm:$0xff]  ;;  %v1970_v51 = vmul.f32 %v8445_v30, %v8445_v30 }
 0x361   :  { %v2304_v19 = vsub.f32 %v2220_v5, %v2262_v6  ;;  %v1597_v39 = vpop.f32.mrf.mxu2  ;;  %v8458_v53 = vmul.f32 %v2550_v47, %v2385_v12  ;;  %v1856_v4 = vadd.f32 %v1855_v23, %v7762_v16  ;;  %11350 = vst [vmem:[#allocation176_spill] sm:$0xff] %v8465_v0  ;;  %v8473_v12 = vmul.f32 0.0051020407, %v1798_v11  ;;  %v2386_v6 = vld [vmem:[%s10874_s2 + $0x48] sm:$0xff] }
 0x362   :  { %v2554_v26 = vmul.f32 0.5, %v2553_v18  ;;  %v1598_v2 = vadd.f32 %v1597_v39, %v8345_v60  ;;  %v2107_v47 = vsel %vm1746_vm1, %v1970_v51, 0.0  ;;  %v8501_v51 = vld [vmem:[%s10875_s3 + $0x48] sm:$0xff] }
 0x363   :  { %v2346_v42 = vmax.f32 %v2304_v19, 0.0  ;;  %v8471_v32 = vmul.f32 %v8458_v53, %v8322_v45  ;;  %2105 = vadd.xlane.f32.xlu2 %v2104_v62  ;;  %1857 = vadd.xlane.f32.xlu0 %v1856_v4  ;;  %v8488_v19 = vpop.f32.mrf.mxu3  ;;  %11353 = vst [vmem:[#allocation179_spill] sm:$0xff] %v8501_v51  ;;  %v2108_v30 = vadd.f32 %v2107_v47, %v1969_v44 }
 0x364   :  { %v2555_v52 = vsub.f32 1.5, %v2554_v26  ;;  %v2263_v26 = vmul.f32 %v8473_v12, %v8473_v12  ;;  %v1971_v47 = vmul.f32 %v7766_v37, %v7766_v37 }
 0x365   :  { %11351 = vst [vmem:[#allocation177_spill] sm:$0xff] %v8471_v32  ;;  %v8475_v23 = vadd.f32 1e-05, %v2346_v42  ;;  %v1711_v60 = vpop.f32.mrf.mxu0  ;;  %v6145_v39 = vpop.eup %6144 }
 0x366   :  { %v2556_v5 = vmul.f32 %v6143_v41, %v2555_v52  ;;  %v8483_v45 = vadd.f32 %v1711_v60, %v1598_v2  ;;  %v1802_v11 = vpop.xlane.xlu1 %1801  ;;  %v2050_v18 = vpop.xlane.xlu0 %2049  ;;  %v2562_v4 = vmul.f32 %v6145_v39, %v8443_v29  ;;  %vm2568_vm4 = vweird.f32 %v6145_v39 }
 0x367   :  { %6146 = vrsqrt.f32 %v8475_v23  ;;  %v2221_v42 = vmul.f32 0.0051020407, %v2050_v18  ;;  %vm2569_vm6 = vmor %vm2567_vm5, %vm2568_vm4  ;;  %vm2577_vm8 = vweird.f32 %v8475_v23 }
 0x368   :  { %11352 = vst [vmem:[#allocation178_spill] sm:$0xff] %v8483_v45  ;;  %v2560_v62 = vsel %vm2559_vm3, %v6143_v41, %v2556_v5  ;;  %v2563_v52 = vmul.f32 %v6145_v39, %v2562_v4  ;;  %v1859_v10 = vsel %vm1746_vm1, %v8483_v45, 0.0  ;;  %v1972_v41 = vmul.f32 %v8483_v45, %v8483_v45 }
 0x369   :  { %v8494_v2 = vmul.f32 %v2560_v62, %v2386_v6  ;;  %v1599_v60 = vpop.f32.mrf.mxu2  ;;  %v2305_v5 = vsub.f32 %v2221_v42, %v2263_v26  ;;  %v1860_v18 = vadd.f32 %v1859_v10, %v7766_v37  ;;  %v8510_v62 = vmul.f32 0.0051020407, %v1802_v11 }
 0x36a   :  { %v2564_v4 = vmul.f32 0.5, %v2563_v52  ;;  %v1600_v32 = vadd.f32 %v1599_v60, %v8392_v9  ;;  %v2387_v52 = vld [vmem:[%s10874_s2 + $0x50] sm:$0xff] }
 0x36b   :  { %v8508_v6 = vmul.f32 %v8494_v2, %v8359_v48  ;;  %v2347_v16 = vmax.f32 %v2305_v5, 0.0  ;;  %1861 = vadd.xlane.f32.xlu1 %v1860_v18  ;;  %2109 = vadd.xlane.f32.xlu0 %v2108_v30  ;;  %v2111_v30 = vsel %vm1746_vm1, %v1972_v41, 0.0  ;;  %v2264_v5 = vmul.f32 %v8510_v62, %v8510_v62  ;;  %v8532_v37 = vpop.f32.mrf.mxu3 }
 0x36c   :  { %v2565_v26 = vsub.f32 1.5, %v2564_v4  ;;  %v2112_v45 = vadd.f32 %v2111_v30, %v1971_v47 }
 0x36d   :  { %11354 = vst [vmem:[#allocation180_spill] sm:$0xff] %v8508_v6  ;;  %v6147_v0 = vpop.eup %6146  ;;  %v1713_v10 = vpop.f32.mrf.mxu0  ;;  %v8518_v42 = vadd.f32 1e-05, %v2347_v16 }
 0x36e   :  { %v2572_v48 = vmul.f32 %v6147_v0, %v8475_v23  ;;  %v8520_v11 = vadd.f32 %v1713_v10, %v1600_v32  ;;  %v1806_v44 = vpop.xlane.xlu2 %1805  ;;  %v2054_v9 = vpop.xlane.xlu1 %2053  ;;  %v2566_v60 = vmul.f32 %v6145_v39, %v2565_v26  ;;  %vm2578_vm7 = vweird.f32 %v6147_v0 }
 0x36f   :  { %v2222_v18 = vmul.f32 0.0051020407, %v2054_v9  ;;  %6148 = vrsqrt.f32 %v8518_v42  ;;  %vm2579_vm9 = vmor %vm2577_vm8, %vm2578_vm7  ;;  %vm2587_vm11 = vweird.f32 %v8518_v42 }
 0x370   :  { %11355 = vst [vmem:[#allocation181_spill] sm:$0xff] %v8520_v11  ;;  %v2573_v16 = vmul.f32 %v6147_v0, %v2572_v48  ;;  %v2570_v32 = vsel %vm2569_vm6, %v6145_v39, %v2566_v60  ;;  %v1863_v41 = vsel %vm1746_vm1, %v8520_v11, 0.0  ;;  %v8541_v48 = vld [vmem:[%s10875_s3 + $0x50] sm:$0xff]  ;;  %v1974_v39 = vmul.f32 %v8520_v11, %v8520_v11  ;;  %v8575_v11 = vld [vmem:[%s10875_s3 + $0x58] sm:$0xff] }
 0x371   :  { %v2306_v4 = vsub.f32 %v2222_v18, %v2264_v5  ;;  %v1602_v10 = vpop.f32.mrf.mxu2  ;;  %v8534_v26 = vmul.f32 %v2570_v32, %v2387_v52  ;;  %v1864_v9 = vadd.f32 %v1863_v41, %v7770_v31  ;;  %11356 = vst [vmem:[#allocation182_spill] sm:$0xff] %v8541_v48  ;;  %v8549_v52 = vmul.f32 0.0051020407, %v1806_v44  ;;  %v2388_v32 = vld [vmem:[%s10874_s2 + $0x58] sm:$0xff] }
 0x372   :  { %v2574_v29 = vmul.f32 0.5, %v2573_v16  ;;  %v1603_v6 = vadd.f32 %v1602_v10, %v8440_v14  ;;  %v2115_v41 = vsel %vm1746_vm1, %v1974_v39, 0.0  ;;  %11359 = vst [vmem:[#allocation185_spill] sm:$0xff] %v8575_v11 }
 0x373   :  { %v2348_v60 = vmax.f32 %v2306_v4, 0.0  ;;  %v8547_v47 = vmul.f32 %v8534_v26, %v8398_v40  ;;  %1865 = vadd.xlane.f32.xlu2 %v1864_v9  ;;  %2113 = vadd.xlane.f32.xlu1 %v2112_v45  ;;  %v2265_v9 = vmul.f32 %v8549_v52, %v8549_v52 }
 0x374   :  { %v2575_v30 = vsub.f32 1.5, %v2574_v29 }
 0x375   :  { %11357 = vst [vmem:[#allocation183_spill] sm:$0xff] %v8547_v47  ;;  %v8551_v14 = vadd.f32 1e-05, %v2348_v60  ;;  %v1716_v5 = vpop.f32.mrf.mxu0  ;;  %v6149_v18 = vpop.eup %6148 }
 0x376   :  { %v2576_v4 = vmul.f32 %v6147_v0, %v2575_v30  ;;  %v8559_v40 = vadd.f32 %v1716_v5, %v1603_v6  ;;  %v2058_v44 = vpop.xlane.xlu2 %2057  ;;  %v1810_v10 = vpop.xlane.xlu0 %1809  ;;  %v2582_v45 = vmul.f32 %v6149_v18, %v8518_v42  ;;  %v1973_v30 = vmul.f32 %v7770_v31, %v7770_v31 }
 0x377   :  { %6150 = vrsqrt.f32 %v8551_v14  ;;  %v2223_v60 = vmul.f32 0.0051020407, %v2058_v44  ;;  %v8586_v31 = vpop.f32.mrf.mxu3  ;;  %vm2588_vm10 = vweird.f32 %v6149_v18  ;;  %vm2597_vm14 = vweird.f32 %v8551_v14 }
 0x378   :  { %11358 = vst [vmem:[#allocation184_spill] sm:$0xff] %v8559_v40  ;;  %v2580_v29 = vsel %vm2579_vm9, %v6147_v0, %v2576_v4  ;;  %v2583_v6 = vmul.f32 %v6149_v18, %v2582_v45  ;;  %v1867_v16 = vsel %vm1746_vm1, %v8559_v40, 0.0  ;;  %v1976_v0 = vmul.f32 %v8559_v40, %v8559_v40  ;;  %vm2589_vm12 = vmor %vm2587_vm11, %vm2588_vm10 }
 0x379   :  { %v8568_v23 = vmul.f32 %v2580_v29, %v2388_v32  ;;  %v1604_v5 = vpop.f32.mrf.mxu2  ;;  %v2307_v39 = vsub.f32 %v2223_v60, %v2265_v9  ;;  %v2116_v4 = vadd.f32 %v2115_v41, %v1973_v30  ;;  %v1868_v44 = vadd.f32 %v1867_v16, %v7774_v55 }
 0x37a   :  { %v2584_v45 = vmul.f32 0.5, %v2583_v6  ;;  %v8584_v29 = vmul.f32 0.0051020407, %v1810_v10  ;;  %v1605_v47 = vadd.f32 %v1604_v5, %v8488_v19  ;;  %v2119_v5 = vsel %vm1746_vm1, %v1976_v0, 0.0 }
 0x37b   :  { %v8582_v32 = vmul.f32 %v8568_v23, %v8433_v50  ;;  %v2349_v51 = vmax.f32 %v2307_v39, 0.0  ;;  %2117 = vadd.xlane.f32.xlu2 %v2116_v4  ;;  %1869 = vadd.xlane.f32.xlu0 %v1868_v44  ;;  %v1975_v50 = vmul.f32 %v7774_v55, %v7774_v55  ;;  %v2389_v39 = vld [vmem:[%s10874_s2 + $0x60] sm:$0xff] }
 0x37c   :  { %v2585_v9 = vsub.f32 1.5, %v2584_v45  ;;  %v2266_v44 = vmul.f32 %v8584_v29, %v8584_v29 }
 0x37d   :  { %11360 = vst [vmem:[#allocation186_spill] sm:$0xff] %v8582_v32  ;;  %v6151_v48 = vpop.eup %6150  ;;  %v1718_v16 = vpop.f32.mrf.mxu0  ;;  %v8594_v60 = vadd.f32 1e-05, %v2349_v51  ;;  %v2120_v40 = vadd.f32 %v2119_v5, %v1975_v50 }
 0x37e   :  { %v2592_v10 = vmul.f32 %v6151_v48, %v8551_v14  ;;  %v8596_v30 = vadd.f32 %v1718_v16, %v1605_v47  ;;  %v1814_v6 = vpop.xlane.xlu1 %1813  ;;  %v2062_v19 = vpop.xlane.xlu0 %2061  ;;  %v2586_v4 = vmul.f32 %v6149_v18, %v2585_v9  ;;  %vm2598_vm13 = vweird.f32 %v6151_v48 }
 0x37f   :  { %v2224_v45 = vmul.f32 0.0051020407, %v2062_v19  ;;  %6152 = vrsqrt.f32 %v8594_v60  ;;  %v8623_v5 = vmul.f32 0.0051020407, %v1814_v6  ;;  %vm2599_vm15 = vmor %vm2597_vm14, %vm2598_vm13  ;;  %v1977_v14 = vmul.f32 %v7778_v21, %v7778_v21 }
 0x380   :  { %11361 = vst [vmem:[#allocation187_spill] sm:$0xff] %v8596_v30  ;;  %v2593_v51 = vmul.f32 %v6151_v48, %v2592_v10  ;;  %v2590_v47 = vsel %vm2589_vm12, %v6149_v18, %v2586_v4  ;;  %v1871_v0 = vsel %vm1746_vm1, %v8596_v30, 0.0  ;;  %v8615_v10 = vld [vmem:[%s10875_s3 + $0x60] sm:$0xff]  ;;  %v1978_v18 = vmul.f32 %v8596_v30, %v8596_v30  ;;  %v8650_v30 = vld [vmem:[%s10875_s3 + $0x68] sm:$0xff] }
 0x381   :  { %v2308_v16 = vsub.f32 %v2224_v45, %v2266_v44  ;;  %v1607_v41 = vpop.f32.mrf.mxu2  ;;  %v8608_v55 = vmul.f32 %v2590_v47, %v2389_v39  ;;  %v1872_v32 = vadd.f32 %v1871_v0, %v7778_v21  ;;  %11362 = vst [vmem:[#allocation188_spill] sm:$0xff] %v8615_v10  ;;  %v1498_v39 = vpop.f32.mrf.mxu3  ;;  %vm2607_vm3 = vweird.f32 %v8594_v60 }
 0x382   :  { %v2594_v9 = vmul.f32 0.5, %v2593_v51  ;;  %v1608_v42 = vadd.f32 %v1607_v41, %v8532_v37  ;;  %v2390_v51 = vld [vmem:[%s10874_s2 + $0x68] sm:$0xff]  ;;  %11365 = vst [vmem:[#allocation191_spill] sm:$0xff] %v8650_v30  ;;  %v8688_v30 = vld [vmem:[%s10875_s3 + $0x70] sm:$0xff] }
 0x383   :  { %v2350_v19 = vmax.f32 %v2308_v16, 0.0  ;;  %v8621_v4 = vmul.f32 %v8608_v55, %v8473_v12  ;;  %1873 = vadd.xlane.f32.xlu1 %v1872_v32  ;;  %2121 = vadd.xlane.f32.xlu0 %v2120_v40  ;;  %v2123_v16 = vsel %vm1746_vm1, %v1978_v18, 0.0  ;;  %11368 = vst [vmem:[#allocation194_spill] sm:$0xff] %v8688_v30 }
 0x384   :  { %v2595_v50 = vsub.f32 1.5, %v2594_v9  ;;  %v2267_v9 = vmul.f32 %v8623_v5, %v8623_v5 }
 0x385   :  { %11363 = vst [vmem:[#allocation189_spill] sm:$0xff] %v8621_v4  ;;  %v8625_v37 = vadd.f32 1e-05, %v2350_v19  ;;  %v1721_v41 = vpop.f32.mrf.mxu0  ;;  %v6153_v44 = vpop.eup %6152 }
 0x386   :  { %v2596_v12 = vmul.f32 %v6151_v48, %v2595_v50  ;;  %v8633_v47 = vadd.f32 %v1721_v41, %v1608_v42  ;;  %v1818_v6 = vpop.xlane.xlu2 %1817  ;;  %v2066_v32 = vpop.xlane.xlu1 %2065  ;;  %v2602_v40 = vmul.f32 %v6153_v44, %v8594_v60  ;;  %vm2608_vm2 = vweird.f32 %v6153_v44 }
 0x387   :  { %6154 = vrsqrt.f32 %v8625_v37  ;;  %v2225_v19 = vmul.f32 0.0051020407, %v2066_v32  ;;  %v2124_v32 = vadd.f32 %v2123_v16, %v1977_v14  ;;  %v1979_v16 = vmul.f32 %v7782_v57, %v7782_v57  ;;  %vm2609_vm4 = vmor %vm2607_vm3, %vm2608_vm2 }
 0x388   :  { %11364 = vst [vmem:[#allocation190_spill] sm:$0xff] %v8633_v47  ;;  %v2600_v0 = vsel %vm2599_vm15, %v6151_v48, %v2596_v12  ;;  %v2603_v50 = vmul.f32 %v6153_v44, %v2602_v40  ;;  %v1875_v45 = vsel %vm1746_vm1, %v8633_v47, 0.0  ;;  %v1980_v48 = vmul.f32 %v8633_v47, %v8633_v47 }
 0x389   :  { %v8643_v42 = vmul.f32 %v2600_v0, %v2390_v51  ;;  %v1609_v41 = vpop.f32.mrf.mxu2  ;;  %v2309_v18 = vsub.f32 %v2225_v19, %v2267_v9  ;;  %v1876_v12 = vadd.f32 %v1875_v45, %v7782_v57  ;;  %v8659_v0 = vmul.f32 0.0051020407, %v1818_v6 }
 0x38a   :  { %v2604_v40 = vmul.f32 0.5, %v2603_v50  ;;  %v1610_v4 = vadd.f32 %v1609_v41, %v8586_v31  ;;  %v2127_v31 = vsel %vm1746_vm1, %v1980_v48, 0.0  ;;  %v2391_v50 = vld [vmem:[%s10874_s2 + $0x70] sm:$0xff]  ;;  %vm2617_vm6 = vweird.f32 %v8625_v37 }
 0x38b   :  { %v8657_v51 = vmul.f32 %v8643_v42, %v8510_v62  ;;  %v2351_v21 = vmax.f32 %v2309_v18, 0.0  ;;  %1877 = vadd.xlane.f32.xlu2 %v1876_v12  ;;  %2125 = vadd.xlane.f32.xlu1 %v2124_v32  ;;  %v2268_v18 = vmul.f32 %v8659_v0, %v8659_v0  ;;  %v2128_v47 = vadd.f32 %v2127_v31, %v1979_v16 }
 0x38c   :  { %v2605_v9 = vsub.f32 1.5, %v2604_v40  ;;  %v1500_v40 = vpop.f32.mrf.mxu3 }
 0x38d   :  { %11366 = vst [vmem:[#allocation192_spill] sm:$0xff] %v8657_v51  ;;  %v6155_v10 = vpop.eup %6154  ;;  %v1723_v45 = vpop.f32.mrf.mxu0  ;;  %v8667_v19 = vadd.f32 1e-05, %v2351_v21 }
 0x38e   :  { %v2612_v62 = vmul.f32 %v6155_v10, %v8625_v37  ;;  %v8669_v6 = vadd.f32 %v1723_v45, %v1610_v4  ;;  %v2070_v14 = vpop.xlane.xlu2 %2069  ;;  %v2606_v41 = vmul.f32 %v6153_v44, %v2605_v9  ;;  %v1822_v32 = vpop.xlane.xlu0 %1821  ;;  %vm2618_vm5 = vweird.f32 %v6155_v10 }
 0x38f   :  { %v2226_v12 = vmul.f32 0.0051020407, %v2070_v14  ;;  %6156 = vrsqrt.f32 %v8667_v19  ;;  %vm2619_vm7 = vmor %vm2617_vm6, %vm2618_vm5  ;;  %vm2627_vm9 = vweird.f32 %v8667_v19 }
 0x390   :  { %11367 = vst [vmem:[#allocation193_spill] sm:$0xff] %v8669_v6  ;;  %v2613_v21 = vmul.f32 %v6155_v10, %v2612_v62  ;;  %v2610_v4 = vsel %vm2609_vm4, %v6153_v44, %v2606_v41  ;;  %v1879_v9 = vsel %vm1746_vm1, %v8669_v6, 0.0  ;;  %v1982_v44 = vmul.f32 %v8669_v6, %v8669_v6  ;;  %v8723_v6 = vld [vmem:[%s10875_s3 + $0x78] sm:$0xff] }
 0x391   :  { %v2310_v48 = vsub.f32 %v2226_v12, %v2268_v18  ;;  %v1612_v45 = vpop.f32.mrf.mxu2  ;;  %v8682_v57 = vmul.f32 %v2610_v4, %v2391_v50  ;;  %v1880_v14 = vadd.f32 %v1879_v9, %v7786_v22  ;;  %v8696_v50 = vmul.f32 0.0051020407, %v1822_v32  ;;  %11371 = vst [vmem:[#allocation197_spill] sm:$0xff] %v8723_v6 }
 0x392   :  { %v2614_v60 = vmul.f32 0.5, %v2613_v21  ;;  %v1613_v51 = vadd.f32 %v1612_v45, %v1498_v39  ;;  %v2392_v21 = vld [vmem:[%s10874_s2 + $0x78] sm:$0xff]  ;;  %v2131_v45 = vsel %vm1746_vm1, %v1982_v44, 0.0 }
 0x393   :  { %v2352_v62 = vmax.f32 %v2310_v48, 0.0  ;;  %v8694_v16 = vmul.f32 %v8682_v57, %v8549_v52  ;;  %2129 = vadd.xlane.f32.xlu2 %v2128_v47  ;;  %1881 = vadd.xlane.f32.xlu0 %v1880_v14  ;;  %v1981_v48 = vmul.f32 %v7786_v22, %v7786_v22 }
 0x394   :  { %v2615_v31 = vsub.f32 1.5, %v2614_v60  ;;  %v2269_v60 = vmul.f32 %v8696_v50, %v8696_v50 }
 0x395   :  { %11369 = vst [vmem:[#allocation195_spill] sm:$0xff] %v8694_v16  ;;  %v8698_v39 = vadd.f32 1e-05, %v2352_v62  ;;  %v1726_v41 = vpop.f32.mrf.mxu0  ;;  %v6157_v18 = vpop.eup %6156 }
 0x396   :  { %v2616_v4 = vmul.f32 %v6155_v10, %v2615_v31  ;;  %v8706_v52 = vadd.f32 %v1726_v41, %v1613_v51  ;;  %v2622_v47 = vmul.f32 %v6157_v18, %v8667_v19  ;;  %v2074_v32 = vpop.xlane.xlu0 %2073  ;;  %v1503_v41 = vpop.f32.mrf.mxu3  ;;  %vm2628_vm8 = vweird.f32 %v6157_v18 }
 0x397   :  { %6158 = vrsqrt.f32 %v8698_v39  ;;  %v2227_v14 = vmul.f32 0.0051020407, %v2074_v32  ;;  %v2132_v32 = vadd.f32 %v2131_v45, %v1981_v48  ;;  %vm2629_vm10 = vmor %vm2627_vm9, %vm2628_vm8  ;;  %vm2637_vm12 = vweird.f32 %v8698_v39 }
 0x398   :  { %11370 = vst [vmem:[#allocation196_spill] sm:$0xff] %v8706_v52  ;;  %v2620_v9 = vsel %vm2619_vm7, %v6155_v10, %v2616_v4  ;;  %v1883_v37 = vsel %vm1746_vm1, %v8706_v52, 0.0  ;;  %v2623_v62 = vmul.f32 %v6157_v18, %v2622_v47  ;;  %v1984_v10 = vmul.f32 %v8706_v52, %v8706_v52  ;;  %v1826_v44 = vpop.xlane.xlu1 %1825 }
 0x399   :  { %v8717_v51 = vmul.f32 %v2620_v9, %v2392_v21  ;;  %v1614_v31 = vpop.f32.mrf.mxu2  ;;  %v1884_v12 = vadd.f32 %v1883_v37, %v7790_v61  ;;  %v2311_v4 = vsub.f32 %v2227_v14, %v2269_v60  ;;  %v8743_v14 = vmul.f32 0.0051020407, %v1826_v44 }
 0x39a   :  { %v2624_v47 = vmul.f32 0.5, %v2623_v62  ;;  %v1615_v22 = vadd.f32 %v1614_v31, %v1500_v40  ;;  %v2135_v45 = vsel %vm1746_vm1, %v1984_v10, 0.0  ;;  %v2393_v40 = vld [vmem:[%s10874_s2 + $0x80] sm:$0xff]  ;;  %v1983_v62 = vmul.f32 %v7790_v61, %v7790_v61 }
 0x39b   :  { %v8729_v21 = vmul.f32 %v8717_v51, %v8584_v29  ;;  %1885 = vadd.xlane.f32.xlu1 %v1884_v12  ;;  %v2353_v9 = vmax.f32 %v2311_v4, 0.0  ;;  %2133 = vadd.xlane.f32.xlu0 %v2132_v32  ;;  %v1985_v61 = vmul.f32 %v7794_v59, %v7794_v59 }
 0x39c   :  { %v2625_v30 = vsub.f32 1.5, %v2624_v47  ;;  %v2136_v32 = vadd.f32 %v2135_v45, %v1983_v62 }
 0x39d   :  { %11372 = vst [vmem:[#allocation198_spill] sm:$0xff] %v8729_v21  ;;  %v6159_v37 = vpop.eup %6158  ;;  %v1728_v11 = vpop.f32.mrf.mxu0  ;;  %v8734_v60 = vadd.f32 1e-05, %v2353_v9 }
 0x39e   :  { %v2632_v52 = vmul.f32 %v6159_v37, %v8698_v39  ;;  %v8736_v48 = vadd.f32 %v1728_v11, %v1615_v22  ;;  %v1830_v29 = vpop.xlane.xlu2 %1829  ;;  %v2626_v12 = vmul.f32 %v6157_v18, %v2625_v30  ;;  %v1505_v45 = vpop.f32.mrf.mxu3  ;;  %vm2638_vm11 = vweird.f32 %v6159_v37 }
 0x39f   :  { %6160 = vrsqrt.f32 %v8734_v60  ;;  %v8748_v11 = vmul.f32 0.0051020407, %v1830_v29  ;;  %vm2639_vm13 = vmor %vm2637_vm12, %vm2638_vm11  ;;  %vm2647_vm15 = vweird.f32 %v8734_v60 }
 0x3a0   :  { %11373 = vst [vmem:[#allocation199_spill] sm:$0xff] %v8736_v48  ;;  %v2633_v31 = vmul.f32 %v6159_v37, %v2632_v52  ;;  %v2630_v22 = vsel %vm2629_vm10, %v6157_v18, %v2626_v12  ;;  %v1887_v4 = vsel %vm1746_vm1, %v8736_v48, 0.0  ;;  %v8758_v52 = vld [vmem:[%s10875_s3 + $0x80] sm:$0xff]  ;;  %v2270_v18 = vmul.f32 %v8743_v14, %v8743_v14 }
 0x3a1   :  { %v1617_v10 = vpop.f32.mrf.mxu2  ;;  %v8752_v30 = vmul.f32 %v2630_v22, %v2393_v40  ;;  %v2078_v44 = vpop.xlane.xlu1 %2077  ;;  %v1888_v9 = vadd.f32 %v1887_v4, %v7794_v59  ;;  %11374 = vst [vmem:[#allocation200_spill] sm:$0xff] %v8758_v52  ;;  %v1986_v29 = vmul.f32 %v8736_v48, %v8736_v48  ;;  %v2394_v4 = vld [vmem:[%s10874_s2 + $0x88] sm:$0xff]  ;;  %v8827_v59 = vld [vmem:[%s10875_s3 + $0x90] sm:$0xff] }
 0x3a2   :  { %v2634_v19 = vmul.f32 0.5, %v2633_v31  ;;  %v1618_v47 = vadd.f32 %v1617_v10, %v1503_v41  ;;  %v2228_v12 = vmul.f32 0.0051020407, %v2078_v44  ;;  %11380 = vst [vmem:[#allocation206_spill] sm:$0xff] %v8827_v59  ;;  %v2396_v59 = vld [vmem:[%s10874_s2 + $0x98] sm:$0xff] }
 0x3a3   :  { %2137 = vadd.xlane.f32.xlu1 %v2136_v32  ;;  %v8766_v40 = vmul.f32 %v8752_v30, %v8623_v5  ;;  %1889 = vadd.xlane.f32.xlu2 %v1888_v9  ;;  %v2271_v5 = vmul.f32 %v8748_v11, %v8748_v11  ;;  %v2139_v16 = vsel %vm1746_vm1, %v1986_v29, 0.0 }
 0x3a4   :  { %v2635_v41 = vsub.f32 1.5, %v2634_v19  ;;  %v2312_v62 = vsub.f32 %v2228_v12, %v2270_v18  ;;  %v2140_v29 = vadd.f32 %v2139_v16, %v1985_v61 }
 0x3a5   :  { %11375 = vst [vmem:[#allocation201_spill] sm:$0xff] %v8766_v40  ;;  %v1731_v31 = vpop.f32.mrf.mxu0  ;;  %v6161_v22 = vpop.eup %6160 }
 0x3a6   :  { %v2636_v32 = vmul.f32 %v6159_v37, %v2635_v41  ;;  %v8776_v44 = vadd.f32 %v1731_v31, %v1618_v47  ;;  %v2082_v19 = vpop.xlane.xlu2 %2081  ;;  %v2642_v39 = vmul.f32 %v6161_v22, %v8734_v60  ;;  %v2354_v9 = vmax.f32 %v2312_v62, 0.0  ;;  %v1834_v12 = vpop.xlane.xlu0 %1833  ;;  %v8791_v62 = vld [vmem:[%s10875_s3 + $0x88] sm:$0xff] }
 0x3a7   :  { %v2229_v18 = vmul.f32 0.0051020407, %v2082_v19  ;;  %11377 = vst [vmem:[#allocation203_spill] sm:$0xff] %v8791_v62  ;;  %vm2648_vm14 = vweird.f32 %v6161_v22 }
 0x3a8   :  { %11376 = vst [vmem:[#allocation202_spill] sm:$0xff] %v8776_v44  ;;  %v2640_v10 = vsel %vm2639_vm13, %v6159_v37, %v2636_v32  ;;  %v1891_v41 = vsel %vm1746_vm1, %v8776_v44, 0.0  ;;  %v2643_v47 = vmul.f32 %v6161_v22, %v2642_v39  ;;  %v8786_v31 = vadd.f32 1e-05, %v2354_v9  ;;  %v1508_v9 = vpop.f32.mrf.mxu3  ;;  %vm2649_vm2 = vmor %vm2647_vm15, %vm2648_vm14 }
 0x3a9   :  { %v8784_v48 = vmul.f32 %v2640_v10, %v2394_v4  ;;  %v2313_v21 = vsub.f32 %v2229_v18, %v2271_v5  ;;  %v1619_v6 = vpop.f32.mrf.mxu2  ;;  %v1892_v37 = vadd.f32 %v1891_v41, %v7798_v38  ;;  %v1988_v10 = vmul.f32 %v8776_v44, %v8776_v44 }
 0x3aa   :  { %v2644_v19 = vmul.f32 0.5, %v2643_v47  ;;  %6162 = vrsqrt.f32 %v8786_v31  ;;  %v8801_v5 = vmul.f32 0.0051020407, %v1834_v12  ;;  %v1620_v39 = vadd.f32 %v1619_v6, %v1505_v45 }
 0x3ab   :  { %v8796_v32 = vmul.f32 %v8784_v48, %v8659_v0  ;;  %v2355_v4 = vmax.f32 %v2313_v21, 0.0  ;;  %2141 = vadd.xlane.f32.xlu2 %v2140_v29  ;;  %1893 = vadd.xlane.f32.xlu0 %v1892_v37  ;;  %v2395_v21 = vld [vmem:[%s10874_s2 + $0x90] sm:$0xff]  ;;  %v2143_v45 = vsel %vm1746_vm1, %v1988_v10, 0.0  ;;  %vm2657_vm4 = vweird.f32 %v8786_v31 }
 0x3ac   :  { %v2645_v16 = vsub.f32 1.5, %v2644_v19  ;;  %v2272_v29 = vmul.f32 %v8801_v5, %v8801_v5  ;;  %v1987_v19 = vmul.f32 %v7798_v38, %v7798_v38 }
 0x3ad   :  { %11378 = vst [vmem:[#allocation204_spill] sm:$0xff] %v8796_v32  ;;  %v1733_v0 = vpop.f32.mrf.mxu0  ;;  %v8805_v18 = vadd.f32 1e-05, %v2355_v4 }
 0x3ae   :  { %v8807_v41 = vadd.f32 %v1733_v0, %v1620_v39  ;;  %v1838_v47 = vpop.xlane.xlu1 %1837  ;;  %v2646_v12 = vmul.f32 %v6161_v22, %v2645_v16  ;;  %v2086_v6 = vpop.xlane.xlu0 %2085  ;;  %v2144_v44 = vadd.f32 %v2143_v45, %v1987_v19 }
 0x3af   :  { %6164 = vrsqrt.f32 %v8805_v18  ;;  %v2230_v37 = vmul.f32 0.0051020407, %v2086_v6  ;;  %v8829_v6 = vmul.f32 0.0051020407, %v1838_v47  ;;  %vm2667_vm7 = vweird.f32 %v8805_v18 }
 0x3b0   :  { %11379 = vst [vmem:[#allocation205_spill] sm:$0xff] %v8807_v41  ;;  %v6163_v4 = vpop.eup %6162  ;;  %v2650_v39 = vsel %vm2649_vm2, %v6161_v22, %v2646_v12  ;;  %v1895_v16 = vsel %vm1746_vm1, %v8807_v41, 0.0 }
 0x3b1   :  { %v1622_v0 = vpop.f32.mrf.mxu2  ;;  %v8821_v60 = vmul.f32 %v2650_v39, %v2395_v21  ;;  %v2652_v10 = vmul.f32 %v6163_v4, %v8786_v31  ;;  %v2314_v61 = vsub.f32 %v2230_v37, %v2272_v29  ;;  %v1896_v22 = vadd.f32 %v1895_v16, %v7802_v54 }
 0x3b2   :  { %v1623_v38 = vadd.f32 %v1622_v0, %v1508_v9  ;;  %v1990_v39 = vmul.f32 %v8807_v41, %v8807_v41  ;;  %v1510_v41 = vpop.f32.mrf.mxu3  ;;  %vm2658_vm3 = vweird.f32 %v6163_v4 }
 0x3b3   :  { %v8834_v12 = vmul.f32 %v8821_v60, %v8696_v50  ;;  %v2653_v21 = vmul.f32 %v6163_v4, %v2652_v10  ;;  %v2356_v29 = vmax.f32 %v2314_v61, 0.0  ;;  %2145 = vadd.xlane.f32.xlu0 %v2144_v44  ;;  %1897 = vadd.xlane.f32.xlu1 %v1896_v22  ;;  %v2273_v10 = vmul.f32 %v8829_v6, %v8829_v6  ;;  %vm2659_vm5 = vmor %vm2657_vm4, %vm2658_vm3 }
 0x3b4   :  { %v2147_v47 = vsel %vm1746_vm1, %v1990_v39, 0.0 }
 0x3b5   :  { %11381 = vst [vmem:[#allocation207_spill] sm:$0xff] %v8834_v12  ;;  %v1736_v45 = vpop.f32.mrf.mxu0  ;;  %v6165_v37 = vpop.eup %6164  ;;  %v2654_v19 = vmul.f32 0.5, %v2653_v21  ;;  %v8840_v9 = vadd.f32 1e-05, %v2356_v29 }
 0x3b6   :  { %v8842_v0 = vadd.f32 %v1736_v45, %v1623_v38  ;;  %v2090_v16 = vpop.xlane.xlu1 %2089  ;;  %v2662_v50 = vmul.f32 %v6165_v37, %v8805_v18  ;;  %v1842_v61 = vpop.xlane.xlu2 %1841  ;;  %v1989_v45 = vmul.f32 %v7802_v54, %v7802_v54  ;;  %vm2668_vm6 = vweird.f32 %v6165_v37 }
 0x3b7   :  { %v2231_v44 = vmul.f32 0.0051020407, %v2090_v16  ;;  %v2655_v22 = vsub.f32 1.5, %v2654_v19  ;;  %6166 = vrsqrt.f32 %v8840_v9  ;;  %v8860_v52 = vmul.f32 0.0051020407, %v1842_v61  ;;  %vm2669_vm8 = vmor %vm2667_vm7, %vm2668_vm6 }
 0x3b8   :  { %11382 = vst [vmem:[#allocation208_spill] sm:$0xff] %v8842_v0  ;;  %v2663_v21 = vmul.f32 %v6165_v37, %v2662_v50  ;;  %v1899_v38 = vsel %vm1746_vm1, %v8842_v0, 0.0  ;;  %v1992_v19 = vmul.f32 %v8842_v0, %v8842_v0  ;;  %vm2677_vm10 = vweird.f32 %v8840_v9 }
 0x3b9   :  { %v2315_v29 = vsub.f32 %v2231_v44, %v2273_v10  ;;  %v1624_v12 = vpop.f32.mrf.mxu2  ;;  %v2656_v16 = vmul.f32 %v6163_v4, %v2655_v22  ;;  %v1900_v39 = vadd.f32 %v1899_v38, %v7806_v58  ;;  %v2148_v44 = vadd.f32 %v2147_v47, %v1989_v45 }
 0x3ba   :  { %v2664_v50 = vmul.f32 0.5, %v2663_v21  ;;  %v1625_v54 = vadd.f32 %v1624_v12, %v1510_v41  ;;  %v8869_v21 = vld [vmem:[%s10875_s3 + $0x98] sm:$0xff]  ;;  %v1991_v41 = vmul.f32 %v7806_v58, %v7806_v58  ;;  %v2274_v38 = vmul.f32 %v8860_v52, %v8860_v52  ;;  %v8898_v58 = vld [vmem:[%s10875_s3 + $0xa0] sm:$0xff] }
 0x3bb   :  { %v2357_v10 = vmax.f32 %v2315_v29, 0.0  ;;  %v2660_v40 = vsel %vm2659_vm5, %v6163_v4, %v2656_v16  ;;  %1901 = vadd.xlane.f32.xlu2 %v1900_v39  ;;  %2149 = vadd.xlane.f32.xlu1 %v2148_v44  ;;  %11383 = vst [vmem:[#allocation209_spill] sm:$0xff] %v8869_v21  ;;  %v2397_v4 = vld [vmem:[%s10874_s2 + $0xa0] sm:$0xff] }
 0x3bc   :  { %v8862_v32 = vmul.f32 %v2660_v40, %v2396_v59  ;;  %v2665_v62 = vsub.f32 1.5, %v2664_v50  ;;  %v2151_v59 = vsel %vm1746_vm1, %v1992_v19, 0.0  ;;  %11386 = vst [vmem:[#allocation212_spill] sm:$0xff] %v8898_v58 }
 0x3bd   :  { %v8864_v22 = vadd.f32 1e-05, %v2357_v10  ;;  %v1738_v31 = vpop.f32.mrf.mxu0  ;;  %v6167_v0 = vpop.eup %6166  ;;  %v2152_v18 = vadd.f32 %v2151_v59, %v1991_v41 }
 0x3be   :  { %v8871_v47 = vadd.f32 %v1738_v31, %v1625_v54  ;;  %v8878_v40 = vmul.f32 %v8862_v32, %v8743_v14  ;;  %v2666_v12 = vmul.f32 %v6165_v37, %v2665_v62  ;;  %v2672_v61 = vmul.f32 %v6167_v0, %v8840_v9  ;;  %v2094_v54 = vpop.xlane.xlu2 %2093  ;;  %v1846_v29 = vpop.xlane.xlu0 %1845 }
 0x3bf   :  { %6168 = vrsqrt.f32 %v8864_v22  ;;  %v2232_v14 = vmul.f32 0.0051020407, %v2094_v54  ;;  %v1513_v62 = vpop.f32.mrf.mxu3  ;;  %vm2678_vm9 = vweird.f32 %v6167_v0  ;;  %vm2687_vm13 = vweird.f32 %v8864_v22 }
 0x3c0   :  { %11384 = vst [vmem:[#allocation210_spill] sm:$0xff] %v8871_v47  ;;  %v2670_v16 = vsel %vm2669_vm8, %v6165_v37, %v2666_v12  ;;  %v2673_v19 = vmul.f32 %v6167_v0, %v2672_v61  ;;  %v1903_v31 = vsel %vm1746_vm1, %v8871_v47, 0.0  ;;  %v1994_v41 = vmul.f32 %v8871_v47, %v8871_v47  ;;  %vm2679_vm11 = vmor %vm2677_vm10, %vm2678_vm9  ;;  %v8934_v47 = vld [vmem:[%s10875_s3 + $0xa8] sm:$0xff] }
 0x3c1   :  { %11385 = vst [vmem:[#allocation211_spill] sm:$0xff] %v8878_v40  ;;  %v1627_v39 = vpop.f32.mrf.mxu2  ;;  %v8891_v50 = vmul.f32 %v2670_v16, %v2397_v4  ;;  %v2316_v10 = vsub.f32 %v2232_v14, %v2274_v38  ;;  %v1904_v45 = vadd.f32 %v1903_v31, %v7810_v17  ;;  %v8907_v4 = vmul.f32 0.0051020407, %v1846_v29 }
 0x3c2   :  { %v1628_v44 = vadd.f32 %v1627_v39, %v1513_v62  ;;  %v2674_v54 = vmul.f32 0.5, %v2673_v19  ;;  %11389 = vst [vmem:[#allocation215_spill] sm:$0xff] %v8934_v47 }
 0x3c3   :  { %v8903_v37 = vmul.f32 %v8891_v50, %v8748_v11  ;;  %v2358_v59 = vmax.f32 %v2316_v10, 0.0  ;;  %2153 = vadd.xlane.f32.xlu2 %v2152_v18  ;;  %1905 = vadd.xlane.f32.xlu0 %v1904_v45  ;;  %v2398_v11 = vld [vmem:[%s10874_s2 + $0xa8] sm:$0xff]  ;;  %v2275_v18 = vmul.f32 %v8907_v4, %v8907_v4  ;;  %v1993_v10 = vmul.f32 %v7810_v17, %v7810_v17 }
 0x3c4   :  { %v2675_v12 = vsub.f32 1.5, %v2674_v54 }
 0x3c5   :  { %11387 = vst [vmem:[#allocation213_spill] sm:$0xff] %v8903_v37  ;;  %v1741_v61 = vpop.f32.mrf.mxu0  ;;  %v6169_v38 = vpop.eup %6168  ;;  %v8911_v16 = vadd.f32 1e-05, %v2358_v59 }
 0x3c6   :  { %v8913_v19 = vadd.f32 %v1741_v61, %v1628_v44  ;;  %v2676_v62 = vmul.f32 %v6167_v0, %v2675_v12  ;;  %v2682_v29 = vmul.f32 %v6169_v38, %v8864_v22  ;;  %v1850_v39 = vpop.xlane.xlu1 %1849  ;;  %v2098_v45 = vpop.xlane.xlu0 %2097  ;;  %v2155_v44 = vsel %vm1746_vm1, %v1994_v41, 0.0 }
 0x3c7   :  { %6170 = vrsqrt.f32 %v8911_v16  ;;  %v2233_v59 = vmul.f32 0.0051020407, %v2098_v45  ;;  %v1515_v17 = vpop.f32.mrf.mxu3  ;;  %vm2688_vm12 = vweird.f32 %v6169_v38  ;;  %vm2697_vm2 = vweird.f32 %v8911_v16 }
 0x3c8   :  { %11388 = vst [vmem:[#allocation214_spill] sm:$0xff] %v8913_v19  ;;  %v2680_v31 = vsel %vm2679_vm11, %v6167_v0, %v2676_v62  ;;  %v2683_v54 = vmul.f32 %v6169_v38, %v2682_v29  ;;  %v1907_v9 = vsel %vm1746_vm1, %v8913_v19, 0.0  ;;  %v1996_v0 = vmul.f32 %v8913_v19, %v8913_v19  ;;  %vm2689_vm14 = vmor %vm2687_vm13, %vm2688_vm12 }
 0x3c9   :  { %v1629_v12 = vpop.f32.mrf.mxu2  ;;  %v8928_v61 = vmul.f32 %v2680_v31, %v2398_v11  ;;  %v1908_v14 = vadd.f32 %v1907_v9, %v7814_v33  ;;  %v2317_v41 = vsub.f32 %v2233_v59, %v2275_v18  ;;  %v2156_v62 = vadd.f32 %v2155_v44, %v1993_v10 }
 0x3ca   :  { %v2684_v40 = vmul.f32 0.5, %v2683_v54  ;;  %v8942_v11 = vmul.f32 0.0051020407, %v1850_v39  ;;  %v1630_v45 = vadd.f32 %v1629_v12, %v1515_v17  ;;  %v2159_v44 = vsel %vm1746_vm1, %v1996_v0, 0.0 }
 0x3cb   :  { %v8940_v29 = vmul.f32 %v8928_v61, %v8801_v5  ;;  %1909 = vadd.xlane.f32.xlu1 %v1908_v14  ;;  %v2359_v9 = vmax.f32 %v2317_v41, 0.0  ;;  %2157 = vadd.xlane.f32.xlu0 %v2156_v62  ;;  %v2399_v5 = vld [vmem:[%s10874_s2 + $0xb0] sm:$0xff]  ;;  %v1995_v12 = vmul.f32 %v7814_v33, %v7814_v33 }
 0x3cc   :  { %v2685_v31 = vsub.f32 1.5, %v2684_v40  ;;  %v2276_v22 = vmul.f32 %v8942_v11, %v8942_v11 }
 0x3cd   :  { %11390 = vst [vmem:[#allocation216_spill] sm:$0xff] %v8940_v29  ;;  %v1743_v21 = vpop.f32.mrf.mxu0  ;;  %v6171_v54 = vpop.eup %6170  ;;  %v8953_v40 = vadd.f32 1e-05, %v2359_v9  ;;  %v2160_v9 = vadd.f32 %v2159_v44, %v1995_v12 }
 0x3ce   :  { %v8947_v18 = vadd.f32 %v1743_v21, %v1630_v45  ;;  %v2686_v39 = vmul.f32 %v6169_v38, %v2685_v31  ;;  %v2692_v17 = vmul.f32 %v6171_v54, %v8911_v16  ;;  %v1854_v14 = vpop.xlane.xlu2 %1853  ;;  %v2102_v10 = vpop.xlane.xlu1 %2101  ;;  %vm2698_vm15 = vweird.f32 %v6171_v54 }
 0x3cf   :  { %v2234_v21 = vmul.f32 0.0051020407, %v2102_v10  ;;  %6172 = vrsqrt.f32 %v8953_v40  ;;  %v8970_v10 = vld [vmem:[%s10875_s3 + $0xb0] sm:$0xff]  ;;  %vm2699_vm3 = vmor %vm2697_vm2, %vm2698_vm15  ;;  %vm2707_vm4 = vweird.f32 %v8953_v40 }
 0x3d0   :  { %11391 = vst [vmem:[#allocation217_spill] sm:$0xff] %v8947_v18  ;;  %v1911_v59 = vsel %vm1746_vm1, %v8947_v18, 0.0  ;;  %v2690_v41 = vsel %vm2689_vm14, %v6169_v38, %v2686_v39  ;;  %v2693_v62 = vmul.f32 %v6171_v54, %v2692_v17  ;;  %v1998_v19 = vmul.f32 %v8947_v18, %v8947_v18 }
 0x3d1   :  { %v8964_v45 = vmul.f32 %v2690_v41, %v2399_v5  ;;  %v2318_v31 = vsub.f32 %v2234_v21, %v2276_v22  ;;  %v1912_v0 = vadd.f32 %v1911_v59, %v7818_v43  ;;  %11392 = vst [vmem:[#allocation218_spill] sm:$0xff] %v8970_v10  ;;  %v8978_v17 = vmul.f32 0.0051020407, %v1854_v14  ;;  %v2400_v59 = vld [vmem:[%s10874_s2 + $0xb8] sm:$0xff] }
 0x3d2   :  { %v2694_v37 = vmul.f32 0.5, %v2693_v62  ;;  %v2163_v62 = vsel %vm1746_vm1, %v1998_v19, 0.0  ;;  %v1997_v14 = vmul.f32 %v7818_v43, %v7818_v43  ;;  %v8997_v19 = vld [vmem:[%s10875_s3 + $0xb8] sm:$0xff] }
 0x3d3   :  { %v8976_v38 = vmul.f32 %v8964_v45, %v8829_v6  ;;  %v2360_v39 = vmax.f32 %v2318_v31, 0.0  ;;  %1913 = vadd.xlane.f32.xlu2 %v1912_v0  ;;  %2161 = vadd.xlane.f32.xlu1 %v2160_v9  ;;  %v2277_v0 = vmul.f32 %v8978_v17, %v8978_v17  ;;  %11394 = vst [vmem:[#allocation220_spill] sm:$0xff] %v8997_v19 }
 0x3d4   :  { %v2695_v5 = vsub.f32 1.5, %v2694_v37  ;;  %v2164_v16 = vadd.f32 %v2163_v62, %v1997_v14 }
 0x3d5   :  { %11393 = vst [vmem:[#allocation219_spill] sm:$0xff] %v8976_v38  ;;  %v2444_v22 = vadd.f32 1e-05, %v2360_v39  ;;  %v6173_v21 = vpop.eup %6172 }
 0x3d6   :  { %v2696_v12 = vmul.f32 %v6171_v54, %v2695_v5  ;;  %v2106_v6 = vpop.xlane.xlu2 %2105  ;;  %v1858_v41 = vpop.xlane.xlu0 %1857  ;;  %v2702_v37 = vmul.f32 %v6173_v21, %v8953_v40  ;;  %vm2708_vm1 = vweird.f32 %v6173_v21 }
 0x3d7   :  { %6174 = vrsqrt.f32 %v2444_v22  ;;  %v2235_v9 = vmul.f32 0.0051020407, %v2106_v6  ;;  %vm2709_vm5 = vmor %vm2707_vm4, %vm2708_vm1  ;;  %vm2717_vm7 = vweird.f32 %v2444_v22 }
 0x3d8   :  { %v2700_v31 = vsel %vm2699_vm3, %v6171_v54, %v2696_v12  ;;  %v2703_v5 = vmul.f32 %v6173_v21, %v2702_v37  ;;  %v9003_v54 = vmul.f32 0.0051020407, %v1858_v41 }
 0x3d9   :  { %v8992_v39 = vmul.f32 %v2700_v31, %v2400_v59  ;;  %v2319_v44 = vsub.f32 %v2235_v9, %v2277_v0  ;;  %v9018_v59 = vld [vmem:[%s10875_s3 + $0xc0] sm:$0xff] }
 0x3da   :  { %v2704_v18 = vmul.f32 0.5, %v2703_v5  ;;  %11396 = vst [vmem:[#allocation222_spill] sm:$0xff] %v9018_v59 }
 0x3db   :  { %v9001_v33 = vmul.f32 %v8992_v39, %v8860_v52  ;;  %2165 = vadd.xlane.f32.xlu2 %v2164_v16  ;;  %v2361_v12 = vmax.f32 %v2319_v44, 0.0  ;;  %v2401_v52 = vld [vmem:[%s10874_s2 + $0xc0] sm:$0xff]  ;;  %v2278_v44 = vmul.f32 %v9003_v54, %v9003_v54 }
 0x3dc   :  { %v2705_v62 = vsub.f32 1.5, %v2704_v18 }
 0x3dd   :  { %11395 = vst [vmem:[#allocation221_spill] sm:$0xff] %v9001_v33  ;;  %v6175_v6 = vpop.eup %6174  ;;  %v2445_v14 = vadd.f32 1e-05, %v2361_v12 }
 0x3de   :  { %v2712_v37 = vmul.f32 %v6175_v6, %v2444_v22  ;;  %v1862_v31 = vpop.xlane.xlu1 %1861  ;;  %v2110_v43 = vpop.xlane.xlu0 %2109  ;;  %v2706_v0 = vmul.f32 %v6173_v21, %v2705_v62  ;;  %vm2718_vm6 = vweird.f32 %v6175_v6 }
 0x3df   :  { %v2236_v41 = vmul.f32 0.0051020407, %v2110_v43  ;;  %6176 = vrsqrt.f32 %v2445_v14  ;;  %v9024_v43 = vmul.f32 0.0051020407, %v1862_v31  ;;  %vm2719_vm8 = vmor %vm2717_vm7, %vm2718_vm6  ;;  %vm2727_vm10 = vweird.f32 %v2445_v14 }
 0x3e0   :  { %v2713_v9 = vmul.f32 %v6175_v6, %v2712_v37  ;;  %v2710_v18 = vsel %vm2709_vm5, %v6173_v21, %v2706_v0  ;;  %v2402_v0 = vld [vmem:[%s10874_s2 + $0xc8] sm:$0xff] }
 0x3e1   :  { %v2320_v5 = vsub.f32 %v2236_v41, %v2278_v44  ;;  %v9013_v16 = vmul.f32 %v2710_v18, %v2401_v52  ;;  %v2279_v31 = vmul.f32 %v9024_v43, %v9024_v43  ;;  %v9038_v52 = vld [vmem:[%s10875_s3 + $0xc8] sm:$0xff] }
 0x3e2   :  { %v2714_v12 = vmul.f32 0.5, %v2713_v9  ;;  %11398 = vst [vmem:[#allocation224_spill] sm:$0xff] %v9038_v52 }
 0x3e3   :  { %v2362_v62 = vmax.f32 %v2320_v5, 0.0  ;;  %v9022_v40 = vmul.f32 %v9013_v16, %v8907_v4 }
 0x3e4   :  { %v2715_v29 = vsub.f32 1.5, %v2714_v12 }
 0x3e5   :  { %11397 = vst [vmem:[#allocation223_spill] sm:$0xff] %v9022_v40  ;;  %v2446_v37 = vadd.f32 1e-05, %v2362_v62  ;;  %v6177_v21 = vpop.eup %6176 }
 0x3e6   :  { %v2716_v44 = vmul.f32 %v6175_v6, %v2715_v29  ;;  %v1866_v41 = vpop.xlane.xlu2 %1865  ;;  %v2114_v9 = vpop.xlane.xlu1 %2113  ;;  %v2722_v4 = vmul.f32 %v6177_v21, %v2445_v14  ;;  %vm2728_vm9 = vweird.f32 %v6177_v21 }
 0x3e7   :  { %6178 = vrsqrt.f32 %v2446_v37  ;;  %v2237_v5 = vmul.f32 0.0051020407, %v2114_v9  ;;  %v9044_v59 = vmul.f32 0.0051020407, %v1866_v41  ;;  %vm2729_vm11 = vmor %vm2727_vm10, %vm2728_vm9  ;;  %vm2737_vm13 = vweird.f32 %v2446_v37 }
 0x3e8   :  { %v2720_v18 = vsel %vm2719_vm8, %v6175_v6, %v2716_v44  ;;  %v2723_v62 = vmul.f32 %v6177_v21, %v2722_v4 }
 0x3e9   :  { %v9033_v12 = vmul.f32 %v2720_v18, %v2402_v0  ;;  %v2321_v29 = vsub.f32 %v2237_v5, %v2279_v31  ;;  %v2403_v31 = vld [vmem:[%s10874_s2 + $0xd0] sm:$0xff]  ;;  %v2280_v41 = vmul.f32 %v9044_v59, %v9044_v59 }
 0x3ea   :  { %v2724_v40 = vmul.f32 0.5, %v2723_v62 }
 0x3eb   :  { %v9042_v22 = vmul.f32 %v9033_v12, %v8942_v11  ;;  %v2363_v6 = vmax.f32 %v2321_v29, 0.0 }
 0x3ec   :  { %v2725_v9 = vsub.f32 1.5, %v2724_v40 }
 0x3ed   :  { %11399 = vst [vmem:[#allocation225_spill] sm:$0xff] %v9042_v22  ;;  %v6179_v44 = vpop.eup %6178  ;;  %v2447_v18 = vadd.f32 1e-05, %v2363_v6  ;;  %v9058_v22 = vld [vmem:[%s10875_s3 + $0xd0] sm:$0xff] }
 0x3ee   :  { %v2732_v4 = vmul.f32 %v6179_v44, %v2446_v37  ;;  %v2118_v47 = vpop.xlane.xlu2 %2117  ;;  %v1870_v38 = vpop.xlane.xlu0 %1869  ;;  %v2726_v11 = vmul.f32 %v6177_v21, %v2725_v9  ;;  %11400 = vst [vmem:[#allocation226_spill] sm:$0xff] %v9058_v22  ;;  %vm2738_vm12 = vweird.f32 %v6179_v44 }
 0x3ef   :  { %v2238_v5 = vmul.f32 0.0051020407, %v2118_v47  ;;  %6180 = vrsqrt.f32 %v2447_v18  ;;  %v9064_v47 = vmul.f32 0.0051020407, %v1870_v38  ;;  %vm2739_vm14 = vmor %vm2737_vm13, %vm2738_vm12  ;;  %vm2747_vm2 = vweird.f32 %v2447_v18 }
 0x3f0   :  { %v2733_v62 = vmul.f32 %v6179_v44, %v2732_v4  ;;  %v2730_v29 = vsel %vm2729_vm11, %v6177_v21, %v2726_v11  ;;  %v2404_v11 = vld [vmem:[%s10874_s2 + $0xd8] sm:$0xff] }
 0x3f1   :  { %v2322_v40 = vsub.f32 %v2238_v5, %v2280_v41  ;;  %v9053_v0 = vmul.f32 %v2730_v29, %v2403_v31  ;;  %v2281_v38 = vmul.f32 %v9064_v47, %v9064_v47  ;;  %v9078_v31 = vld [vmem:[%s10875_s3 + $0xd8] sm:$0xff] }
 0x3f2   :  { %v2734_v6 = vmul.f32 0.5, %v2733_v62  ;;  %11402 = vst [vmem:[#allocation228_spill] sm:$0xff] %v9078_v31 }
 0x3f3   :  { %v2364_v52 = vmax.f32 %v2322_v40, 0.0  ;;  %v9062_v14 = vmul.f32 %v9053_v0, %v8978_v17 }
 0x3f4   :  { %v2735_v9 = vsub.f32 1.5, %v2734_v6 }
 0x3f5   :  { %11401 = vst [vmem:[#allocation227_spill] sm:$0xff] %v9062_v14  ;;  %v2448_v4 = vadd.f32 1e-05, %v2364_v52  ;;  %v6181_v21 = vpop.eup %6180 }
 0x3f6   :  { %v2736_v41 = vmul.f32 %v6179_v44, %v2735_v9  ;;  %v1874_v5 = vpop.xlane.xlu1 %1873  ;;  %v2122_v62 = vpop.xlane.xlu0 %2121  ;;  %v2742_v17 = vmul.f32 %v6181_v21, %v2447_v18  ;;  %vm2748_vm15 = vweird.f32 %v6181_v21 }
 0x3f7   :  { %6182 = vrsqrt.f32 %v2448_v4  ;;  %v2239_v52 = vmul.f32 0.0051020407, %v2122_v62  ;;  %v9084_v22 = vmul.f32 0.0051020407, %v1874_v5  ;;  %vm2749_vm3 = vmor %vm2747_vm2, %vm2748_vm15  ;;  %vm2757_vm4 = vweird.f32 %v2448_v4 }
 0x3f8   :  { %v2740_v29 = vsel %vm2739_vm14, %v6179_v44, %v2736_v41  ;;  %v2743_v6 = vmul.f32 %v6181_v21, %v2742_v17 }
 0x3f9   :  { %v9073_v40 = vmul.f32 %v2740_v29, %v2404_v11  ;;  %v2323_v9 = vsub.f32 %v2239_v52, %v2281_v38  ;;  %v2405_v38 = vld [vmem:[%s10874_s2 + $0xe0] sm:$0xff]  ;;  %v2282_v5 = vmul.f32 %v9084_v22, %v9084_v22 }
 0x3fa   :  { %v2744_v14 = vmul.f32 0.5, %v2743_v6 }
 0x3fb   :  { %v9082_v37 = vmul.f32 %v9073_v40, %v9003_v54  ;;  %v2365_v44 = vmax.f32 %v2323_v9, 0.0 }
 0x3fc   :  { %v2745_v62 = vsub.f32 1.5, %v2744_v14 }
 0x3fd   :  { %11403 = vst [vmem:[#allocation229_spill] sm:$0xff] %v9082_v37  ;;  %v6183_v41 = vpop.eup %6182  ;;  %v2449_v29 = vadd.f32 1e-05, %v2365_v44  ;;  %v9098_v37 = vld [vmem:[%s10875_s3 + $0xe0] sm:$0xff] }
 0x3fe   :  { %v2752_v17 = vmul.f32 %v6183_v41, %v2448_v4  ;;  %v1878_v10 = vpop.xlane.xlu2 %1877  ;;  %v2126_v33 = vpop.xlane.xlu1 %2125  ;;  %v2746_v54 = vmul.f32 %v6181_v21, %v2745_v62  ;;  %11404 = vst [vmem:[#allocation230_spill] sm:$0xff] %v9098_v37  ;;  %vm2758_vm1 = vweird.f32 %v6183_v41 }
 0x3ff   :  { %v2240_v52 = vmul.f32 0.0051020407, %v2126_v33  ;;  %6184 = vrsqrt.f32 %v2449_v29  ;;  %v9104_v33 = vmul.f32 0.0051020407, %v1878_v10  ;;  %vm2759_vm5 = vmor %vm2757_vm4, %vm2758_vm1  ;;  %vm2767_vm7 = vweird.f32 %v2449_v29 }
 0x400   :  { %v2753_v6 = vmul.f32 %v6183_v41, %v2752_v17  ;;  %v2750_v9 = vsel %vm2749_vm3, %v6181_v21, %v2746_v54  ;;  %v2406_v54 = vld [vmem:[%s10874_s2 + $0xe8] sm:$0xff] }
 0x401   :  { %v2324_v14 = vsub.f32 %v2240_v52, %v2282_v5  ;;  %v9093_v11 = vmul.f32 %v2750_v9, %v2405_v38  ;;  %v2283_v10 = vmul.f32 %v9104_v33, %v9104_v33  ;;  %v9118_v38 = vld [vmem:[%s10875_s3 + $0xe8] sm:$0xff] }
 0x402   :  { %v2754_v44 = vmul.f32 0.5, %v2753_v6  ;;  %11406 = vst [vmem:[#allocation232_spill] sm:$0xff] %v9118_v38  ;;  %v9140_v38 = vld [vmem:[%s10875_s3 + $0xf0] sm:$0xff] }
 0x403   :  { %v2366_v31 = vmax.f32 %v2324_v14, 0.0  ;;  %v9102_v18 = vmul.f32 %v9093_v11, %v9024_v43  ;;  %11408 = vst [vmem:[#allocation234_spill] sm:$0xff] %v9140_v38 }
 0x404   :  { %v2755_v62 = vsub.f32 1.5, %v2754_v44 }
 0x405   :  { %11405 = vst [vmem:[#allocation231_spill] sm:$0xff] %v9102_v18  ;;  %v2450_v17 = vadd.f32 1e-05, %v2366_v31  ;;  %v6185_v21 = vpop.eup %6184 }
 0x406   :  { %v2756_v5 = vmul.f32 %v6183_v41, %v2755_v62  ;;  %v2130_v52 = vpop.xlane.xlu2 %2129  ;;  %v1882_v6 = vpop.xlane.xlu0 %1881  ;;  %v2762_v43 = vmul.f32 %v6185_v21, %v2449_v29  ;;  %vm2768_vm6 = vweird.f32 %v6185_v21 }
 0x407   :  { %6186 = vrsqrt.f32 %v2450_v17  ;;  %v2241_v31 = vmul.f32 0.0051020407, %v2130_v52  ;;  %v9124_v37 = vmul.f32 0.0051020407, %v1882_v6  ;;  %vm2769_vm8 = vmor %vm2767_vm7, %vm2768_vm6  ;;  %vm2777_vm10 = vweird.f32 %v2450_v17 }
 0x408   :  { %v2760_v9 = vsel %vm2759_vm5, %v6183_v41, %v2756_v5  ;;  %v2763_v44 = vmul.f32 %v6185_v21, %v2762_v43 }
 0x409   :  { %v9113_v14 = vmul.f32 %v2760_v9, %v2406_v54  ;;  %v2325_v62 = vsub.f32 %v2241_v31, %v2283_v10  ;;  %v2407_v10 = vld [vmem:[%s10874_s2 + $0xf0] sm:$0xff]  ;;  %v2284_v6 = vmul.f32 %v9124_v37, %v9124_v37 }
 0x40a   :  { %v2764_v18 = vmul.f32 0.5, %v2763_v44 }
 0x40b   :  { %v9122_v4 = vmul.f32 %v9113_v14, %v9044_v59  ;;  %v2367_v41 = vmax.f32 %v2325_v62, 0.0 }
 0x40c   :  { %v2765_v52 = vsub.f32 1.5, %v2764_v18 }
 0x40d   :  { %11407 = vst [vmem:[#allocation233_spill] sm:$0xff] %v9122_v4  ;;  %v6187_v5 = vpop.eup %6186  ;;  %v2451_v19 = vadd.f32 1e-05, %v2367_v41 }
 0x40e   :  { %v1886_v43 = vpop.xlane.xlu1 %1885  ;;  %v2772_v9 = vmul.f32 %v6187_v5, %v2450_v17  ;;  %v2134_v58 = vpop.xlane.xlu0 %2133  ;;  %v2766_v59 = vmul.f32 %v6185_v21, %v2765_v52  ;;  %vm2778_vm9 = vweird.f32 %v6187_v5 }
 0x40f   :  { %v2242_v31 = vmul.f32 0.0051020407, %v2134_v58  ;;  %6188 = vrsqrt.f32 %v2451_v19  ;;  %v9135_v41 = vmul.f32 0.0051020407, %v1886_v43  ;;  %vm2779_vm11 = vmor %vm2777_vm10, %vm2778_vm9  ;;  %v9158_v43 = vld [vmem:[%s10875_s3 + $0xf8] sm:$0xff]  ;;  %vm2787_vm13 = vweird.f32 %v2451_v19 }
 0x410   :  { %v2773_v44 = vmul.f32 %v6187_v5, %v2772_v9  ;;  %v2770_v62 = vsel %vm2769_vm8, %v6185_v21, %v2766_v59  ;;  %v2408_v59 = vld [vmem:[%s10874_s2 + $0xf8] sm:$0xff]  ;;  %11410 = vst [vmem:[#allocation236_spill] sm:$0xff] %v9158_v43 }
 0x411   :  { %v2326_v18 = vsub.f32 %v2242_v31, %v2284_v6  ;;  %v9133_v54 = vmul.f32 %v2770_v62, %v2407_v10  ;;  %v2285_v31 = vmul.f32 %v9135_v41, %v9135_v41 }
 0x412   :  { %v2774_v4 = vmul.f32 0.5, %v2773_v44 }
 0x413   :  { %v2368_v29 = vmax.f32 %v2326_v18, 0.0  ;;  %v9144_v52 = vmul.f32 %v9133_v54, %v9064_v47 }
 0x414   :  { %v2775_v58 = vsub.f32 1.5, %v2774_v4 }
 0x415   :  { %11409 = vst [vmem:[#allocation235_spill] sm:$0xff] %v9144_v52  ;;  %v2452_v21 = vadd.f32 1e-05, %v2368_v29  ;;  %v6189_v10 = vpop.eup %6188 }
 0x416   :  { %v2138_v9 = vpop.xlane.xlu1 %2137  ;;  %v2776_v6 = vmul.f32 %v6187_v5, %v2775_v58  ;;  %v1890_v44 = vpop.xlane.xlu2 %1889  ;;  %v2782_v4 = vmul.f32 %v6189_v10, %v2451_v19  ;;  %vm2788_vm12 = vweird.f32 %v6189_v10 }
 0x417   :  { %v2243_v47 = vmul.f32 0.0051020407, %v2138_v9  ;;  %6190 = vrsqrt.f32 %v2452_v21  ;;  %v9164_v9 = vmul.f32 0.0051020407, %v1890_v44  ;;  %vm2789_vm14 = vmor %vm2787_vm13, %vm2788_vm12  ;;  %vm2797_vm2 = vweird.f32 %v2452_v21 }
 0x418   :  { %v2780_v17 = vsel %vm2779_vm11, %v6187_v5, %v2776_v6  ;;  %v2783_v29 = vmul.f32 %v6189_v10, %v2782_v4  ;;  %v2409_v4 = vld [vmem:[%s10874_s2 + $0x100] sm:$0xff] }
 0x419   :  { %v2327_v62 = vsub.f32 %v2243_v47, %v2285_v31  ;;  %v9153_v18 = vmul.f32 %v2780_v17, %v2408_v59  ;;  %v2286_v44 = vmul.f32 %v9164_v9, %v9164_v9 }
 0x41a   :  { %v2784_v38 = vmul.f32 0.5, %v2783_v29 }
 0x41b   :  { %v2369_v52 = vmax.f32 %v2327_v62, 0.0  ;;  %v9162_v58 = vmul.f32 %v9153_v18, %v9084_v22 }
 0x41c   :  { %v2785_v59 = vsub.f32 1.5, %v2784_v38 }
 0x41d   :  { %11411 = vst [vmem:[#allocation237_spill] sm:$0xff] %v9162_v58  ;;  %v2453_v46 = vadd.f32 1e-05, %v2369_v52  ;;  %v6191_v15 = vpop.eup %6190  ;;  %v9178_v58 = vld [vmem:[%s10875_s3 + $0x100] sm:$0xff] }
 0x41e   :  { %v2792_v6 = vmul.f32 %v6191_v15, %v2452_v21  ;;  %v2142_v31 = vpop.xlane.xlu2 %2141  ;;  %v1894_v47 = vpop.xlane.xlu0 %1893  ;;  %v2786_v22 = vmul.f32 %v6189_v10, %v2785_v59  ;;  %11412 = vst [vmem:[#allocation238_spill] sm:$0xff] %v9178_v58  ;;  %vm2798_vm15 = vweird.f32 %v6191_v15 }
 0x41f   :  { %6192 = vrsqrt.f32 %v2453_v46  ;;  %v2244_v52 = vmul.f32 0.0051020407, %v2142_v31  ;;  %v9180_v13 = vmul.f32 0.0051020407, %v1894_v47  ;;  %vm2799_vm3 = vmor %vm2797_vm2, %vm2798_vm15  ;;  %vm2807_vm4 = vweird.f32 %v2453_v46 }
 0x420   :  { %v2793_v17 = vmul.f32 %v6191_v15, %v2792_v6  ;;  %v2790_v62 = vsel %vm2789_vm14, %v6189_v10, %v2786_v22  ;;  %v2410_v22 = vld [vmem:[%s10874_s2 + $0x108] sm:$0xff] }
 0x421   :  { %v2328_v29 = vsub.f32 %v2244_v52, %v2286_v44  ;;  %v9173_v38 = vmul.f32 %v2790_v62, %v2409_v4 }
 0x422   :  { %v2794_v5 = vmul.f32 0.5, %v2793_v17 }
 0x423   :  { %v2370_v43 = vmax.f32 %v2328_v29, 0.0  ;;  %v9184_v59 = vmul.f32 %v9173_v38, %v9104_v33  ;;  %v2287_v33 = vmul.f32 %v9180_v13, %v9180_v13 }
 0x424   :  { %v2795_v31 = vsub.f32 1.5, %v2794_v5 }
 0x425   :  { %v6193_v19 = vpop.eup %6192  ;;  %11413 = vst [vmem:[#allocation239_spill] sm:$0xff] %v9184_v59  ;;  %v2454_v6 = vadd.f32 1e-05, %v2370_v43  ;;  %v9198_v59 = vld [vmem:[%s10875_s3 + $0x108] sm:$0xff] }
 0x426   :  { %v2802_v10 = vmul.f32 %v6193_v19, %v2453_v46  ;;  %v2796_v44 = vmul.f32 %v6191_v15, %v2795_v31  ;;  %v2146_v47 = vpop.xlane.xlu0 %2145  ;;  %v1898_v5 = vpop.xlane.xlu1 %1897  ;;  %11414 = vst [vmem:[#allocation240_spill] sm:$0xff] %v9198_v59  ;;  %vm2808_vm1 = vweird.f32 %v6193_v19 }
 0x427   :  { %6194 = vrsqrt.f32 %v2454_v6  ;;  %v2245_v17 = vmul.f32 0.0051020407, %v2146_v47  ;;  %v9204_v58 = vmul.f32 0.0051020407, %v1898_v5  ;;  %vm2809_vm5 = vmor %vm2807_vm4, %vm2808_vm1  ;;  %vm2817_vm7 = vweird.f32 %v2454_v6 }
 0x428   :  { %v2803_v52 = vmul.f32 %v6193_v19, %v2802_v10  ;;  %v2800_v62 = vsel %vm2799_vm3, %v6191_v15, %v2796_v44 }
 0x429   :  { %v9193_v43 = vmul.f32 %v2800_v62, %v2410_v22  ;;  %v2329_v4 = vsub.f32 %v2245_v17, %v2287_v33  ;;  %v2411_v22 = vld [vmem:[%s10874_s2 + $0x110] sm:$0xff] }
 0x42a   :  { %v2804_v29 = vmul.f32 0.5, %v2803_v52 }
 0x42b   :  { %v9202_v21 = vmul.f32 %v9193_v43, %v9124_v37  ;;  %v2371_v10 = vmax.f32 %v2329_v4, 0.0 }
 0x42c   :  { %v2805_v31 = vsub.f32 1.5, %v2804_v29  ;;  %v2288_v29 = vmul.f32 %v9204_v58, %v9204_v58 }
 0x42d   :  { %11415 = vst [vmem:[#allocation241_spill] sm:$0xff] %v9202_v21  ;;  %v6195_v47 = vpop.eup %6194  ;;  %v2455_v52 = vadd.f32 1e-05, %v2371_v10  ;;  %v9218_v21 = vld [vmem:[%s10875_s3 + $0x110] sm:$0xff] }
 0x42e   :  { %v2806_v44 = vmul.f32 %v6193_v19, %v2805_v31  ;;  %v2812_v33 = vmul.f32 %v6195_v47, %v2454_v6  ;;  %v1902_v37 = vpop.xlane.xlu2 %1901  ;;  %v2150_v62 = vpop.xlane.xlu1 %2149  ;;  %11416 = vst [vmem:[#allocation242_spill] sm:$0xff] %v9218_v21  ;;  %vm2818_vm6 = vweird.f32 %v6195_v47 }
 0x42f   :  { %6196 = vrsqrt.f32 %v2455_v52  ;;  %v2246_v15 = vmul.f32 0.0051020407, %v2150_v62  ;;  %v9224_v10 = vmul.f32 0.0051020407, %v1902_v37  ;;  %v2412_v62 = vld [vmem:[%s10874_s2 + $0x118] sm:$0xff]  ;;  %vm2819_vm8 = vmor %vm2817_vm7, %vm2818_vm6  ;;  %vm2827_vm10 = vweird.f32 %v2455_v52 }
 0x430   :  { %v2810_v17 = vsel %vm2809_vm5, %v6193_v19, %v2806_v44  ;;  %v2813_v5 = vmul.f32 %v6195_v47, %v2812_v33 }
 0x431   :  { %v9211_v4 = vmul.f32 %v2810_v17, %v2411_v22  ;;  %v2330_v19 = vsub.f32 %v2246_v15, %v2288_v29  ;;  %v2289_v15 = vmul.f32 %v9224_v10, %v9224_v10 }
 0x432   :  { %v2814_v31 = vmul.f32 0.5, %v2813_v5 }
 0x433   :  { %v9222_v46 = vmul.f32 %v9211_v4, %v9135_v41  ;;  %v2372_v33 = vmax.f32 %v2330_v19, 0.0 }
 0x434   :  { %v2815_v44 = vsub.f32 1.5, %v2814_v31 }
 0x435   :  { %11417 = vst [vmem:[#allocation243_spill] sm:$0xff] %v9222_v46  ;;  %v6197_v17 = vpop.eup %6196  ;;  %v2456_v41 = vadd.f32 1e-05, %v2372_v33 }
 0x436   :  { %v2816_v59 = vmul.f32 %v6195_v47, %v2815_v44  ;;  %v2822_v25 = vmul.f32 %v6197_v17, %v2455_v52  ;;  %v2154_v63 = vpop.xlane.xlu2 %2153  ;;  %v1906_v5 = vpop.xlane.xlu0 %1905  ;;  %v9238_v44 = vld [vmem:[%s10875_s3 + $0x118] sm:$0xff]  ;;  %vm2828_vm9 = vweird.f32 %v6197_v17 }
 0x437   :  { %v2247_v37 = vmul.f32 0.0051020407, %v2154_v63  ;;  %6198 = vrsqrt.f32 %v2456_v41  ;;  %11418 = vst [vmem:[#allocation244_spill] sm:$0xff] %v9238_v44  ;;  %v9244_v63 = vmul.f32 0.0051020407, %v1906_v5  ;;  %vm2829_vm11 = vmor %vm2827_vm10, %vm2828_vm9  ;;  %vm2837_vm13 = vweird.f32 %v2456_v41 }
 0x438   :  { %v2820_v29 = vsel %vm2819_vm8, %v6195_v47, %v2816_v59  ;;  %v2823_v31 = vmul.f32 %v6197_v17, %v2822_v25  ;;  %v9258_v25 = vld [vmem:[%s10875_s3 + $0x120] sm:$0xff] }
 0x439   :  { %v9233_v19 = vmul.f32 %v2820_v29, %v2412_v62  ;;  %v2331_v22 = vsub.f32 %v2247_v37, %v2289_v15  ;;  %v2413_v62 = vld [vmem:[%s10874_s2 + $0x120] sm:$0xff]  ;;  %v2290_v5 = vmul.f32 %v9244_v63, %v9244_v63  ;;  %11420 = vst [vmem:[#allocation246_spill] sm:$0xff] %v9258_v25 }
 0x43a   :  { %v2824_v6 = vmul.f32 0.5, %v2823_v31 }
 0x43b   :  { %v9242_v33 = vmul.f32 %v9233_v19, %v9164_v9  ;;  %v2373_v46 = vmax.f32 %v2331_v22, 0.0 }
 0x43c   :  { %v2825_v21 = vsub.f32 1.5, %v2824_v6 }
 0x43d   :  { %11419 = vst [vmem:[#allocation245_spill] sm:$0xff] %v9242_v33  ;;  %v2457_v59 = vadd.f32 1e-05, %v2373_v46  ;;  %v6199_v47 = vpop.eup %6198 }
 0x43e   :  { %v2826_v15 = vmul.f32 %v6197_v17, %v2825_v21  ;;  %v1910_v37 = vpop.xlane.xlu1 %1909  ;;  %v2832_v9 = vmul.f32 %v6199_v47, %v2456_v41  ;;  %v2158_v22 = vpop.xlane.xlu0 %2157  ;;  %vm2838_vm12 = vweird.f32 %v6199_v47 }
 0x43f   :  { %6200 = vrsqrt.f32 %v2457_v59  ;;  %v2248_v31 = vmul.f32 0.0051020407, %v2158_v22  ;;  %v9264_v44 = vmul.f32 0.0051020407, %v1910_v37  ;;  %vm2839_vm14 = vmor %vm2837_vm13, %vm2838_vm12  ;;  %vm2847_vm2 = vweird.f32 %v2457_v59 }
 0x440   :  { %v2830_v29 = vsel %vm2829_vm11, %v6197_v17, %v2826_v15  ;;  %v2833_v46 = vmul.f32 %v6199_v47, %v2832_v9 }
 0x441   :  { %v9253_v6 = vmul.f32 %v2830_v29, %v2413_v62  ;;  %v2332_v21 = vsub.f32 %v2248_v31, %v2290_v5  ;;  %v2414_v5 = vld [vmem:[%s10874_s2 + $0x128] sm:$0xff]  ;;  %v2291_v37 = vmul.f32 %v9264_v44, %v9264_v44 }
 0x442   :  { %v2834_v33 = vmul.f32 0.5, %v2833_v46 }
 0x443   :  { %v9262_v52 = vmul.f32 %v9253_v6, %v9180_v13  ;;  %v2374_v17 = vmax.f32 %v2332_v21, 0.0 }
 0x444   :  { %v2835_v22 = vsub.f32 1.5, %v2834_v33 }
 0x445   :  { %11421 = vst [vmem:[#allocation247_spill] sm:$0xff] %v9262_v52  ;;  %v6201_v15 = vpop.eup %6200  ;;  %v2458_v29 = vadd.f32 1e-05, %v2374_v17  ;;  %v9278_v52 = vld [vmem:[%s10875_s3 + $0x128] sm:$0xff] }
 0x446   :  { %v2842_v9 = vmul.f32 %v6201_v15, %v2457_v59  ;;  %v1914_v20 = vpop.xlane.xlu2 %1913  ;;  %v2162_v8 = vpop.xlane.xlu1 %2161  ;;  %v2836_v13 = vmul.f32 %v6199_v47, %v2835_v22  ;;  %11422 = vst [vmem:[#allocation248_spill] sm:$0xff] %v9278_v52  ;;  %vm2848_vm15 = vweird.f32 %v6201_v15 }
 0x447   :  { %v2249_v31 = vmul.f32 0.0051020407, %v2162_v8  ;;  %6202 = vrsqrt.f32 %v2458_v29  ;;  %v9284_v8 = vmul.f32 0.0051020407, %v1914_v20  ;;  %vm2849_vm3 = vmor %vm2847_vm2, %vm2848_vm15  ;;  %vm2857_vm4 = vweird.f32 %v2458_v29 }
 0x448   :  { %v2843_v46 = vmul.f32 %v6201_v15, %v2842_v9  ;;  %v2840_v21 = vsel %vm2839_vm14, %v6199_v47, %v2836_v13  ;;  %v2415_v13 = vld [vmem:[%s10874_s2 + $0x130] sm:$0xff] }
 0x449   :  { %v2333_v33 = vsub.f32 %v2249_v31, %v2291_v37  ;;  %v9273_v62 = vmul.f32 %v2840_v21, %v2414_v5  ;;  %v2292_v20 = vmul.f32 %v9284_v8, %v9284_v8 }
 0x44a   :  { %v2844_v17 = vmul.f32 0.5, %v2843_v46 }
 0x44b   :  { %v2375_v25 = vmax.f32 %v2333_v33, 0.0  ;;  %v9282_v41 = vmul.f32 %v9273_v62, %v9204_v58 }
 0x44c   :  { %v2845_v22 = vsub.f32 1.5, %v2844_v17  ;;  %v9298_v17 = vld [vmem:[%s10875_s3 + $0x130] sm:$0xff] }
 0x44d   :  { %11423 = vst [vmem:[#allocation249_spill] sm:$0xff] %v9282_v41  ;;  %v2459_v9 = vadd.f32 1e-05, %v2375_v25  ;;  %v6203_v47 = vpop.eup %6202 }
 0x44e   :  { %v2846_v37 = vmul.f32 %v6201_v15, %v2845_v22  ;;  %v2166_v31 = vpop.xlane.xlu2 %2165  ;;  %v2852_v46 = vmul.f32 %v6203_v47, %v2458_v29  ;;  %vm2858_vm1 = vweird.f32 %v6203_v47 }
 0x44f   :  { %6204 = vrsqrt.f32 %v2459_v9  ;;  %v2250_v21 = vmul.f32 0.0051020407, %v2166_v31  ;;  %vm2859_vm5 = vmor %vm2857_vm4, %vm2858_vm1  ;;  %vm2867_vm7 = vweird.f32 %v2459_v9 }
 0x450   :  { %v2850_v58 = vsel %vm2849_vm3, %v6201_v15, %v2846_v37  ;;  %v2853_v33 = vmul.f32 %v6203_v47, %v2852_v46 }
 0x451   :  { %v9293_v25 = vmul.f32 %v2850_v58, %v2415_v13  ;;  %v2334_v5 = vsub.f32 %v2250_v21, %v2292_v20  ;;  %v2416_v58 = vld [vmem:[%s10874_s2 + $0x138] sm:$0xff] }
 0x452   :  { %v2854_v22 = vmul.f32 0.5, %v2853_v33  ;;  %v9314_v33 = vld [vmem:[%s10875_s3 + $0x138] sm:$0xff] }
 0x453   :  { %v9302_v59 = vmul.f32 %v9293_v25, %v9224_v10  ;;  %v2376_v41 = vmax.f32 %v2334_v5, 0.0 }
 0x454   :  { %v2855_v31 = vsub.f32 1.5, %v2854_v22 }
 0x455   :  { %v6205_v15 = vpop.eup %6204  ;;  %v3045_v37 = vsub.f32 %v9298_v17, %v9302_v59  ;;  %v2460_v46 = vadd.f32 1e-05, %v2376_v41 }
 0x456   :  { %v2862_v13 = vmul.f32 %v6205_v15, %v2459_v9  ;;  %v2856_v52 = vmul.f32 %v6203_v47, %v2855_v31  ;;  %vm2868_vm6 = vweird.f32 %v6205_v15 }
 0x457   :  { %6206 = vrsqrt.f32 %v2460_v46  ;;  %vm2869_vm8 = vmor %vm2867_vm7, %vm2868_vm6  ;;  %vm2877_vm10 = vweird.f32 %v2460_v46 }
 0x458   :  { %v2863_v20 = vmul.f32 %v6205_v15, %v2862_v13  ;;  %v2860_v10 = vsel %vm2859_vm5, %v6203_v47, %v2856_v52  ;;  %v2417_v52 = vld [vmem:[%s10874_s2 + $0x140] sm:$0xff] }
 0x459   :  { %v9309_v21 = vmul.f32 %v2860_v10, %v2416_v58 }
 0x45a   :  { %v2864_v5 = vmul.f32 0.5, %v2863_v20 }
 0x45b   :  { %v9318_v41 = vmul.f32 %v9309_v21, %v9244_v63  ;;  %v9330_v63 = vld [vmem:[%s10875_s3 + $0x140] sm:$0xff] }
 0x45c   :  { %v2865_v22 = vsub.f32 1.5, %v2864_v5 }
 0x45d   :  { %v6207_v31 = vpop.eup %6206 }
 0x45e   :  { %v2866_v47 = vmul.f32 %v6205_v15, %v2865_v22  ;;  %v2872_v13 = vmul.f32 %v6207_v31, %v2460_v46  ;;  %vm2878_vm9 = vweird.f32 %v6207_v31 }
 0x45f   :  { %vm2879_vm11 = vmor %vm2877_vm10, %vm2878_vm9 }
 0x460   :  { %v2870_v58 = vsel %vm2869_vm8, %v6205_v15, %v2866_v47  ;;  %v2873_v10 = vmul.f32 %v6207_v31, %v2872_v13  ;;  %v2418_v15 = vld [vmem:[%s10874_s2 + $0x148] sm:$0xff] }
 0x461   :  { %v9325_v20 = vmul.f32 %v2870_v58, %v2417_v52 }
 0x462   :  { %v2874_v29 = vmul.f32 0.5, %v2873_v10 }
 0x463   :  { %v9334_v5 = vmul.f32 %v9325_v20, %v9264_v44  ;;  %v9344_v44 = vld [vmem:[%s10875_s3 + $0x148] sm:$0xff] }
 0x464   :  { %v2875_v9 = vsub.f32 1.5, %v2874_v29 }
 0x466   :  { %v2876_v52 = vmul.f32 %v6207_v31, %v2875_v9 }
 0x468   :  { %v2880_v47 = vsel %vm2879_vm11, %v6207_v31, %v2876_v52 }
 0x469   :  { %v2922_v13 = vmul.f32 %v2880_v47, %v2418_v15 }
 0x46b   :  { %v9347_v58 = vmul.f32 %v2922_v13, %v9284_v8 }
 0x46d   :  { %v3048_v29 = vsub.f32 %v9344_v44, %v9347_v58 }
 0x46e   :  { %6211 = dma.done.wait [#allocation4], 10752 }
 0x46f   :  { %6212 = vsyncadd [#allocation4], 4294956544  ;;  %v6215_v10 = vmov 0   ;;  %v11455_v46 = vld [vmem:[#allocation180_spill] sm:$0xff]  ;;  %v11457_v15 = vld [vmem:[#allocation194_spill] sm:$0xff] }
 0x470   :  { %6210 = vset.pattern.permute.xlu2 %v6215_v10  ;;  %6209 = vset.pattern.permute.xlu1 %v6215_v10  ;;  %v11458_v52 = vld [vmem:[#allocation195_spill] sm:$0xff]  ;;  %v11546_v59 = vld [vmem:[#allocation101_spill] sm:$0xff] }
 0x471   :  { %6208 = vset.pattern.permute.xlu0 %v6215_v10  ;;  %3159 = vperm.xlu2 %6210, %v8286_v7   ;;  %v11425_v7 = vld [vmem:[#allocation125_spill] sm:$0xff]  ;;  %v11459_v47 = vsub.f32 %v11457_v15, %v11458_v52  ;;  %v11461_v10 = vld [vmem:[#allocation192_spill] sm:$0xff]  ;;  %v11487_v52 = vld [vmem:[#allocation218_spill] sm:$0xff] }
 0x472   :  { %3149 = vperm.xlu1 %6209, %v8210_v34   ;;  %3139 = vperm.xlu0 %6208, %v8138_v27   ;;  %v11426_v27 = vsub.f32 %v8202_v1, %v11425_v7  ;;  %v11428_v34 = vld [vmem:[#allocation120_spill] sm:$0xff]  ;;  %v11436_v1 = vld [vmem:[#allocation162_spill] sm:$0xff]  ;;  %v11553_v58 = vld [vmem:[#allocation107_spill] sm:$0xff] }
 0x473   :  { %v11463_v7 = vld [vmem:[#allocation188_spill] sm:$0xff] }
 0x479   :  { %3164 = vperm.xlu2 %6210, %v8341_v28  }
 0x47a   :  { %3154 = vperm.xlu1 %6209, %v8249_v35   ;;  %3144 = vperm.xlu0 %6208, %v8190_v49   ;;  %v11424_v35 = vsub.f32 %v8215_v24, %v8227_v56  ;;  %v11427_v49 = vld [vmem:[#allocation123_spill] sm:$0xff]  ;;  %v11433_v24 = vld [vmem:[#allocation129_spill] sm:$0xff] }
 0x47b   :  { %v11429_v28 = vsub.f32 %v11427_v49, %v11428_v34  ;;  %v11434_v56 = vld [vmem:[#allocation165_spill] sm:$0xff] }
 0x481   :  { %3179 = vperm.xlu2 %6210, %v8458_v53  }
 0x482   :  { %3174 = vperm.xlu1 %6209, %v8417_v36   ;;  %3169 = vperm.xlu0 %6208, %v8381_v3  }
 0x489   :  { %3194 = vperm.xlu2 %6210, %v8568_v23   ;;  %v11431_v23 = vld [vmem:[#allocation168_spill] sm:$0xff] }
 0x48a   :  { %3189 = vperm.xlu1 %6209, %v8534_v26   ;;  %3184 = vperm.xlu0 %6208, %v8494_v2   ;;  %v11430_v26 = vld [vmem:[#allocation133_spill] sm:$0xff] }
 0x491   :  { %3209 = vperm.xlu2 %6210, %v8682_v57  }
 0x492   :  { %3204 = vperm.xlu1 %6209, %v8643_v42   ;;  %3199 = vperm.xlu0 %6208, %v8608_v55   ;;  %v11432_v42 = vsub.f32 %v11430_v26, %v11431_v23  ;;  %v11466_v23 = vld [vmem:[#allocation203_spill] sm:$0xff] }
 0x499   :  { %3224 = vperm.xlu2 %6210, %v8784_v48   ;;  %v11437_v48 = vld [vmem:[#allocation164_spill] sm:$0xff] }
 0x49a   :  { %3219 = vperm.xlu1 %6209, %v8752_v30   ;;  %3214 = vperm.xlu0 %6208, %v8717_v51   ;;  %v11435_v51 = vsub.f32 %v11433_v24, %v11434_v56  ;;  %v11438_v30 = vsub.f32 %v11436_v1, %v11437_v48  ;;  %v11469_v56 = vld [vmem:[#allocation200_spill] sm:$0xff]  ;;  %v11472_v48 = vld [vmem:[#allocation197_spill] sm:$0xff] }
 0x4a1   :  { %3239 = vperm.xlu2 %6210, %v8891_v50  }
 0x4a2   :  { %3234 = vperm.xlu1 %6209, %v8862_v32   ;;  %3229 = vperm.xlu0 %6208, %v8821_v60  }
 0x4a9   :  { %3254 = vperm.xlu2 %6210, %v8992_v39  }
 0x4aa   :  { %3249 = vperm.xlu1 %6209, %v8964_v45   ;;  %3244 = vperm.xlu0 %6208, %v8928_v61   ;;  %v11439_v61 = vld [vmem:[#allocation176_spill] sm:$0xff]  ;;  %v11440_v45 = vld [vmem:[#allocation177_spill] sm:$0xff] }
 0x4ab   :  { %v11441_v39 = vsub.f32 %v11439_v61, %v11440_v45 }
 0x4b1   :  { %3269 = vperm.xlu2 %6210, %v9053_v0  }
 0x4b2   :  { %3264 = vperm.xlu1 %6209, %v9033_v12   ;;  %3259 = vperm.xlu0 %6208, %v9013_v16   ;;  %v11442_v16 = vld [vmem:[#allocation173_spill] sm:$0xff]  ;;  %v11443_v12 = vld [vmem:[#allocation174_spill] sm:$0xff] }
 0x4b3   :  { %v11444_v0 = vsub.f32 %v11442_v16, %v11443_v12  ;;  %v11475_v12 = vld [vmem:[#allocation212_spill] sm:$0xff] }
 0x4b9   :  { %3284 = vperm.xlu2 %6210, %v9113_v14  }
 0x4ba   :  { %3279 = vperm.xlu1 %6209, %v9093_v11   ;;  %3274 = vperm.xlu0 %6208, %v9073_v40   ;;  %v11445_v40 = vld [vmem:[#allocation170_spill] sm:$0xff]  ;;  %v11446_v11 = vld [vmem:[#allocation171_spill] sm:$0xff] }
 0x4bb   :  { %v11447_v14 = vsub.f32 %v11445_v40, %v11446_v11  ;;  %v11478_v11 = vld [vmem:[#allocation209_spill] sm:$0xff] }
 0x4c1   :  { %3299 = vperm.xlu2 %6210, %v9173_v38  }
 0x4c2   :  { %3294 = vperm.xlu1 %6209, %v9153_v18   ;;  %3289 = vperm.xlu0 %6208, %v9133_v54  }
 0x4c9   :  { %3314 = vperm.xlu2 %6210, %v9233_v19  }
 0x4ca   :  { %3309 = vperm.xlu1 %6209, %v9211_v4   ;;  %3304 = vperm.xlu0 %6208, %v9193_v43   ;;  %v11448_v43 = vld [vmem:[#allocation185_spill] sm:$0xff]  ;;  %v11449_v4 = vld [vmem:[#allocation186_spill] sm:$0xff] }
 0x4cb   :  { %v9387_v3 = vpop.permute.xlu2 %3159  ;;  %v11450_v19 = vsub.f32 %v11448_v43, %v11449_v4  ;;  %v11481_v4 = vld [vmem:[#allocation206_spill] sm:$0xff] }
 0x4d1   :  { %3329 = vperm.xlu2 %6210, %v9293_v25   ;;  %v11454_v25 = vld [vmem:[#allocation179_spill] sm:$0xff] }
 0x4d2   :  { %3324 = vperm.xlu1 %6209, %v9273_v62   ;;  %3319 = vperm.xlu0 %6208, %v9253_v6   ;;  %v11451_v6 = vld [vmem:[#allocation182_spill] sm:$0xff]  ;;  %v11452_v62 = vld [vmem:[#allocation183_spill] sm:$0xff] }
 0x4d3   :  { %v9392_v55 = vpop.permute.xlu2 %3164  ;;  %v11453_v8 = vsub.f32 %v11451_v6, %v11452_v62 }
 0x4d9   :  { %3344 = vperm.xlu2 %6210, %v2922_v13   ;;  %v11460_v13 = vld [vmem:[#allocation191_spill] sm:$0xff] }
 0x4da   :  { %3339 = vperm.xlu1 %6209, %v9325_v20   ;;  %3334 = vperm.xlu0 %6208, %v9309_v21   ;;  %v11456_v21 = vsub.f32 %v11454_v25, %v11455_v46  ;;  %v11484_v46 = vld [vmem:[#allocation220_spill] sm:$0xff] }
 0x4db   :  { %v9396_v57 = vpop.permute.xlu2 %3179 }
 0x4e1   :  { %3527 = vperm.xlu2 %6210, %v11424_v35   ;;  %v11462_v35 = vsub.f32 %v11460_v13, %v11461_v10  ;;  %v11490_v10 = vld [vmem:[#allocation215_spill] sm:$0xff] }
 0x4e2   :  { %3522 = vperm.xlu1 %6209, %v11426_v27   ;;  %3517 = vperm.xlu0 %6208, %v11429_v28   ;;  %v11464_v27 = vld [vmem:[#allocation189_spill] sm:$0xff] }
 0x4e3   :  { %v9407_v36 = vpop.permute.xlu2 %3194  ;;  %v11465_v49 = vsub.f32 %v11463_v7, %v11464_v27 }
 0x4e4   :  { %v9409_v53 = vpop.permute.xlu1 %3149  ;;  %v9411_v2 = vpop.permute.xlu0 %3139 }
 0x4e9   :  { %3542 = vperm.xlu2 %6210, %v11432_v42   ;;  %v11467_v42 = vld [vmem:[#allocation204_spill] sm:$0xff] }
 0x4ea   :  { %3537 = vperm.xlu1 %6209, %v11435_v51   ;;  %3532 = vperm.xlu0 %6208, %v11438_v30   ;;  %v11468_v24 = vsub.f32 %v11466_v23, %v11467_v42  ;;  %v11470_v51 = vld [vmem:[#allocation201_spill] sm:$0xff]  ;;  %v11473_v30 = vld [vmem:[#allocation198_spill] sm:$0xff] }
 0x4eb   :  { %v9422_v32 = vpop.permute.xlu2 %3209  ;;  %v11471_v1 = vsub.f32 %v11469_v56, %v11470_v51  ;;  %v11474_v61 = vsub.f32 %v11472_v48, %v11473_v30  ;;  %v11493_v42 = vld [vmem:[#allocation226_spill] sm:$0xff]  ;;  %v11496_v51 = vld [vmem:[#allocation224_spill] sm:$0xff] }
 0x4ec   :  { %v9424_v60 = vpop.permute.xlu1 %3154  ;;  %v9426_v50 = vpop.permute.xlu0 %3144  ;;  %v11499_v30 = vld [vmem:[#allocation222_spill] sm:$0xff] }
 0x4f1   :  { %3557 = vperm.xlu2 %6210, %v11441_v39  }
 0x4f2   :  { %3552 = vperm.xlu1 %6209, %v11444_v0   ;;  %3547 = vperm.xlu0 %6208, %v11447_v14   ;;  %v11476_v0 = vld [vmem:[#allocation213_spill] sm:$0xff]  ;;  %v11479_v14 = vld [vmem:[#allocation211_spill] sm:$0xff] }
 0x4f3   :  { %v9437_v54 = vpop.permute.xlu2 %3224  ;;  %v11477_v40 = vsub.f32 %v11475_v12, %v11476_v0  ;;  %v11480_v43 = vsub.f32 %v11478_v11, %v11479_v14  ;;  %v11502_v14 = vld [vmem:[#allocation232_spill] sm:$0xff] }
 0x4f4   :  { %v9439_v18 = vpop.permute.xlu1 %3174  ;;  %v9441_v38 = vpop.permute.xlu0 %3169 }
 0x4f9   :  { %3572 = vperm.xlu2 %6210, %v11450_v19   ;;  %v11482_v19 = vld [vmem:[#allocation207_spill] sm:$0xff] }
 0x4fa   :  { %3567 = vperm.xlu1 %6209, %v11453_v8   ;;  %3562 = vperm.xlu0 %6208, %v11456_v21   ;;  %v11483_v6 = vsub.f32 %v11481_v4, %v11482_v19  ;;  %v11485_v21 = vld [vmem:[#allocation221_spill] sm:$0xff]  ;;  %v11505_v19 = vld [vmem:[#allocation230_spill] sm:$0xff] }
 0x4fb   :  { %v9452_v31 = vpop.permute.xlu2 %3239  ;;  %v11486_v15 = vsub.f32 %v11484_v46, %v11485_v21  ;;  %v11508_v21 = vld [vmem:[#allocation228_spill] sm:$0xff] }
 0x4fc   :  { %v9454_v20 = vpop.permute.xlu1 %3189  ;;  %v9456_v9 = vpop.permute.xlu0 %3184 }
 0x501   :  { %3587 = vperm.xlu2 %6210, %v11459_v47   ;;  %v11488_v47 = vld [vmem:[#allocation219_spill] sm:$0xff] }
 0x502   :  { %3582 = vperm.xlu1 %6209, %v11462_v35   ;;  %3577 = vperm.xlu0 %6208, %v11465_v49   ;;  %v11489_v13 = vsub.f32 %v11487_v52, %v11488_v47  ;;  %v11491_v35 = vld [vmem:[#allocation216_spill] sm:$0xff] }
 0x503   :  { %v9467_v34 = vpop.permute.xlu2 %3254  ;;  %v11492_v7 = vsub.f32 %v11490_v10, %v11491_v35  ;;  %v11511_v35 = vld [vmem:[#allocation238_spill] sm:$0xff] }
 0x504   :  { %v9469_v28 = vpop.permute.xlu1 %3204  ;;  %v9471_v26 = vpop.permute.xlu0 %3199 }
 0x509   :  { %3602 = vperm.xlu2 %6210, %v11468_v24   ;;  %v11494_v24 = vld [vmem:[#allocation227_spill] sm:$0xff] }
 0x50a   :  { %3597 = vperm.xlu1 %6209, %v11471_v1   ;;  %3592 = vperm.xlu0 %6208, %v11474_v61   ;;  %v11495_v56 = vsub.f32 %v11493_v42, %v11494_v24  ;;  %v11497_v1 = vld [vmem:[#allocation225_spill] sm:$0xff]  ;;  %v11500_v61 = vld [vmem:[#allocation223_spill] sm:$0xff]  ;;  %v11514_v24 = vld [vmem:[#allocation236_spill] sm:$0xff] }
 0x50b   :  { %v9482_v45 = vpop.permute.xlu2 %3269  ;;  %v11498_v48 = vsub.f32 %v11496_v51, %v11497_v1  ;;  %v11501_v12 = vsub.f32 %v11499_v30, %v11500_v61  ;;  %v11517_v1 = vld [vmem:[#allocation234_spill] sm:$0xff] }
 0x50c   :  { %v9484_v39 = vpop.permute.xlu1 %3219  ;;  %v9486_v16 = vpop.permute.xlu0 %3214 }
 0x511   :  { %3617 = vperm.xlu2 %6210, %v11477_v40  }
 0x512   :  { %3612 = vperm.xlu1 %6209, %v11480_v43   ;;  %3607 = vperm.xlu0 %6208, %v11483_v6   ;;  %v11503_v43 = vld [vmem:[#allocation233_spill] sm:$0xff]  ;;  %v11506_v6 = vld [vmem:[#allocation231_spill] sm:$0xff] }
 0x513   :  { %v9497_v62 = vpop.permute.xlu2 %3284  ;;  %v11504_v4 = vsub.f32 %v11502_v14, %v11503_v43  ;;  %v11507_v46 = vsub.f32 %v11505_v19, %v11506_v6  ;;  %v11520_v43 = vld [vmem:[#allocation95_spill] sm:$0xff] }
 0x514   :  { %v9499_v8 = vpop.permute.xlu1 %3234  ;;  %v9501_v25 = vpop.permute.xlu0 %3229  ;;  %v11521_v19 = vld [vmem:[#allocation155_spill] sm:$0xff] }
 0x515   :  { %v3352_v6 = vmul.f32 %v9409_v53, %v11521_v19 }
 0x519   :  { %3632 = vperm.xlu2 %6210, %v11486_v15   ;;  %v11509_v15 = vld [vmem:[#allocation229_spill] sm:$0xff] }
 0x51a   :  { %3627 = vperm.xlu1 %6209, %v11489_v13   ;;  %3622 = vperm.xlu0 %6208, %v11492_v7   ;;  %v11510_v52 = vsub.f32 %v11508_v21, %v11509_v15  ;;  %v11512_v7 = vld [vmem:[#allocation239_spill] sm:$0xff]  ;;  %v11523_v21 = vld [vmem:[#allocation245_spill] sm:$0xff] }
 0x51b   :  { %v9512_v27 = vpop.permute.xlu2 %3299  ;;  %v11513_v42 = vsub.f32 %v11511_v35, %v11512_v7  ;;  %v11526_v7 = vld [vmem:[#allocation14_spill] sm:$0xff] }
 0x51c   :  { %v9514_v49 = vpop.permute.xlu1 %3249  ;;  %v9516_v23 = vpop.permute.xlu0 %3244 }
 0x521   :  { %3647 = vperm.xlu2 %6210, %v11495_v56   ;;  %v11515_v56 = vld [vmem:[#allocation237_spill] sm:$0xff] }
 0x522   :  { %3642 = vperm.xlu1 %6209, %v11498_v48   ;;  %3637 = vperm.xlu0 %6208, %v11501_v12   ;;  %v11516_v51 = vsub.f32 %v11514_v24, %v11515_v56  ;;  %v11518_v48 = vld [vmem:[#allocation235_spill] sm:$0xff]  ;;  %v11527_v24 = vld [vmem:[#allocation242_spill] sm:$0xff] }
 0x523   :  { %v9527_v0 = vpop.permute.xlu2 %3314  ;;  %v11519_v30 = vsub.f32 %v11517_v1, %v11518_v48  ;;  %v11528_v56 = vld [vmem:[#allocation243_spill] sm:$0xff]  ;;  %v11530_v1 = vld [vmem:[#allocation240_spill] sm:$0xff]  ;;  %v11531_v48 = vld [vmem:[#allocation241_spill] sm:$0xff] }
 0x524   :  { %v9529_v40 = vpop.permute.xlu1 %3264  ;;  %v9531_v11 = vpop.permute.xlu0 %3259 }
 0x529   :  { %3662 = vperm.xlu2 %6210, %v11504_v4   ;;  %v3351_v4 = vmul.f32 %v9409_v53, %v11520_v43 }
 0x52a   :  { %3657 = vperm.xlu1 %6209, %v11507_v46   ;;  %3652 = vperm.xlu0 %6208, %v11510_v52   ;;  %v11522_v46 = vld [vmem:[#allocation244_spill] sm:$0xff]  ;;  %v11525_v52 = vld [vmem:[#allocation13_spill] sm:$0xff] }
 0x52b   :  { %v9542_v47 = vpop.permute.xlu2 %3329  ;;  %v11524_v15 = vsub.f32 %v11522_v46, %v11523_v21  ;;  %v3435_v35 = vadd.f32 %v3351_v4, %v11525_v52  ;;  %v11535_v4 = vld [vmem:[#allocation98_spill] sm:$0xff] }
 0x52c   :  { %v9544_v13 = vpop.permute.xlu1 %3279  ;;  %v9546_v10 = vpop.permute.xlu0 %3274  ;;  %v11536_v21 = vld [vmem:[#allocation158_spill] sm:$0xff] }
 0x531   :  { %3677 = vperm.xlu2 %6210, %v11513_v42   ;;  %v3436_v42 = vadd.f32 %v3352_v6, %v11526_v7  ;;  %v3357_v6 = vmul.f32 %v9392_v55, %v11535_v4 }
 0x532   :  { %3672 = vperm.xlu1 %6209, %v11516_v51   ;;  %3667 = vperm.xlu0 %6208, %v11519_v30   ;;  %v11529_v51 = vsub.f32 %v11527_v24, %v11528_v56  ;;  %v11532_v30 = vsub.f32 %v11530_v1, %v11531_v48  ;;  %v11538_v24 = vld [vmem:[#allocation20_spill] sm:$0xff]  ;;  %v11540_v1 = vld [vmem:[#allocation249_spill] sm:$0xff] }
 0x533   :  { %v9557_v61 = vpop.permute.xlu2 %3344 }
 0x534   :  { %v9559_v12 = vpop.permute.xlu1 %3294  ;;  %v9561_v14 = vpop.permute.xlu0 %3289 }
 0x539   :  { %3692 = vperm.xlu2 %6210, %v11524_v15   ;;  %v3358_v15 = vmul.f32 %v9392_v55, %v11536_v21 }
 0x53a   :  { %3687 = vperm.xlu1 %6209, %v11529_v51   ;;  %3682 = vperm.xlu0 %6208, %v11532_v30   ;;  %v11539_v51 = vld [vmem:[#allocation248_spill] sm:$0xff]  ;;  %v11542_v30 = vld [vmem:[#allocation246_spill] sm:$0xff] }
 0x53b   :  { %v3528_v43 = vpop.permute.xlu2 %3527  ;;  %v3442_v56 = vadd.f32 %v3358_v15, %v11538_v24  ;;  %v11541_v48 = vsub.f32 %v11539_v51, %v11540_v1  ;;  %v11549_v51 = vld [vmem:[#allocation26_spill] sm:$0xff]  ;;  %v11562_v24 = vld [vmem:[#allocation32_spill] sm:$0xff] }
 0x53c   :  { %v9578_v22 = vadd.f32 %v3528_v43, %v3435_v35  ;;  %v9580_v53 = vadd.f32 %v3528_v43, %v3436_v42  ;;  %v9582_v19 = vpop.permute.xlu1 %3309  ;;  %v9584_v46 = vpop.permute.xlu0 %3304  ;;  %v11537_v35 = vld [vmem:[#allocation19_spill] sm:$0xff] }
 0x53d   :  { %v3441_v42 = vadd.f32 %v3357_v6, %v11537_v35  ;;  %v11543_v43 = vld [vmem:[#allocation247_spill] sm:$0xff]  ;;  %v11547_v6 = vld [vmem:[#allocation161_spill] sm:$0xff] }
 0x53e   :  { %11533 = vst [vmem:[#allocation125_spill] sm:$0xff] %v9578_v22  ;;  %v11544_v4 = vsub.f32 %v11542_v30, %v11543_v43  ;;  %v3364_v15 = vmul.f32 %v9396_v57, %v11547_v6  ;;  %v11551_v30 = vsub.f32 %v9314_v33, %v9318_v41  ;;  %v11555_v41 = vld [vmem:[#allocation93_spill] sm:$0xff] }
 0x53f   :  { %11534 = vst [vmem:[#allocation123_spill] sm:$0xff] %v9580_v53  ;;  %v11556_v6 = vld [vmem:[#allocation153_spill] sm:$0xff] }
 0x540   :  { %v3448_v1 = vadd.f32 %v3364_v15, %v11549_v51  ;;  %v3348_v15 = vmul.f32 %v9411_v2, %v11556_v6  ;;  %v11558_v51 = vld [vmem:[#allocation154_spill] sm:$0xff]  ;;  %v11565_v6 = vld [vmem:[#allocation11_spill] sm:$0xff] }
 0x541   :  { %3707 = vperm.xlu2 %6210, %v3045_v37   ;;  %v3363_v37 = vmul.f32 %v9396_v57, %v11546_v59  ;;  %v11554_v59 = vld [vmem:[#allocation102_spill] sm:$0xff] }
 0x542   :  { %3702 = vperm.xlu1 %6209, %v11541_v48   ;;  %3697 = vperm.xlu0 %6208, %v11544_v4   ;;  %v11550_v48 = vsub.f32 %v9330_v63, %v9334_v5  ;;  %v3370_v63 = vmul.f32 %v9407_v36, %v11554_v59  ;;  %v11564_v5 = vld [vmem:[#allocation10_spill] sm:$0xff] }
 0x543   :  { %v3543_v55 = vpop.permute.xlu2 %3542 }
 0x544   :  { %v9603_v21 = vadd.f32 %v3543_v55, %v3441_v42  ;;  %v9605_v7 = vadd.f32 %v3543_v55, %v3442_v56  ;;  %v9607_v52 = vpop.permute.xlu1 %3324  ;;  %v9609_v17 = vpop.permute.xlu0 %3319  ;;  %v11548_v42 = vld [vmem:[#allocation25_spill] sm:$0xff]  ;;  %v3454_v33 = vadd.f32 %v3370_v63, %v11562_v24 }
 0x545   :  { %v3447_v56 = vadd.f32 %v3363_v37, %v11548_v42  ;;  %v3347_v37 = vmul.f32 %v9411_v2, %v11555_v41  ;;  %v11557_v42 = vld [vmem:[#allocation94_spill] sm:$0xff]  ;;  %v11563_v41 = vld [vmem:[#allocation9_spill] sm:$0xff]  ;;  %v3432_v2 = vadd.f32 %v3348_v15, %v11564_v5 }
 0x546   :  { %11545 = vst [vmem:[#allocation120_spill] sm:$0xff] %v9605_v7 }
 0x547   :  { %v3431_v35 = vadd.f32 %v3347_v37, %v11563_v41  ;;  %v11574_v41 = vld [vmem:[#allocation17_spill] sm:$0xff] }
 0x549   :  { %3722 = vperm.xlu2 %6210, %v3048_v29   ;;  %v3369_v29 = vmul.f32 %v9407_v36, %v11553_v58  ;;  %v11560_v36 = vld [vmem:[#allocation157_spill] sm:$0xff]  ;;  %v11561_v58 = vld [vmem:[#allocation31_spill] sm:$0xff] }
 0x54a   :  { %3717 = vperm.xlu1 %6209, %v11550_v48   ;;  %3712 = vperm.xlu0 %6208, %v11551_v30   ;;  %v11559_v48 = vld [vmem:[#allocation97_spill] sm:$0xff] }
 0x54b   :  { %v3558_v57 = vpop.permute.xlu2 %3557  ;;  %v3355_v30 = vmul.f32 %v9387_v3, %v11559_v48  ;;  %v3453_v59 = vadd.f32 %v3369_v29, %v11561_v58  ;;  %v11568_v48 = vld [vmem:[#allocation106_spill] sm:$0xff]  ;;  %v11573_v58 = vld [vmem:[#allocation156_spill] sm:$0xff] }
 0x54c   :  { %v9628_v43 = vadd.f32 %v3558_v57, %v3447_v56  ;;  %v9630_v4 = vadd.f32 %v3558_v57, %v3448_v1  ;;  %v9632_v55 = vpop.permute.xlu1 %3339  ;;  %v9634_v44 = vpop.permute.xlu0 %3334  ;;  %v3349_v56 = vmul.f32 %v9426_v50, %v11557_v42  ;;  %v3350_v1 = vmul.f32 %v9426_v50, %v11558_v51  ;;  %v11566_v42 = vld [vmem:[#allocation12_spill] sm:$0xff]  ;;  %v11567_v50 = vld [vmem:[#allocation114_spill] sm:$0xff] }
 0x54d   :  { %v3356_v57 = vmul.f32 %v9387_v3, %v11560_v36  ;;  %v3375_v51 = vmul.f32 %v9422_v32, %v11567_v50  ;;  %v3376_v22 = vmul.f32 %v9422_v32, %v11568_v48  ;;  %v3354_v32 = vmul.f32 %v9424_v60, %v11573_v58  ;;  %v11576_v50 = vld [vmem:[#allocation37_spill] sm:$0xff]  ;;  %v11579_v58 = vld [vmem:[#allocation16_spill] sm:$0xff] }
 0x54e   :  { %11552 = vst [vmem:[#allocation133_spill] sm:$0xff] %v9630_v4  ;;  %v3433_v53 = vadd.f32 %v3349_v56, %v11565_v6  ;;  %v3434_v7 = vadd.f32 %v3350_v1, %v11566_v42  ;;  %v11572_v1 = vld [vmem:[#allocation96_spill] sm:$0xff]  ;;  %v11575_v6 = vld [vmem:[#allocation18_spill] sm:$0xff] }
 0x54f   :  { %v3353_v36 = vmul.f32 %v9424_v60, %v11572_v1  ;;  %v3440_v42 = vadd.f32 %v3356_v57, %v11575_v6  ;;  %v3459_v48 = vadd.f32 %v3375_v51, %v11576_v50 }
 0x553   :  { %v3573_v4 = vpop.permute.xlu2 %3572 }
 0x554   :  { %v9664_v3 = vadd.f32 %v3573_v4, %v3453_v59  ;;  %v9666_v29 = vadd.f32 %v3573_v4, %v3454_v33  ;;  %v3523_v24 = vpop.permute.xlu1 %3522  ;;  %v3518_v63 = vpop.permute.xlu0 %3517  ;;  %v3438_v4 = vadd.f32 %v3354_v32, %v11579_v58  ;;  %v11580_v59 = vld [vmem:[#allocation121_spill] sm:$0xff]  ;;  %v11590_v58 = vld [vmem:[#allocation44_spill] sm:$0xff] }
 0x555   :  { %v9668_v37 = vadd.f32 %v3523_v24, %v3433_v53  ;;  %v9670_v5 = vadd.f32 %v3523_v24, %v3434_v7  ;;  %v9672_v15 = vadd.f32 %v3518_v63, %v3431_v35  ;;  %v9674_v56 = vadd.f32 %v3518_v63, %v3432_v2  ;;  %v11577_v24 = vld [vmem:[#allocation38_spill] sm:$0xff]  ;;  %v11578_v63 = vld [vmem:[#allocation15_spill] sm:$0xff]  ;;  %v11582_v35 = vld [vmem:[#allocation100_spill] sm:$0xff] }
 0x556   :  { %11569 = vst [vmem:[#allocation168_spill] sm:$0xff] %v9666_v29  ;;  %v3439_v2 = vadd.f32 %v3355_v30, %v11574_v41  ;;  %v3460_v60 = vadd.f32 %v3376_v22, %v11577_v24  ;;  %v3437_v1 = vadd.f32 %v3353_v36, %v11578_v63  ;;  %v3381_v33 = vmul.f32 %v9437_v54, %v11580_v59  ;;  %v11581_v53 = vld [vmem:[#allocation110_spill] sm:$0xff]  ;;  %v11583_v41 = vld [vmem:[#allocation160_spill] sm:$0xff]  ;;  %v11588_v24 = vld [vmem:[#allocation159_spill] sm:$0xff] }
 0x557   :  { %11570 = vst [vmem:[#allocation129_spill] sm:$0xff] %v9670_v5  ;;  %v3382_v7 = vmul.f32 %v9437_v54, %v11581_v53  ;;  %v3361_v30 = vmul.f32 %v9439_v18, %v11582_v35  ;;  %v3362_v57 = vmul.f32 %v9439_v18, %v11583_v41  ;;  %v11587_v53 = vld [vmem:[#allocation99_spill] sm:$0xff]  ;;  %v3360_v18 = vmul.f32 %v9441_v38, %v11588_v24  ;;  %v11593_v24 = vld [vmem:[#allocation21_spill] sm:$0xff]  ;;  %v11595_v29 = vld [vmem:[#allocation128_spill] sm:$0xff] }
 0x558   :  { %11571 = vst [vmem:[#allocation165_spill] sm:$0xff] %v9674_v56  ;;  %v3359_v35 = vmul.f32 %v9441_v38, %v11587_v53  ;;  %v11592_v53 = vld [vmem:[#allocation24_spill] sm:$0xff]  ;;  %v11594_v56 = vld [vmem:[#allocation22_spill] sm:$0xff]  ;;  %v11597_v63 = vld [vmem:[#allocation105_spill] sm:$0xff] }
 0x559   :  { %v3466_v41 = vadd.f32 %v3382_v7, %v11590_v58  ;;  %v3446_v38 = vadd.f32 %v3362_v57, %v11592_v53 }
 0x55b   :  { %v3588_v5 = vpop.permute.xlu2 %3587 }
 0x55c   :  { %v9700_v51 = vadd.f32 %v3588_v5, %v3459_v48  ;;  %v9702_v22 = vadd.f32 %v3588_v5, %v3460_v60  ;;  %v3538_v36 = vpop.permute.xlu1 %3537  ;;  %v3533_v6 = vpop.permute.xlu0 %3532  ;;  %v3443_v48 = vadd.f32 %v3359_v35, %v11593_v24  ;;  %v3444_v5 = vadd.f32 %v3360_v18, %v11594_v56  ;;  %v11605_v24 = vld [vmem:[#allocation50_spill] sm:$0xff] }
 0x55d   :  { %v9704_v32 = vadd.f32 %v3538_v36, %v3439_v2  ;;  %v9706_v50 = vadd.f32 %v3538_v36, %v3440_v42  ;;  %v9708_v59 = vadd.f32 %v3533_v6, %v3437_v1  ;;  %v9710_v54 = vadd.f32 %v3533_v6, %v3438_v4  ;;  %v11589_v4 = vld [vmem:[#allocation43_spill] sm:$0xff] }
 0x55e   :  { %11584 = vst [vmem:[#allocation162_spill] sm:$0xff] %v9702_v22  ;;  %v3465_v1 = vadd.f32 %v3381_v33, %v11589_v4  ;;  %v11591_v36 = vld [vmem:[#allocation23_spill] sm:$0xff]  ;;  %v3387_v60 = vmul.f32 %v9452_v31, %v11595_v29  ;;  %v3367_v33 = vmul.f32 %v9454_v20, %v11597_v63  ;;  %v11598_v4 = vld [vmem:[#allocation104_spill] sm:$0xff]  ;;  %v11610_v22 = vld [vmem:[#allocation134_spill] sm:$0xff] }
 0x55f   :  { %11585 = vst [vmem:[#allocation164_spill] sm:$0xff] %v9706_v50  ;;  %v3445_v6 = vadd.f32 %v3361_v30, %v11591_v36  ;;  %v11596_v2 = vld [vmem:[#allocation127_spill] sm:$0xff]  ;;  %v3368_v7 = vmul.f32 %v9454_v20, %v11598_v4  ;;  %v11603_v36 = vld [vmem:[#allocation112_spill] sm:$0xff] }
 0x560   :  { %11586 = vst [vmem:[#allocation176_spill] sm:$0xff] %v9710_v54  ;;  %v3388_v42 = vmul.f32 %v9452_v31, %v11596_v2  ;;  %v11602_v2 = vld [vmem:[#allocation103_spill] sm:$0xff]  ;;  %v3366_v20 = vmul.f32 %v9456_v9, %v11603_v36  ;;  %v11609_v54 = vld [vmem:[#allocation28_spill] sm:$0xff] }
 0x561   :  { %v3365_v63 = vmul.f32 %v9456_v9, %v11602_v2  ;;  %v11607_v2 = vld [vmem:[#allocation30_spill] sm:$0xff]  ;;  %v11608_v36 = vld [vmem:[#allocation27_spill] sm:$0xff] }
 0x562   :  { %v3472_v4 = vadd.f32 %v3388_v42, %v11605_v24  ;;  %v3452_v9 = vadd.f32 %v3368_v7, %v11607_v2 }
 0x563   :  { %v3603_v50 = vpop.permute.xlu2 %3602 }
 0x564   :  { %v9736_v30 = vadd.f32 %v3603_v50, %v3465_v1  ;;  %v9738_v57 = vadd.f32 %v3603_v50, %v3466_v41  ;;  %v3553_v35 = vpop.permute.xlu1 %3552  ;;  %v3548_v58 = vpop.permute.xlu0 %3547  ;;  %v3449_v1 = vadd.f32 %v3365_v63, %v11608_v36  ;;  %v3450_v50 = vadd.f32 %v3366_v20, %v11609_v54  ;;  %v11620_v36 = vld [vmem:[#allocation56_spill] sm:$0xff] }
 0x565   :  { %v9740_v56 = vadd.f32 %v3553_v35, %v3445_v6  ;;  %v9742_v18 = vadd.f32 %v3553_v35, %v3446_v38  ;;  %v9744_v29 = vadd.f32 %v3548_v58, %v3443_v48  ;;  %v9746_v31 = vadd.f32 %v3548_v58, %v3444_v5  ;;  %v11604_v5 = vld [vmem:[#allocation49_spill] sm:$0xff]  ;;  %v11611_v6 = vld [vmem:[#allocation166_spill] sm:$0xff]  ;;  %v11612_v48 = vld [vmem:[#allocation111_spill] sm:$0xff] }
 0x566   :  { %11599 = vst [vmem:[#allocation177_spill] sm:$0xff] %v9738_v57  ;;  %v3471_v38 = vadd.f32 %v3387_v60, %v11604_v5  ;;  %v11606_v35 = vld [vmem:[#allocation29_spill] sm:$0xff]  ;;  %v3393_v41 = vmul.f32 %v9467_v34, %v11610_v22  ;;  %v3394_v53 = vmul.f32 %v9467_v34, %v11611_v6  ;;  %v3373_v60 = vmul.f32 %v9469_v28, %v11612_v48  ;;  %v11613_v5 = vld [vmem:[#allocation108_spill] sm:$0xff] }
 0x567   :  { %11600 = vst [vmem:[#allocation173_spill] sm:$0xff] %v9742_v18  ;;  %v3451_v58 = vadd.f32 %v3367_v33, %v11606_v35  ;;  %v3374_v42 = vmul.f32 %v9469_v28, %v11613_v5  ;;  %v11617_v6 = vld [vmem:[#allocation109_spill] sm:$0xff] }
 0x568   :  { %11601 = vst [vmem:[#allocation174_spill] sm:$0xff] %v9746_v31  ;;  %v3371_v48 = vmul.f32 %v9471_v26, %v11617_v6  ;;  %v11618_v35 = vld [vmem:[#allocation117_spill] sm:$0xff]  ;;  %v3478_v5 = vadd.f32 %v3394_v53, %v11620_v36  ;;  %v11622_v6 = vld [vmem:[#allocation36_spill] sm:$0xff]  ;;  %v11624_v31 = vld [vmem:[#allocation34_spill] sm:$0xff] }
 0x569   :  { %v3372_v28 = vmul.f32 %v9471_v26, %v11618_v35  ;;  %v3458_v26 = vadd.f32 %v3374_v42, %v11622_v6  ;;  %v11623_v35 = vld [vmem:[#allocation33_spill] sm:$0xff] }
 0x56a   :  { %v11625_v57 = vld [vmem:[#allocation137_spill] sm:$0xff] }
 0x56b   :  { %v3618_v18 = vpop.permute.xlu2 %3617 }
 0x56c   :  { %v9772_v33 = vadd.f32 %v3618_v18, %v3471_v38  ;;  %v9774_v7 = vadd.f32 %v3618_v18, %v3472_v4  ;;  %v3568_v63 = vpop.permute.xlu1 %3567  ;;  %v3563_v24 = vpop.permute.xlu0 %3562  ;;  %v3455_v38 = vadd.f32 %v3371_v48, %v11623_v35  ;;  %v3456_v18 = vadd.f32 %v3372_v28, %v11624_v31  ;;  %v11635_v35 = vld [vmem:[#allocation62_spill] sm:$0xff] }
 0x56d   :  { %v9776_v54 = vadd.f32 %v3568_v63, %v3451_v58  ;;  %v9778_v20 = vadd.f32 %v3568_v63, %v3452_v9  ;;  %v9780_v22 = vadd.f32 %v3563_v24, %v3449_v1  ;;  %v9782_v34 = vadd.f32 %v3563_v24, %v3450_v50  ;;  %v11619_v50 = vld [vmem:[#allocation55_spill] sm:$0xff]  ;;  %v11626_v58 = vld [vmem:[#allocation172_spill] sm:$0xff] }
 0x56e   :  { %11614 = vst [vmem:[#allocation170_spill] sm:$0xff] %v9774_v7  ;;  %v3477_v9 = vadd.f32 %v3393_v41, %v11619_v50  ;;  %v11621_v63 = vld [vmem:[#allocation35_spill] sm:$0xff]  ;;  %v3399_v4 = vmul.f32 %v9482_v45, %v11625_v57  ;;  %v3400_v2 = vmul.f32 %v9482_v45, %v11626_v58  ;;  %v11628_v50 = vld [vmem:[#allocation113_spill] sm:$0xff]  ;;  %v11632_v58 = vld [vmem:[#allocation116_spill] sm:$0xff] }
 0x56f   :  { %11615 = vst [vmem:[#allocation171_spill] sm:$0xff] %v9778_v20  ;;  %v3457_v24 = vadd.f32 %v3373_v60, %v11621_v63  ;;  %v11627_v1 = vld [vmem:[#allocation119_spill] sm:$0xff]  ;;  %v3380_v53 = vmul.f32 %v9484_v39, %v11628_v50  ;;  %v11633_v63 = vld [vmem:[#allocation122_spill] sm:$0xff]  ;;  %v11640_v7 = vld [vmem:[#allocation140_spill] sm:$0xff] }
 0x570   :  { %11616 = vst [vmem:[#allocation185_spill] sm:$0xff] %v9782_v34  ;;  %v3379_v41 = vmul.f32 %v9484_v39, %v11627_v1  ;;  %v3377_v1 = vmul.f32 %v9486_v16, %v11632_v58  ;;  %v3378_v39 = vmul.f32 %v9486_v16, %v11633_v63  ;;  %v3484_v50 = vadd.f32 %v3400_v2, %v11635_v35  ;;  %v11637_v58 = vld [vmem:[#allocation42_spill] sm:$0xff]  ;;  %v11638_v63 = vld [vmem:[#allocation39_spill] sm:$0xff]  ;;  %v11639_v34 = vld [vmem:[#allocation40_spill] sm:$0xff] }
 0x571   :  { %v3464_v16 = vadd.f32 %v3380_v53, %v11637_v58 }
 0x573   :  { %v3633_v20 = vpop.permute.xlu2 %3632 }
 0x574   :  { %v9808_v60 = vadd.f32 %v3633_v20, %v3477_v9  ;;  %v9810_v42 = vadd.f32 %v3633_v20, %v3478_v5  ;;  %v3583_v48 = vpop.permute.xlu1 %3582  ;;  %v3578_v36 = vpop.permute.xlu0 %3577  ;;  %v3461_v9 = vadd.f32 %v3377_v1, %v11638_v63  ;;  %v3462_v20 = vadd.f32 %v3378_v39, %v11639_v34  ;;  %v11650_v63 = vld [vmem:[#allocation68_spill] sm:$0xff] }
 0x575   :  { %v9812_v31 = vadd.f32 %v3583_v48, %v3457_v24  ;;  %v9814_v28 = vadd.f32 %v3583_v48, %v3458_v26  ;;  %v9816_v57 = vadd.f32 %v3578_v36, %v3455_v38  ;;  %v9818_v45 = vadd.f32 %v3578_v36, %v3456_v18  ;;  %v11634_v18 = vld [vmem:[#allocation61_spill] sm:$0xff]  ;;  %v11642_v38 = vld [vmem:[#allocation126_spill] sm:$0xff] }
 0x576   :  { %11629 = vst [vmem:[#allocation186_spill] sm:$0xff] %v9810_v42  ;;  %v3483_v26 = vadd.f32 %v3399_v4, %v11634_v18  ;;  %v11636_v48 = vld [vmem:[#allocation41_spill] sm:$0xff]  ;;  %v3405_v5 = vmul.f32 %v9497_v62, %v11640_v7  ;;  %v3385_v4 = vmul.f32 %v9499_v8, %v11642_v38  ;;  %v11643_v18 = vld [vmem:[#allocation115_spill] sm:$0xff] }
 0x577   :  { %11630 = vst [vmem:[#allocation182_spill] sm:$0xff] %v9814_v28  ;;  %v3463_v36 = vadd.f32 %v3379_v41, %v11636_v48  ;;  %v11641_v24 = vld [vmem:[#allocation181_spill] sm:$0xff]  ;;  %v3386_v2 = vmul.f32 %v9499_v8, %v11643_v18  ;;  %v11648_v48 = vld [vmem:[#allocation118_spill] sm:$0xff]  ;;  %v11655_v42 = vld [vmem:[#allocation143_spill] sm:$0xff] }
 0x578   :  { %11631 = vst [vmem:[#allocation183_spill] sm:$0xff] %v9818_v45  ;;  %v3406_v6 = vmul.f32 %v9497_v62, %v11641_v24  ;;  %v11647_v24 = vld [vmem:[#allocation124_spill] sm:$0xff]  ;;  %v3384_v8 = vmul.f32 %v9501_v25, %v11648_v48  ;;  %v11653_v48 = vld [vmem:[#allocation45_spill] sm:$0xff]  ;;  %v11654_v45 = vld [vmem:[#allocation46_spill] sm:$0xff] }
 0x579   :  { %v3383_v38 = vmul.f32 %v9501_v25, %v11647_v24  ;;  %v11652_v24 = vld [vmem:[#allocation48_spill] sm:$0xff] }
 0x57a   :  { %v3490_v18 = vadd.f32 %v3406_v6, %v11650_v63  ;;  %v3470_v25 = vadd.f32 %v3386_v2, %v11652_v24 }
 0x57b   :  { %v3648_v28 = vpop.permute.xlu2 %3647 }
 0x57c   :  { %v9844_v41 = vadd.f32 %v3648_v28, %v3483_v26  ;;  %v9846_v53 = vadd.f32 %v3648_v28, %v3484_v50  ;;  %v3598_v1 = vpop.permute.xlu1 %3597  ;;  %v3593_v35 = vpop.permute.xlu0 %3592  ;;  %v3467_v26 = vadd.f32 %v3383_v38, %v11653_v48  ;;  %v3468_v28 = vadd.f32 %v3384_v8, %v11654_v45  ;;  %v11665_v48 = vld [vmem:[#allocation74_spill] sm:$0xff] }
 0x57d   :  { %v9848_v34 = vadd.f32 %v3598_v1, %v3463_v36  ;;  %v9850_v39 = vadd.f32 %v3598_v1, %v3464_v16  ;;  %v9852_v7 = vadd.f32 %v3593_v35, %v3461_v9  ;;  %v9854_v62 = vadd.f32 %v3593_v35, %v3462_v20  ;;  %v11649_v20 = vld [vmem:[#allocation67_spill] sm:$0xff]  ;;  %v11656_v36 = vld [vmem:[#allocation190_spill] sm:$0xff]  ;;  %v11657_v9 = vld [vmem:[#allocation132_spill] sm:$0xff] }
 0x57e   :  { %11644 = vst [vmem:[#allocation179_spill] sm:$0xff] %v9846_v53  ;;  %v3489_v16 = vadd.f32 %v3405_v5, %v11649_v20  ;;  %v11651_v1 = vld [vmem:[#allocation47_spill] sm:$0xff]  ;;  %v3411_v50 = vmul.f32 %v9512_v27, %v11655_v42  ;;  %v3412_v58 = vmul.f32 %v9512_v27, %v11656_v36  ;;  %v3391_v5 = vmul.f32 %v9514_v49, %v11657_v9  ;;  %v11662_v36 = vld [vmem:[#allocation130_spill] sm:$0xff] }
 0x57f   :  { %11645 = vst [vmem:[#allocation180_spill] sm:$0xff] %v9850_v39  ;;  %v3469_v35 = vadd.f32 %v3385_v4, %v11651_v1  ;;  %v11658_v20 = vld [vmem:[#allocation163_spill] sm:$0xff]  ;;  %v3389_v9 = vmul.f32 %v9516_v23, %v11662_v36  ;;  %v11667_v36 = vld [vmem:[#allocation54_spill] sm:$0xff] }
 0x580   :  { %11646 = vst [vmem:[#allocation194_spill] sm:$0xff] %v9854_v62  ;;  %v3392_v6 = vmul.f32 %v9514_v49, %v11658_v20  ;;  %v11663_v1 = vld [vmem:[#allocation131_spill] sm:$0xff]  ;;  %v3496_v20 = vadd.f32 %v3412_v58, %v11665_v48  ;;  %v11669_v62 = vld [vmem:[#allocation52_spill] sm:$0xff]  ;;  %v11670_v53 = vld [vmem:[#allocation146_spill] sm:$0xff] }
 0x581   :  { %v3390_v49 = vmul.f32 %v9516_v23, %v11663_v1  ;;  %v11668_v1 = vld [vmem:[#allocation51_spill] sm:$0xff] }
 0x582   :  { %v3476_v23 = vadd.f32 %v3392_v6, %v11667_v36 }
 0x583   :  { %v3663_v39 = vpop.permute.xlu2 %3662 }
 0x584   :  { %v9880_v4 = vadd.f32 %v3663_v39, %v3489_v16  ;;  %v9882_v2 = vadd.f32 %v3663_v39, %v3490_v18  ;;  %v3613_v38 = vpop.permute.xlu1 %3612  ;;  %v3608_v63 = vpop.permute.xlu0 %3607  ;;  %v3473_v16 = vadd.f32 %v3389_v9, %v11668_v1  ;;  %v3474_v39 = vadd.f32 %v3390_v49, %v11669_v62  ;;  %v11680_v1 = vld [vmem:[#allocation80_spill] sm:$0xff] }
 0x585   :  { %v9884_v45 = vadd.f32 %v3613_v38, %v3469_v35  ;;  %v9886_v8 = vadd.f32 %v3613_v38, %v3470_v25  ;;  %v9888_v42 = vadd.f32 %v3608_v63, %v3467_v26  ;;  %v9890_v27 = vadd.f32 %v3608_v63, %v3468_v28  ;;  %v11664_v28 = vld [vmem:[#allocation73_spill] sm:$0xff]  ;;  %v11671_v35 = vld [vmem:[#allocation199_spill] sm:$0xff]  ;;  %v11672_v26 = vld [vmem:[#allocation136_spill] sm:$0xff] }
 0x586   :  { %11659 = vst [vmem:[#allocation195_spill] sm:$0xff] %v9882_v2  ;;  %v3495_v25 = vadd.f32 %v3411_v50, %v11664_v28  ;;  %v11666_v38 = vld [vmem:[#allocation53_spill] sm:$0xff]  ;;  %v3417_v18 = vmul.f32 %v9527_v0, %v11670_v53  ;;  %v3418_v24 = vmul.f32 %v9527_v0, %v11671_v35  ;;  %v3397_v50 = vmul.f32 %v9529_v40, %v11672_v26  ;;  %v11677_v35 = vld [vmem:[#allocation135_spill] sm:$0xff]  ;;  %v11716_v2 = vld [vmem:[#allocation196_spill] sm:$0xff] }
 0x587   :  { %11660 = vst [vmem:[#allocation191_spill] sm:$0xff] %v9886_v8  ;;  %v3475_v63 = vadd.f32 %v3391_v5, %v11666_v38  ;;  %v11673_v28 = vld [vmem:[#allocation169_spill] sm:$0xff]  ;;  %v3395_v26 = vmul.f32 %v9531_v11, %v11677_v35  ;;  %v11678_v38 = vld [vmem:[#allocation167_spill] sm:$0xff]  ;;  %v11682_v35 = vld [vmem:[#allocation60_spill] sm:$0xff] }
 0x588   :  { %11661 = vst [vmem:[#allocation192_spill] sm:$0xff] %v9890_v27  ;;  %v3398_v58 = vmul.f32 %v9529_v40, %v11673_v28  ;;  %v3396_v40 = vmul.f32 %v9531_v11, %v11678_v38  ;;  %v3502_v28 = vadd.f32 %v3418_v24, %v11680_v1  ;;  %v11683_v38 = vld [vmem:[#allocation57_spill] sm:$0xff]  ;;  %v11684_v27 = vld [vmem:[#allocation58_spill] sm:$0xff] }
 0x58a   :  { %v3482_v11 = vadd.f32 %v3398_v58, %v11682_v35 }
 0x58b   :  { %v3678_v8 = vpop.permute.xlu2 %3677 }
 0x58c   :  { %v9916_v5 = vadd.f32 %v3678_v8, %v3495_v25  ;;  %v9918_v6 = vadd.f32 %v3678_v8, %v3496_v20  ;;  %v3628_v9 = vpop.permute.xlu1 %3627  ;;  %v3623_v48 = vpop.permute.xlu0 %3622  ;;  %v3479_v25 = vadd.f32 %v3395_v26, %v11683_v38  ;;  %v3480_v8 = vadd.f32 %v3396_v40, %v11684_v27  ;;  %v11695_v38 = vld [vmem:[#allocation86_spill] sm:$0xff] }
 0x58d   :  { %v9920_v62 = vadd.f32 %v3628_v9, %v3475_v63  ;;  %v9922_v49 = vadd.f32 %v3628_v9, %v3476_v23  ;;  %v9924_v53 = vadd.f32 %v3623_v48, %v3473_v16  ;;  %v9926_v0 = vadd.f32 %v3623_v48, %v3474_v39  ;;  %v11679_v39 = vld [vmem:[#allocation79_spill] sm:$0xff]  ;;  %v11686_v63 = vld [vmem:[#allocation208_spill] sm:$0xff] }
 0x58e   :  { %11674 = vst [vmem:[#allocation188_spill] sm:$0xff] %v9918_v6  ;;  %v3501_v23 = vadd.f32 %v3417_v18, %v11679_v39  ;;  %v11681_v9 = vld [vmem:[#allocation59_spill] sm:$0xff]  ;;  %v11685_v6 = vld [vmem:[#allocation149_spill] sm:$0xff]  ;;  %v3424_v36 = vmul.f32 %v9542_v47, %v11686_v63  ;;  %v11688_v39 = vld [vmem:[#allocation178_spill] sm:$0xff] }
 0x58f   :  { %11675 = vst [vmem:[#allocation189_spill] sm:$0xff] %v9922_v49  ;;  %v3481_v48 = vadd.f32 %v3397_v50, %v11681_v9  ;;  %v3423_v20 = vmul.f32 %v9542_v47, %v11685_v6  ;;  %v11687_v16 = vld [vmem:[#allocation139_spill] sm:$0xff]  ;;  %v3404_v24 = vmul.f32 %v9544_v13, %v11688_v39  ;;  %v11692_v63 = vld [vmem:[#allocation138_spill] sm:$0xff] }
 0x590   :  { %11676 = vst [vmem:[#allocation203_spill] sm:$0xff] %v9926_v0  ;;  %v3403_v18 = vmul.f32 %v9544_v13, %v11687_v16  ;;  %v3401_v16 = vmul.f32 %v9546_v10, %v11692_v63  ;;  %v11693_v9 = vld [vmem:[#allocation175_spill] sm:$0xff]  ;;  %v3508_v39 = vadd.f32 %v3424_v36, %v11695_v38  ;;  %v11697_v63 = vld [vmem:[#allocation66_spill] sm:$0xff]  ;;  %v11699_v0 = vld [vmem:[#allocation64_spill] sm:$0xff] }
 0x591   :  { %v3402_v13 = vmul.f32 %v9546_v10, %v11693_v9  ;;  %v3488_v10 = vadd.f32 %v3404_v24, %v11697_v63  ;;  %v11698_v9 = vld [vmem:[#allocation63_spill] sm:$0xff]  ;;  %v3416_v63 = vmul.f32 %v9582_v19, %v11716_v2 }
 0x593   :  { %v3693_v49 = vpop.permute.xlu2 %3692 }
 0x594   :  { %v9952_v50 = vadd.f32 %v3693_v49, %v3501_v23  ;;  %v9954_v58 = vadd.f32 %v3693_v49, %v3502_v28  ;;  %v3643_v26 = vpop.permute.xlu1 %3642  ;;  %v3638_v1 = vpop.permute.xlu0 %3637  ;;  %v3485_v23 = vadd.f32 %v3401_v16, %v11698_v9  ;;  %v3486_v49 = vadd.f32 %v3402_v13, %v11699_v0  ;;  %v11710_v9 = vld [vmem:[#allocation92_spill] sm:$0xff] }
 0x595   :  { %v9956_v27 = vadd.f32 %v3643_v26, %v3481_v48  ;;  %v9958_v40 = vadd.f32 %v3643_v26, %v3482_v11  ;;  %v9960_v6 = vadd.f32 %v3638_v1, %v3479_v25  ;;  %v9962_v47 = vadd.f32 %v3638_v1, %v3480_v8  ;;  %v11694_v8 = vld [vmem:[#allocation85_spill] sm:$0xff]  ;;  %v11702_v25 = vld [vmem:[#allocation142_spill] sm:$0xff] }
 0x596   :  { %11689 = vst [vmem:[#allocation204_spill] sm:$0xff] %v9954_v58  ;;  %v3507_v11 = vadd.f32 %v3423_v20, %v11694_v8  ;;  %v11696_v26 = vld [vmem:[#allocation65_spill] sm:$0xff]  ;;  %v11700_v58 = vld [vmem:[#allocation152_spill] sm:$0xff]  ;;  %v3409_v20 = vmul.f32 %v9559_v12, %v11702_v25  ;;  %v11703_v8 = vld [vmem:[#allocation187_spill] sm:$0xff] }
 0x597   :  { %11690 = vst [vmem:[#allocation200_spill] sm:$0xff] %v9958_v40  ;;  %v3487_v1 = vadd.f32 %v3403_v18, %v11696_v26  ;;  %v3429_v28 = vmul.f32 %v9557_v61, %v11700_v58  ;;  %v11701_v48 = vld [vmem:[#allocation217_spill] sm:$0xff]  ;;  %v3410_v36 = vmul.f32 %v9559_v12, %v11703_v8  ;;  %v11708_v26 = vld [vmem:[#allocation184_spill] sm:$0xff] }
 0x598   :  { %11691 = vst [vmem:[#allocation201_spill] sm:$0xff] %v9962_v47  ;;  %v3430_v35 = vmul.f32 %v9557_v61, %v11701_v48  ;;  %v11707_v48 = vld [vmem:[#allocation141_spill] sm:$0xff]  ;;  %v3408_v12 = vmul.f32 %v9561_v14, %v11708_v26  ;;  %v11714_v47 = vld [vmem:[#allocation70_spill] sm:$0xff] }
 0x599   :  { %v3407_v25 = vmul.f32 %v9561_v14, %v11707_v48  ;;  %v11712_v48 = vld [vmem:[#allocation72_spill] sm:$0xff]  ;;  %v11713_v26 = vld [vmem:[#allocation69_spill] sm:$0xff] }
 0x59a   :  { %v3514_v8 = vadd.f32 %v3430_v35, %v11710_v9  ;;  %v3494_v14 = vadd.f32 %v3410_v36, %v11712_v48  ;;  %v11723_v48 = vld [vmem:[#allocation78_spill] sm:$0xff] }
 0x59b   :  { %v3708_v40 = vpop.permute.xlu2 %3707 }
 0x59c   :  { %v9988_v18 = vadd.f32 %v3708_v40, %v3507_v11  ;;  %v9990_v24 = vadd.f32 %v3708_v40, %v3508_v39  ;;  %v3658_v16 = vpop.permute.xlu1 %3657  ;;  %v3653_v38 = vpop.permute.xlu0 %3652  ;;  %v3491_v11 = vadd.f32 %v3407_v25, %v11713_v26  ;;  %v3492_v40 = vadd.f32 %v3408_v12, %v11714_v47  ;;  %v11715_v39 = vld [vmem:[#allocation145_spill] sm:$0xff]  ;;  %v11720_v47 = vld [vmem:[#allocation144_spill] sm:$0xff]  ;;  %v11724_v26 = vld [vmem:[#allocation75_spill] sm:$0xff] }
 0x59d   :  { %v9992_v0 = vadd.f32 %v3658_v16, %v3487_v1  ;;  %v9994_v13 = vadd.f32 %v3658_v16, %v3488_v10  ;;  %v9996_v58 = vadd.f32 %v3653_v38, %v3485_v23  ;;  %v9998_v61 = vadd.f32 %v3653_v38, %v3486_v49  ;;  %v11709_v49 = vld [vmem:[#allocation91_spill] sm:$0xff] }
 0x59e   :  { %11704 = vst [vmem:[#allocation197_spill] sm:$0xff] %v9990_v24  ;;  %v3513_v10 = vadd.f32 %v3429_v28, %v11709_v49  ;;  %v11711_v16 = vld [vmem:[#allocation71_spill] sm:$0xff]  ;;  %v3415_v1 = vmul.f32 %v9582_v19, %v11715_v39  ;;  %v3413_v12 = vmul.f32 %v9584_v46, %v11720_v47  ;;  %v11721_v39 = vld [vmem:[#allocation193_spill] sm:$0xff] }
 0x59f   :  { %11705 = vst [vmem:[#allocation198_spill] sm:$0xff] %v9994_v13  ;;  %v3493_v38 = vadd.f32 %v3409_v20, %v11711_v16  ;;  %v3414_v16 = vmul.f32 %v9584_v46, %v11721_v39 }
 0x5a0   :  { %11706 = vst [vmem:[#allocation212_spill] sm:$0xff] %v9998_v61 }
 0x5a3   :  { %v3723_v24 = vpop.permute.xlu2 %3722 }
 0x5a4   :  { %v10020_v23 = vadd.f32 %v3723_v24, %v3513_v10  ;;  %v10022_v28 = vadd.f32 %v3723_v24, %v3514_v8  ;;  %v3673_v35 = vpop.permute.xlu1 %3672  ;;  %v3668_v49 = vpop.permute.xlu0 %3667 }
 0x5a5   :  { %v10024_v20 = vadd.f32 %v3673_v35, %v3493_v38  ;;  %v10026_v36 = vadd.f32 %v3673_v35, %v3494_v14  ;;  %v3785_v25 = vadd.f32 %v3668_v49, %v3491_v11  ;;  %v10028_v9 = vadd.f32 %v3668_v49, %v3492_v40  ;;  %v11722_v11 = vld [vmem:[#allocation77_spill] sm:$0xff]  ;;  %v11725_v49 = vld [vmem:[#allocation76_spill] sm:$0xff] }
 0x5a6   :  { %11717 = vst [vmem:[#allocation213_spill] sm:$0xff] %v10022_v28  ;;  %v3499_v40 = vadd.f32 %v3415_v1, %v11722_v11  ;;  %v3500_v14 = vadd.f32 %v3416_v63, %v11723_v48  ;;  %v3497_v35 = vadd.f32 %v3413_v12, %v11724_v26  ;;  %v3498_v47 = vadd.f32 %v3414_v16, %v11725_v49  ;;  %v11729_v1 = vld [vmem:[#allocation205_spill] sm:$0xff]  ;;  %v11730_v11 = vld [vmem:[#allocation147_spill] sm:$0xff]  ;;  %v11731_v16 = vld [vmem:[#allocation202_spill] sm:$0xff] }
 0x5a7   :  { %11718 = vst [vmem:[#allocation209_spill] sm:$0xff] %v10026_v36  ;;  %v3871_v24 = vmax.f32 %v10024_v20, 0.0  ;;  %v3869_v8 = vmax.f32 %v3785_v25, 0.0  ;;  %v11728_v25 = vld [vmem:[#allocation148_spill] sm:$0xff]  ;;  %v3422_v63 = vmul.f32 %v9607_v52, %v11729_v1  ;;  %v3419_v12 = vmul.f32 %v9609_v17, %v11730_v11  ;;  %v11732_v49 = vld [vmem:[#allocation83_spill] sm:$0xff]  ;;  %v11735_v1 = vld [vmem:[#allocation82_spill] sm:$0xff] }
 0x5a8   :  { %11719 = vst [vmem:[#allocation211_spill] sm:$0xff] %v10028_v9  ;;  %v3421_v38 = vmul.f32 %v9607_v52, %v11728_v25  ;;  %v3420_v48 = vmul.f32 %v9609_v17, %v11731_v16  ;;  %v11734_v25 = vld [vmem:[#allocation81_spill] sm:$0xff] }
 0x5a9   :  { %v3503_v52 = vadd.f32 %v3419_v12, %v11734_v25  ;;  %v11739_v12 = vld [vmem:[#allocation210_spill] sm:$0xff] }
 0x5aa   :  { %v3504_v61 = vadd.f32 %v3420_v48, %v11735_v1  ;;  %v3426_v48 = vmul.f32 %v9634_v44, %v11739_v12 }
 0x5ac   :  { %v3688_v46 = vpop.permute.xlu1 %3687  ;;  %v3683_v39 = vpop.permute.xlu0 %3682 }
 0x5ad   :  { %v10043_v19 = vadd.f32 %v3688_v46, %v3499_v40  ;;  %v10045_v2 = vadd.f32 %v3688_v46, %v3500_v14  ;;  %v10047_v20 = vadd.f32 %v3683_v39, %v3497_v35  ;;  %v10049_v10 = vadd.f32 %v3683_v39, %v3498_v47  ;;  %v11733_v46 = vld [vmem:[#allocation84_spill] sm:$0xff]  ;;  %v11736_v14 = vld [vmem:[#allocation151_spill] sm:$0xff]  ;;  %v11737_v35 = vld [vmem:[#allocation214_spill] sm:$0xff] }
 0x5ae   :  { %v3505_v47 = vadd.f32 %v3421_v38, %v11732_v49  ;;  %v3506_v39 = vadd.f32 %v3422_v63, %v11733_v46  ;;  %v3428_v38 = vmul.f32 %v9632_v55, %v11737_v35  ;;  %v11738_v49 = vld [vmem:[#allocation150_spill] sm:$0xff] }
 0x5af   :  { %11726 = vst [vmem:[#allocation206_spill] sm:$0xff] %v10045_v2  ;;  %v3877_v40 = vmax.f32 %v10043_v19, 0.0  ;;  %v3875_v26 = vmax.f32 %v10047_v20, 0.0  ;;  %v3427_v20 = vmul.f32 %v9632_v55, %v11736_v14  ;;  %v3425_v63 = vmul.f32 %v9634_v44, %v11738_v49  ;;  %v11742_v14 = vld [vmem:[#allocation87_spill] sm:$0xff] }
 0x5b0   :  { %11727 = vst [vmem:[#allocation207_spill] sm:$0xff] %v10049_v10  ;;  %v11743_v10 = vld [vmem:[#allocation88_spill] sm:$0xff] }
 0x5b1   :  { %v3510_v55 = vadd.f32 %v3426_v48, %v11743_v10 }
 0x5b4   :  { %v3703_v11 = vpop.permute.xlu1 %3702  ;;  %v3698_v13 = vpop.permute.xlu0 %3697 }
 0x5b5   :  { %v3799_v36 = vadd.f32 %v3703_v11, %v3505_v47  ;;  %v10067_v17 = vadd.f32 %v3703_v11, %v3506_v39  ;;  %v3797_v19 = vadd.f32 %v3698_v13, %v3503_v52  ;;  %v10069_v16 = vadd.f32 %v3698_v13, %v3504_v61  ;;  %v11740_v13 = vld [vmem:[#allocation89_spill] sm:$0xff]  ;;  %v11741_v52 = vld [vmem:[#allocation90_spill] sm:$0xff] }
 0x5b6   :  { %v3511_v61 = vadd.f32 %v3427_v20, %v11740_v13  ;;  %v3512_v1 = vadd.f32 %v3428_v38, %v11741_v52  ;;  %v3509_v11 = vadd.f32 %v3425_v63, %v11742_v14  ;;  %v11744_v20 = vmax.f32 %v9700_v51, 0.0 }
 0x5b7   :  { %v3883_v46 = vmax.f32 %v3799_v36, 0.0  ;;  %v3881_v39 = vmax.f32 %v3797_v19, 0.0  ;;  %v3882_v25 = vmax.f32 %v10069_v16, 0.0  ;;  %v11745_v38 = vmax.f32 %v9852_v7, 0.0 }
 0x5b8   :  { %v4011_v63 = vpack.c.bf16 %v3871_v24, %v3869_v8 }
 0x5b9   :  { %v3995_v13 = vpack.c.bf16 %v11745_v38, %v11744_v20 }
 0x5bc   :  { %v3718_v35 = vpop.permute.xlu1 %3717  ;;  %v3713_v2 = vpop.permute.xlu0 %3712 }
 0x5bd   :  { %v3805_v49 = vadd.f32 %v3718_v35, %v3511_v61  ;;  %v3806_v9 = vadd.f32 %v3718_v35, %v3512_v1  ;;  %v3803_v28 = vadd.f32 %v3713_v2, %v3509_v11  ;;  %v10085_v44 = vadd.f32 %v3713_v2, %v3510_v55 }
 0x5bf   :  { %v3889_v36 = vmax.f32 %v3805_v49, 0.0  ;;  %v3890_v12 = vmax.f32 %v3806_v9, 0.0  ;;  %v3887_v19 = vmax.f32 %v3803_v28, 0.0  ;;  %v3888_v47 = vmax.f32 %v10085_v44, 0.0 }
 0x5c0   :  { %6213 = dma.done.wait [#allocation4 + $0x1], 8064 }
 0x5c1   :  { %6214 = vsyncadd [#allocation4 + $0x1], 4294959232  ;;  %4401 = vmatpush.bf16.msrb.mxu1 %v3995_v13  ;;  %4515 = vmatpush.bf16.msrb.mxu3 %v4011_v63  ;;  %v11746_v10 = vmax.f32 %v9816_v57, 0.0  ;;  %v11747_v2 = vmax.f32 %v9812_v31, 0.0  ;;  %v11748_v9 = vmax.f32 %v9992_v0, 0.0  ;;  %v11749_v28 = vmax.f32 %v9880_v4, 0.0 }
 0x5c2   :  { %v11750_v51 = vmax.f32 %v10020_v23, 0.0  ;;  %v11751_v7 = vmax.f32 %v9988_v18, 0.0  ;;  %v11752_v8 = vmax.f32 %v9776_v54, 0.0  ;;  %v11753_v57 = vmax.f32 %v9664_v3, 0.0  ;;  %v6085_v16 = vld [vmem:[#allocation3 + $0xc8] sm:$0xf0] }
 0x5c3   :  { %v3993_v48 = vpack.c.bf16 %v11747_v2, %v11746_v10  ;;  %v4009_v61 = vpack.c.bf16 %v11749_v28, %v11748_v9  ;;  %v11754_v1 = vmax.f32 %v9844_v41, 0.0  ;;  %v11755_v0 = vmax.f32 %v9996_v58, 0.0  ;;  %v6060_v28 = vld [vmem:[#allocation3 + $0x4] sm:$0xf] }
 0x5c4   :  { %v4021_v52 = vpack.c.bf16 %v11750_v51, %v3889_v36  ;;  %v4019_v24 = vpack.c.bf16 %v3887_v19, %v11751_v7  ;;  %v3991_v31 = vpack.c.bf16 %v11753_v57, %v11752_v8  ;;  %v4017_v14 = vpack.c.bf16 %v3883_v46, %v3881_v39  ;;  %v5669_v36 = vld [vmem:[#allocation3 + $0x8] sm:$0xf]  ;;  %v6062_v19 = vld [vmem:[#allocation3 + $0x10] sm:$0xf0]  ;;  %v11783_v8 = vld [vmem:[#allocation209_spill] sm:$0xff] }
 0x5c5   :  { %4402 = vmatpush.bf16.msrb.mxu1 %v3993_v48  ;;  %4516 = vmatpush.bf16.msrb.mxu3 %v4009_v61  ;;  %v4007_v4 = vpack.c.bf16 %v11755_v0, %v11754_v1  ;;  %v11756_v23 = vmax.f32 %v9628_v43, 0.0  ;;  %v11757_v18 = vmax.f32 %v9780_v22, 0.0  ;;  %v11758_v55 = vmax.f32 %v9960_v6, 0.0  ;;  %v11779_v61 = vld [vmem:[#allocation213_spill] sm:$0xff]  ;;  %v11781_v7 = vld [vmem:[#allocation211_spill] sm:$0xff] }
 0x5c6   :  { %4632 = vmatpush.bf16.msra.mxu2 %v4021_v52  ;;  %v11759_v54 = vmax.f32 %v9956_v27, 0.0  ;;  %v11760_v41 = vmax.f32 %v9952_v50, 0.0  ;;  %v11761_v58 = vmax.f32 %v9744_v29, 0.0  ;;  %v11762_v46 = vmax.f32 %v9740_v56, 0.0  ;;  %v11787_v0 = vld [vmem:[#allocation195_spill] sm:$0xff] }
 0x5c7   :  { %v3989_v11 = vpack.c.bf16 %v11757_v18, %v11756_v23  ;;  %v11763_v43 = vmax.f32 %v9920_v62, 0.0  ;;  %v11764_v22 = vmax.f32 %v9808_v60, 0.0  ;;  %v11765_v27 = vmax.f32 %v9916_v5, 0.0  ;;  %v11770_v5 = vld [vmem:[#allocation125_spill] sm:$0xff] }
 0x5c8   :  { %v4005_v3 = vpack.c.bf16 %v11759_v54, %v11758_v55  ;;  %v4015_v35 = vpack.c.bf16 %v11760_v41, %v3877_v40  ;;  %v3987_v39 = vpack.c.bf16 %v11762_v46, %v11761_v58  ;;  %v11766_v50 = vmax.f32 %v9704_v32, 0.0  ;;  %v5673_v18 = vld [vmem:[#allocation3 + $0x18] sm:$0xf]  ;;  %v6063_v55 = vld [vmem:[#allocation3 + $0x1c] sm:$0xf] }
 0x5c9   :  { %4403 = vmatpush.bf16.msrb.mxu1 %v3991_v31  ;;  %4517 = vmatpush.bf16.msrb.mxu3 %v4007_v4  ;;  %v4003_v49 = vpack.c.bf16 %v11764_v22, %v11763_v43  ;;  %v4013_v6 = vpack.c.bf16 %v3875_v26, %v11765_v27  ;;  %v11767_v29 = vmax.f32 %v9603_v21, 0.0  ;;  %v11768_v56 = vmax.f32 %v9772_v33, 0.0  ;;  %v5661_v33 = vld [vmem:[#allocation3] sm:$0xf]  ;;  %v5675_v54 = vld [vmem:[#allocation3 + $0x24] sm:$0xf0] }
 0x5ca   :  { %4633 = vmatpush.bf16.msra.mxu2 %v4019_v24  ;;  %v11769_v62 = vmax.f32 %v9924_v53, 0.0  ;;  %v10140_v60 = vor.u32 %v6062_v19, %v5669_v36  ;;  %v11771_v26 = vmax.f32 %v11770_v5, 0.0  ;;  %v11772_v38 = vmax.f32 %v9708_v59, 0.0  ;;  %v6068_v58 = vld [vmem:[#allocation3 + $0x40] sm:$0xf0] }
 0x5cb   :  { %v3985_v40 = vpack.c.bf16 %v11767_v29, %v11766_v50  ;;  %v11773_v32 = vmax.f32 %v9888_v42, 0.0  ;;  %v11774_v21 = vmax.f32 %v9884_v45, 0.0  ;;  %v11775_v53 = vmax.f32 %v9672_v15, 0.0  ;;  %v6061_v42 = vld [vmem:[#allocation3 + $0x8] sm:$0xf0]  ;;  %v11789_v50 = vld [vmem:[#allocation197_spill] sm:$0xff] }
 0x5cc   :  { %v4001_v20 = vpack.c.bf16 %v11769_v62, %v11768_v56  ;;  %v3983_v13 = vpack.c.bf16 %v11772_v38, %v11771_v26  ;;  %v11776_v10 = vmax.f32 %v9668_v37, 0.0  ;;  %v11777_v48 = vmax.f32 %v9848_v34, 0.0  ;;  %v5663_v45 = vld [vmem:[#allocation3 + $0xc] sm:$0xf0]  ;;  %v6065_v34 = vld [vmem:[#allocation3 + $0x28] sm:$0xf0] }
 0x5cd   :  { %4404 = vmatpush.bf16.msrb.mxu1 %v3989_v11  ;;  %4518 = vmatpush.bf16.msrb.mxu3 %v4005_v3  ;;  %v3999_v63 = vpack.c.bf16 %v11774_v21, %v11773_v32  ;;  %v11778_v59 = vmax.f32 %v9736_v30, 0.0  ;;  %v11780_v51 = vmax.f32 %v11779_v61, 0.0  ;;  %v11782_v24 = vmax.f32 %v11781_v7, 0.0  ;;  %v5681_v30 = vld [vmem:[#allocation3 + $0x20] sm:$0xf] }
 0x5ce   :  { %4634 = vmatpush.bf16.msra.mxu2 %v4017_v14  ;;  %v3981_v2 = vpack.c.bf16 %v11776_v10, %v11775_v53  ;;  %v11784_v57 = vmax.f32 %v11783_v8, 0.0  ;;  %v10166_v15 = vor.u32 %v6061_v42, %v5661_v33  ;;  %v10168_v37 = vor.u32 %v6060_v28, %v5663_v45  ;;  %v6064_v11 = vld [vmem:[#allocation3 + $0x20] sm:$0xf0]  ;;  %v6067_v43 = vld [vmem:[#allocation3 + $0x38] sm:$0xf0] }
 0x5cf   :  { %v3997_v9 = vpack.c.bf16 %v11778_v59, %v11777_v48  ;;  %v4022_v52 = vpack.c.bf16 %v11780_v51, %v3890_v12  ;;  %v11785_v12 = vld [vmem:[#allocation198_spill] sm:$0xff]  ;;  %v11788_v4 = vmax.f32 %v11787_v0, 0.0  ;;  %v10176_v23 = vor.u32 %v6065_v34, %v5681_v30  ;;  %v6066_v22 = vld [vmem:[#allocation3 + $0x34] sm:$0xf]  ;;  %v5705_v36 = vld [vmem:[#allocation3 + $0x50] sm:$0xf] }
 0x5d0   :  { %v4012_v31 = vpack.c.bf16 %v11784_v57, %v11782_v24  ;;  %v11786_v1 = vmax.f32 %v11785_v12, 0.0  ;;  %v10180_v3 = vor.u32 %v6064_v11, %v5673_v18  ;;  %v10182_v41 = vor.u32 %v6063_v55, %v5675_v54  ;;  %v6071_v19 = vld [vmem:[#allocation3 + $0x58] sm:$0xf0]  ;;  %v5697_v62 = vld [vmem:[#allocation3 + $0x48] sm:$0xf] }
 0x5d1   :  { %4405 = vmatpush.bf16.msrb.mxu1 %v3987_v39  ;;  %4519 = vmatpush.bf16.msrb.mxu3 %v4003_v49  ;;  %v5685_v39 = vld [vmem:[#allocation3 + $0x30] sm:$0xf]  ;;  %v5687_v49 = vld [vmem:[#allocation3 + $0x3c] sm:$0xf0]  ;;  %v11790_v29 = vmax.f32 %v11789_v50, 0.0  ;;  %v10200_v56 = vor.u32 %v6071_v19, %v5705_v36  ;;  %v11799_v36 = vmax.f32 %v10067_v17, 0.0 }
 0x5d2   :  { %4635 = vmatpush.bf16.msra.mxu2 %v4015_v35  ;;  %v4010_v14 = vpack.c.bf16 %v11788_v4, %v11786_v1  ;;  %v5693_v35 = vld [vmem:[#allocation3 + $0x38] sm:$0xf]  ;;  %v10190_v27 = vor.u32 %v6067_v43, %v5685_v39  ;;  %v6069_v5 = vld [vmem:[#allocation3 + $0x4c] sm:$0xf]  ;;  %v5717_v32 = vld [vmem:[#allocation3 + $0x68] sm:$0xf] }
 0x5d3   :  { %v10186_v46 = vor.u32 %v6068_v58, %v5693_v35  ;;  %v5699_v26 = vld [vmem:[#allocation3 + $0x54] sm:$0xf0]  ;;  %v6074_v21 = vld [vmem:[#allocation3 + $0x70] sm:$0xf0]  ;;  %v6073_v48 = vld [vmem:[#allocation3 + $0x68] sm:$0xf0]  ;;  %v4018_v19 = vpack.c.bf16 %v11799_v36, %v3882_v25 }
 0x5d4   :  { %v10214_v10 = vor.u32 %v6074_v21, %v5717_v32  ;;  %v6072_v59 = vld [vmem:[#allocation3 + $0x64] sm:$0xf]  ;;  %v5729_v45 = vld [vmem:[#allocation3 + $0x80] sm:$0xf]  ;;  %v6077_v61 = vld [vmem:[#allocation3 + $0x88] sm:$0xf0] }
 0x5d5   :  { %4406 = vmatpush.bf16.msrb.mxu1 %v3985_v40  ;;  %4520 = vmatpush.bf16.msrb.mxu3 %v4001_v20  ;;  %v4020_v40 = vpack.c.bf16 %v3888_v47, %v11790_v29  ;;  %v6070_v20 = vld [vmem:[#allocation3 + $0x50] sm:$0xf0]  ;;  %v11791_v47 = vld [vmem:[#allocation179_spill] sm:$0xff]  ;;  %v10224_v51 = vor.u32 %v6077_v61, %v5729_v45  ;;  %v6076_v7 = vld [vmem:[#allocation3 + $0x80] sm:$0xf0]  ;;  %vm5127_vm12 = vcmask 1043456  }
 0x5d6   :  { %4636 = vmatpush.bf16.msra.mxu2 %v4013_v6  ;;  %v10192_v6 = vor.u32 %v6066_v22, %v5687_v49  ;;  %v10204_v38 = vor.u32 %v6070_v20, %v5697_v62  ;;  %v11792_v44 = vmax.f32 %v11791_v47, 0.0  ;;  %v6075_v24 = vld [vmem:[#allocation3 + $0x7c] sm:$0xf]  ;;  %v5723_v8 = vld [vmem:[#allocation3 + $0x84] sm:$0xf0]  ;;  %v11797_v39 = vld [vmem:[#allocation200_spill] sm:$0xff] }
 0x5d7   :  { %v5741_v30 = vld [vmem:[#allocation3 + $0x98] sm:$0xf]  ;;  %v6080_v34 = vld [vmem:[#allocation3 + $0xa0] sm:$0xf0]  ;;  %v5733_v1 = vld [vmem:[#allocation3 + $0x90] sm:$0xf] }
 0x5d8   :  { %v10234_v12 = vor.u32 %v6080_v34, %v5741_v30  ;;  %v6079_v0 = vld [vmem:[#allocation3 + $0x98] sm:$0xf0]  ;;  %v6078_v4 = vld [vmem:[#allocation3 + $0x94] sm:$0xf]  ;;  %v5753_v55 = vld [vmem:[#allocation3 + $0xb0] sm:$0xf] }
 0x5d9   :  { %5911 = vmatmul.msk.bf16.vlgmr.msra.gmra.mxu2 %vm998_vm0, %v10140_v60  ;;  %4407 = vmatpush.bf16.msrb.mxu1 %v3983_v13  ;;  %v10206_v13 = vor.u32 %v6069_v5, %v5699_v26  ;;  %v10238_v18 = vor.u32 %v6079_v0, %v5733_v1  ;;  %v6083_v54 = vld [vmem:[#allocation3 + $0xb8] sm:$0xf0]  ;;  %v11798_v43 = vmax.f32 %v11797_v39, 0.0  ;;  %v5745_v50 = vld [vmem:[#allocation3 + $0xa8] sm:$0xf]  ;;  %vm5128_vm13 = vcmask 556036  }
 0x5da   :  { %4521 = vmatpush.bf16.msrb.mxu3 %v3999_v63  ;;  %v11793_v63 = vld [vmem:[#allocation212_spill] sm:$0xff]  ;;  %v11795_v35 = vld [vmem:[#allocation201_spill] sm:$0xff]  ;;  %v10248_v49 = vor.u32 %v6083_v54, %v5753_v55  ;;  %v5765_v26 = vld [vmem:[#allocation3 + $0xc8] sm:$0xf] }
 0x5db   :  { %v11794_v33 = vmax.f32 %v11793_v63, 0.0  ;;  %v11796_v58 = vmax.f32 %v11795_v35, 0.0  ;;  %v6082_v29 = vld [vmem:[#allocation3 + $0xb0] sm:$0xf0]  ;;  %v5747_v62 = vld [vmem:[#allocation3 + $0xb4] sm:$0xf0]  ;;  %vm10570_vm14 = vmor %vm5128_vm13, %vm5127_vm12 }
 0x5dc   :  { %v10256_v20 = vor.u32 %v6082_v29, %v5745_v50  ;;  %v6086_v32 = vld [vmem:[#allocation3 + $0xd0] sm:$0xf0]  ;;  %v5757_v17 = vld [vmem:[#allocation3 + $0xc0] sm:$0xf]  ;;  %v6084_v25 = vld [vmem:[#allocation3 + $0xc4] sm:$0xf] }
 0x5dd   :  { %4408 = vmatpush.bf16.msrb.mxu1 %v3981_v2  ;;  %v4008_v53 = vpack.c.bf16 %v11794_v33, %v11792_v44  ;;  %v5709_v2 = vld [vmem:[#allocation3 + $0x60] sm:$0xf]  ;;  %v4006_v22 = vpack.c.bf16 %v11798_v43, %v11796_v58  ;;  %v10262_v21 = vor.u32 %v6086_v32, %v5765_v26  ;;  %v5759_v47 = vld [vmem:[#allocation3 + $0xcc] sm:$0xf0]  ;;  %v10266_v63 = vor.u32 %v6085_v16, %v5757_v17  ;;  %v6087_v30 = vld [vmem:[#allocation3 + $0xdc] sm:$0xf] }
 0x5de   :  { %4522 = vmatpush.bf16.msrb.mxu3 %v3997_v9  ;;  %v5711_v9 = vld [vmem:[#allocation3 + $0x6c] sm:$0xf0]  ;;  %v10218_v42 = vor.u32 %v6073_v48, %v5709_v2  ;;  %v10268_v33 = vor.u32 %v6084_v25, %v5759_v47  ;;  %v5777_v2 = vld [vmem:[#allocation3 + $0xe0] sm:$0xf]  ;;  %v6089_v48 = vld [vmem:[#allocation3 + $0xe8] sm:$0xf0] }
 0x5df   :  { %v10220_v28 = vor.u32 %v6072_v59, %v5711_v9  ;;  %v10272_v9 = vor.u32 %v6089_v48, %v5777_v2  ;;  %v5771_v34 = vld [vmem:[#allocation3 + $0xe4] sm:$0xf0]  ;;  %v11800_v54 = vld [vmem:[#allocation189_spill] sm:$0xff]  ;;  %v11802_v58 = vld [vmem:[#allocation186_spill] sm:$0xff] }
 0x5e0   :  { %4409 = vmatmul.bf16.vlgmr.msrb.gmra.mxu1 %v10166_v15  ;;  %v10280_v55 = vor.u32 %v6087_v30, %v5771_v34  ;;  %v11801_v35 = vmax.f32 %v11800_v54, 0.0  ;;  %v11803_v39 = vmax.f32 %v11802_v58, 0.0  ;;  %v6092_v50 = vld [vmem:[#allocation3 + $0x100] sm:$0xf0]  ;;  %v5781_v16 = vld [vmem:[#allocation3 + $0xf0] sm:$0xf] }
 0x5e1   :  { %4857 = vmatpush.bf16.msra.mxu1 %v4012_v31  ;;  %4523 = vmatmul.bf16.vlgmr.msrb.gmra.mxu3 %v10168_v37  ;;  %v10230_v31 = vor.u32 %v6075_v24, %v5723_v8  ;;  %v5769_v24 = vld [vmem:[#allocation3 + $0xd8] sm:$0xf]  ;;  %v6088_v8 = vld [vmem:[#allocation3 + $0xe0] sm:$0xf0]  ;;  %v6091_v25 = vld [vmem:[#allocation3 + $0xf8] sm:$0xf0] }
 0x5e2   :  { %4974 = vmatpush.bf16.msra.mxu3 %v4022_v52  ;;  %v5721_v52 = vld [vmem:[#allocation3 + $0x78] sm:$0xf]  ;;  %v4004_v43 = vpack.c.bf16 %v11803_v39, %v11801_v35  ;;  %v6090_v47 = vld [vmem:[#allocation3 + $0xf4] sm:$0xf]  ;;  %v11805_v35 = vld [vmem:[#allocation206_spill] sm:$0xff] }
 0x5e3   :  { %v10228_v57 = vor.u32 %v6076_v7, %v5721_v52  ;;  %v11806_v58 = vmax.f32 %v11805_v35, 0.0  ;;  %v11807_v39 = vld [vmem:[#allocation204_spill] sm:$0xff]  ;;  %v11813_v35 = vld [vmem:[#allocation170_spill] sm:$0xff] }
 0x5e5   :  { %4858 = vmatpush.bf16.msra.mxu1 %v4010_v14  ;;  %v5735_v14 = vld [vmem:[#allocation3 + $0x9c] sm:$0xf0] }
 0x5e6   :  { %4975 = vmatpush.bf16.msra.mxu3 %v4020_v40  ;;  %v10240_v11 = vor.u32 %v6078_v4, %v5735_v14  ;;  %v6081_v40 = vld [vmem:[#allocation3 + $0xac] sm:$0xf]  ;;  %v10278_v14 = vor.u32 %v6088_v8, %v5769_v24  ;;  %v5801_v24 = vld [vmem:[#allocation3 + $0x110] sm:$0xf]  ;;  %v6095_v8 = vld [vmem:[#allocation3 + $0x118] sm:$0xf0] }
 0x5e7   :  { %v10258_v5 = vor.u32 %v6081_v40, %v5747_v62  ;;  %v10304_v34 = vor.u32 %v6095_v8, %v5801_v24 }
 0x5e9   :  { %5912 = vmatmul.msk.bf16.gmra.mxu2 %vm998_vm0, %v10176_v23  ;;  %4859 = vmatpush.bf16.msra.mxu1 %v4008_v53  ;;  %11804 = vst [vmem:[#allocation220_spill] sm:$0xff] %v10304_v34 }
 0x5ea   :  { %4976 = vmatpush.bf16.msra.mxu3 %v4018_v19  ;;  %v5789_v19 = vld [vmem:[#allocation3 + $0xf8] sm:$0xf] }
 0x5eb   :  { %v10290_v40 = vor.u32 %v6092_v50, %v5789_v19  ;;  %v5793_v19 = vld [vmem:[#allocation3 + $0x108] sm:$0xf]  ;;  %v6094_v50 = vld [vmem:[#allocation3 + $0x110] sm:$0xf0] }
 0x5ed   :  { %4860 = vmatpush.bf16.msra.mxu1 %v4006_v22 }
 0x5f0   :  { %4414 = vmatmul.bf16.gmra.mxu1 %v10180_v3 }
 0x5f1   :  { %4528 = vmatmul.bf16.gmra.mxu3 %v10182_v41  ;;  %4861 = vmatpush.bf16.msra.mxu1 %v4004_v43  ;;  %v11808_v43 = vmax.f32 %v11807_v39, 0.0 }
 0x5f9   :  { %5913 = vmatmul.msk.bf16.gmra.mxu2 %vm998_vm0, %v10186_v46 }
 0x600   :  { %4419 = vmatmul.bf16.gmra.mxu1 %v10190_v27 }
 0x601   :  { %4533 = vmatmul.bf16.gmra.mxu3 %v10192_v6 }
 0x609   :  { %5914 = vmatmul.msk.bf16.gmra.mxu2 %vm998_vm0, %v10200_v56 }
 0x610   :  { %4424 = vmatmul.bf16.gmra.mxu1 %v10204_v38 }
 0x611   :  { %4538 = vmatmul.bf16.gmra.mxu3 %v10206_v13 }
 0x619   :  { %5915 = vmatmul.msk.bf16.gmra.mxu2 %vm998_vm0, %v10214_v10 }
 0x620   :  { %4429 = vmatmul.bf16.gmra.mxu1 %v10218_v42 }
 0x621   :  { %4543 = vmatmul.bf16.gmra.mxu3 %v10220_v28 }
 0x629   :  { %5916 = vmatmul.msk.bf16.gmra.mxu2 %vm998_vm0, %v10224_v51 }
 0x630   :  { %4434 = vmatmul.bf16.gmra.mxu1 %v10228_v57 }
 0x631   :  { %4548 = vmatmul.bf16.gmra.mxu3 %v10230_v31 }
 0x639   :  { %5917 = vmatmul.msk.bf16.gmra.mxu2 %vm998_vm0, %v10234_v12 }
 0x640   :  { %4439 = vmatmul.bf16.gmra.mxu1 %v10238_v18 }
 0x641   :  { %4553 = vmatmul.bf16.gmra.mxu3 %v10240_v11 }
 0x649   :  { %5918 = vmatmul.msk.bf16.gmra.mxu2 %vm998_vm0, %v10248_v49 }
 0x650   :  { %4444 = vmatmul.bf16.gmra.mxu1 %v10256_v20 }
 0x651   :  { %4558 = vmatmul.bf16.gmra.mxu3 %v10258_v5 }
 0x659   :  { %5919 = vmatmul.msk.bf16.gmra.mxu2 %vm998_vm0, %v10262_v21 }
 0x65c   :  { %v4638_v44 = vpop.f32.mrf.mxu2 }
 0x65d   :  { %v4410_v53 = vpop.f32.mrf.mxu1 }
 0x660   :  { %4449 = vmatmul.bf16.gmra.mxu1 %v10266_v63 }
 0x661   :  { %4563 = vmatmul.bf16.gmra.mxu3 %v10268_v33 }
 0x664   :  { %v4640_v59 = vpop.f32.mrf.mxu2  ;;  %v4524_v45 = vpop.f32.mrf.mxu3 }
 0x665   :  { %v4525_v61 = vadd.f32 %v4524_v45, %v4410_v53  ;;  %v4412_v52 = vpop.f32.mrf.mxu1 }
 0x667   :  { %v10274_v7 = vadd.f32 %v4638_v44, %v4525_v61  ;;  %v5783_v44 = vld [vmem:[#allocation3 + $0xfc] sm:$0xf0] }
 0x668   :  { %v10298_v45 = vor.u32 %v6090_v47, %v5783_v44 }
 0x669   :  { %5920 = vmatmul.msk.bf16.gmra.mxu2 %vm998_vm0, %v10272_v9 }
 0x66c   :  { %v4643_v1 = vpop.f32.mrf.mxu2  ;;  %v4526_v0 = vpop.f32.mrf.mxu3 }
 0x66d   :  { %v4527_v4 = vadd.f32 %v4526_v0, %v4412_v52  ;;  %v4415_v22 = vpop.f32.mrf.mxu1 }
 0x66f   :  { %v10286_v36 = vadd.f32 %v4640_v59, %v4527_v4  ;;  %v10296_v59 = vor.u32 %v6091_v25, %v5781_v16  ;;  %v10314_v25 = vor.u32 %v6094_v50, %v5793_v19  ;;  %v6097_v19 = vld [vmem:[#allocation3 + $0x128] sm:$0xf0]  ;;  %v6096_v50 = vld [vmem:[#allocation3 + $0x124] sm:$0xf] }
 0x670   :  { %4454 = vmatmul.bf16.gmra.mxu1 %v10278_v14 }
 0x671   :  { %4568 = vmatmul.bf16.gmra.mxu3 %v10280_v55 }
 0x674   :  { %v4645_v29 = vpop.f32.mrf.mxu2  ;;  %v4529_v62 = vpop.f32.mrf.mxu3 }
 0x675   :  { %v4530_v26 = vadd.f32 %v4529_v62, %v4415_v22  ;;  %v4417_v32 = vpop.f32.mrf.mxu1  ;;  %v4016_v22 = vpack.c.bf16 %v11808_v43, %v11806_v58  ;;  %v5795_v62 = vld [vmem:[#allocation3 + $0x114] sm:$0xf0]  ;;  %v11815_v58 = vld [vmem:[#allocation203_spill] sm:$0xff] }
 0x676   :  { %v11816_v39 = vmax.f32 %v11815_v58, 0.0 }
 0x677   :  { %v10292_v17 = vadd.f32 %v4643_v1, %v4530_v26  ;;  %4977 = vmatpush.bf16.msra.mxu3 %v4016_v22  ;;  %v5805_v22 = vld [vmem:[#allocation3 + $0x120] sm:$0xf] }
 0x679   :  { %5921 = vmatmul.msk.bf16.gmra.mxu2 %vm998_vm0, %v10290_v40 }
 0x67c   :  { %v4648_v53 = vpop.f32.mrf.mxu2  ;;  %v4531_v2 = vpop.f32.mrf.mxu3 }
 0x67d   :  { %v4532_v48 = vadd.f32 %v4531_v2, %v4417_v32  ;;  %v4420_v61 = vpop.f32.mrf.mxu1  ;;  %v5813_v2 = vld [vmem:[#allocation3 + $0x128] sm:$0xf] }
 0x67f   :  { %v10300_v52 = vadd.f32 %v4645_v29, %v4532_v48  ;;  %v6093_v29 = vld [vmem:[#allocation3 + $0x10c] sm:$0xf]  ;;  %v6098_v48 = vld [vmem:[#allocation3 + $0x130] sm:$0xf0] }
 0x680   :  { %4459 = vmatmul.bf16.gmra.mxu1 %v10296_v59  ;;  %v10316_v47 = vor.u32 %v6093_v29, %v5795_v62  ;;  %v10322_v24 = vor.u32 %v6098_v48, %v5813_v2  ;;  %v5807_v29 = vld [vmem:[#allocation3 + $0x12c] sm:$0xf0] }
 0x681   :  { %4573 = vmatmul.bf16.gmra.mxu3 %v10298_v45 }
 0x682   :  { %11809 = vst [vmem:[#allocation221_spill] sm:$0xff] %v10316_v47 }
 0x683   :  { %11811 = vst [vmem:[#allocation219_spill] sm:$0xff] %v10322_v24 }
 0x684   :  { %v4650_v30 = vpop.f32.mrf.mxu2  ;;  %v4534_v1 = vpop.f32.mrf.mxu3 }
 0x685   :  { %v4535_v0 = vadd.f32 %v4534_v1, %v4420_v61  ;;  %v4422_v4 = vpop.f32.mrf.mxu1 }
 0x687   :  { %v10306_v54 = vadd.f32 %v4648_v53, %v4535_v0 }
 0x689   :  { %5922 = vmatmul.msk.bf16.gmra.mxu2 %vm998_vm0, %v10304_v34 }
 0x68c   :  { %v4653_v26 = vpop.f32.mrf.mxu2  ;;  %v4536_v32 = vpop.f32.mrf.mxu3 }
 0x68d   :  { %v4537_v16 = vadd.f32 %v4536_v32, %v4422_v4  ;;  %v4425_v44 = vpop.f32.mrf.mxu1 }
 0x68f   :  { %v10318_v53 = vadd.f32 %v4650_v30, %v4537_v16  ;;  %v11814_v30 = vmax.f32 %v11813_v35, 0.0 }
 0x690   :  { %4464 = vmatmul.bf16.gmra.mxu1 %v10314_v25 }
 0x691   :  { %11810 = vst [vmem:[#allocation218_spill] sm:$0xff] %v10318_v53  ;;  %4578 = vmatmul.bf16.gmra.mxu3 %v10316_v47  ;;  %v4002_v43 = vpack.c.bf16 %v11816_v39, %v11814_v30  ;;  %v11860_v47 = vld [vmem:[#allocation182_spill] sm:$0xff] }
 0x692   :  { %v11861_v53 = vmax.f32 %v11860_v47, 0.0  ;;  %v11868_v47 = vld [vmem:[#allocation133_spill] sm:$0xff] }
 0x693   :  { %4862 = vmatpush.bf16.msra.mxu1 %v4002_v43 }
 0x694   :  { %v4655_v61 = vpop.f32.mrf.mxu2  ;;  %v4539_v8 = vpop.f32.mrf.mxu3 }
 0x695   :  { %v4540_v1 = vadd.f32 %v4539_v8, %v4425_v44  ;;  %v4427_v0 = vpop.f32.mrf.mxu1  ;;  %v10332_v44 = vor.u32 %v6097_v19, %v5805_v22  ;;  %v5825_v8 = vld [vmem:[#allocation3 + $0x140] sm:$0xf]  ;;  %v5817_v22 = vld [vmem:[#allocation3 + $0x138] sm:$0xf]  ;;  %v6099_v19 = vld [vmem:[#allocation3 + $0x13c] sm:$0xf] }
 0x697   :  { %v10324_v4 = vadd.f32 %v4653_v26, %v4540_v1  ;;  %v10334_v26 = vor.u32 %v6096_v50, %v5807_v29  ;;  %v6101_v1 = vld [vmem:[#allocation3 + $0x148] sm:$0xf0]  ;;  %v5819_v50 = vld [vmem:[#allocation3 + $0x144] sm:$0xf0] }
 0x698   :  { %v10340_v30 = vor.u32 %v6101_v1, %v5825_v8 }
 0x699   :  { %11812 = vst [vmem:[#allocation215_spill] sm:$0xff] %v10324_v4  ;;  %5923 = vmatmul.msk.bf16.gmra.mxu2 %vm998_vm0, %v10322_v24 }
 0x69a   :  { %11817 = vst [vmem:[#allocation216_spill] sm:$0xff] %v10334_v26 }
 0x69b   :  { %11819 = vst [vmem:[#allocation227_spill] sm:$0xff] %v10340_v30 }
 0x69c   :  { %v4658_v62 = vpop.f32.mrf.mxu2  ;;  %v4541_v32 = vpop.f32.mrf.mxu3 }
 0x69d   :  { %v4542_v16 = vadd.f32 %v4541_v32, %v4427_v0  ;;  %v4430_v2 = vpop.f32.mrf.mxu1 }
 0x69f   :  { %v10336_v48 = vadd.f32 %v4655_v61, %v4542_v16  ;;  %v6100_v61 = vld [vmem:[#allocation3 + $0x140] sm:$0xf0] }
 0x6a0   :  { %4469 = vmatmul.bf16.gmra.mxu1 %v10332_v44  ;;  %v10346_v24 = vor.u32 %v6100_v61, %v5817_v22  ;;  %v5829_v22 = vld [vmem:[#allocation3 + $0x150] sm:$0xf]  ;;  %v6102_v61 = vld [vmem:[#allocation3 + $0x154] sm:$0xf] }
 0x6a1   :  { %11818 = vst [vmem:[#allocation226_spill] sm:$0xff] %v10336_v48  ;;  %4583 = vmatmul.bf16.gmra.mxu3 %v10334_v26  ;;  %v10348_v26 = vor.u32 %v6099_v19, %v5819_v50  ;;  %v5831_v19 = vld [vmem:[#allocation3 + $0x15c] sm:$0xf0] }
 0x6a2   :  { %11821 = vst [vmem:[#allocation225_spill] sm:$0xff] %v10346_v24 }
 0x6a3   :  { %11822 = vst [vmem:[#allocation222_spill] sm:$0xff] %v10348_v26 }
 0x6a4   :  { %v4660_v35 = vpop.f32.mrf.mxu2  ;;  %v4544_v58 = vpop.f32.mrf.mxu3 }
 0x6a5   :  { %v4545_v39 = vadd.f32 %v4544_v58, %v4430_v2  ;;  %v4432_v43 = vpop.f32.mrf.mxu1  ;;  %v5837_v2 = vld [vmem:[#allocation3 + $0x158] sm:$0xf] }
 0x6a7   :  { %v10342_v0 = vadd.f32 %v4658_v62, %v4545_v39  ;;  %v6104_v62 = vld [vmem:[#allocation3 + $0x160] sm:$0xf0] }
 0x6a8   :  { %v10354_v39 = vor.u32 %v6104_v62, %v5837_v2 }
 0x6a9   :  { %11820 = vst [vmem:[#allocation224_spill] sm:$0xff] %v10342_v0  ;;  %5924 = vmatmul.msk.bf16.gmra.mxu2 %vm998_vm0, %v10340_v30 }
 0x6aa   :  { %11824 = vst [vmem:[#allocation232_spill] sm:$0xff] %v10354_v39 }
 0x6ac   :  { %v4663_v29 = vpop.f32.mrf.mxu2  ;;  %v4546_v32 = vpop.f32.mrf.mxu3 }
 0x6ad   :  { %v4547_v16 = vadd.f32 %v4546_v32, %v4432_v43  ;;  %v4435_v8 = vpop.f32.mrf.mxu1 }
 0x6af   :  { %v10350_v1 = vadd.f32 %v4660_v35, %v4547_v16  ;;  %v6103_v35 = vld [vmem:[#allocation3 + $0x158] sm:$0xf0] }
 0x6b0   :  { %4474 = vmatmul.bf16.gmra.mxu1 %v10346_v24 }
 0x6b1   :  { %11823 = vst [vmem:[#allocation223_spill] sm:$0xff] %v10350_v1  ;;  %4588 = vmatmul.bf16.gmra.mxu3 %v10348_v26  ;;  %v10360_v1 = vor.u32 %v6103_v35, %v5829_v22  ;;  %v10362_v26 = vor.u32 %v6102_v61, %v5831_v19  ;;  %v5841_v19 = vld [vmem:[#allocation3 + $0x168] sm:$0xf] }
 0x6b3   :  { %11826 = vst [vmem:[#allocation230_spill] sm:$0xff] %v10360_v1 }
 0x6b4   :  { %v4665_v58 = vpop.f32.mrf.mxu2  ;;  %v4549_v30 = vpop.f32.mrf.mxu3  ;;  %11827 = vst [vmem:[#allocation231_spill] sm:$0xff] %v10362_v26 }
 0x6b5   :  { %v4550_v0 = vadd.f32 %v4549_v30, %v4435_v8  ;;  %v4437_v48 = vpop.f32.mrf.mxu1  ;;  %v5849_v30 = vld [vmem:[#allocation3 + $0x170] sm:$0xf] }
 0x6b7   :  { %v10356_v43 = vadd.f32 %v4663_v29, %v4550_v0  ;;  %v6107_v0 = vld [vmem:[#allocation3 + $0x178] sm:$0xf0]  ;;  %v11829_v29 = vld [vmem:[#allocation192_spill] sm:$0xff] }
 0x6b8   :  { %v11830_v8 = vmax.f32 %v11829_v29, 0.0  ;;  %v10372_v34 = vor.u32 %v6107_v0, %v5849_v30 }
 0x6b9   :  { %11825 = vst [vmem:[#allocation233_spill] sm:$0xff] %v10356_v43  ;;  %5925 = vmatmul.msk.bf16.gmra.mxu2 %vm998_vm0, %v10354_v39  ;;  %v11831_v39 = vld [vmem:[#allocation191_spill] sm:$0xff] }
 0x6ba   :  { %v11832_v43 = vmax.f32 %v11831_v39, 0.0  ;;  %11833 = vst [vmem:[#allocation229_spill] sm:$0xff] %v10372_v34 }
 0x6bc   :  { %v4668_v50 = vpop.f32.mrf.mxu2  ;;  %v4551_v32 = vpop.f32.mrf.mxu3  ;;  %v4000_v4 = vpack.c.bf16 %v11832_v43, %v11830_v8  ;;  %v11840_v8 = vld [vmem:[#allocation207_spill] sm:$0xff] }
 0x6bd   :  { %v4552_v16 = vadd.f32 %v4551_v32, %v4437_v48  ;;  %v4440_v2 = vpop.f32.mrf.mxu1  ;;  %v6106_v32 = vld [vmem:[#allocation3 + $0x170] sm:$0xf0] }
 0x6be   :  { %4863 = vmatpush.bf16.msra.mxu1 %v4000_v4  ;;  %v10378_v39 = vor.u32 %v6106_v32, %v5841_v19 }
 0x6bf   :  { %v10364_v62 = vadd.f32 %v4665_v58, %v4552_v16  ;;  %v6105_v16 = vld [vmem:[#allocation3 + $0x16c] sm:$0xf] }
 0x6c0   :  { %4479 = vmatmul.bf16.gmra.mxu1 %v10360_v1  ;;  %11835 = vst [vmem:[#allocation239_spill] sm:$0xff] %v10378_v39 }
 0x6c1   :  { %11828 = vst [vmem:[#allocation228_spill] sm:$0xff] %v10364_v62  ;;  %4593 = vmatmul.bf16.gmra.mxu3 %v10362_v26  ;;  %v5843_v26 = vld [vmem:[#allocation3 + $0x174] sm:$0xf0] }
 0x6c2   :  { %v10380_v43 = vor.u32 %v6105_v16, %v5843_v26 }
 0x6c4   :  { %v4554_v48 = vpop.f32.mrf.mxu3  ;;  %v4670_v22 = vpop.f32.mrf.mxu2  ;;  %11836 = vst [vmem:[#allocation236_spill] sm:$0xff] %v10380_v43 }
 0x6c5   :  { %v4555_v35 = vadd.f32 %v4554_v48, %v4440_v2  ;;  %v4442_v61 = vpop.f32.mrf.mxu1  ;;  %v11838_v2 = vld [vmem:[#allocation188_spill] sm:$0xff]  ;;  %v11841_v48 = vmax.f32 %v11840_v8, 0.0 }
 0x6c7   :  { %v10374_v58 = vadd.f32 %v4668_v50, %v4555_v35  ;;  %v11839_v50 = vmax.f32 %v11838_v2, 0.0  ;;  %v6108_v2 = vld [vmem:[#allocation3 + $0x184] sm:$0xf] }
 0x6c9   :  { %11834 = vst [vmem:[#allocation238_spill] sm:$0xff] %v10374_v58  ;;  %5926 = vmatmul.msk.bf16.gmra.mxu2 %vm998_vm0, %v10372_v34  ;;  %v4014_v35 = vpack.c.bf16 %v11841_v48, %v11839_v50  ;;  %v5861_v34 = vld [vmem:[#allocation3 + $0x188] sm:$0xf]  ;;  %v6110_v58 = vld [vmem:[#allocation3 + $0x190] sm:$0xf0] }
 0x6ca   :  { %v5855_v50 = vld [vmem:[#allocation3 + $0x18c] sm:$0xf0] }
 0x6cb   :  { %4978 = vmatpush.bf16.msra.mxu3 %v4014_v35  ;;  %v10398_v35 = vor.u32 %v6108_v2, %v5855_v50 }
 0x6cc   :  { %v4556_v29 = vpop.f32.mrf.mxu3  ;;  %v4673_v30 = vpop.f32.mrf.mxu2 }
 0x6cd   :  { %v4557_v62 = vadd.f32 %v4556_v29, %v4442_v61  ;;  %v4445_v4 = vpop.f32.mrf.mxu1  ;;  %v10390_v61 = vor.u32 %v6110_v58, %v5861_v34  ;;  %v6109_v29 = vld [vmem:[#allocation3 + $0x188] sm:$0xf0]  ;;  %11845 = vst [vmem:[#allocation155_spill] sm:$0xff] %v10398_v35 }
 0x6cf   :  { %v10382_v0 = vadd.f32 %v4670_v22, %v4557_v62  ;;  %11842 = vst [vmem:[#allocation234_spill] sm:$0xff] %v10390_v61  ;;  %v5853_v22 = vld [vmem:[#allocation3 + $0x180] sm:$0xf] }
 0x6d0   :  { %4484 = vmatmul.bf16.gmra.mxu1 %v10378_v39 }
 0x6d1   :  { %11837 = vst [vmem:[#allocation237_spill] sm:$0xff] %v10382_v0  ;;  %4598 = vmatmul.bf16.gmra.mxu3 %v10380_v43  ;;  %v10396_v0 = vor.u32 %v6109_v29, %v5853_v22  ;;  %v11849_v22 = vld [vmem:[#allocation180_spill] sm:$0xff]  ;;  %v11851_v29 = vld [vmem:[#allocation177_spill] sm:$0xff] }
 0x6d2   :  { %v11852_v2 = vmax.f32 %v11851_v29, 0.0  ;;  %v5885_v29 = vld [vmem:[#allocation3 + $0x1b8] sm:$0xf] }
 0x6d3   :  { %11844 = vst [vmem:[#allocation95_spill] sm:$0xff] %v10396_v0 }
 0x6d4   :  { %v4559_v26 = vpop.f32.mrf.mxu3  ;;  %v4675_v62 = vpop.f32.mrf.mxu2 }
 0x6d5   :  { %v4560_v19 = vadd.f32 %v4559_v26, %v4445_v4  ;;  %v4447_v32 = vpop.f32.mrf.mxu1  ;;  %v5873_v4 = vld [vmem:[#allocation3 + $0x1a0] sm:$0xf] }
 0x6d7   :  { %v10392_v16 = vadd.f32 %v4673_v30, %v4560_v19  ;;  %v6113_v30 = vld [vmem:[#allocation3 + $0x1a8] sm:$0xf0] }
 0x6d8   :  { %v10404_v19 = vor.u32 %v6113_v30, %v5873_v4 }
 0x6d9   :  { %11843 = vst [vmem:[#allocation235_spill] sm:$0xff] %v10392_v16  ;;  %5927 = vmatmul.msk.bf16.gmra.mxu2 %vm998_vm0, %v10390_v61 }
 0x6da   :  { %11847 = vst [vmem:[#allocation245_spill] sm:$0xff] %v10404_v19 }
 0x6dc   :  { %v4561_v8 = vpop.f32.mrf.mxu3  ;;  %v4678_v26 = vpop.f32.mrf.mxu2 }
 0x6dd   :  { %v4562_v48 = vadd.f32 %v4561_v8, %v4447_v32  ;;  %v4450_v34 = vpop.f32.mrf.mxu1  ;;  %v5865_v8 = vld [vmem:[#allocation3 + $0x198] sm:$0xf] }
 0x6df   :  { %v10400_v58 = vadd.f32 %v4675_v62, %v4562_v48  ;;  %v11850_v62 = vmax.f32 %v11849_v22, 0.0  ;;  %v6112_v48 = vld [vmem:[#allocation3 + $0x1a0] sm:$0xf0] }
 0x6e0   :  { %4489 = vmatmul.bf16.gmra.mxu1 %v10396_v0  ;;  %v11853_v0 = vld [vmem:[#allocation162_spill] sm:$0xff]  ;;  %v10418_v39 = vor.u32 %v6112_v48, %v5865_v8  ;;  %v11865_v8 = vld [vmem:[#allocation168_spill] sm:$0xff] }
 0x6e1   :  { %11846 = vst [vmem:[#allocation244_spill] sm:$0xff] %v10400_v58  ;;  %4603 = vmatmul.bf16.gmra.mxu3 %v10398_v35  ;;  %v3998_v50 = vpack.c.bf16 %v11852_v2, %v11850_v62  ;;  %v6111_v35 = vld [vmem:[#allocation3 + $0x19c] sm:$0xf]  ;;  %v5867_v58 = vld [vmem:[#allocation3 + $0x1a4] sm:$0xf0] }
 0x6e2   :  { %v6116_v2 = vld [vmem:[#allocation3 + $0x1c0] sm:$0xf0] }
 0x6e3   :  { %4864 = vmatpush.bf16.msra.mxu1 %v3998_v50  ;;  %v11858_v50 = vld [vmem:[#allocation183_spill] sm:$0xff] }
 0x6e4   :  { %v4564_v61 = vpop.f32.mrf.mxu3  ;;  %v4680_v30 = vpop.f32.mrf.mxu2  ;;  %v11859_v1 = vmax.f32 %v11858_v50, 0.0  ;;  %v11872_v50 = vld [vmem:[#allocation174_spill] sm:$0xff] }
 0x6e5   :  { %v4565_v16 = vadd.f32 %v4564_v61, %v4450_v34  ;;  %v4452_v43 = vpop.f32.mrf.mxu1  ;;  %v11854_v61 = vmax.f32 %v11853_v0, 0.0  ;;  %v11855_v34 = vld [vmem:[#allocation194_spill] sm:$0xff] }
 0x6e6   :  { %v3994_v24 = vpack.c.bf16 %v11861_v53, %v11859_v1  ;;  %v11869_v53 = vmax.f32 %v11868_v47, 0.0  ;;  %v11870_v1 = vld [vmem:[#allocation185_spill] sm:$0xff] }
 0x6e7   :  { %v10406_v32 = vadd.f32 %v4678_v26, %v4565_v16  ;;  %v11856_v16 = vmax.f32 %v11855_v34, 0.0  ;;  %v5877_v34 = vld [vmem:[#allocation3 + $0x1b0] sm:$0xf] }
 0x6e9   :  { %11848 = vst [vmem:[#allocation13_spill] sm:$0xff] %v10406_v32  ;;  %5928 = vmatmul.msk.bf16.gmra.mxu2 %vm998_vm0, %v10404_v19  ;;  %v3996_v26 = vpack.c.bf16 %v11856_v16, %v11854_v61  ;;  %v10420_v19 = vor.u32 %v6111_v35, %v5867_v58  ;;  %v11863_v35 = vld [vmem:[#allocation171_spill] sm:$0xff]  ;;  %v11871_v61 = vmax.f32 %v11870_v1, 0.0  ;;  %v6115_v16 = vld [vmem:[#allocation3 + $0x1b8] sm:$0xf0] }
 0x6ea   :  { %v11864_v58 = vmax.f32 %v11863_v35, 0.0  ;;  %v11873_v35 = vmax.f32 %v11872_v50, 0.0  ;;  %v6119_v1 = vld [vmem:[#allocation3 + $0x1d8] sm:$0xf0] }
 0x6eb   :  { %11857 = vst [vmem:[#allocation14_spill] sm:$0xff] %v10420_v19  ;;  %4743 = vmatpush.bf16.msra.mxu0 %v3996_v26  ;;  %v6114_v26 = vld [vmem:[#allocation3 + $0x1b4] sm:$0xf] }
 0x6ec   :  { %v4566_v4 = vpop.f32.mrf.mxu3 }
 0x6ed   :  { %v4567_v32 = vadd.f32 %v4566_v4, %v4452_v43  ;;  %v4455_v22 = vpop.f32.mrf.mxu1  ;;  %v10430_v43 = vor.u32 %v6116_v2, %v5885_v29  ;;  %v5879_v29 = vld [vmem:[#allocation3 + $0x1bc] sm:$0xf0] }
 0x6ef   :  { %v10422_v62 = vadd.f32 %v4680_v30, %v4567_v32  ;;  %4744 = vmatpush.bf16.msra.mxu0 %v3994_v24  ;;  %11862 = vst [vmem:[#allocation242_spill] sm:$0xff] %v10430_v43  ;;  %v11866_v32 = vmax.f32 %v11865_v8, 0.0  ;;  %v3990_v24 = vpack.c.bf16 %v11871_v61, %v11869_v53  ;;  %v5897_v53 = vld [vmem:[#allocation3 + $0x1d0] sm:$0xf] }
 0x6f0   :  { %4494 = vmatmul.bf16.gmra.mxu1 %v10418_v39  ;;  %v11876_v61 = vld [vmem:[#allocation164_spill] sm:$0xff] }
 0x6f1   :  { %4608 = vmatmul.bf16.gmra.mxu3 %v10420_v19  ;;  %v3992_v48 = vpack.c.bf16 %v11866_v32, %v11864_v58  ;;  %v10450_v32 = vor.u32 %v6115_v16, %v5877_v34  ;;  %v11880_v16 = vld [vmem:[#allocation123_spill] sm:$0xff] }
 0x6f3   :  { %4745 = vmatpush.bf16.msra.mxu0 %v3992_v48  ;;  %v10452_v48 = vor.u32 %v6114_v26, %v5879_v29  ;;  %v11881_v26 = vmax.f32 %v11880_v16, 0.0  ;;  %v11882_v29 = vld [vmem:[#allocation176_spill] sm:$0xff] }
 0x6f4   :  { %v4569_v0 = vpop.f32.mrf.mxu3 }
 0x6f5   :  { %v10436_v4 = vadd.f32 %v4569_v0, %v4455_v22  ;;  %v4457_v30 = vpop.f32.mrf.mxu1  ;;  %v11874_v22 = vld [vmem:[#allocation173_spill] sm:$0xff] }
 0x6f6   :  { %v11875_v0 = vmax.f32 %v11874_v22, 0.0 }
 0x6f7   :  { %11867 = vst [vmem:[#allocation243_spill] sm:$0xff] %v10436_v4  ;;  %4746 = vmatpush.bf16.msra.mxu0 %v3990_v24  ;;  %v11878_v4 = vld [vmem:[#allocation120_spill] sm:$0xff] }
 0x6f8   :  { %v3988_v58 = vpack.c.bf16 %v11875_v0, %v11873_v35  ;;  %v11879_v24 = vmax.f32 %v11878_v4, 0.0  ;;  %v11886_v0 = vld [vmem:[#allocation129_spill] sm:$0xff] }
 0x6f9   :  { %5929 = vmatmul.msk.bf16.gmra.mxu2 %vm998_vm0, %v10430_v43  ;;  %v11877_v43 = vmax.f32 %v11876_v61, 0.0  ;;  %v6117_v61 = vld [vmem:[#allocation3 + $0x1cc] sm:$0xf] }
 0x6fb   :  { %4747 = vmatpush.bf16.msra.mxu0 %v3988_v58  ;;  %v3986_v19 = vpack.c.bf16 %v11879_v24, %v11877_v43  ;;  %v11884_v43 = vld [vmem:[#allocation165_spill] sm:$0xff]  ;;  %v11887_v58 = vmax.f32 %v11886_v0, 0.0 }
 0x6fc   :  { %v4571_v2 = vpop.f32.mrf.mxu3  ;;  %v11885_v4 = vmax.f32 %v11884_v43, 0.0  ;;  %v5891_v24 = vld [vmem:[#allocation3 + $0x1d4] sm:$0xf0] }
 0x6fd   :  { %v10448_v8 = vadd.f32 %v4571_v2, %v4457_v30  ;;  %v4460_v47 = vpop.f32.mrf.mxu1  ;;  %v10460_v30 = vor.u32 %v6119_v1, %v5897_v53  ;;  %v11883_v2 = vmax.f32 %v11882_v29, 0.0  ;;  %v5889_v53 = vld [vmem:[#allocation3 + $0x1c8] sm:$0xf]  ;;  %v6118_v1 = vld [vmem:[#allocation3 + $0x1d0] sm:$0xf0] }
 0x6ff   :  { %4748 = vmatpush.bf16.msra.mxu0 %v3986_v19  ;;  %v3984_v50 = vpack.c.bf16 %v11883_v2, %v11881_v26  ;;  %v3982_v19 = vpack.c.bf16 %v11887_v58, %v11885_v4  ;;  %v5909_v2 = vld [vmem:[#allocation3 + $0x1e8] sm:$0xf]  ;;  %v5901_v58 = vld [vmem:[#allocation3 + $0x1e0] sm:$0xf] }
 0x700   :  { %4499 = vmatmul.bf16.gmra.mxu1 %v10450_v32 }
 0x701   :  { %4613 = vmatmul.bf16.gmra.mxu3 %v10452_v48 }
 0x703   :  { %4749 = vmatpush.bf16.msra.mxu0 %v3984_v50  ;;  %v6122_v50 = vld [vmem:[#allocation3 + $0x1f0] sm:$0xf0] }
 0x704   :  { %v4574_v34 = vpop.f32.mrf.mxu3  ;;  %v10483_v43 = vor.u32 %v6122_v50, %v5909_v2 }
 0x705   :  { %v10466_v35 = vadd.f32 %v4574_v34, %v4460_v47  ;;  %v4462_v22 = vpop.f32.mrf.mxu1  ;;  %v10476_v47 = vor.u32 %v6118_v1, %v5889_v53  ;;  %v10478_v34 = vor.u32 %v6117_v61, %v5891_v24  ;;  %v6120_v53 = vld [vmem:[#allocation3 + $0x1e4] sm:$0xf] }
 0x706   :  { %11888 = vst [vmem:[#allocation240_spill] sm:$0xff] %v10483_v43 }
 0x707   :  { %4750 = vmatpush.bf16.msra.mxu0 %v3982_v19  ;;  %v6121_v19 = vld [vmem:[#allocation3 + $0x1e8] sm:$0xf0] }
 0x708   :  { %v10491_v24 = vor.u32 %v6121_v19, %v5901_v58 }
 0x709   :  { %5930 = vmatmul.msk.bf16.gmra.mxu2 %vm998_vm0, %v10460_v30 }
 0x70a   :  { %4751 = vmatmul.bf16.vlgmr.msra.gmra.mxu0 %v10166_v15  ;;  %v5903_v15 = vld [vmem:[#allocation3 + $0x1ec] sm:$0xf0] }
 0x70c   :  { %v4576_v16 = vpop.f32.mrf.mxu3 }
 0x70d   :  { %v10474_v29 = vadd.f32 %v4576_v16, %v4462_v22  ;;  %v4465_v26 = vpop.f32.mrf.mxu1  ;;  %v10493_v16 = vor.u32 %v6120_v53, %v5903_v15 }
 0x710   :  { %4504 = vmatmul.bf16.gmra.mxu1 %v10476_v47 }
 0x711   :  { %4618 = vmatmul.bf16.gmra.mxu3 %v10478_v34 }
 0x714   :  { %v4579_v4 = vpop.f32.mrf.mxu3 }
 0x715   :  { %v10485_v0 = vadd.f32 %v4579_v4, %v4465_v26  ;;  %v4467_v22 = vpop.f32.mrf.mxu1 }
 0x717   :  { %11889 = vst [vmem:[#allocation241_spill] sm:$0xff] %v10485_v0 }
 0x719   :  { %5931 = vmatmul.msk.bf16.gmra.mxu2 %vm998_vm0, %v10483_v43 }
 0x71a   :  { %4756 = vmatmul.bf16.gmra.mxu0 %v10180_v3 }
 0x71c   :  { %v4581_v1 = vpop.f32.mrf.mxu3 }
 0x71d   :  { %v10489_v61 = vadd.f32 %v4581_v1, %v4467_v22  ;;  %v4470_v2 = vpop.f32.mrf.mxu1 }
 0x720   :  { %4509 = vmatmul.bf16.gmra.mxu1 %v10491_v24 }
 0x721   :  { %4623 = vmatmul.bf16.gmra.mxu3 %v10493_v16 }
 0x724   :  { %v4584_v26 = vpop.f32.mrf.mxu3 }
 0x725   :  { %v10498_v50 = vadd.f32 %v4584_v26, %v4470_v2  ;;  %v4472_v4 = vpop.f32.mrf.mxu1 }
 0x72a   :  { %4761 = vmatmul.bf16.gmra.mxu0 %v10190_v27 }
 0x72c   :  { %v4586_v43 = vpop.f32.mrf.mxu3 }
 0x72d   :  { %v10500_v0 = vadd.f32 %v4586_v43, %v4472_v4  ;;  %v4475_v22 = vpop.f32.mrf.mxu1 }
 0x730   :  { %4865 = vmatmul.bf16.vlgmr.msra.gmra.mxu1 %v10168_v37 }
 0x731   :  { %5932 = vmatmul.msk.bf16.vlgmr.msra.gmra.mxu3 %vm998_vm0, %v10140_v60 }
 0x734   :  { %v4589_v3 = vpop.f32.mrf.mxu3 }
 0x735   :  { %v10506_v58 = vadd.f32 %v4589_v3, %v4475_v22  ;;  %v4477_v19 = vpop.f32.mrf.mxu1 }
 0x73a   :  { %4766 = vmatmul.bf16.gmra.mxu0 %v10204_v38 }
 0x73c   :  { %v4591_v53 = vpop.f32.mrf.mxu3 }
 0x73d   :  { %v10508_v15 = vadd.f32 %v4591_v53, %v4477_v19  ;;  %v4480_v1 = vpop.f32.mrf.mxu1 }
 0x740   :  { %4870 = vmatmul.bf16.gmra.mxu1 %v10182_v41 }
 0x741   :  { %5933 = vmatmul.msk.bf16.gmra.mxu3 %vm998_vm0, %v10176_v23 }
 0x744   :  { %v4594_v27 = vpop.f32.mrf.mxu3 }
 0x745   :  { %v10514_v37 = vadd.f32 %v4594_v27, %v4480_v1  ;;  %v4482_v43 = vpop.f32.mrf.mxu1 }
 0x74a   :  { %4771 = vmatmul.bf16.gmra.mxu0 %v10218_v42 }
 0x74c   :  { %v4596_v60 = vpop.f32.mrf.mxu3 }
 0x74d   :  { %v10516_v2 = vadd.f32 %v4596_v60, %v4482_v43  ;;  %v4485_v26 = vpop.f32.mrf.mxu1 }
 0x750   :  { %4875 = vmatmul.bf16.gmra.mxu1 %v10192_v6 }
 0x751   :  { %5934 = vmatmul.msk.bf16.gmra.mxu3 %vm998_vm0, %v10186_v46 }
 0x754   :  { %v4599_v38 = vpop.f32.mrf.mxu3 }
 0x755   :  { %v10522_v41 = vadd.f32 %v4599_v38, %v4485_v26  ;;  %v4487_v4 = vpop.f32.mrf.mxu1 }
 0x75a   :  { %4776 = vmatmul.bf16.gmra.mxu0 %v10228_v57 }
 0x75c   :  { %v4601_v23 = vpop.f32.mrf.mxu3 }
 0x75d   :  { %v10524_v22 = vadd.f32 %v4601_v23, %v4487_v4  ;;  %v4490_v3 = vpop.f32.mrf.mxu1 }
 0x760   :  { %4880 = vmatmul.bf16.gmra.mxu1 %v10206_v13 }
 0x761   :  { %5935 = vmatmul.msk.bf16.gmra.mxu3 %vm998_vm0, %v10200_v56 }
 0x764   :  { %v4604_v42 = vpop.f32.mrf.mxu3 }
 0x765   :  { %v10530_v6 = vadd.f32 %v4604_v42, %v4490_v3  ;;  %v4492_v19 = vpop.f32.mrf.mxu1 }
 0x76a   :  { %4781 = vmatmul.bf16.gmra.mxu0 %v10238_v18 }
 0x76c   :  { %v4606_v46 = vpop.f32.mrf.mxu3 }
 0x76d   :  { %v10532_v53 = vadd.f32 %v4606_v46, %v4492_v19  ;;  %v4495_v1 = vpop.f32.mrf.mxu1 }
 0x770   :  { %4885 = vmatmul.bf16.gmra.mxu1 %v10220_v28 }
 0x771   :  { %5936 = vmatmul.msk.bf16.gmra.mxu3 %vm998_vm0, %v10214_v10 }
 0x774   :  { %v4609_v57 = vpop.f32.mrf.mxu3 }
 0x775   :  { %v10538_v13 = vadd.f32 %v4609_v57, %v4495_v1  ;;  %v4497_v27 = vpop.f32.mrf.mxu1 }
 0x77a   :  { %4786 = vmatmul.bf16.gmra.mxu0 %v10256_v20 }
 0x77c   :  { %v4611_v56 = vpop.f32.mrf.mxu3 }
 0x77d   :  { %v10540_v43 = vadd.f32 %v4611_v56, %v4497_v27  ;;  %v4500_v60 = vpop.f32.mrf.mxu1 }
 0x780   :  { %4890 = vmatmul.bf16.gmra.mxu1 %v10230_v31 }
 0x781   :  { %5937 = vmatmul.msk.bf16.gmra.mxu3 %vm998_vm0, %v10224_v51 }
 0x784   :  { %v4614_v18 = vpop.f32.mrf.mxu3 }
 0x785   :  { %v10546_v28 = vadd.f32 %v4614_v18, %v4500_v60  ;;  %v4502_v26 = vpop.f32.mrf.mxu1 }
 0x787   :  { %v4752_v10 = vpop.f32.mrf.mxu0 }
 0x78a   :  { %4791 = vmatmul.bf16.gmra.mxu0 %v10266_v63 }
 0x78c   :  { %v4616_v38 = vpop.f32.mrf.mxu3 }
 0x78d   :  { %v10548_v4 = vadd.f32 %v4616_v38, %v4502_v26  ;;  %v4505_v23 = vpop.f32.mrf.mxu1 }
 0x78f   :  { %v4754_v31 = vpop.f32.mrf.mxu0 }
 0x790   :  { %4895 = vmatmul.bf16.gmra.mxu1 %v10240_v11 }
 0x791   :  { %5938 = vmatmul.msk.bf16.gmra.mxu3 %vm998_vm0, %v10234_v12 }
 0x794   :  { %v4619_v20 = vpop.f32.mrf.mxu3 }
 0x795   :  { %v10554_v3 = vadd.f32 %v4619_v20, %v4505_v23  ;;  %v4507_v51 = vpop.f32.mrf.mxu1 }
 0x797   :  { %v4757_v42 = vpop.f32.mrf.mxu0 }
 0x79a   :  { %4796 = vmatmul.bf16.gmra.mxu0 %v10278_v14 }
 0x79c   :  { %v4621_v19 = vpop.f32.mrf.mxu3 }
 0x79d   :  { %v10556_v46 = vadd.f32 %v4621_v19, %v4507_v51  ;;  %v4510_v1 = vpop.f32.mrf.mxu1 }
 0x79f   :  { %v4759_v11 = vpop.f32.mrf.mxu0 }
 0x7a0   :  { %4900 = vmatmul.bf16.gmra.mxu1 %v10258_v5 }
 0x7a1   :  { %5939 = vmatmul.msk.bf16.gmra.mxu3 %vm998_vm0, %v10248_v49 }
 0x7a4   :  { %v4624_v63 = vpop.f32.mrf.mxu3 }
 0x7a5   :  { %v10562_v12 = vadd.f32 %v4624_v63, %v4510_v1  ;;  %v4512_v57 = vpop.f32.mrf.mxu1 }
 0x7a7   :  { %v4762_v27 = vpop.f32.mrf.mxu0 }
 0x7aa   :  { %4801 = vmatmul.bf16.gmra.mxu0 %v10296_v59 }
 0x7ac   :  { %v4626_v56 = vpop.f32.mrf.mxu3 }
 0x7ad   :  { %v10564_v60 = vadd.f32 %v4626_v56, %v4512_v57  ;;  %v4866_v18 = vpop.f32.mrf.mxu1 }
 0x7ae   :  { %v4867_v26 = vadd.f32 %v4866_v18, %v4752_v10 }
 0x7af   :  { %v4764_v5 = vpop.f32.mrf.mxu0 }
 0x7b0   :  { %4905 = vmatmul.bf16.gmra.mxu1 %v10268_v33 }
 0x7b1   :  { %5940 = vmatmul.msk.bf16.gmra.mxu3 %vm998_vm0, %v10262_v21 }
 0x7b4   :  { %v4980_v49 = vpop.f32.mrf.mxu3 }
 0x7b5   :  { %v4981_v14 = vadd.f32 %v4980_v49, %v4867_v26  ;;  %v4868_v23 = vpop.f32.mrf.mxu1 }
 0x7b6   :  { %v4869_v21 = vadd.f32 %v4868_v23, %v4754_v31 }
 0x7b7   :  { %v5085_v20 = vpack.c.bf16 %v4981_v14, %v10274_v7  ;;  %v4767_v33 = vpop.f32.mrf.mxu0 }
 0x7b9   :  { %5130 = vst.msk [vmem:[%s10878_s6] sm:$0xff] %vm10570_vm14, %v5085_v20 }
 0x7ba   :  { %4806 = vmatmul.bf16.gmra.mxu0 %v10314_v25 }
 0x7bc   :  { %v4982_v59 = vpop.f32.mrf.mxu3 }
 0x7bd   :  { %v4983_v10 = vadd.f32 %v4982_v59, %v4869_v21  ;;  %v4871_v51 = vpop.f32.mrf.mxu1 }
 0x7be   :  { %v4872_v7 = vadd.f32 %v4871_v51, %v4757_v42  ;;  %v11895_v51 = vld [vmem:[#allocation220_spill] sm:$0xff] }
 0x7bf   :  { %v5086_v19 = vpack.c.bf16 %v4983_v10, %v10286_v36  ;;  %v4769_v31 = vpop.f32.mrf.mxu0  ;;  %v11894_v10 = vld [vmem:[#allocation221_spill] sm:$0xff] }
 0x7c0   :  { %4910 = vmatmul.bf16.gmra.mxu1 %v10280_v55 }
 0x7c1   :  { %5131 = vst.msk [vmem:[%s10878_s6 + $0x8] sm:$0xff] %vm10570_vm14, %v5086_v19  ;;  %5941 = vmatmul.msk.bf16.gmra.mxu3 %vm998_vm0, %v10272_v9 }
 0x7c4   :  { %v4985_v1 = vpop.f32.mrf.mxu3 }
 0x7c5   :  { %v4986_v63 = vadd.f32 %v4985_v1, %v4872_v7  ;;  %v4873_v57 = vpop.f32.mrf.mxu1 }
 0x7c6   :  { %v4874_v56 = vadd.f32 %v4873_v57, %v4759_v11 }
 0x7c7   :  { %v5087_v25 = vpack.c.bf16 %v4986_v63, %v10292_v17  ;;  %v4772_v36 = vpop.f32.mrf.mxu0  ;;  %v11896_v63 = vld [vmem:[#allocation215_spill] sm:$0xff] }
 0x7c9   :  { %5132 = vst.msk [vmem:[%s10878_s6 + $0x10] sm:$0xff] %vm10570_vm14, %v5087_v25 }
 0x7ca   :  { %4811 = vmatmul.bf16.gmra.mxu0 %v10332_v44 }
 0x7cc   :  { %v4987_v42 = vpop.f32.mrf.mxu3 }
 0x7cd   :  { %v4988_v18 = vadd.f32 %v4987_v42, %v4874_v56  ;;  %v4876_v55 = vpop.f32.mrf.mxu1 }
 0x7ce   :  { %v4877_v17 = vadd.f32 %v4876_v55, %v4762_v27 }
 0x7cf   :  { %v5088_v9 = vpack.c.bf16 %v4988_v18, %v10300_v52  ;;  %v4774_v11 = vpop.f32.mrf.mxu0  ;;  %v11897_v18 = vld [vmem:[#allocation230_spill] sm:$0xff] }
 0x7d0   :  { %4915 = vmatmul.bf16.gmra.mxu1 %v10298_v45  ;;  %v11892_v45 = vld [vmem:[#allocation225_spill] sm:$0xff] }
 0x7d1   :  { %5133 = vst.msk [vmem:[%s10878_s6 + $0x18] sm:$0xff] %vm10570_vm14, %v5088_v9  ;;  %5942 = vmatmul.msk.bf16.gmra.mxu3 %vm998_vm0, %v10290_v40  ;;  %v11893_v40 = vld [vmem:[#allocation218_spill] sm:$0xff] }
 0x7d2   :  { %v11898_v9 = vld [vmem:[#allocation226_spill] sm:$0xff] }
 0x7d4   :  { %v4990_v26 = vpop.f32.mrf.mxu3 }
 0x7d5   :  { %v4991_v49 = vadd.f32 %v4990_v26, %v4877_v17  ;;  %v4878_v14 = vpop.f32.mrf.mxu1 }
 0x7d6   :  { %v4879_v23 = vadd.f32 %v4878_v14, %v4764_v5  ;;  %v11900_v14 = vld [vmem:[#allocation219_spill] sm:$0xff] }
 0x7d7   :  { %v5089_v44 = vpack.c.bf16 %v4991_v49, %v10306_v54  ;;  %v4777_v52 = vpop.f32.mrf.mxu0  ;;  %v11899_v49 = vld [vmem:[#allocation216_spill] sm:$0xff] }
 0x7d9   :  { %5134 = vst.msk [vmem:[%s10878_s6 + $0x20] sm:$0xff] %vm10570_vm14, %v5089_v44 }
 0x7da   :  { %4816 = vmatmul.bf16.gmra.mxu0 %v11892_v45 }
 0x7dc   :  { %v4992_v27 = vpop.f32.mrf.mxu3 }
 0x7dd   :  { %v4993_v20 = vadd.f32 %v4992_v27, %v4879_v23  ;;  %v4881_v21 = vpop.f32.mrf.mxu1 }
 0x7de   :  { %v4882_v54 = vadd.f32 %v4881_v21, %v4767_v33 }
 0x7df   :  { %v5090_v59 = vpack.c.bf16 %v4993_v20, %v11893_v40  ;;  %v4779_v5 = vpop.f32.mrf.mxu0  ;;  %v11901_v20 = vld [vmem:[#allocation224_spill] sm:$0xff] }
 0x7e0   :  { %4920 = vmatmul.bf16.gmra.mxu1 %v11894_v10 }
 0x7e1   :  { %5135 = vst.msk [vmem:[%s10878_s6 + $0x28] sm:$0xff] %vm10570_vm14, %v5090_v59  ;;  %5943 = vmatmul.msk.bf16.gmra.mxu3 %vm998_vm0, %v11895_v51  ;;  %v11903_v51 = vld [vmem:[#allocation223_spill] sm:$0xff] }
 0x7e4   :  { %v4995_v19 = vpop.f32.mrf.mxu3 }
 0x7e5   :  { %v4996_v7 = vadd.f32 %v4995_v19, %v4882_v54  ;;  %v4883_v1 = vpop.f32.mrf.mxu1  ;;  %v11902_v54 = vld [vmem:[#allocation239_spill] sm:$0xff] }
 0x7e6   :  { %v4884_v56 = vadd.f32 %v4883_v1, %v4769_v31  ;;  %v11904_v1 = vld [vmem:[#allocation222_spill] sm:$0xff] }
 0x7e7   :  { %v5091_v57 = vpack.c.bf16 %v4996_v7, %v11896_v63  ;;  %v4782_v25 = vpop.f32.mrf.mxu0  ;;  %v11905_v63 = vld [vmem:[#allocation227_spill] sm:$0xff] }
 0x7e9   :  { %5136 = vst.msk [vmem:[%s10878_s6 + $0x30] sm:$0xff] %vm10570_vm14, %v5091_v57 }
 0x7ea   :  { %4821 = vmatmul.bf16.gmra.mxu0 %v11897_v18 }
 0x7ec   :  { %v4997_v33 = vpop.f32.mrf.mxu3 }
 0x7ed   :  { %v4998_v42 = vadd.f32 %v4997_v33, %v4884_v56  ;;  %v4886_v55 = vpop.f32.mrf.mxu1 }
 0x7ee   :  { %v4887_v26 = vadd.f32 %v4886_v55, %v4772_v36 }
 0x7ef   :  { %v5092_v17 = vpack.c.bf16 %v4998_v42, %v11898_v9  ;;  %v4784_v31 = vpop.f32.mrf.mxu0  ;;  %v11906_v42 = vld [vmem:[#allocation233_spill] sm:$0xff] }
 0x7f0   :  { %4925 = vmatmul.bf16.gmra.mxu1 %v11899_v49 }
 0x7f1   :  { %5137 = vst.msk [vmem:[%s10878_s6 + $0x38] sm:$0xff] %vm10570_vm14, %v5092_v17  ;;  %5944 = vmatmul.msk.bf16.gmra.mxu3 %vm998_vm0, %v11900_v14  ;;  %v11908_v14 = vld [vmem:[#allocation228_spill] sm:$0xff] }
 0x7f4   :  { %v5000_v44 = vpop.f32.mrf.mxu3 }
 0x7f5   :  { %v5001_v23 = vadd.f32 %v5000_v44, %v4887_v26  ;;  %v4888_v27 = vpop.f32.mrf.mxu1  ;;  %v11907_v26 = vld [vmem:[#allocation95_spill] sm:$0xff] }
 0x7f6   :  { %v4889_v40 = vadd.f32 %v4888_v27, %v4774_v11  ;;  %v11909_v27 = vld [vmem:[#allocation231_spill] sm:$0xff] }
 0x7f7   :  { %v5093_v45 = vpack.c.bf16 %v5001_v23, %v11901_v20  ;;  %v4787_v21 = vpop.f32.mrf.mxu0  ;;  %v11910_v20 = vld [vmem:[#allocation232_spill] sm:$0xff] }
 0x7f9   :  { %5138 = vst.msk [vmem:[%s10878_s6 + $0x40] sm:$0xff] %vm10570_vm14, %v5093_v45  ;;  %v4683_v45 = vpop.f32.mrf.mxu2 }
 0x7fa   :  { %4826 = vmatmul.bf16.gmra.mxu0 %v11902_v54  ;;  %v11911_v54 = vld [vmem:[#allocation238_spill] sm:$0xff] }
 0x7fc   :  { %v5002_v36 = vpop.f32.mrf.mxu3 }
 0x7fd   :  { %v5003_v59 = vadd.f32 %v5002_v36, %v4889_v40  ;;  %v4891_v10 = vpop.f32.mrf.mxu1 }
 0x7fe   :  { %v4892_v7 = vadd.f32 %v4891_v10, %v4777_v52 }
 0x7ff   :  { %v5094_v19 = vpack.c.bf16 %v5003_v59, %v11903_v51  ;;  %v4789_v11 = vpop.f32.mrf.mxu0 }
 0x800   :  { %4930 = vmatmul.bf16.gmra.mxu1 %v11904_v1 }
 0x801   :  { %5139 = vst.msk [vmem:[%s10878_s6 + $0x48] sm:$0xff] %vm10570_vm14, %v5094_v19  ;;  %5945 = vmatmul.msk.bf16.gmra.mxu3 %vm998_vm0, %v11905_v63 }
 0x804   :  { %v5005_v57 = vpop.f32.mrf.mxu3 }
 0x805   :  { %v5006_v56 = vadd.f32 %v5005_v57, %v4892_v7  ;;  %v4893_v33 = vpop.f32.mrf.mxu1  ;;  %v4685_v7 = vpop.f32.mrf.mxu2  ;;  %v11912_v57 = vld [vmem:[#allocation237_spill] sm:$0xff] }
 0x806   :  { %v4894_v9 = vadd.f32 %v4893_v33, %v4779_v5 }
 0x807   :  { %v5095_v18 = vpack.c.bf16 %v5006_v56, %v11906_v42  ;;  %v4792_v55 = vpop.f32.mrf.mxu0  ;;  %v11913_v42 = vld [vmem:[#allocation236_spill] sm:$0xff] }
 0x809   :  { %5140 = vst.msk [vmem:[%s10878_s6 + $0x50] sm:$0xff] %vm10570_vm14, %v5095_v18  ;;  %v11914_v18 = vld [vmem:[#allocation229_spill] sm:$0xff] }
 0x80a   :  { %4831 = vmatmul.bf16.gmra.mxu0 %v11907_v26  ;;  %v11915_v26 = vld [vmem:[#allocation235_spill] sm:$0xff] }
 0x80c   :  { %v5007_v52 = vpop.f32.mrf.mxu3 }
 0x80d   :  { %v5008_v17 = vadd.f32 %v5007_v52, %v4894_v9  ;;  %v4896_v49 = vpop.f32.mrf.mxu1 }
 0x80e   :  { %v4897_v23 = vadd.f32 %v4896_v49, %v4782_v25 }
 0x80f   :  { %v5096_v44 = vpack.c.bf16 %v5008_v17, %v11908_v14  ;;  %v4794_v5 = vpop.f32.mrf.mxu0 }
 0x810   :  { %4935 = vmatmul.bf16.gmra.mxu1 %v11909_v27 }
 0x811   :  { %5141 = vst.msk [vmem:[%s10878_s6 + $0x58] sm:$0xff] %vm10570_vm14, %v5096_v44  ;;  %5946 = vmatmul.msk.bf16.gmra.mxu3 %vm998_vm0, %v11910_v20  ;;  %v11916_v20 = vld [vmem:[#allocation244_spill] sm:$0xff] }
 0x814   :  { %v5010_v40 = vpop.f32.mrf.mxu3 }
 0x815   :  { %v5011_v36 = vadd.f32 %v5010_v40, %v4897_v23  ;;  %v4898_v59 = vpop.f32.mrf.mxu1 }
 0x816   :  { %v4899_v25 = vadd.f32 %v4898_v59, %v4784_v31 }
 0x817   :  { %v5097_v10 = vpack.c.bf16 %v5011_v36, %v11911_v54  ;;  %v4797_v51 = vpop.f32.mrf.mxu0  ;;  %v11917_v54 = vld [vmem:[#allocation155_spill] sm:$0xff] }
 0x819   :  { %5142 = vst.msk [vmem:[%s10878_s6 + $0x60] sm:$0xff] %vm10570_vm14, %v5097_v10  ;;  %v11918_v10 = vld [vmem:[#allocation234_spill] sm:$0xff] }
 0x81a   :  { %4836 = vmatmul.bf16.gmra.mxu0 %v10418_v39  ;;  %v4688_v39 = vpop.f32.mrf.mxu2 }
 0x81c   :  { %v5012_v19 = vpop.f32.mrf.mxu3 }
 0x81d   :  { %v5013_v1 = vadd.f32 %v5012_v19, %v4899_v25  ;;  %v4901_v63 = vpop.f32.mrf.mxu1 }
 0x81e   :  { %v4902_v33 = vadd.f32 %v4901_v63, %v4787_v21 }
 0x81f   :  { %v5098_v56 = vpack.c.bf16 %v5013_v1, %v11912_v57  ;;  %v4799_v31 = vpop.f32.mrf.mxu0  ;;  %v11919_v1 = vld [vmem:[#allocation13_spill] sm:$0xff] }
 0x820   :  { %4940 = vmatmul.bf16.gmra.mxu1 %v11913_v42 }
 0x821   :  { %5143 = vst.msk [vmem:[%s10878_s6 + $0x68] sm:$0xff] %vm10570_vm14, %v5098_v56  ;;  %5947 = vmatmul.msk.bf16.gmra.mxu3 %vm998_vm0, %v11914_v18 }
 0x822   :  { %v4690_v36 = vpop.f32.mrf.mxu2 }
 0x824   :  { %v5015_v9 = vpop.f32.mrf.mxu3 }
 0x825   :  { %v5016_v52 = vadd.f32 %v5015_v9, %v4902_v33  ;;  %v4903_v17 = vpop.f32.mrf.mxu1 }
 0x826   :  { %v4904_v21 = vadd.f32 %v4903_v17, %v4789_v11  ;;  %v11920_v17 = vld [vmem:[#allocation14_spill] sm:$0xff] }
 0x827   :  { %v5099_v49 = vpack.c.bf16 %v5016_v52, %v11915_v26  ;;  %v4802_v14 = vpop.f32.mrf.mxu0  ;;  %v11921_v26 = vld [vmem:[#allocation245_spill] sm:$0xff] }
 0x829   :  { %5144 = vst.msk [vmem:[%s10878_s6 + $0x70] sm:$0xff] %vm10570_vm14, %v5099_v49  ;;  %v11922_v49 = vld [vmem:[#allocation243_spill] sm:$0xff] }
 0x82a   :  { %4841 = vmatmul.bf16.gmra.mxu0 %v10450_v32  ;;  %v4693_v57 = vpop.f32.mrf.mxu2 }
 0x82c   :  { %v5017_v44 = vpop.f32.mrf.mxu3 }
 0x82d   :  { %v5018_v23 = vadd.f32 %v5017_v44, %v4904_v21  ;;  %v4906_v27 = vpop.f32.mrf.mxu1  ;;  %v4684_v21 = vadd.f32 %v4683_v45, %v11922_v49 }
 0x82e   :  { %v4907_v59 = vadd.f32 %v4906_v27, %v4792_v55 }
 0x82f   :  { %v5100_v40 = vpack.c.bf16 %v5018_v23, %v11916_v20  ;;  %v4804_v11 = vpop.f32.mrf.mxu0 }
 0x830   :  { %4945 = vmatmul.bf16.gmra.mxu1 %v11917_v54 }
 0x831   :  { %5145 = vst.msk [vmem:[%s10878_s6 + $0x78] sm:$0xff] %vm10570_vm14, %v5100_v40  ;;  %5948 = vmatmul.msk.bf16.gmra.mxu3 %vm998_vm0, %v11918_v10  ;;  %v4686_v40 = vadd.f32 %v4685_v7, %v10448_v8  ;;  %v4689_v7 = vadd.f32 %v4688_v39, %v10466_v35 }
 0x832   :  { %v4695_v44 = vpop.f32.mrf.mxu2 }
 0x834   :  { %v5020_v25 = vpop.f32.mrf.mxu3 }
 0x835   :  { %v5021_v19 = vadd.f32 %v5020_v25, %v4907_v59  ;;  %v4908_v32 = vpop.f32.mrf.mxu1 }
 0x836   :  { %v4909_v56 = vadd.f32 %v4908_v32, %v4794_v5 }
 0x837   :  { %v5101_v63 = vpack.c.bf16 %v5021_v19, %v11919_v1  ;;  %v4807_v33 = vpop.f32.mrf.mxu0 }
 0x839   :  { %5146 = vst.msk [vmem:[%s10878_s6 + $0x80] sm:$0xff] %vm10570_vm14, %v5101_v63 }
 0x83a   :  { %4846 = vmatmul.bf16.gmra.mxu0 %v10476_v47  ;;  %v4698_v45 = vpop.f32.mrf.mxu2 }
 0x83c   :  { %v5022_v55 = vpop.f32.mrf.mxu3 }
 0x83d   :  { %v5023_v42 = vadd.f32 %v5022_v55, %v4909_v56  ;;  %v4911_v18 = vpop.f32.mrf.mxu1 }
 0x83e   :  { %v4912_v52 = vadd.f32 %v4911_v18, %v4797_v51 }
 0x83f   :  { %v5102_v9 = vpack.c.bf16 %v5023_v42, %v10422_v62  ;;  %v4809_v27 = vpop.f32.mrf.mxu0 }
 0x840   :  { %4950 = vmatmul.bf16.gmra.mxu1 %v11920_v17  ;;  %v11924_v17 = vld [vmem:[#allocation241_spill] sm:$0xff] }
 0x841   :  { %5147 = vst.msk [vmem:[%s10878_s6 + $0x88] sm:$0xff] %vm10570_vm14, %v5102_v9  ;;  %5949 = vmatmul.msk.bf16.gmra.mxu3 %vm998_vm0, %v11921_v26 }
 0x842   :  { %v4700_v63 = vpop.f32.mrf.mxu2 }
 0x844   :  { %v5025_v5 = vpop.f32.mrf.mxu3 }
 0x845   :  { %v5026_v47 = vadd.f32 %v5025_v5, %v4912_v52  ;;  %v4913_v23 = vpop.f32.mrf.mxu1 }
 0x846   :  { %v4914_v51 = vadd.f32 %v4913_v23, %v4799_v31  ;;  %v11923_v31 = vld [vmem:[#allocation242_spill] sm:$0xff] }
 0x847   :  { %v5103_v62 = vpack.c.bf16 %v5026_v47, %v4684_v21  ;;  %v4812_v25 = vpop.f32.mrf.mxu0 }
 0x849   :  { %5148 = vst.msk [vmem:[%s10878_s6 + $0x90] sm:$0xff] %vm10570_vm14, %v5103_v62 }
 0x84a   :  { %4851 = vmatmul.bf16.gmra.mxu0 %v10491_v24  ;;  %v4703_v39 = vpop.f32.mrf.mxu2 }
 0x84c   :  { %v5027_v20 = vpop.f32.mrf.mxu3 }
 0x84d   :  { %v5028_v59 = vadd.f32 %v5027_v20, %v4914_v51  ;;  %v4916_v54 = vpop.f32.mrf.mxu1  ;;  %v11925_v51 = vld [vmem:[#allocation240_spill] sm:$0xff] }
 0x84e   :  { %v4917_v19 = vadd.f32 %v4916_v54, %v4802_v14 }
 0x84f   :  { %v5104_v10 = vpack.c.bf16 %v5028_v59, %v4686_v40  ;;  %v4814_v56 = vpop.f32.mrf.mxu0 }
 0x850   :  { %4955 = vmatmul.bf16.gmra.mxu1 %v10452_v48  ;;  %v4691_v48 = vadd.f32 %v4690_v36, %v10474_v29  ;;  %v4694_v29 = vadd.f32 %v4693_v57, %v11924_v17 }
 0x851   :  { %5149 = vst.msk [vmem:[%s10878_s6 + $0x98] sm:$0xff] %vm10570_vm14, %v5104_v10  ;;  %5950 = vmatmul.msk.bf16.gmra.mxu3 %vm998_vm0, %v11923_v31 }
 0x852   :  { %v4705_v21 = vpop.f32.mrf.mxu2 }
 0x854   :  { %v5030_v8 = vpop.f32.mrf.mxu3 }
 0x855   :  { %v5031_v24 = vadd.f32 %v5030_v8, %v4917_v19  ;;  %v4918_v32 = vpop.f32.mrf.mxu1 }
 0x856   :  { %v4919_v14 = vadd.f32 %v4918_v32, %v4804_v11  ;;  %v4704_v32 = vadd.f32 %v4703_v39, %v10506_v58 }
 0x857   :  { %v5105_v1 = vpack.c.bf16 %v5031_v24, %v4689_v7  ;;  %v4817_v52 = vpop.f32.mrf.mxu0 }
 0x859   :  { %5150 = vst.msk [vmem:[%s10878_s6 + $0xa0] sm:$0xff] %vm10570_vm14, %v5105_v1 }
 0x85a   :  { %v4708_v40 = vpop.f32.mrf.mxu2 }
 0x85c   :  { %v5032_v55 = vpop.f32.mrf.mxu3 }
 0x85d   :  { %v5033_v42 = vadd.f32 %v5032_v55, %v4919_v14  ;;  %v4921_v18 = vpop.f32.mrf.mxu1 }
 0x85e   :  { %v4922_v35 = vadd.f32 %v4921_v18, %v4807_v33 }
 0x85f   :  { %v5106_v9 = vpack.c.bf16 %v5033_v42, %v4691_v48  ;;  %v4819_v23 = vpop.f32.mrf.mxu0  ;;  %v4706_v42 = vadd.f32 %v4705_v21, %v10508_v15 }
 0x860   :  { %4960 = vmatmul.bf16.gmra.mxu1 %v10478_v34  ;;  %v4696_v34 = vadd.f32 %v4695_v44, %v10489_v61  ;;  %v4699_v61 = vadd.f32 %v4698_v45, %v10498_v50 }
 0x861   :  { %5151 = vst.msk [vmem:[%s10878_s6 + $0xa8] sm:$0xff] %vm10570_vm14, %v5106_v9  ;;  %5951 = vmatmul.msk.bf16.gmra.mxu3 %vm998_vm0, %v10460_v30 }
 0x862   :  { %v4710_v7 = vpop.f32.mrf.mxu2 }
 0x864   :  { %v5035_v11 = vpop.f32.mrf.mxu3 }
 0x865   :  { %v5036_v36 = vadd.f32 %v5035_v11, %v4922_v35  ;;  %v4923_v26 = vpop.f32.mrf.mxu1  ;;  %v4709_v11 = vadd.f32 %v4708_v40, %v10514_v37 }
 0x866   :  { %v4924_v33 = vadd.f32 %v4923_v26, %v4809_v27 }
 0x867   :  { %v5107_v5 = vpack.c.bf16 %v5036_v36, %v4694_v29  ;;  %v4822_v54 = vpop.f32.mrf.mxu0 }
 0x869   :  { %5152 = vst.msk [vmem:[%s10878_s6 + $0xb0] sm:$0xff] %vm10570_vm14, %v5107_v5 }
 0x86c   :  { %v5037_v49 = vpop.f32.mrf.mxu3 }
 0x86d   :  { %v5038_v30 = vadd.f32 %v5037_v49, %v4924_v33  ;;  %v4926_v47 = vpop.f32.mrf.mxu1  ;;  %v4711_v33 = vadd.f32 %v4710_v7, %v10516_v2 }
 0x86e   :  { %v4927_v57 = vadd.f32 %v4926_v47, %v4812_v25 }
 0x86f   :  { %v5108_v62 = vpack.c.bf16 %v5038_v30, %v4696_v34  ;;  %v4824_v45 = vpop.f32.mrf.mxu0 }
 0x870   :  { %4965 = vmatmul.bf16.gmra.mxu1 %v10493_v16  ;;  %v4701_v16 = vadd.f32 %v4700_v63, %v10500_v0  ;;  %v4713_v0 = vpop.f32.mrf.mxu2 }
 0x871   :  { %5153 = vst.msk [vmem:[%s10878_s6 + $0xb8] sm:$0xff] %vm10570_vm14, %v5108_v62  ;;  %5952 = vmatmul.msk.bf16.gmra.mxu3 %vm998_vm0, %v11925_v51  ;;  %v4714_v62 = vadd.f32 %v4713_v0, %v10522_v41 }
 0x874   :  { %v5040_v27 = vpop.f32.mrf.mxu3 }
 0x875   :  { %v5041_v44 = vadd.f32 %v5040_v27, %v4927_v57  ;;  %v4928_v20 = vpop.f32.mrf.mxu1 }
 0x876   :  { %v4929_v10 = vadd.f32 %v4928_v20, %v4814_v56 }
 0x877   :  { %v5109_v59 = vpack.c.bf16 %v5041_v44, %v4699_v61  ;;  %v4827_v48 = vpop.f32.mrf.mxu0 }
 0x879   :  { %5154 = vst.msk [vmem:[%s10878_s6 + $0xc0] sm:$0xff] %vm10570_vm14, %v5109_v59 }
 0x87c   :  { %v5042_v25 = vpop.f32.mrf.mxu3 }
 0x87d   :  { %v5043_v19 = vadd.f32 %v5042_v25, %v4929_v10  ;;  %v4931_v31 = vpop.f32.mrf.mxu1 }
 0x87e   :  { %v4932_v50 = vadd.f32 %v4931_v31, %v4817_v52  ;;  %v4715_v52 = vpop.f32.mrf.mxu2 }
 0x87f   :  { %v5110_v8 = vpack.c.bf16 %v5043_v19, %v4701_v16  ;;  %v4829_v36 = vpop.f32.mrf.mxu0  ;;  %v4716_v40 = vadd.f32 %v4715_v52, %v10524_v22 }
 0x881   :  { %5155 = vst.msk [vmem:[%s10878_s6 + $0xc8] sm:$0xff] %vm10570_vm14, %v5110_v8 }
 0x884   :  { %v5045_v24 = vpop.f32.mrf.mxu3 }
 0x885   :  { %v5046_v1 = vadd.f32 %v5045_v24, %v4932_v50  ;;  %v4933_v56 = vpop.f32.mrf.mxu1 }
 0x886   :  { %v4934_v63 = vadd.f32 %v4933_v56, %v4819_v23  ;;  %v4718_v21 = vpop.f32.mrf.mxu2 }
 0x887   :  { %v5111_v14 = vpack.c.bf16 %v5046_v1, %v4704_v32  ;;  %v4832_v37 = vpop.f32.mrf.mxu0  ;;  %v4719_v31 = vadd.f32 %v4718_v21, %v10530_v6 }
 0x889   :  { %5156 = vst.msk [vmem:[%s10878_s6 + $0xd0] sm:$0xff] %vm10570_vm14, %v5111_v14 }
 0x88c   :  { %v5047_v55 = vpop.f32.mrf.mxu3 }
 0x88d   :  { %v5048_v18 = vadd.f32 %v5047_v55, %v4934_v63  ;;  %v4936_v9 = vpop.f32.mrf.mxu1 }
 0x88e   :  { %v4937_v58 = vadd.f32 %v4936_v9, %v4822_v54  ;;  %v4720_v61 = vpop.f32.mrf.mxu2 }
 0x88f   :  { %v5112_v35 = vpack.c.bf16 %v5048_v18, %v4706_v42  ;;  %v4834_v2 = vpop.f32.mrf.mxu0  ;;  %v4721_v24 = vadd.f32 %v4720_v61, %v10532_v53 }
 0x891   :  { %5157 = vst.msk [vmem:[%s10878_s6 + $0xd8] sm:$0xff] %vm10570_vm14, %v5112_v35 }
 0x894   :  { %v5050_v39 = vpop.f32.mrf.mxu3 }
 0x895   :  { %v5051_v17 = vadd.f32 %v5050_v39, %v4937_v58  ;;  %v4938_v29 = vpop.f32.mrf.mxu1 }
 0x896   :  { %v4939_v15 = vadd.f32 %v4938_v29, %v4824_v45  ;;  %v4723_v25 = vpop.f32.mrf.mxu2 }
 0x897   :  { %v5113_v26 = vpack.c.bf16 %v5051_v17, %v4709_v11  ;;  %v4837_v19 = vpop.f32.mrf.mxu0  ;;  %v4724_v55 = vadd.f32 %v4723_v25, %v10538_v13 }
 0x899   :  { %5158 = vst.msk [vmem:[%s10878_s6 + $0xe0] sm:$0xff] %vm10570_vm14, %v5113_v26 }
 0x89c   :  { %v5052_v5 = vpop.f32.mrf.mxu3 }
 0x89d   :  { %v5053_v49 = vadd.f32 %v5052_v5, %v4939_v15  ;;  %v4941_v34 = vpop.f32.mrf.mxu1 }
 0x89e   :  { %v4942_v47 = vadd.f32 %v4941_v34, %v4827_v48  ;;  %v4725_v32 = vpop.f32.mrf.mxu2 }
 0x89f   :  { %v5114_v30 = vpack.c.bf16 %v5053_v49, %v4711_v33  ;;  %v4839_v14 = vpop.f32.mrf.mxu0  ;;  %v4726_v39 = vadd.f32 %v4725_v32, %v10540_v43 }
 0x8a1   :  { %5159 = vst.msk [vmem:[%s10878_s6 + $0xe8] sm:$0xff] %vm10570_vm14, %v5114_v30 }
 0x8a4   :  { %v5055_v23 = vpop.f32.mrf.mxu3 }
 0x8a5   :  { %v5056_v57 = vadd.f32 %v5055_v23, %v4942_v47  ;;  %v4943_v51 = vpop.f32.mrf.mxu1 }
 0x8a6   :  { %v4944_v44 = vadd.f32 %v4943_v51, %v4829_v36  ;;  %v4728_v18 = vpop.f32.mrf.mxu2 }
 0x8a7   :  { %v5115_v27 = vpack.c.bf16 %v5056_v57, %v4714_v62  ;;  %v4842_v53 = vpop.f32.mrf.mxu0  ;;  %v4729_v15 = vadd.f32 %v4728_v18, %v10546_v28 }
 0x8a9   :  { %5160 = vst.msk [vmem:[%s10878_s6 + $0xf0] sm:$0xff] %vm10570_vm14, %v5115_v27 }
 0x8ac   :  { %v5057_v20 = vpop.f32.mrf.mxu3 }
 0x8ad   :  { %v5058_v59 = vadd.f32 %v5057_v20, %v4944_v44  ;;  %v4946_v54 = vpop.f32.mrf.mxu1 }
 0x8ae   :  { %v4947_v41 = vadd.f32 %v4946_v54, %v4832_v37  ;;  %v4730_v29 = vpop.f32.mrf.mxu2 }
 0x8af   :  { %v5116_v10 = vpack.c.bf16 %v5058_v59, %v4716_v40  ;;  %v4844_v36 = vpop.f32.mrf.mxu0  ;;  %v4731_v37 = vadd.f32 %v4730_v29, %v10548_v4 }
 0x8b1   :  { %5161 = vst.msk [vmem:[%s10878_s6 + $0xf8] sm:$0xff] %vm10570_vm14, %v5116_v10 }
 0x8b4   :  { %v5060_v16 = vpop.f32.mrf.mxu3 }
 0x8b5   :  { %v5061_v8 = vadd.f32 %v5060_v16, %v4947_v41  ;;  %v4948_v7 = vpop.f32.mrf.mxu1 }
 0x8b6   :  { %v4949_v22 = vadd.f32 %v4948_v7, %v4834_v2  ;;  %v4733_v43 = vpop.f32.mrf.mxu2 }
 0x8b7   :  { %v5117_v50 = vpack.c.bf16 %v5061_v8, %v4719_v31  ;;  %v4847_v21 = vpop.f32.mrf.mxu0  ;;  %v4734_v51 = vadd.f32 %v4733_v43, %v10554_v3 }
 0x8b9   :  { %5162 = vst.msk [vmem:[%s10878_s6 + $0x100] sm:$0xff] %vm10570_vm14, %v5117_v50 }
 0x8bc   :  { %v5062_v45 = vpop.f32.mrf.mxu3 }
 0x8bd   :  { %v5063_v1 = vadd.f32 %v5062_v45, %v4949_v22  ;;  %v4951_v56 = vpop.f32.mrf.mxu1 }
 0x8be   :  { %v4952_v6 = vadd.f32 %v4951_v56, %v4837_v19  ;;  %v4735_v27 = vpop.f32.mrf.mxu2 }
 0x8bf   :  { %v5118_v0 = vpack.c.bf16 %v5063_v1, %v4721_v24  ;;  %v4849_v2 = vpop.f32.mrf.mxu0  ;;  %v4736_v59 = vadd.f32 %v4735_v27, %v10556_v46 }
 0x8c1   :  { %5163 = vst.msk [vmem:[%s10878_s6 + $0x108] sm:$0xff] %vm10570_vm14, %v5118_v0 }
 0x8c4   :  { %v5065_v63 = vpop.f32.mrf.mxu3 }
 0x8c5   :  { %v5066_v48 = vadd.f32 %v5065_v63, %v4952_v6  ;;  %v4953_v42 = vpop.f32.mrf.mxu1 }
 0x8c6   :  { %v4954_v35 = vadd.f32 %v4953_v42, %v4839_v14  ;;  %v4738_v25 = vpop.f32.mrf.mxu2 }
 0x8c7   :  { %v5119_v9 = vpack.c.bf16 %v5066_v48, %v4724_v55  ;;  %v4852_v3 = vpop.f32.mrf.mxu0  ;;  %v4739_v31 = vadd.f32 %v4738_v25, %v10562_v12 }
 0x8c9   :  { %5164 = vst.msk [vmem:[%s10878_s6 + $0x110] sm:$0xff] %vm10570_vm14, %v5119_v9 }
 0x8cc   :  { %v5067_v58 = vpop.f32.mrf.mxu3 }
 0x8cd   :  { %v5068_v11 = vadd.f32 %v5067_v58, %v4954_v35  ;;  %v4956_v52 = vpop.f32.mrf.mxu1 }
 0x8ce   :  { %v4957_v13 = vadd.f32 %v4956_v52, %v4842_v53  ;;  %v4740_v46 = vpop.f32.mrf.mxu2 }
 0x8cf   :  { %v5120_v17 = vpack.c.bf16 %v5068_v11, %v4726_v39  ;;  %v4854_v22 = vpop.f32.mrf.mxu0  ;;  %v4741_v32 = vadd.f32 %v4740_v46, %v10564_v60 }
 0x8d1   :  { %5165 = vst.msk [vmem:[%s10878_s6 + $0x118] sm:$0xff] %vm10570_vm14, %v5120_v17 }
 0x8d4   :  { %v5070_v26 = vpop.f32.mrf.mxu3 }
 0x8d5   :  { %v5071_v5 = vadd.f32 %v5070_v26, %v4957_v13  ;;  %v4958_v33 = vpop.f32.mrf.mxu1 }
 0x8d6   :  { %v4959_v34 = vadd.f32 %v4958_v33, %v4844_v36 }
 0x8d7   :  { %v5121_v49 = vpack.c.bf16 %v5071_v5, %v4729_v15 }
 0x8d9   :  { %5166 = vst.msk [vmem:[%s10878_s6 + $0x120] sm:$0xff] %vm10570_vm14, %v5121_v49 }
 0x8dc   :  { %v5072_v30 = vpop.f32.mrf.mxu3 }
 0x8dd   :  { %v5073_v47 = vadd.f32 %v5072_v30, %v4959_v34  ;;  %v4961_v23 = vpop.f32.mrf.mxu1 }
 0x8de   :  { %v4962_v28 = vadd.f32 %v4961_v23, %v4847_v21 }
 0x8df   :  { %v5122_v62 = vpack.c.bf16 %v5073_v47, %v4731_v37 }
 0x8e1   :  { %5167 = vst.msk [vmem:[%s10878_s6 + $0x128] sm:$0xff] %vm10570_vm14, %v5122_v62 }
 0x8e4   :  { %v5075_v57 = vpop.f32.mrf.mxu3 }
 0x8e5   :  { %v5076_v61 = vadd.f32 %v5075_v57, %v4962_v28  ;;  %v4963_v44 = vpop.f32.mrf.mxu1 }
 0x8e6   :  { %v4964_v4 = vadd.f32 %v4963_v44, %v4849_v2 }
 0x8e7   :  { %v5123_v20 = vpack.c.bf16 %v5076_v61, %v4734_v51 }
 0x8e9   :  { %5168 = vst.msk [vmem:[%s10878_s6 + $0x130] sm:$0xff] %vm10570_vm14, %v5123_v20 }
 0x8ec   :  { %v5077_v40 = vpop.f32.mrf.mxu3 }
 0x8ed   :  { %v5078_v54 = vadd.f32 %v5077_v40, %v4964_v4  ;;  %v4966_v10 = vpop.f32.mrf.mxu1 }
 0x8ee   :  { %v4967_v16 = vadd.f32 %v4966_v10, %v4852_v3 }
 0x8ef   :  { %v5124_v41 = vpack.c.bf16 %v5078_v54, %v4736_v59 }
 0x8f1   :  { %5169 = vst.msk [vmem:[%s10878_s6 + $0x138] sm:$0xff] %vm10570_vm14, %v5124_v41 }
 0x8f4   :  { %v5080_v19 = vpop.f32.mrf.mxu3 }
 0x8f5   :  { %v5081_v8 = vadd.f32 %v5080_v19, %v4967_v16  ;;  %v4968_v50 = vpop.f32.mrf.mxu1 }
 0x8f6   :  { %v4969_v45 = vadd.f32 %v4968_v50, %v4854_v22 }
 0x8f7   :  { %v5125_v7 = vpack.c.bf16 %v5081_v8, %v4739_v31 }
 0x8f9   :  { %5170 = vst.msk [vmem:[%s10878_s6 + $0x140] sm:$0xff] %vm10570_vm14, %v5125_v7 }
 0x8fc   :  { %v5082_v24 = vpop.f32.mrf.mxu3 }
 0x8fd   :  { %v5083_v1 = vadd.f32 %v5082_v24, %v4969_v45 }
 0x8ff   :  { %v5126_v56 = vpack.c.bf16 %v5083_v1, %v4741_v32 }
 0x901   :  { %5171 = vst.msk [vmem:[%s10878_s6 + $0x148] sm:$0xff] %vm10570_vm14, %v5126_v56 }
 0x902   :  { %5176 = vsyncmov [#allocation4] }
 0x905   :  { %s5177_s19 = vpop.sfrf %5176 }
 0x906   :  { %p5953_p0 = scmp.ne.s32.totalorder %s5177_s19, 0 }
 0x908   :  { %5181 = shalt.err (%p5953_p0)  }
 0x909   :  { %5183 = vsyncmov [#allocation4 + $0x1] }
 0x90c   :  { %s5184_s20 = vpop.sfrf %5183 }
 0x90d   :  { %p5954_p1 = scmp.ne.s32.totalorder %s5184_s20, 0 }
 0x90f   :  { %5188 = shalt.err (%p5954_p1)  }

</bundles_post_ra>
